<compile_context>
chip_gen: v6e
topology: v6e:2x2x1
jax: 0.10.0
libtpu: 0.0.40
codegen_flags: <defaults>
</compile_context>

<pallas_src>
import functools

import jax
import jax.numpy as jnp
from jax.experimental import pallas as pl
from jax.experimental.pallas import tpu as pltpu


# For output parity dy (or dx) in {0, 1}, the two contributing taps are
# (row offset into the zero-padded input, kernel index) pairs:
#   dy = 0 : out[2m]   = xp[m+1] @ W[k=1] + xp[m+0] @ W[k=3]
#   dy = 1 : out[2m+1] = xp[m+1] @ W[k=2] + xp[m+2] @ W[k=0]
_DECONV_TAPS = (((1, 1), (0, 3)), ((1, 2), (2, 0)))

_BN_EPS = 1e-5
_HEADS = {"hm": 1, "wh": 2, "reg": 2}
_HEAD_ORDER = ("hm", "wh", "reg")
_HEAD_CONV = 64
_CPAD = 128          # final head outputs packed + padded to 128 lanes (unmasked vst)
_VMEM_LIMIT = 48 * 1024 * 1024


# --------------------------------------------------------------------------------
# Kernel 1: ConvTranspose2d(k=4, s=2, p=1) + folded BatchNorm + ReLU  (per layer)
# --------------------------------------------------------------------------------
def _deconv_bn_relu_kernel(xp_ref, w_ref, scale_ref, shift_ref, o_ref, *, H, W, Cin):
    # xp_ref   : (1, H+2, W+2, Cin)   zero-padded input (one batch item)
    # w_ref    : (16, Cin, Cout)      sub-kernels, indexed [parity*4 + tap]
    # scale/shift : (1, Cout)         folded BN affine
    # o_ref    : (4, H, W, Cout)      4 parity planes for this batch item
    Cout = o_ref.shape[-1]
    for dy in range(2):
        for dx in range(2):
            parity = dy * 2 + dx
            acc = None
            for a in range(2):
                ry = _DECONV_TAPS[dy][a][0]
                for b in range(2):
                    rx = _DECONV_TAPS[dx][b][0]
                    xs = xp_ref[0, ry:ry + H, rx:rx + W, :].reshape(H * W, Cin)
                    t = jnp.dot(xs, w_ref[parity * 4 + a * 2 + b],
                                preferred_element_type=jnp.float32)
                    acc = t if acc is None else acc + t
            y = acc * scale_ref[...] + shift_ref[...]
            y = jnp.maximum(y, 0.0)
            o_ref[parity] = y.reshape(H, W, Cout).astype(o_ref.dtype)


def _deconv_bn_relu(x, wsub, scale, shift):
    """x: (B, H, W, Cin) NHWC  ->  (B, 2H, 2W, Cout) NHWC."""
    B, H, W, Cin = x.shape
    Cout = wsub.shape[-1]
    xp = jnp.pad(x, ((0, 0), (1, 1), (1, 1), (0, 0)))
    kernel = functools.partial(_deconv_bn_relu_kernel, H=H, W=W, Cin=Cin)
    out = pl.pallas_call(
        kernel,
        out_shape=jax.ShapeDtypeStruct((B * 4, H, W, Cout), x.dtype),
        grid=(B,),
        in_specs=[
            pl.BlockSpec((1, H + 2, W + 2, Cin), lambda b: (b, 0, 0, 0)),
            pl.BlockSpec((16, Cin, Cout), lambda b: (0, 0, 0)),       # resident
            pl.BlockSpec((1, Cout), lambda b: (0, 0)),                # resident
            pl.BlockSpec((1, Cout), lambda b: (0, 0)),                # resident
        ],
        out_specs=pl.BlockSpec((4, H, W, Cout), lambda b: (b, 0, 0, 0)),
        compiler_params=pltpu.CompilerParams(
            dimension_semantics=("parallel",),
            vmem_limit_bytes=_VMEM_LIMIT),
    )(xp, wsub, scale, shift)
    # interleave the 4 parity planes -> (B, 2H, 2W, Cout)
    out = out.reshape(B, 2, 2, H, W, Cout)
    out = out.transpose(0, 3, 1, 4, 2, 5).reshape(B, 2 * H, 2 * W, Cout)
    return out


# --------------------------------------------------------------------------------
# Kernel 2: all three heads fused:
#   stacked Conv3x3(256->192) + bias + ReLU + block-diagonal Conv1x1(192->128 padded)
# --------------------------------------------------------------------------------
def _heads_kernel(xp_ref, w1_ref, b1_ref, w2_ref, b2_ref, o_ref, acc_ref, *, H, W, Cin):
    # xp_ref : (1, H+2, W+2, Cin); w1_ref: (9, Cin, Cmid); b1_ref: (1, Cmid)
    # w2_ref : (Cmid, Cpad);       b2_ref: (1, Cpad);      o_ref : (1, H, W, Cpad)
    # acc_ref: (H*W, Cmid) f32 VMEM scratch accumulator
    acc_ref[...] = jnp.zeros_like(acc_ref)
    for ky in range(3):
        for kx in range(3):
            xs = xp_ref[0, ky:ky + H, kx:kx + W, :].reshape(H * W, Cin)
            acc_ref[...] += jnp.dot(xs, w1_ref[ky * 3 + kx],
                                    preferred_element_type=jnp.float32)
    h = jnp.maximum(acc_ref[...] + b1_ref[...], 0.0)
    y = jnp.dot(h, w2_ref[...], preferred_element_type=jnp.float32) + b2_ref[...]
    o_ref[0] = y.reshape(H, W, o_ref.shape[-1]).astype(o_ref.dtype)


def _heads_conv(x, w1, b1, w2, b2):
    """x: (B, H, W, Cin) -> packed head outputs (B, H, W, Cpad)."""
    B, H, W, Cin = x.shape
    Cmid = w1.shape[-1]
    Cpad = w2.shape[-1]
    xp = jnp.pad(x, ((0, 0), (1, 1), (1, 1), (0, 0)))
    kernel = functools.partial(_heads_kernel, H=H, W=W, Cin=Cin)
    return pl.pallas_call(
        kernel,
        out_shape=jax.ShapeDtypeStruct((B, H, W, Cpad), x.dtype),
        grid=(B,),
        in_specs=[
            pl.BlockSpec((1, H + 2, W + 2, Cin), lambda b: (b, 0, 0, 0)),
            pl.BlockSpec((9, Cin, Cmid), lambda b: (0, 0, 0)),        # resident
            pl.BlockSpec((1, Cmid), lambda b: (0, 0)),                # resident
            pl.BlockSpec((Cmid, Cpad), lambda b: (0, 0)),             # resident
            pl.BlockSpec((1, Cpad), lambda b: (0, 0)),                # resident
        ],
        out_specs=pl.BlockSpec((1, H, W, Cpad), lambda b: (b, 0, 0, 0)),
        scratch_shapes=[pltpu.VMEM((H * W, Cmid), jnp.float32)],
        compiler_params=pltpu.CompilerParams(
            dimension_semantics=("parallel",),
            vmem_limit_bytes=_VMEM_LIMIT),
    )(xp, w1, b1, w2, b2)


# --------------------------------------------------------------------------------
# Parameter construction (PyTorch layouts) and packing into kernel layouts
# --------------------------------------------------------------------------------
def init_params(key):
    C = 256
    p = {}
    for i in (1, 2):
        key, k1, k2, k3, k4, k5 = jax.random.split(key, 6)
        p["deconv%d" % i] = dict(
            w=0.05 * jax.random.normal(k1, (C, C, 4, 4), jnp.float32),   # (Cin, Cout, kH, kW)
            gamma=1.0 + 0.1 * jax.random.normal(k2, (C,), jnp.float32),
            beta=0.1 * jax.random.normal(k3, (C,), jnp.float32),
            mean=0.1 * jax.random.normal(k4, (C,), jnp.float32),
            var=1.0 + jax.random.uniform(k5, (C,), jnp.float32),
        )
    for head in _HEAD_ORDER:
        nout = _HEADS[head]
        key, k1, k2, k3, k4 = jax.random.split(key, 5)
        p[head] = dict(
            w1=0.05 * jax.random.normal(k1, (_HEAD_CONV, C, 3, 3), jnp.float32),  # OIHW
            b1=0.1 * jax.random.normal(k2, (_HEAD_CONV,), jnp.float32),
            w2=0.5 * jax.random.normal(k3, (nout, _HEAD_CONV, 1, 1), jnp.float32),
            b2=(jnp.full((nout,), -2.19, jnp.float32) if head == "hm"
                else 0.1 * jax.random.normal(k4, (nout,), jnp.float32)),
        )
    return p


def _pack_deconv_weight(w_t):
    """(Cin, Cout, 4, 4) torch ConvTranspose2d weight -> (16, Cin, Cout) sub-kernels."""
    blocks = []
    for dy in range(2):
        for dx in range(2):
            for a in range(2):
                ky = _DECONV_TAPS[dy][a][1]
                for b in range(2):
                    kx = _DECONV_TAPS[dx][b][1]
                    blocks.append(w_t[:, :, ky, kx])
    return jnp.stack(blocks, axis=0)


def pack_params(p):
    packed = {}
    for i in (1, 2):
        d = p["deconv%d" % i]
        s = d["gamma"] / jnp.sqrt(d["var"] + _BN_EPS)
        packed["deconv%d" % i] = dict(
            wsub=_pack_deconv_weight(d["w"]),
            scale=s[None, :],
            shift=(d["beta"] - d["mean"] * s)[None, :],
        )
    # Stack the three 3x3 convs along output channels (lane axis), and build a
    # block-diagonal, lane-padded (Cmid, 128) matrix for the three 1x1 convs.
    w1 = jnp.concatenate(
        [jnp.transpose(p[h]["w1"], (2, 3, 1, 0)).reshape(9, 256, _HEAD_CONV)
         for h in _HEAD_ORDER], axis=-1)                       # (9, 256, 192)
    b1 = jnp.concatenate([p[h]["b1"] for h in _HEAD_ORDER])[None, :]
    Cmid = w1.shape[-1]
    w2 = jnp.zeros((Cmid, _CPAD), jnp.float32)
    b2 = jnp.zeros((1, _CPAD), jnp.float32)
    slices = {}
    col = 0
    for idx, h in enumerate(_HEAD_ORDER):
        nout = _HEADS[h]
        w2 = w2.at[idx * _HEAD_CONV:(idx + 1) * _HEAD_CONV, col:col + nout].set(
            jnp.transpose(p[h]["w2"][:, :, 0, 0], (1, 0)))
        b2 = b2.at[0, col:col + nout].set(p[h]["b2"])
        slices[h] = (col, nout)
        col += nout
    packed["heads"] = dict(w1=w1, b1=b1, w2=w2, b2=b2, slices=slices)
    return packed


# --------------------------------------------------------------------------------
# Forward pass (matches Centernet_head.forward, inference mode)
# --------------------------------------------------------------------------------
def centernet_head_forward(x_nchw, packed):
    x = jnp.transpose(x_nchw, (0, 2, 3, 1))                    # NHWC, C=256 lane-dense
    for i in (1, 2):
        d = packed["deconv%d" % i]
        x = _deconv_bn_relu(x, d["wsub"], d["scale"], d["shift"])
    hp = packed["heads"]
    y = _heads_conv(x, hp["w1"], hp["b1"], hp["w2"], hp["b2"])  # (B, Hf, Wf, 128)
    ret = {}
    for h, (col, nout) in hp["slices"].items():
        ret[h] = jnp.transpose(y[..., col:col + nout], (0, 3, 1, 2))   # NCHW like torch
    return [ret]


# --------------------------------------------------------------------------------
# Pure-JAX reference (lax convolutions) for verification
# --------------------------------------------------------------------------------
def _reference_forward(x_nchw, p):
    def conv_transpose(x, w):  # torch ConvTranspose2d(k=4, s=2, p=1, bias=False)
        w_oihw = jnp.transpose(w[:, :, ::-1, ::-1], (1, 0, 2, 3))
        return jax.lax.conv_general_dilated(
            x, w_oihw, window_strides=(1, 1), padding=((2, 2), (2, 2)),
            lhs_dilation=(2, 2), dimension_numbers=("NCHW", "OIHW", "NCHW"),
            precision=jax.lax.Precision.HIGHEST)

    def bn(x, d):
        s = d["gamma"] / jnp.sqrt(d["var"] + _BN_EPS)
        return x * s[None, :, None, None] + (d["beta"] - d["mean"] * s)[None, :, None, None]

    def conv(x, w, b, pad):
        y = jax.lax.conv_general_dilated(
            x, w, window_strides=(1, 1), padding=((pad, pad), (pad, pad)),
            dimension_numbers=("NCHW", "OIHW", "NCHW"),
            precision=jax.lax.Precision.HIGHEST)
        return y + b[None, :, None, None]

    h = x_nchw
    for i in (1, 2):
        d = p["deconv%d" % i]
        h = jax.nn.relu(bn(conv_transpose(h, d["w"]), d))
    ret = {}
    for head in _HEAD_ORDER:
        hp = p[head]
        t = jax.nn.relu(conv(h, hp["w1"], hp["b1"], 1))
        ret[head] = conv(t, hp["w2"], hp["b2"], 0)
    return [ret]


if __name__ == "__main__":
    key = jax.random.PRNGKey(0)
    k_x, k_p = jax.random.split(key)

    # Small shapes: the module hard-codes 256 input channels; feature map 8x8.
    B, C, H, W = 2, 256, 8, 8
    x = jax.random.normal(k_x, (B, C, H, W), dtype=jnp.float32)

    raw_params = init_params(k_p)
    packed = pack_params(raw_params)

    out = centernet_head_forward(x, packed)
    out = jax.block_until_ready(out)

    ref = _reference_forward(x, raw_params)
    for h in _HEAD_ORDER:
        o, r = out[0][h], ref[0][h]
        assert o.shape == r.shape, (h, o.shape, r.shape)
        max_diff = float(jnp.max(jnp.abs(o - r)))
        assert jnp.allclose(o, r, atol=5e-2, rtol=5e-2), (h, max_diff)
    assert out[0]["hm"].shape == (B, 1, 4 * H, 4 * W)
    assert out[0]["wh"].shape == (B, 2, 4 * H, 4 * W)
    assert out[0]["reg"].shape == (B, 2, 4 * H, 4 * W)

    print("KERNEL_OK")
</pallas_src>

<mosaic_0001>
module attributes {stable_mosaic.version = 11 : i64} {
  func.func @_deconv_bn_relu_kernel(%arg0: i32, %arg1: memref<1x10x10x256xf32, #tpu.memory_space<vmem>>, %arg2: memref<16x256x256xf32, #tpu.memory_space<vmem>>, %arg3: memref<1x256xf32, #tpu.memory_space<vmem>>, %arg4: memref<1x256xf32, #tpu.memory_space<vmem>>, %arg5: memref<4x8x8x256xf32, #tpu.memory_space<vmem>>) attributes {dimension_semantics = [#tpu.dimension_semantics<parallel>], iteration_bounds = array<i64: 2>, scalar_prefetch = 0 : i64, scratch_operands = 0 : i64, tpu.core_type = #tpu.core_type<tc>, window_params = [{transform_indices = @transform_0, window_bounds = array<i64: 1, 10, 10, 256>}, {pipeline_mode = #tpu.pipeline_mode<synchronous>, transform_indices = @transform_1, window_bounds = array<i64: 16, 256, 256>}, {pipeline_mode = #tpu.pipeline_mode<synchronous>, transform_indices = @transform_2, window_bounds = array<i64: 1, 256>}, {pipeline_mode = #tpu.pipeline_mode<synchronous>, transform_indices = @transform_3, window_bounds = array<i64: 1, 256>}, {transform_indices = @transform_4, window_bounds = array<i64: 4, 8, 8, 256>}]} {
    %c0 = arith.constant 0 : index
    %c1 = arith.constant 1 : index
    %c1_0 = arith.constant 1 : index
    %c0_1 = arith.constant 0 : index
    %0 = vector.load %arg1[%c0, %c1, %c1_0, %c0_1] : memref<1x10x10x256xf32, #tpu.memory_space<vmem>>, vector<1x8x8x256xf32>
    %1 = vector.shape_cast %0 : vector<1x8x8x256xf32> to vector<8x8x256xf32>
    %2 = vector.shape_cast %1 : vector<8x8x256xf32> to vector<64x256xf32>
    %c0_2 = arith.constant 0 : index
    %c0_3 = arith.constant 0 : index
    %c0_4 = arith.constant 0 : index
    %3 = vector.load %arg2[%c0_2, %c0_3, %c0_4] : memref<16x256x256xf32, #tpu.memory_space<vmem>>, vector<1x256x256xf32>
    %4 = vector.shape_cast %3 : vector<1x256x256xf32> to vector<256x256xf32>
    %cst = arith.constant dense<0.000000e+00> : vector<64x256xf32>
    %5 = tpu.matmul %2, %4, %cst {dimension_numbers = #tpu.dot_dimension_numbers<[1], [0], [0], [1], [0, 0, 1, 1], [], []>} : vector<64x256xf32>, vector<256x256xf32>, vector<64x256xf32> -> vector<64x256xf32>
    %c0_5 = arith.constant 0 : index
    %c1_6 = arith.constant 1 : index
    %c0_7 = arith.constant 0 : index
    %c0_8 = arith.constant 0 : index
    %6 = vector.load %arg1[%c0_5, %c1_6, %c0_7, %c0_8] : memref<1x10x10x256xf32, #tpu.memory_space<vmem>>, vector<1x8x8x256xf32>
    %7 = vector.shape_cast %6 : vector<1x8x8x256xf32> to vector<8x8x256xf32>
    %8 = vector.shape_cast %7 : vector<8x8x256xf32> to vector<64x256xf32>
    %c1_9 = arith.constant 1 : index
    %c0_10 = arith.constant 0 : index
    %c0_11 = arith.constant 0 : index
    %9 = vector.load %arg2[%c1_9, %c0_10, %c0_11] : memref<16x256x256xf32, #tpu.memory_space<vmem>>, vector<1x256x256xf32>
    %10 = vector.shape_cast %9 : vector<1x256x256xf32> to vector<256x256xf32>
    %cst_12 = arith.constant dense<0.000000e+00> : vector<64x256xf32>
    %11 = tpu.matmul %8, %10, %cst_12 {dimension_numbers = #tpu.dot_dimension_numbers<[1], [0], [0], [1], [0, 0, 1, 1], [], []>} : vector<64x256xf32>, vector<256x256xf32>, vector<64x256xf32> -> vector<64x256xf32>
    %12 = arith.addf %5, %11 : vector<64x256xf32>
    %c0_13 = arith.constant 0 : index
    %c0_14 = arith.constant 0 : index
    %c1_15 = arith.constant 1 : index
    %c0_16 = arith.constant 0 : index
    %13 = vector.load %arg1[%c0_13, %c0_14, %c1_15, %c0_16] : memref<1x10x10x256xf32, #tpu.memory_space<vmem>>, vector<1x8x8x256xf32>
    %14 = vector.shape_cast %13 : vector<1x8x8x256xf32> to vector<8x8x256xf32>
    %15 = vector.shape_cast %14 : vector<8x8x256xf32> to vector<64x256xf32>
    %c2 = arith.constant 2 : index
    %c0_17 = arith.constant 0 : index
    %c0_18 = arith.constant 0 : index
    %16 = vector.load %arg2[%c2, %c0_17, %c0_18] : memref<16x256x256xf32, #tpu.memory_space<vmem>>, vector<1x256x256xf32>
    %17 = vector.shape_cast %16 : vector<1x256x256xf32> to vector<256x256xf32>
    %cst_19 = arith.constant dense<0.000000e+00> : vector<64x256xf32>
    %18 = tpu.matmul %15, %17, %cst_19 {dimension_numbers = #tpu.dot_dimension_numbers<[1], [0], [0], [1], [0, 0, 1, 1], [], []>} : vector<64x256xf32>, vector<256x256xf32>, vector<64x256xf32> -> vector<64x256xf32>
    %19 = arith.addf %12, %18 : vector<64x256xf32>
    %c0_20 = arith.constant 0 : index
    %c0_21 = arith.constant 0 : index
    %c0_22 = arith.constant 0 : index
    %c0_23 = arith.constant 0 : index
    %20 = vector.load %arg1[%c0_20, %c0_21, %c0_22, %c0_23] : memref<1x10x10x256xf32, #tpu.memory_space<vmem>>, vector<1x8x8x256xf32>
    %21 = vector.shape_cast %20 : vector<1x8x8x256xf32> to vector<8x8x256xf32>
    %22 = vector.shape_cast %21 : vector<8x8x256xf32> to vector<64x256xf32>
    %c3 = arith.constant 3 : index
    %c0_24 = arith.constant 0 : index
    %c0_25 = arith.constant 0 : index
    %23 = vector.load %arg2[%c3, %c0_24, %c0_25] : memref<16x256x256xf32, #tpu.memory_space<vmem>>, vector<1x256x256xf32>
    %24 = vector.shape_cast %23 : vector<1x256x256xf32> to vector<256x256xf32>
    %cst_26 = arith.constant dense<0.000000e+00> : vector<64x256xf32>
    %25 = tpu.matmul %22, %24, %cst_26 {dimension_numbers = #tpu.dot_dimension_numbers<[1], [0], [0], [1], [0, 0, 1, 1], [], []>} : vector<64x256xf32>, vector<256x256xf32>, vector<64x256xf32> -> vector<64x256xf32>
    %26 = arith.addf %19, %25 : vector<64x256xf32>
    %c0_27 = arith.constant 0 : index
    %c0_28 = arith.constant 0 : index
    %27 = vector.load %arg3[%c0_27, %c0_28] : memref<1x256xf32, #tpu.memory_space<vmem>>, vector<1x256xf32>
    %28 = vector.broadcast %27 : vector<1x256xf32> to vector<64x256xf32>
    %29 = arith.mulf %26, %28 : vector<64x256xf32>
    %c0_29 = arith.constant 0 : index
    %c0_30 = arith.constant 0 : index
    %30 = vector.load %arg4[%c0_29, %c0_30] : memref<1x256xf32, #tpu.memory_space<vmem>>, vector<1x256xf32>
    %31 = vector.broadcast %30 : vector<1x256xf32> to vector<64x256xf32>
    %32 = arith.addf %29, %31 : vector<64x256xf32>
    %cst_31 = arith.constant 0.000000e+00 : f32
    %33 = vector.broadcast %cst_31 : f32 to vector<64x256xf32>
    %34 = arith.maximumf %32, %33 : vector<64x256xf32>
    %35 = vector.shape_cast %34 : vector<64x256xf32> to vector<8x8x256xf32>
    %c0_32 = arith.constant 0 : index
    %c0_33 = arith.constant 0 : index
    %c0_34 = arith.constant 0 : index
    %c0_35 = arith.constant 0 : index
    %36 = vector.load %arg5[%c0_32, %c0_33, %c0_34, %c0_35] : memref<4x8x8x256xf32, #tpu.memory_space<vmem>>, vector<1x8x8x256xf32>
    %37 = vector.shape_cast %36 : vector<1x8x8x256xf32> to vector<8x8x256xf32>
    %38 = vector.shape_cast %35 : vector<8x8x256xf32> to vector<1x8x8x256xf32>
    tpu.vector_store %arg5[%c0_32, %c0_33, %c0_34, %c0_35], %38 {strides = array<i32>} : memref<4x8x8x256xf32, #tpu.memory_space<vmem>>, vector<1x8x8x256xf32>,
    %c0_36 = arith.constant 0 : index
    %c1_37 = arith.constant 1 : index
    %c1_38 = arith.constant 1 : index
    %c0_39 = arith.constant 0 : index
    %39 = vector.load %arg1[%c0_36, %c1_37, %c1_38, %c0_39] : memref<1x10x10x256xf32, #tpu.memory_space<vmem>>, vector<1x8x8x256xf32>
    %40 = vector.shape_cast %39 : vector<1x8x8x256xf32> to vector<8x8x256xf32>
    %41 = vector.shape_cast %40 : vector<8x8x256xf32> to vector<64x256xf32>
    %c4 = arith.constant 4 : index
    %c0_40 = arith.constant 0 : index
    %c0_41 = arith.constant 0 : index
    %42 = vector.load %arg2[%c4, %c0_40, %c0_41] : memref<16x256x256xf32, #tpu.memory_space<vmem>>, vector<1x256x256xf32>
    %43 = vector.shape_cast %42 : vector<1x256x256xf32> to vector<256x256xf32>
    %cst_42 = arith.constant dense<0.000000e+00> : vector<64x256xf32>
    %44 = tpu.matmul %41, %43, %cst_42 {dimension_numbers = #tpu.dot_dimension_numbers<[1], [0], [0], [1], [0, 0, 1, 1], [], []>} : vector<64x256xf32>, vector<256x256xf32>, vector<64x256xf32> -> vector<64x256xf32>
    %c0_43 = arith.constant 0 : index
    %c1_44 = arith.constant 1 : index
    %c2_45 = arith.constant 2 : index
    %c0_46 = arith.constant 0 : index
    %45 = vector.load %arg1[%c0_43, %c1_44, %c2_45, %c0_46] : memref<1x10x10x256xf32, #tpu.memory_space<vmem>>, vector<1x8x8x256xf32>
    %46 = vector.shape_cast %45 : vector<1x8x8x256xf32> to vector<8x8x256xf32>
    %47 = vector.shape_cast %46 : vector<8x8x256xf32> to vector<64x256xf32>
    %c5 = arith.constant 5 : index
    %c0_47 = arith.constant 0 : index
    %c0_48 = arith.constant 0 : index
    %48 = vector.load %arg2[%c5, %c0_47, %c0_48] : memref<16x256x256xf32, #tpu.memory_space<vmem>>, vector<1x256x256xf32>
    %49 = vector.shape_cast %48 : vector<1x256x256xf32> to vector<256x256xf32>
    %cst_49 = arith.constant dense<0.000000e+00> : vector<64x256xf32>
    %50 = tpu.matmul %47, %49, %cst_49 {dimension_numbers = #tpu.dot_dimension_numbers<[1], [0], [0], [1], [0, 0, 1, 1], [], []>} : vector<64x256xf32>, vector<256x256xf32>, vector<64x256xf32> -> vector<64x256xf32>
    %51 = arith.addf %44, %50 : vector<64x256xf32>
    %c0_50 = arith.constant 0 : index
    %c0_51 = arith.constant 0 : index
    %c1_52 = arith.constant 1 : index
    %c0_53 = arith.constant 0 : index
    %52 = vector.load %arg1[%c0_50, %c0_51, %c1_52, %c0_53] : memref<1x10x10x256xf32, #tpu.memory_space<vmem>>, vector<1x8x8x256xf32>
    %53 = vector.shape_cast %52 : vector<1x8x8x256xf32> to vector<8x8x256xf32>
    %54 = vector.shape_cast %53 : vector<8x8x256xf32> to vector<64x256xf32>
    %c6 = arith.constant 6 : index
    %c0_54 = arith.constant 0 : index
    %c0_55 = arith.constant 0 : index
    %55 = vector.load %arg2[%c6, %c0_54, %c0_55] : memref<16x256x256xf32, #tpu.memory_space<vmem>>, vector<1x256x256xf32>
    %56 = vector.shape_cast %55 : vector<1x256x256xf32> to vector<256x256xf32>
    %cst_56 = arith.constant dense<0.000000e+00> : vector<64x256xf32>
    %57 = tpu.matmul %54, %56, %cst_56 {dimension_numbers = #tpu.dot_dimension_numbers<[1], [0], [0], [1], [0, 0, 1, 1], [], []>} : vector<64x256xf32>, vector<256x256xf32>, vector<64x256xf32> -> vector<64x256xf32>
    %58 = arith.addf %51, %57 : vector<64x256xf32>
    %c0_57 = arith.constant 0 : index
    %c0_58 = arith.constant 0 : index
    %c2_59 = arith.constant 2 : index
    %c0_60 = arith.constant 0 : index
    %59 = vector.load %arg1[%c0_57, %c0_58, %c2_59, %c0_60] : memref<1x10x10x256xf32, #tpu.memory_space<vmem>>, vector<1x8x8x256xf32>
    %60 = vector.shape_cast %59 : vector<1x8x8x256xf32> to vector<8x8x256xf32>
    %61 = vector.shape_cast %60 : vector<8x8x256xf32> to vector<64x256xf32>
    %c7 = arith.constant 7 : index
    %c0_61 = arith.constant 0 : index
    %c0_62 = arith.constant 0 : index
    %62 = vector.load %arg2[%c7, %c0_61, %c0_62] : memref<16x256x256xf32, #tpu.memory_space<vmem>>, vector<1x256x256xf32>
    %63 = vector.shape_cast %62 : vector<1x256x256xf32> to vector<256x256xf32>
    %cst_63 = arith.constant dense<0.000000e+00> : vector<64x256xf32>
    %64 = tpu.matmul %61, %63, %cst_63 {dimension_numbers = #tpu.dot_dimension_numbers<[1], [0], [0], [1], [0, 0, 1, 1], [], []>} : vector<64x256xf32>, vector<256x256xf32>, vector<64x256xf32> -> vector<64x256xf32>
    %65 = arith.addf %58, %64 : vector<64x256xf32>
    %c0_64 = arith.constant 0 : index
    %c0_65 = arith.constant 0 : index
    %66 = vector.load %arg3[%c0_64, %c0_65] : memref<1x256xf32, #tpu.memory_space<vmem>>, vector<1x256xf32>
    %67 = vector.broadcast %66 : vector<1x256xf32> to vector<64x256xf32>
    %68 = arith.mulf %65, %67 : vector<64x256xf32>
    %c0_66 = arith.constant 0 : index
    %c0_67 = arith.constant 0 : index
    %69 = vector.load %arg4[%c0_66, %c0_67] : memref<1x256xf32, #tpu.memory_space<vmem>>, vector<1x256xf32>
    %70 = vector.broadcast %69 : vector<1x256xf32> to vector<64x256xf32>
    %71 = arith.addf %68, %70 : vector<64x256xf32>
    %cst_68 = arith.constant 0.000000e+00 : f32
    %72 = vector.broadcast %cst_68 : f32 to vector<64x256xf32>
    %73 = arith.maximumf %71, %72 : vector<64x256xf32>
    %74 = vector.shape_cast %73 : vector<64x256xf32> to vector<8x8x256xf32>
    %c1_69 = arith.constant 1 : index
    %c0_70 = arith.constant 0 : index
    %c0_71 = arith.constant 0 : index
    %c0_72 = arith.constant 0 : index
    %75 = vector.load %arg5[%c1_69, %c0_70, %c0_71, %c0_72] : memref<4x8x8x256xf32, #tpu.memory_space<vmem>>, vector<1x8x8x256xf32>
    %76 = vector.shape_cast %75 : vector<1x8x8x256xf32> to vector<8x8x256xf32>
    %77 = vector.shape_cast %74 : vector<8x8x256xf32> to vector<1x8x8x256xf32>
    tpu.vector_store %arg5[%c1_69, %c0_70, %c0_71, %c0_72], %77 {strides = array<i32>} : memref<4x8x8x256xf32, #tpu.memory_space<vmem>>, vector<1x8x8x256xf32>,
    %c0_73 = arith.constant 0 : index
    %c1_74 = arith.constant 1 : index
    %c1_75 = arith.constant 1 : index
    %c0_76 = arith.constant 0 : index
    %78 = vector.load %arg1[%c0_73, %c1_74, %c1_75, %c0_76] : memref<1x10x10x256xf32, #tpu.memory_space<vmem>>, vector<1x8x8x256xf32>
    %79 = vector.shape_cast %78 : vector<1x8x8x256xf32> to vector<8x8x256xf32>
    %80 = vector.shape_cast %79 : vector<8x8x256xf32> to vector<64x256xf32>
    %c8 = arith.constant 8 : index
    %c0_77 = arith.constant 0 : index
    %c0_78 = arith.constant 0 : index
    %81 = vector.load %arg2[%c8, %c0_77, %c0_78] : memref<16x256x256xf32, #tpu.memory_space<vmem>>, vector<1x256x256xf32>
    %82 = vector.shape_cast %81 : vector<1x256x256xf32> to vector<256x256xf32>
    %cst_79 = arith.constant dense<0.000000e+00> : vector<64x256xf32>
    %83 = tpu.matmul %80, %82, %cst_79 {dimension_numbers = #tpu.dot_dimension_numbers<[1], [0], [0], [1], [0, 0, 1, 1], [], []>} : vector<64x256xf32>, vector<256x256xf32>, vector<64x256xf32> -> vector<64x256xf32>
    %c0_80 = arith.constant 0 : index
    %c1_81 = arith.constant 1 : index
    %c0_82 = arith.constant 0 : index
    %c0_83 = arith.constant 0 : index
    %84 = vector.load %arg1[%c0_80, %c1_81, %c0_82, %c0_83] : memref<1x10x10x256xf32, #tpu.memory_space<vmem>>, vector<1x8x8x256xf32>
    %85 = vector.shape_cast %84 : vector<1x8x8x256xf32> to vector<8x8x256xf32>
    %86 = vector.shape_cast %85 : vector<8x8x256xf32> to vector<64x256xf32>
    %c9 = arith.constant 9 : index
    %c0_84 = arith.constant 0 : index
    %c0_85 = arith.constant 0 : index
    %87 = vector.load %arg2[%c9, %c0_84, %c0_85] : memref<16x256x256xf32, #tpu.memory_space<vmem>>, vector<1x256x256xf32>
    %88 = vector.shape_cast %87 : vector<1x256x256xf32> to vector<256x256xf32>
    %cst_86 = arith.constant dense<0.000000e+00> : vector<64x256xf32>
    %89 = tpu.matmul %86, %88, %cst_86 {dimension_numbers = #tpu.dot_dimension_numbers<[1], [0], [0], [1], [0, 0, 1, 1], [], []>} : vector<64x256xf32>, vector<256x256xf32>, vector<64x256xf32> -> vector<64x256xf32>
    %90 = arith.addf %83, %89 : vector<64x256xf32>
    %c0_87 = arith.constant 0 : index
    %c2_88 = arith.constant 2 : index
    %c1_89 = arith.constant 1 : index
    %c0_90 = arith.constant 0 : index
    %91 = vector.load %arg1[%c0_87, %c2_88, %c1_89, %c0_90] : memref<1x10x10x256xf32, #tpu.memory_space<vmem>>, vector<1x8x8x256xf32>
    %92 = vector.shape_cast %91 : vector<1x8x8x256xf32> to vector<8x8x256xf32>
    %93 = vector.shape_cast %92 : vector<8x8x256xf32> to vector<64x256xf32>
    %c10 = arith.constant 10 : index
    %c0_91 = arith.constant 0 : index
    %c0_92 = arith.constant 0 : index
    %94 = vector.load %arg2[%c10, %c0_91, %c0_92] : memref<16x256x256xf32, #tpu.memory_space<vmem>>, vector<1x256x256xf32>
    %95 = vector.shape_cast %94 : vector<1x256x256xf32> to vector<256x256xf32>
    %cst_93 = arith.constant dense<0.000000e+00> : vector<64x256xf32>
    %96 = tpu.matmul %93, %95, %cst_93 {dimension_numbers = #tpu.dot_dimension_numbers<[1], [0], [0], [1], [0, 0, 1, 1], [], []>} : vector<64x256xf32>, vector<256x256xf32>, vector<64x256xf32> -> vector<64x256xf32>
    %97 = arith.addf %90, %96 : vector<64x256xf32>
    %c0_94 = arith.constant 0 : index
    %c2_95 = arith.constant 2 : index
    %c0_96 = arith.constant 0 : index
    %c0_97 = arith.constant 0 : index
    %98 = vector.load %arg1[%c0_94, %c2_95, %c0_96, %c0_97] : memref<1x10x10x256xf32, #tpu.memory_space<vmem>>, vector<1x8x8x256xf32>
    %99 = vector.shape_cast %98 : vector<1x8x8x256xf32> to vector<8x8x256xf32>
    %100 = vector.shape_cast %99 : vector<8x8x256xf32> to vector<64x256xf32>
    %c11 = arith.constant 11 : index
    %c0_98 = arith.constant 0 : index
    %c0_99 = arith.constant 0 : index
    %101 = vector.load %arg2[%c11, %c0_98, %c0_99] : memref<16x256x256xf32, #tpu.memory_space<vmem>>, vector<1x256x256xf32>
    %102 = vector.shape_cast %101 : vector<1x256x256xf32> to vector<256x256xf32>
    %cst_100 = arith.constant dense<0.000000e+00> : vector<64x256xf32>
    %103 = tpu.matmul %100, %102, %cst_100 {dimension_numbers = #tpu.dot_dimension_numbers<[1], [0], [0], [1], [0, 0, 1, 1], [], []>} : vector<64x256xf32>, vector<256x256xf32>, vector<64x256xf32> -> vector<64x256xf32>
    %104 = arith.addf %97, %103 : vector<64x256xf32>
    %c0_101 = arith.constant 0 : index
    %c0_102 = arith.constant 0 : index
    %105 = vector.load %arg3[%c0_101, %c0_102] : memref<1x256xf32, #tpu.memory_space<vmem>>, vector<1x256xf32>
    %106 = vector.broadcast %105 : vector<1x256xf32> to vector<64x256xf32>
    %107 = arith.mulf %104, %106 : vector<64x256xf32>
    %c0_103 = arith.constant 0 : index
    %c0_104 = arith.constant 0 : index
    %108 = vector.load %arg4[%c0_103, %c0_104] : memref<1x256xf32, #tpu.memory_space<vmem>>, vector<1x256xf32>
    %109 = vector.broadcast %108 : vector<1x256xf32> to vector<64x256xf32>
    %110 = arith.addf %107, %109 : vector<64x256xf32>
    %cst_105 = arith.constant 0.000000e+00 : f32
    %111 = vector.broadcast %cst_105 : f32 to vector<64x256xf32>
    %112 = arith.maximumf %110, %111 : vector<64x256xf32>
    %113 = vector.shape_cast %112 : vector<64x256xf32> to vector<8x8x256xf32>
    %c2_106 = arith.constant 2 : index
    %c0_107 = arith.constant 0 : index
    %c0_108 = arith.constant 0 : index
    %c0_109 = arith.constant 0 : index
    %114 = vector.load %arg5[%c2_106, %c0_107, %c0_108, %c0_109] : memref<4x8x8x256xf32, #tpu.memory_space<vmem>>, vector<1x8x8x256xf32>
    %115 = vector.shape_cast %114 : vector<1x8x8x256xf32> to vector<8x8x256xf32>
    %116 = vector.shape_cast %113 : vector<8x8x256xf32> to vector<1x8x8x256xf32>
    tpu.vector_store %arg5[%c2_106, %c0_107, %c0_108, %c0_109], %116 {strides = array<i32>} : memref<4x8x8x256xf32, #tpu.memory_space<vmem>>, vector<1x8x8x256xf32>,
    %c0_110 = arith.constant 0 : index
    %c1_111 = arith.constant 1 : index
    %c1_112 = arith.constant 1 : index
    %c0_113 = arith.constant 0 : index
    %117 = vector.load %arg1[%c0_110, %c1_111, %c1_112, %c0_113] : memref<1x10x10x256xf32, #tpu.memory_space<vmem>>, vector<1x8x8x256xf32>
    %118 = vector.shape_cast %117 : vector<1x8x8x256xf32> to vector<8x8x256xf32>
    %119 = vector.shape_cast %118 : vector<8x8x256xf32> to vector<64x256xf32>
    %c12 = arith.constant 12 : index
    %c0_114 = arith.constant 0 : index
    %c0_115 = arith.constant 0 : index
    %120 = vector.load %arg2[%c12, %c0_114, %c0_115] : memref<16x256x256xf32, #tpu.memory_space<vmem>>, vector<1x256x256xf32>
    %121 = vector.shape_cast %120 : vector<1x256x256xf32> to vector<256x256xf32>
    %cst_116 = arith.constant dense<0.000000e+00> : vector<64x256xf32>
    %122 = tpu.matmul %119, %121, %cst_116 {dimension_numbers = #tpu.dot_dimension_numbers<[1], [0], [0], [1], [0, 0, 1, 1], [], []>} : vector<64x256xf32>, vector<256x256xf32>, vector<64x256xf32> -> vector<64x256xf32>
    %c0_117 = arith.constant 0 : index
    %c1_118 = arith.constant 1 : index
    %c2_119 = arith.constant 2 : index
    %c0_120 = arith.constant 0 : index
    %123 = vector.load %arg1[%c0_117, %c1_118, %c2_119, %c0_120] : memref<1x10x10x256xf32, #tpu.memory_space<vmem>>, vector<1x8x8x256xf32>
    %124 = vector.shape_cast %123 : vector<1x8x8x256xf32> to vector<8x8x256xf32>
    %125 = vector.shape_cast %124 : vector<8x8x256xf32> to vector<64x256xf32>
    %c13 = arith.constant 13 : index
    %c0_121 = arith.constant 0 : index
    %c0_122 = arith.constant 0 : index
    %126 = vector.load %arg2[%c13, %c0_121, %c0_122] : memref<16x256x256xf32, #tpu.memory_space<vmem>>, vector<1x256x256xf32>
    %127 = vector.shape_cast %126 : vector<1x256x256xf32> to vector<256x256xf32>
    %cst_123 = arith.constant dense<0.000000e+00> : vector<64x256xf32>
    %128 = tpu.matmul %125, %127, %cst_123 {dimension_numbers = #tpu.dot_dimension_numbers<[1], [0], [0], [1], [0, 0, 1, 1], [], []>} : vector<64x256xf32>, vector<256x256xf32>, vector<64x256xf32> -> vector<64x256xf32>
    %129 = arith.addf %122, %128 : vector<64x256xf32>
    %c0_124 = arith.constant 0 : index
    %c2_125 = arith.constant 2 : index
    %c1_126 = arith.constant 1 : index
    %c0_127 = arith.constant 0 : index
    %130 = vector.load %arg1[%c0_124, %c2_125, %c1_126, %c0_127] : memref<1x10x10x256xf32, #tpu.memory_space<vmem>>, vector<1x8x8x256xf32>
    %131 = vector.shape_cast %130 : vector<1x8x8x256xf32> to vector<8x8x256xf32>
    %132 = vector.shape_cast %131 : vector<8x8x256xf32> to vector<64x256xf32>
    %c14 = arith.constant 14 : index
    %c0_128 = arith.constant 0 : index
    %c0_129 = arith.constant 0 : index
    %133 = vector.load %arg2[%c14, %c0_128, %c0_129] : memref<16x256x256xf32, #tpu.memory_space<vmem>>, vector<1x256x256xf32>
    %134 = vector.shape_cast %133 : vector<1x256x256xf32> to vector<256x256xf32>
    %cst_130 = arith.constant dense<0.000000e+00> : vector<64x256xf32>
    %135 = tpu.matmul %132, %134, %cst_130 {dimension_numbers = #tpu.dot_dimension_numbers<[1], [0], [0], [1], [0, 0, 1, 1], [], []>} : vector<64x256xf32>, vector<256x256xf32>, vector<64x256xf32> -> vector<64x256xf32>
    %136 = arith.addf %129, %135 : vector<64x256xf32>
    %c0_131 = arith.constant 0 : index
    %c2_132 = arith.constant 2 : index
    %c2_133 = arith.constant 2 : index
    %c0_134 = arith.constant 0 : index
    %137 = vector.load %arg1[%c0_131, %c2_132, %c2_133, %c0_134] : memref<1x10x10x256xf32, #tpu.memory_space<vmem>>, vector<1x8x8x256xf32>
    %138 = vector.shape_cast %137 : vector<1x8x8x256xf32> to vector<8x8x256xf32>
    %139 = vector.shape_cast %138 : vector<8x8x256xf32> to vector<64x256xf32>
    %c15 = arith.constant 15 : index
    %c0_135 = arith.constant 0 : index
    %c0_136 = arith.constant 0 : index
    %140 = vector.load %arg2[%c15, %c0_135, %c0_136] : memref<16x256x256xf32, #tpu.memory_space<vmem>>, vector<1x256x256xf32>
    %141 = vector.shape_cast %140 : vector<1x256x256xf32> to vector<256x256xf32>
    %cst_137 = arith.constant dense<0.000000e+00> : vector<64x256xf32>
    %142 = tpu.matmul %139, %141, %cst_137 {dimension_numbers = #tpu.dot_dimension_numbers<[1], [0], [0], [1], [0, 0, 1, 1], [], []>} : vector<64x256xf32>, vector<256x256xf32>, vector<64x256xf32> -> vector<64x256xf32>
    %143 = arith.addf %136, %142 : vector<64x256xf32>
    %c0_138 = arith.constant 0 : index
    %c0_139 = arith.constant 0 : index
    %144 = vector.load %arg3[%c0_138, %c0_139] : memref<1x256xf32, #tpu.memory_space<vmem>>, vector<1x256xf32>
    %145 = vector.broadcast %144 : vector<1x256xf32> to vector<64x256xf32>
    %146 = arith.mulf %143, %145 : vector<64x256xf32>
    %c0_140 = arith.constant 0 : index
    %c0_141 = arith.constant 0 : index
    %147 = vector.load %arg4[%c0_140, %c0_141] : memref<1x256xf32, #tpu.memory_space<vmem>>, vector<1x256xf32>
    %148 = vector.broadcast %147 : vector<1x256xf32> to vector<64x256xf32>
    %149 = arith.addf %146, %148 : vector<64x256xf32>
    %cst_142 = arith.constant 0.000000e+00 : f32
    %150 = vector.broadcast %cst_142 : f32 to vector<64x256xf32>
    %151 = arith.maximumf %149, %150 : vector<64x256xf32>
    %152 = vector.shape_cast %151 : vector<64x256xf32> to vector<8x8x256xf32>
    %c3_143 = arith.constant 3 : index
    %c0_144 = arith.constant 0 : index
    %c0_145 = arith.constant 0 : index
    %c0_146 = arith.constant 0 : index
    %153 = vector.load %arg5[%c3_143, %c0_144, %c0_145, %c0_146] : memref<4x8x8x256xf32, #tpu.memory_space<vmem>>, vector<1x8x8x256xf32>
    %154 = vector.shape_cast %153 : vector<1x8x8x256xf32> to vector<8x8x256xf32>
    %155 = vector.shape_cast %152 : vector<8x8x256xf32> to vector<1x8x8x256xf32>
    tpu.vector_store %arg5[%c3_143, %c0_144, %c0_145, %c0_146], %155 {strides = array<i32>} : memref<4x8x8x256xf32, #tpu.memory_space<vmem>>, vector<1x8x8x256xf32>,
    return
  }
  func.func @transform_0(%arg0: i32) -> (i32, i32, i32, i32) {
    %c0_i32 = arith.constant 0 : i32
    %c0_i32_0 = arith.constant 0 : i32
    %c0_i32_1 = arith.constant 0 : i32
    %c0_i32_2 = arith.constant 0 : i32
    return %arg0, %c0_i32, %c0_i32_0, %c0_i32_1 : i32, i32, i32, i32
  }
  func.func @transform_1(%arg0: i32) -> (i32, i32, i32) {
    %c0_i32 = arith.constant 0 : i32
    %c0_i32_0 = arith.constant 0 : i32
    %c0_i32_1 = arith.constant 0 : i32
    %c0_i32_2 = arith.constant 0 : i32
    return %c0_i32, %c0_i32_0, %c0_i32_1 : i32, i32, i32
  }
  func.func @transform_2(%arg0: i32) -> (i32, i32) {
    %c0_i32 = arith.constant 0 : i32
    %c0_i32_0 = arith.constant 0 : i32
    %c0_i32_1 = arith.constant 0 : i32
    return %c0_i32, %c0_i32_0 : i32, i32
  }
  func.func @transform_3(%arg0: i32) -> (i32, i32) {
    %c0_i32 = arith.constant 0 : i32
    %c0_i32_0 = arith.constant 0 : i32
    %c0_i32_1 = arith.constant 0 : i32
    return %c0_i32, %c0_i32_0 : i32, i32
  }
  func.func @transform_4(%arg0: i32) -> (i32, i32, i32, i32) {
    %c0_i32 = arith.constant 0 : i32
    %c0_i32_0 = arith.constant 0 : i32
    %c0_i32_1 = arith.constant 0 : i32
    %c0_i32_2 = arith.constant 0 : i32
    return %arg0, %c0_i32, %c0_i32_0, %c0_i32_1 : i32, i32, i32, i32
  }
}

</mosaic_0001>

<bundles_post_ra>
// kernel: tpu_custom_call.1
= control target key start
LH: loop header
LB: loop body
LE: loop exit
PB: predicated region body
PF: predicated region fallthrough
CT: control target
= control target key end

     0   :  { %9 = vsyncpa [#allocation3], 0  ;;  %s7523_s0 = inlined_call_operand.vmem [shape: f32[2,10,10,256], index: 0, kind: input, shape index: {}]   ;;  %s7524_s1 = inlined_call_operand.hbm [shape: f32[16,256,256], index: 1, kind: input, shape index: {}]   ;;  %s7525_s2 = inlined_call_operand.hbm [shape: f32[1,256], index: 2, kind: input, shape index: {}]   ;;  %s7526_s3 = inlined_call_operand.hbm [shape: f32[1,256], index: 3, kind: input, shape index: {}]   ;;  %s7527_s4 = inlined_call_operand.hbm [shape: f32[8,8,8,256], index: 4, kind: output, shape index: {}]  }
   0x1   :  { %10 = vsyncpa [#allocation6], 0 }
   0x2   :  { %11 = vsyncpa [#allocation4], 0 }
   0x3   :  { %13 = vsyncpa [#allocation4 + $0x1], 0  ;;  %s5939_s15 = smov 0   ;;  %s5941_s16 = smov 0  }
   0x4   :  { %s5943_s17 = smov 0   ;;  %s5945_s18 = smov 0  }
   0x5 LB: > { %s5960_s19 = sadd.s32 4294967295, %s5904_s18   ;;  %s5279_s20 = sadd.s32 4294967294, %s5904_s18   ;;  %s5904_s18 = sphi %s5945_s18, %s7545_s18   ;;  %s5900_s17 = sphi %s5943_s17, %s7544_s17   ;;  %s5896_s16 = sphi %s5941_s16, %s7543_s16   ;;  %s5892_s15 = sphi %s5939_s15, %s7542_s15  }
   0x6   : > { %s5964_s21 = sadd.s32 1, %s5904_s18   ;;  %s115_s22 = sadd.s32 1, %s5900_s17 }
   0x7   : > { %s112_s23 = ssub.s32 %s5904_s18, %s5964_s21  ;;  %p125_p0 = scmp.ne.s32.totalorder %s5900_s17, %s5896_s16 }
   0x8   : > { %p113_p1 = scmp.eq.s32.totalorder %s112_s23, 0  ;;  %p126_p2 = scmp.eq.s32.totalorder %s5960_s19, 1 }
   0x9   : > { %p131_p3 = scmp.ne.s32.totalorder %s5896_s16, %s5892_s15  ;;  %p132_p4 = scmp.eq.s32.totalorder %s5279_s20, 1 }
   0xa   : > { %s5975_s24 = scalar_select %p113_p1, %s5900_s17, %s115_s22  }
   0xb   : > { %p5977_p5 = por %p126_p2, %p125_p0  ;;  %p5981_p6 = por %p132_p4, %p131_p3 }
   0xc   : > { %p5280_p7 = scmp.ge.s32.totalorder %s5904_s18, 1  ;;  %p139_p8 = scmp.lt.s32.totalorder %s5904_s18, 3 }
   0xd   : > { %s7531_s25 = scalar_select %p5977_p5, 1, 0 }
   0xe   : > { %s7532_s26 = scalar_select %p5981_p6, 1, 0 }
   0xf   : > { %p7528_p9 = scmp.eq.s32.totalorder %s5960_s19, 0  ;;  %p5988_p10 = pnand %p5280_p7, %p139_p8 }
  0x10   : > { %s5906_s28 = smov [#allocation5]   ;;  %s5907_s30 = smov [#allocation2]  }
  0x11   : > { %s7533_s27 = scalar_select %p5988_p10, 1, 0 }
  0x12   : > { %s165_s29 = sshll.u32 %s5906_s28, 4  ;;  %p5698_p11 = pneg %p5988_p10  ;;  %s166_s29 = int_to_ptr.vmem [resolvable:$true] %s165_s29 }
  0x13   : > { %s151_s5 = sshll.u32 %s5907_s30, 4  ;;  %s5908_s7 = smov [#allocation7]   ;;  %s152_s5 = int_to_ptr.vmem [resolvable:$true] %s151_s5 }
  0x14   : > { %p5996_p12 = pnand %p7528_p9, %p5698_p11  ;;  %s176_s8 = sshll.u32 %s5908_s7, 4  ;;  %s177_s8 = int_to_ptr.vmem [resolvable:$true] %s176_s8 }
  0x15   : > { %s5769_s9 = scalar_lea.vmem %s166_s29, 32  ;;  %p5777_p3 = scmp.lt.s32.totalorder %s166_s29, %s166_s29 }
  0x16   : > { %p5760_p13 = pneg %p5996_p12  ;;  %p5770_p0 = scmp.ne.s32.totalorder %s166_s29, %s5769_s9 }
  0x17   : > { %p5778_p4 = scmp.lt.s32.totalorder %s5769_s9, %s5769_s9 }
  0x18   : > { %p5772_p1 = pnand %p5770_p0, %p5760_p13 }
  0x19   : > { %p5779_p7 = por %p5778_p4, %p5777_p3 }
  0x1a   : > { %p5773_p2 = pneg %p5772_p1 }
  0x1c   : > { %p5780_p8 = pnand %p5779_p7, %p5773_p2 }
  0x1e   : > { %5783 = shalt.err (!%p5780_p8)
}
  0x1f   : > { %5704 = dma.hbm_to_vmem [thread:$0]  (!%p5996_p12), %s7525_s2, 32, %s166_s29, [#allocation6]  }
  0x20   : > { %s5795_s12 = scalar_lea.vmem %s152_s5, 131072  ;;  %p5803_p0 = scmp.lt.s32.totalorder %s152_s5, %s152_s5 }
  0x21   : > { %p5796_p11 = scmp.ne.s32.totalorder %s152_s5, %s5795_s12  ;;  %p5804_p1 = scmp.lt.s32.totalorder %s5795_s12, %s5795_s12 }
  0x23   : > { %p5798_p9 = pnand %p5796_p11, %p5760_p13  ;;  %p5805_p5 = por %p5804_p1, %p5803_p0 }
  0x25   : > { %p5799_p6 = pneg %p5798_p9 }
  0x27   : > { %p5806_p10 = pnand %p5805_p5, %p5799_p6 }
  0x29   : > { %5809 = shalt.err (!%p5806_p10)
}
  0x2a   : > { %s5909_s13 = smov 256   ;;  %s5910_s14 = smov 16  }
  0x2b   : > { %5701 = dma.hbm_to_vmem [thread:$0]  (!%p5996_p12), %s7524_s1, 131072, %s152_s5, [#allocation3], %s5909_s13, %s5909_s13, %s5910_s14  }
  0x2c   : > { %s5821_s23 = scalar_lea.vmem %s177_s8, 32  ;;  %p5829_p4 = scmp.lt.s32.totalorder %s177_s8, %s177_s8 }
  0x2d   : > { %p5822_p2 = scmp.ne.s32.totalorder %s177_s8, %s5821_s23  ;;  %p5830_p7 = scmp.lt.s32.totalorder %s5821_s23, %s5821_s23 }
  0x2f   : > { %p5824_p9 = pnand %p5822_p2, %p5760_p13  ;;  %p5831_p5 = por %p5830_p7, %p5829_p4 }
  0x31   : > { %p5825_p3 = pneg %p5824_p9 }
  0x33   : > { %p5832_p6 = pnand %p5831_p5, %p5825_p3 }
  0x35   : > { %5835 = shalt.err (!%p5832_p6)
}
  0x36   : > { %5707 = dma.hbm_to_vmem [thread:$0]  (!%p5996_p12), %s7526_s3, 32, %s177_s8, [#allocation6]  }
  0x37   : > { %p7535_p10 = scmp.ne.s32.totalorder %s7533_s27, 0 }
  0x38   : > { %p7536_p8 = scmp.eq.s32.totalorder (!%p7535_p10), %s5960_s19, 0 }
  0x39   : > { %197 = sbr.rel (%p7535_p10) target bundleno = 939 (0x3ab), region = 36 }
  0x3e   : > { %5879 = dma.done.wait (%p7536_p8), [#allocation3], 131072   ;;  %p7537_p13 = pmov %p7536_p8 }
  0x3f   : > { %p7538_p11 = pmov %p7536_p8 }
  0x40   : > { %5881 = vsyncadd (%p7537_p13), [#allocation3], 4294836224 }
  0x41   : > { %5883 = dma.done.wait (%p7538_p11), [#allocation6], 64   ;;  %p7539_p0 = pmov %p7536_p8 }
  0x42   : > { %v479_v0 = vld [vmem:[#allocation2 + $0x2f8] sm:$0xff]  ;;  %v478_v2 = vld [vmem:[#allocation2 + $0x2f0] sm:$0xff]  ;;  %v477_v4 = vld [vmem:[#allocation2 + $0x2e8] sm:$0xff]  ;;  %p231_p12 = scmp.lt.s32.totalorder %s5960_s19, 1  ;;  %vm302_vm0 = vcmask 1046528   ;;  %vm1615_vm1 = vcmask 1045504  }
  0x43   : > { %5885 = vsyncadd (%p7539_p0), [#allocation6], 4294967232  ;;  %v398_v1 = vld [vmem:[#allocation2 + $0xf8] sm:$0xff]  ;;  %512 = vmatprep.subr.mxu0 %v479_v0  ;;  %v397_v3 = vld [vmem:[#allocation2 + $0xf0] sm:$0xff]  ;;  %s228_s8 = sand.u32 1, %s5896_s16   ;;  %s5682_s11 = sshll.u32 %s5960_s19, 13 }
  0x44   : > { %625 = vmatprep.subr.mxu1 %v398_v1  ;;  %v396_v5 = vld [vmem:[#allocation2 + $0xe8] sm:$0xff]  ;;  %513 = vmatpush1.msra.mxu0 %v478_v2  ;;  %v476_v6 = vld [vmem:[#allocation2 + $0x2e0] sm:$0xff]  ;;  %v475_v8 = vld [vmem:[#allocation2 + $0x2d8] sm:$0xff]  ;;  %s6040_s27 = scalar_select %p231_p12, %s5960_s19, 1 }
  0x45   : > { %626 = vmatpush1.msra.mxu1 %v397_v3  ;;  %v395_v7 = vld [vmem:[#allocation2 + $0xe0] sm:$0xff]  ;;  %514 = vmatprep.subr.mxu0 %v477_v4  ;;  %v394_v9 = vld [vmem:[#allocation2 + $0xd8] sm:$0xff]  ;;  %v474_v10 = vld [vmem:[#allocation2 + $0x2d0] sm:$0xff]  ;;  %s6507_s9 = sshll.u32 %s228_s8, 9  ;;  %s7475_s20 = scalar_lea.hbm %s7527_s4, %s5682_s11 }
  0x46   : > { %627 = vmatprep.subr.mxu1 %v396_v5  ;;  %v393_v11 = vld [vmem:[#allocation2 + $0xd0] sm:$0xff]  ;;  %515 = vmatpush1.msra.mxu0 %v476_v6  ;;  %v473_v12 = vld [vmem:[#allocation2 + $0x2c8] sm:$0xff]  ;;  %v472_v14 = vld [vmem:[#allocation2 + $0x2c0] sm:$0xff]  ;;  %s5683_s30 = smul.u32 320, %s6040_s27  ;;  %s6522_s10 = scalar_lea.vmem [#allocation8], %s6507_s9 }
  0x47   : > { %628 = vmatpush1.msra.mxu1 %v395_v7  ;;  %v392_v13 = vld [vmem:[#allocation2 + $0xc8] sm:$0xff]  ;;  %516 = vmatprep.subr.mxu0 %v475_v8  ;;  %v391_v15 = vld [vmem:[#allocation2 + $0xc0] sm:$0xff]  ;;  %v471_v16 = vld [vmem:[#allocation2 + $0x2b8] sm:$0xff]  ;;  %s5186_s12 = sshll.u32 %s6522_s10, 4  ;;  %s7483_s19 = scalar_lea.sflag [#allocation4], %s228_s8  ;;  %s7477_s12 = int_to_ptr.vmem [resolvable:$true] %s5186_s12 }
  0x48   : > { %629 = vmatprep.subr.mxu1 %v394_v9  ;;  %517 = vmatpush1.msra.mxu0 %v474_v10  ;;  %v390_v17 = vld [vmem:[#allocation2 + $0xb8] sm:$0xff]  ;;  %v470_v18 = vld [vmem:[#allocation2 + $0x2b0] sm:$0xff]  ;;  %v469_v20 = vld [vmem:[#allocation2 + $0x2a8] sm:$0xff]  ;;  %s6046_s7 = scalar_lea.vmem %s7523_s0, %s5683_s30  ;;  %s5836_s22 = scalar_lea.vmem %s7477_s12, 8192 }
  0x49   : > { %630 = vmatpush1.msra.mxu1 %v393_v11  ;;  %518 = vmatprep.subr.mxu0 %v473_v12  ;;  %v389_v19 = vld [vmem:[#allocation2 + $0xb0] sm:$0xff]  ;;  %v388_v21 = vld [vmem:[#allocation2 + $0xa8] sm:$0xff]  ;;  %v468_v22 = vld [vmem:[#allocation2 + $0x2a0] sm:$0xff]  ;;  %p5837_p1 = scmp.ne.s32.totalorder %s7477_s12, %s5836_s22  ;;  %p7540_p2 = scmp.ne.s32.totalorder %s7531_s25, 0 }
  0x4a   : > { %631 = vmatprep.subr.mxu1 %v392_v13  ;;  %519 = vmatpush1.msra.mxu0 %v472_v14  ;;  %v387_v23 = vld [vmem:[#allocation2 + $0xa0] sm:$0xff]  ;;  %v467_v24 = vld [vmem:[#allocation2 + $0x298] sm:$0xff]  ;;  %v466_v26 = vld [vmem:[#allocation2 + $0x290] sm:$0xff]  ;;  %s5911_s23 = smov [#allocation8]  }
  0x4b   : > { %632 = vmatpush1.msra.mxu1 %v391_v15  ;;  %520 = vmatprep.subr.mxu0 %v471_v16  ;;  %v386_v25 = vld [vmem:[#allocation2 + $0x98] sm:$0xff]  ;;  %v385_v27 = vld [vmem:[#allocation2 + $0x90] sm:$0xff]  ;;  %v465_v28 = vld [vmem:[#allocation2 + $0x288] sm:$0xff]  ;;  %p5838_p9 = pnand %p5837_p1, %p7540_p2  ;;  %s5840_s28 = sshll.u32 %s5911_s23, 4  ;;  %s5841_s28 = int_to_ptr.vmem [resolvable:$false] %s5840_s28 }
  0x4c   : > { %633 = vmatprep.subr.mxu1 %v390_v17  ;;  %521 = vmatpush1.msra.mxu0 %v470_v18  ;;  %v384_v29 = vld [vmem:[#allocation2 + $0x88] sm:$0xff]  ;;  %v464_v30 = vld [vmem:[#allocation2 + $0x280] sm:$0xff]  ;;  %v463_v32 = vld [vmem:[#allocation2 + $0x278] sm:$0xff]  ;;  %s5842_s29 = scalar_lea.vmem %s5841_s28, 16384  ;;  %p5843_p4 = scmp.lt.s32.totalorder %s7477_s12, %s5841_s28 }
  0x4d   : > { %634 = vmatpush1.msra.mxu1 %v389_v19  ;;  %522 = vmatprep.subr.mxu0 %v469_v20  ;;  %v383_v31 = vld [vmem:[#allocation2 + $0x80] sm:$0xff]  ;;  %v382_v33 = vld [vmem:[#allocation2 + $0x78] sm:$0xff]  ;;  %v462_v34 = vld [vmem:[#allocation2 + $0x270] sm:$0xff]  ;;  %p5839_p3 = pneg %p5838_p9  ;;  %p5844_p7 = scmp.lt.s32.totalorder %s5842_s29, %s5836_s22 }
  0x4e   : > { %635 = vmatprep.subr.mxu1 %v388_v21  ;;  %523 = vmatpush1.msra.mxu0 %v468_v22  ;;  %v381_v35 = vld [vmem:[#allocation2 + $0x70] sm:$0xff]  ;;  %v461_v36 = vld [vmem:[#allocation2 + $0x268] sm:$0xff]  ;;  %v460_v38 = vld [vmem:[#allocation2 + $0x260] sm:$0xff] }
  0x4f   : > { %636 = vmatpush1.msra.mxu1 %v387_v23  ;;  %524 = vmatprep.subr.mxu0 %v467_v24  ;;  %v380_v37 = vld [vmem:[#allocation2 + $0x68] sm:$0xff]  ;;  %v379_v39 = vld [vmem:[#allocation2 + $0x60] sm:$0xff]  ;;  %v459_v40 = vld [vmem:[#allocation2 + $0x258] sm:$0xff]  ;;  %p5845_p5 = por %p5844_p7, %p5843_p4 }
  0x50   : > { %637 = vmatprep.subr.mxu1 %v386_v25  ;;  %525 = vmatpush1.msra.mxu0 %v466_v26  ;;  %v378_v41 = vld [vmem:[#allocation2 + $0x58] sm:$0xff]  ;;  %v458_v42 = vld [vmem:[#allocation2 + $0x250] sm:$0xff]  ;;  %v457_v44 = vld [vmem:[#allocation2 + $0x248] sm:$0xff] }
  0x51   : > { %638 = vmatpush1.msra.mxu1 %v385_v27  ;;  %526 = vmatprep.subr.mxu0 %v465_v28  ;;  %v377_v43 = vld [vmem:[#allocation2 + $0x50] sm:$0xff]  ;;  %v376_v45 = vld [vmem:[#allocation2 + $0x48] sm:$0xff]  ;;  %v456_v46 = vld [vmem:[#allocation2 + $0x240] sm:$0xff]  ;;  %p5846_p6 = pnand %p5845_p5, %p5839_p3 }
  0x52   : > { %639 = vmatprep.subr.mxu1 %v384_v29  ;;  %527 = vmatpush1.msra.mxu0 %v464_v30  ;;  %v375_v47 = vld [vmem:[#allocation2 + $0x40] sm:$0xff]  ;;  %v455_v48 = vld [vmem:[#allocation2 + $0x238] sm:$0xff]  ;;  %v454_v50 = vld [vmem:[#allocation2 + $0x230] sm:$0xff] }
  0x53   : > { %640 = vmatpush1.msra.mxu1 %v383_v31  ;;  %528 = vmatprep.subr.mxu0 %v463_v32  ;;  %v374_v49 = vld [vmem:[#allocation2 + $0x38] sm:$0xff]  ;;  %v373_v51 = vld [vmem:[#allocation2 + $0x30] sm:$0xff]  ;;  %v453_v52 = vld [vmem:[#allocation2 + $0x228] sm:$0xff] }
  0x54   : > { %641 = vmatprep.subr.mxu1 %v382_v33  ;;  %529 = vmatpush1.msra.mxu0 %v462_v34  ;;  %v372_v53 = vld [vmem:[#allocation2 + $0x28] sm:$0xff]  ;;  %v452_v54 = vld [vmem:[#allocation2 + $0x220] sm:$0xff]  ;;  %v451_v56 = vld [vmem:[#allocation2 + $0x218] sm:$0xff] }
  0x55   : > { %642 = vmatpush1.msra.mxu1 %v381_v35  ;;  %530 = vmatprep.subr.mxu0 %v461_v36  ;;  %v371_v55 = vld [vmem:[#allocation2 + $0x20] sm:$0xff]  ;;  %v370_v57 = vld [vmem:[#allocation2 + $0x18] sm:$0xff]  ;;  %v450_v58 = vld [vmem:[#allocation2 + $0x210] sm:$0xff] }
  0x56   : > { %643 = vmatprep.subr.mxu1 %v380_v37  ;;  %531 = vmatpush1.msra.mxu0 %v460_v38  ;;  %v369_v59 = vld [vmem:[#allocation2 + $0x10] sm:$0xff]  ;;  %v449_v60 = vld [vmem:[#allocation2 + $0x208] sm:$0xff]  ;;  %v448_v62 = vld [vmem:[#allocation2 + $0x200] sm:$0xff] }
  0x57   : > { %644 = vmatpush1.msra.mxu1 %v379_v39  ;;  %532 = vmatprep.subr.mxu0 %v459_v40  ;;  %v368_v61 = vld [vmem:[#allocation2 + $0x8] sm:$0xff]  ;;  %v367_v63 = vld [vmem:[#allocation2] sm:$0xff]  ;;  %v511_v0 = vld [vmem:[#allocation2 + $0x3f8] sm:$0xff] }
  0x58   : > { %645 = vmatprep.subr.mxu1 %v378_v41  ;;  %533 = vmatpush1.msra.mxu0 %v458_v42  ;;  %v430_v1 = vld [vmem:[#allocation2 + $0x1f8] sm:$0xff]  ;;  %v510_v2 = vld [vmem:[#allocation2 + $0x3f0] sm:$0xff]  ;;  %v509_v4 = vld [vmem:[#allocation2 + $0x3e8] sm:$0xff] }
  0x59   : > { %646 = vmatpush1.msra.mxu1 %v377_v43  ;;  %534 = vmatprep.subr.mxu0 %v457_v44  ;;  %v429_v3 = vld [vmem:[#allocation2 + $0x1f0] sm:$0xff]  ;;  %v428_v5 = vld [vmem:[#allocation2 + $0x1e8] sm:$0xff]  ;;  %v508_v6 = vld [vmem:[#allocation2 + $0x3e0] sm:$0xff] }
  0x5a   : > { %647 = vmatprep.subr.mxu1 %v376_v45  ;;  %535 = vmatpush1.msra.mxu0 %v456_v46  ;;  %v427_v7 = vld [vmem:[#allocation2 + $0x1e0] sm:$0xff]  ;;  %v507_v8 = vld [vmem:[#allocation2 + $0x3d8] sm:$0xff]  ;;  %v506_v10 = vld [vmem:[#allocation2 + $0x3d0] sm:$0xff] }
  0x5b   : > { %648 = vmatpush1.msra.mxu1 %v375_v47  ;;  %536 = vmatprep.subr.mxu0 %v455_v48  ;;  %v426_v9 = vld [vmem:[#allocation2 + $0x1d8] sm:$0xff]  ;;  %v425_v11 = vld [vmem:[#allocation2 + $0x1d0] sm:$0xff]  ;;  %v505_v12 = vld [vmem:[#allocation2 + $0x3c8] sm:$0xff] }
  0x5c   : > { %649 = vmatprep.subr.mxu1 %v374_v49  ;;  %537 = vmatpush1.msra.mxu0 %v454_v50  ;;  %v424_v13 = vld [vmem:[#allocation2 + $0x1c8] sm:$0xff]  ;;  %v504_v14 = vld [vmem:[#allocation2 + $0x3c0] sm:$0xff]  ;;  %v503_v16 = vld [vmem:[#allocation2 + $0x3b8] sm:$0xff] }
  0x5d   : > { %650 = vmatpush1.msra.mxu1 %v373_v51  ;;  %538 = vmatprep.subr.mxu0 %v453_v52  ;;  %v423_v15 = vld [vmem:[#allocation2 + $0x1c0] sm:$0xff]  ;;  %v422_v17 = vld [vmem:[#allocation2 + $0x1b8] sm:$0xff]  ;;  %v502_v18 = vld [vmem:[#allocation2 + $0x3b0] sm:$0xff] }
  0x5e   : > { %651 = vmatprep.subr.mxu1 %v372_v53  ;;  %539 = vmatpush1.msra.mxu0 %v452_v54  ;;  %v421_v19 = vld [vmem:[#allocation2 + $0x1b0] sm:$0xff]  ;;  %v501_v20 = vld [vmem:[#allocation2 + $0x3a8] sm:$0xff]  ;;  %v500_v22 = vld [vmem:[#allocation2 + $0x3a0] sm:$0xff] }
  0x5f   : > { %652 = vmatpush1.msra.mxu1 %v371_v55  ;;  %540 = vmatprep.subr.mxu0 %v451_v56  ;;  %v420_v21 = vld [vmem:[#allocation2 + $0x1a8] sm:$0xff]  ;;  %v419_v23 = vld [vmem:[#allocation2 + $0x1a0] sm:$0xff]  ;;  %v499_v24 = vld [vmem:[#allocation2 + $0x398] sm:$0xff] }
  0x60   : > { %653 = vmatprep.subr.mxu1 %v370_v57  ;;  %541 = vmatpush1.msra.mxu0 %v450_v58  ;;  %v418_v25 = vld [vmem:[#allocation2 + $0x198] sm:$0xff]  ;;  %v498_v26 = vld [vmem:[#allocation2 + $0x390] sm:$0xff]  ;;  %v497_v28 = vld [vmem:[#allocation2 + $0x388] sm:$0xff] }
  0x61   : > { %654 = vmatpush1.msra.mxu1 %v369_v59  ;;  %542 = vmatprep.subr.mxu0 %v449_v60  ;;  %v417_v27 = vld [vmem:[#allocation2 + $0x190] sm:$0xff]  ;;  %v416_v29 = vld [vmem:[#allocation2 + $0x188] sm:$0xff]  ;;  %v496_v30 = vld [vmem:[#allocation2 + $0x380] sm:$0xff] }
  0x62   : > { %655 = vmatprep.subr.mxu1 %v368_v61  ;;  %543 = vmatpush1.msra.mxu0 %v448_v62  ;;  %v415_v31 = vld [vmem:[#allocation2 + $0x180] sm:$0xff]  ;;  %v495_v32 = vld [vmem:[#allocation2 + $0x378] sm:$0xff]  ;;  %v494_v34 = vld [vmem:[#allocation2 + $0x370] sm:$0xff] }
  0x63   : > { %656 = vmatpush1.msra.mxu1 %v367_v63  ;;  %544 = vmatprep.subr.mxu0 %v511_v0  ;;  %v414_v33 = vld [vmem:[#allocation2 + $0x178] sm:$0xff]  ;;  %v413_v35 = vld [vmem:[#allocation2 + $0x170] sm:$0xff]  ;;  %v493_v36 = vld [vmem:[#allocation2 + $0x368] sm:$0xff] }
  0x64   : > { %657 = vmatprep.subr.mxu1 %v430_v1  ;;  %545 = vmatpush2.msra.mxu0 %v510_v2  ;;  %v412_v37 = vld [vmem:[#allocation2 + $0x168] sm:$0xff]  ;;  %v492_v38 = vld [vmem:[#allocation2 + $0x360] sm:$0xff]  ;;  %v491_v40 = vld [vmem:[#allocation2 + $0x358] sm:$0xff] }
  0x65   : > { %658 = vmatpush2.msra.mxu1 %v429_v3  ;;  %546 = vmatprep.subr.mxu0 %v509_v4  ;;  %v411_v39 = vld [vmem:[#allocation2 + $0x160] sm:$0xff]  ;;  %v410_v41 = vld [vmem:[#allocation2 + $0x158] sm:$0xff]  ;;  %v490_v42 = vld [vmem:[#allocation2 + $0x350] sm:$0xff] }
  0x66   : > { %659 = vmatprep.subr.mxu1 %v428_v5  ;;  %547 = vmatpush2.msra.mxu0 %v508_v6  ;;  %v409_v43 = vld [vmem:[#allocation2 + $0x150] sm:$0xff]  ;;  %v489_v44 = vld [vmem:[#allocation2 + $0x348] sm:$0xff]  ;;  %v488_v46 = vld [vmem:[#allocation2 + $0x340] sm:$0xff] }
  0x67   : > { %660 = vmatpush2.msra.mxu1 %v427_v7  ;;  %548 = vmatprep.subr.mxu0 %v507_v8  ;;  %v408_v45 = vld [vmem:[#allocation2 + $0x148] sm:$0xff]  ;;  %v407_v47 = vld [vmem:[#allocation2 + $0x140] sm:$0xff]  ;;  %v487_v48 = vld [vmem:[#allocation2 + $0x338] sm:$0xff] }
  0x68   : > { %661 = vmatprep.subr.mxu1 %v426_v9  ;;  %549 = vmatpush2.msra.mxu0 %v506_v10  ;;  %v406_v49 = vld [vmem:[#allocation2 + $0x138] sm:$0xff]  ;;  %v486_v50 = vld [vmem:[#allocation2 + $0x330] sm:$0xff]  ;;  %v485_v52 = vld [vmem:[#allocation2 + $0x328] sm:$0xff] }
  0x69   : > { %662 = vmatpush2.msra.mxu1 %v425_v11  ;;  %550 = vmatprep.subr.mxu0 %v505_v12  ;;  %v405_v51 = vld [vmem:[#allocation2 + $0x130] sm:$0xff]  ;;  %v5292_v53 = vld [vmem:[%s6046_s7 + $0x28] sm:$0xfe]  ;;  %v5294_v54 = vld [vmem:[%s6046_s7 + $0x38] sm:$0x1] }
  0x6a   : > { %663 = vmatprep.subr.mxu1 %v424_v13  ;;  %551 = vmatpush2.msra.mxu0 %v504_v14  ;;  %v404_v55 = vld [vmem:[#allocation2 + $0x128] sm:$0xff]  ;;  %v5291_v56 = vld [vmem:[%s6046_s7 + $0x20] sm:$0xfe]  ;;  %v5293_v57 = vld [vmem:[%s6046_s7 + $0x30] sm:$0x1]  ;;  %v306_v62 = vrot.slane %v5292_v53, 1 }
  0x6b   : > { %664 = vmatpush2.msra.mxu1 %v423_v15  ;;  %552 = vmatprep.subr.mxu0 %v503_v16  ;;  %v484_v58 = vld [vmem:[#allocation2 + $0x320] sm:$0xff]  ;;  %v483_v60 = vld [vmem:[#allocation2 + $0x318] sm:$0xff]  ;;  %v307_v63 = vrot.slane %v5294_v54, 1  ;;  %v482_v0 = vld [vmem:[#allocation2 + $0x310] sm:$0xff]  ;;  %v303_v2 = vrot.slane %v5291_v56, 1  ;;  %v304_v3 = vrot.slane %v5293_v57, 1 }
  0x6c   : > { %665 = vmatprep.subr.mxu1 %v422_v17  ;;  %553 = vmatpush2.msra.mxu0 %v502_v18  ;;  %v403_v59 = vld [vmem:[#allocation2 + $0x120] sm:$0xff]  ;;  %v402_v61 = vld [vmem:[#allocation2 + $0x118] sm:$0xff]  ;;  %v401_v1 = vld [vmem:[#allocation2 + $0x110] sm:$0xff] }
  0x6d   : > { %666 = vmatpush2.msra.mxu1 %v421_v19  ;;  %554 = vmatprep.subr.mxu0 %v501_v20  ;;  %v481_v4 = vld [vmem:[#allocation2 + $0x308] sm:$0xff]  ;;  %v480_v6 = vld [vmem:[#allocation2 + $0x300] sm:$0xff]  ;;  %v308_v9 = vsel %vm302_vm0, %v306_v62, %v307_v63  ;;  %v305_v11 = vsel %vm302_vm0, %v303_v2, %v304_v3  ;;  %v898_v12 = vld [vmem:[#allocation2 + $0x4f8] sm:$0xff] }
  0x6e   : > { %667 = vmatprep.subr.mxu1 %v420_v21  ;;  %555 = vmatpush2.msra.mxu0 %v500_v22  ;;  %v400_v5 = vld [vmem:[#allocation2 + $0x108] sm:$0xff]  ;;  %v399_v8 = vld [vmem:[#allocation2 + $0x100] sm:$0xff]  ;;  %v1108_v13 = vld [vmem:[#allocation2 + $0x6f8] sm:$0xff] }
  0x6f   : > { %668 = vmatpush2.msra.mxu1 %v419_v23  ;;  %556 = vmatprep.subr.mxu0 %v499_v24  ;;  %v6053_v7 = vld [vmem:[%s6046_s7 + $0x28] sm:$0xff]  ;;  %v6057_v10 = vld [vmem:[%s6046_s7 + $0x20] sm:$0xff]  ;;  %v897_v14 = vld [vmem:[#allocation2 + $0x4f0] sm:$0xff] }
  0x70   : > { %669 = vmatprep.subr.mxu1 %v418_v25  ;;  %557 = vmatpush2.msra.mxu0 %v498_v26  ;;  %v1107_v15 = vld [vmem:[#allocation2 + $0x6f0] sm:$0xff]  ;;  %v896_v16 = vld [vmem:[#allocation2 + $0x4e8] sm:$0xff]  ;;  %v895_v18 = vld [vmem:[#allocation2 + $0x4e0] sm:$0xff] }
  0x71   : > { %670 = vmatpush2.msra.mxu1 %v417_v27  ;;  %558 = vmatprep.subr.mxu0 %v497_v28  ;;  %v1106_v17 = vld [vmem:[#allocation2 + $0x6e8] sm:$0xff]  ;;  %v1105_v19 = vld [vmem:[#allocation2 + $0x6e0] sm:$0xff]  ;;  %v894_v20 = vld [vmem:[#allocation2 + $0x4d8] sm:$0xff] }
  0x72   : > { %671 = vmatprep.subr.mxu1 %v416_v29  ;;  %559 = vmatpush2.msra.mxu0 %v496_v30  ;;  %v1104_v21 = vld [vmem:[#allocation2 + $0x6d8] sm:$0xff]  ;;  %v893_v22 = vld [vmem:[#allocation2 + $0x4d0] sm:$0xff]  ;;  %v892_v24 = vld [vmem:[#allocation2 + $0x4c8] sm:$0xff] }
  0x73   : > { %672 = vmatpush2.msra.mxu1 %v415_v31  ;;  %560 = vmatprep.subr.mxu0 %v495_v32  ;;  %v1103_v23 = vld [vmem:[#allocation2 + $0x6d0] sm:$0xff]  ;;  %v1102_v25 = vld [vmem:[#allocation2 + $0x6c8] sm:$0xff]  ;;  %v891_v26 = vld [vmem:[#allocation2 + $0x4c0] sm:$0xff] }
  0x74   : > { %673 = vmatprep.subr.mxu1 %v414_v33  ;;  %561 = vmatpush2.msra.mxu0 %v494_v34  ;;  %v1101_v27 = vld [vmem:[#allocation2 + $0x6c0] sm:$0xff]  ;;  %v890_v28 = vld [vmem:[#allocation2 + $0x4b8] sm:$0xff]  ;;  %v889_v30 = vld [vmem:[#allocation2 + $0x4b0] sm:$0xff] }
  0x75   : > { %674 = vmatpush2.msra.mxu1 %v413_v35  ;;  %562 = vmatprep.subr.mxu0 %v493_v36  ;;  %v1100_v29 = vld [vmem:[#allocation2 + $0x6b8] sm:$0xff]  ;;  %v1099_v31 = vld [vmem:[#allocation2 + $0x6b0] sm:$0xff]  ;;  %v888_v32 = vld [vmem:[#allocation2 + $0x4a8] sm:$0xff] }
  0x76   : > { %675 = vmatprep.subr.mxu1 %v412_v37  ;;  %563 = vmatpush2.msra.mxu0 %v492_v38  ;;  %v1098_v33 = vld [vmem:[#allocation2 + $0x6a8] sm:$0xff]  ;;  %v887_v34 = vld [vmem:[#allocation2 + $0x4a0] sm:$0xff]  ;;  %v886_v36 = vld [vmem:[#allocation2 + $0x498] sm:$0xff] }
  0x77   : > { %676 = vmatpush2.msra.mxu1 %v411_v39  ;;  %564 = vmatprep.subr.mxu0 %v491_v40  ;;  %v1097_v35 = vld [vmem:[#allocation2 + $0x6a0] sm:$0xff]  ;;  %v1096_v37 = vld [vmem:[#allocation2 + $0x698] sm:$0xff]  ;;  %v885_v38 = vld [vmem:[#allocation2 + $0x490] sm:$0xff] }
  0x78   : > { %677 = vmatprep.subr.mxu1 %v410_v41  ;;  %565 = vmatpush2.msra.mxu0 %v490_v42  ;;  %v1095_v39 = vld [vmem:[#allocation2 + $0x690] sm:$0xff]  ;;  %v884_v40 = vld [vmem:[#allocation2 + $0x488] sm:$0xff]  ;;  %v883_v42 = vld [vmem:[#allocation2 + $0x480] sm:$0xff] }
  0x79   : > { %678 = vmatpush2.msra.mxu1 %v409_v43  ;;  %566 = vmatprep.subr.mxu0 %v489_v44  ;;  %v1094_v41 = vld [vmem:[#allocation2 + $0x688] sm:$0xff]  ;;  %v1093_v43 = vld [vmem:[#allocation2 + $0x680] sm:$0xff]  ;;  %v882_v44 = vld [vmem:[#allocation2 + $0x478] sm:$0xff] }
  0x7a   : > { %679 = vmatprep.subr.mxu1 %v408_v45  ;;  %567 = vmatpush2.msra.mxu0 %v488_v46  ;;  %v1092_v45 = vld [vmem:[#allocation2 + $0x678] sm:$0xff]  ;;  %v881_v46 = vld [vmem:[#allocation2 + $0x470] sm:$0xff]  ;;  %v876_v56 = vld [vmem:[#allocation2 + $0x448] sm:$0xff] }
  0x7b   : > { %680 = vmatpush2.msra.mxu1 %v407_v47  ;;  %568 = vmatprep.subr.mxu0 %v487_v48  ;;  %v1091_v47 = vld [vmem:[#allocation2 + $0x670] sm:$0xff]  ;;  %v880_v48 = vld [vmem:[#allocation2 + $0x468] sm:$0xff]  ;;  %v1088_v53 = vld [vmem:[#allocation2 + $0x658] sm:$0xff] }
  0x7c   : > { %681 = vmatprep.subr.mxu1 %v406_v49  ;;  %569 = vmatpush2.msra.mxu0 %v486_v50  ;;  %v1090_v49 = vld [vmem:[#allocation2 + $0x668] sm:$0xff]  ;;  %v879_v50 = vld [vmem:[#allocation2 + $0x460] sm:$0xff]  ;;  %v877_v54 = vld [vmem:[#allocation2 + $0x450] sm:$0xff] }
  0x7d   : > { %682 = vmatpush2.msra.mxu1 %v405_v51  ;;  %570 = vmatprep.subr.mxu0 %v485_v52  ;;  %v1089_v51 = vld [vmem:[#allocation2 + $0x660] sm:$0xff]  ;;  %v878_v52 = vld [vmem:[#allocation2 + $0x458] sm:$0xff]  ;;  %v1086_v57 = vld [vmem:[#allocation2 + $0x648] sm:$0xff] }
  0x7e   : > { %683 = vmatprep.subr.mxu1 %v404_v55  ;;  %571 = vmatpush2.msra.mxu0 %v484_v58  ;;  %v1087_v55 = vld [vmem:[#allocation2 + $0x650] sm:$0xff]  ;;  %v875_v58 = vld [vmem:[#allocation2 + $0x440] sm:$0xff] }
  0x7f   : > { %684 = vmatpush2.msra.mxu1 %v403_v59  ;;  %572 = vmatprep.subr.mxu0 %v483_v60  ;;  %v1085_v59 = vld [vmem:[#allocation2 + $0x640] sm:$0xff]  ;;  %v874_v60 = vld [vmem:[#allocation2 + $0x438] sm:$0xff]  ;;  %v873_v62 = vld [vmem:[#allocation2 + $0x430] sm:$0xff] }
  0x80   : > { %685 = vmatprep.subr.mxu1 %v402_v61  ;;  %573 = vmatpush2.msra.mxu0 %v482_v0  ;;  %v1084_v61 = vld [vmem:[#allocation2 + $0x638] sm:$0xff]  ;;  %v1083_v63 = vld [vmem:[#allocation2 + $0x630] sm:$0xff]  ;;  %v872_v0 = vld [vmem:[#allocation2 + $0x428] sm:$0xff] }
  0x81   : > { %686 = vmatpush2.msra.mxu1 %v401_v1  ;;  %574 = vmatprep.subr.mxu0 %v481_v4  ;;  %v1082_v1 = vld [vmem:[#allocation2 + $0x628] sm:$0xff]  ;;  %v871_v2 = vld [vmem:[#allocation2 + $0x420] sm:$0xff] }
  0x82   : > { %687 = vmatprep.subr.mxu1 %v400_v5  ;;  %575 = vmatpush2.msra.mxu0 %v480_v6  ;;  %v1081_v3 = vld [vmem:[#allocation2 + $0x620] sm:$0xff]  ;;  %v5296_v4 = vld [vmem:[%s6046_s7 + $0x48] sm:$0xfe]  ;;  %v5298_v5 = vld [vmem:[%s6046_s7 + $0x58] sm:$0x1] }
  0x83   : > { %576 = vmatprep.mubr.f32.mxu0 %v6053_v7  ;;  %688 = vmatpush2.msra.mxu1 %v399_v8  ;;  %v870_v6 = vld [vmem:[#allocation2 + $0x418] sm:$0xff] }
  0x84   : > { %689 = vmatprep.mubr.f32.mxu1 %v308_v9  ;;  %577 = vmatmul.mubr.f32.vlgmr.msra.gmra.mxu0 %v6057_v10  ;;  %v1080_v8 = vld [vmem:[#allocation2 + $0x618] sm:$0xff]  ;;  %v869_v9 = vld [vmem:[#allocation2 + $0x410] sm:$0xff] }
  0x85   : > { %690 = vmatmul.mubr.f32.vlgmr.msra.gmra.mxu1 %v305_v11  ;;  %931 = vmatprep.subr.mxu0 %v898_v12  ;;  %v1079_v11 = vld [vmem:[#allocation2 + $0x610] sm:$0xff]  ;;  %v5295_v12 = vld [vmem:[%s6046_s7 + $0x40] sm:$0xfe] }
  0x86   : > { %1141 = vmatprep.subr.mxu1 %v1108_v13  ;;  %932 = vmatpush1.msra.mxu0 %v897_v14  ;;  %v5297_v13 = vld [vmem:[%s6046_s7 + $0x50] sm:$0x1]  ;;  %v868_v14 = vld [vmem:[#allocation2 + $0x408] sm:$0xff] }
  0x87   : > { %1142 = vmatpush1.msra.mxu1 %v1107_v15  ;;  %933 = vmatprep.subr.mxu0 %v896_v16  ;;  %v1078_v15 = vld [vmem:[#allocation2 + $0x608] sm:$0xff]  ;;  %v312_v16 = vrot.slane %v5296_v4, 1 }
  0x88   : > { %1143 = vmatprep.subr.mxu1 %v1106_v17  ;;  %934 = vmatpush1.msra.mxu0 %v895_v18  ;;  %v313_v17 = vrot.slane %v5298_v5, 1  ;;  %v867_v18 = vld [vmem:[#allocation2 + $0x400] sm:$0xff]  ;;  %v6097_v4 = vld [vmem:[%s6046_s7 + $0x88] sm:$0xff] }
  0x89   : > { %1144 = vmatpush1.msra.mxu1 %v1105_v19  ;;  %935 = vmatprep.subr.mxu0 %v894_v20  ;;  %v1077_v19 = vld [vmem:[#allocation2 + $0x600] sm:$0xff]  ;;  %v930_v20 = vld [vmem:[#allocation2 + $0x5f8] sm:$0xff] }
  0x8a   : > { %1145 = vmatprep.subr.mxu1 %v1104_v21  ;;  %936 = vmatpush1.msra.mxu0 %v893_v22  ;;  %v1140_v21 = vld [vmem:[#allocation2 + $0x7f8] sm:$0xff]  ;;  %v929_v22 = vld [vmem:[#allocation2 + $0x5f0] sm:$0xff] }
  0x8b   : > { %1146 = vmatpush1.msra.mxu1 %v1103_v23  ;;  %937 = vmatprep.subr.mxu0 %v892_v24  ;;  %v309_v23 = vrot.slane %v5295_v12, 1  ;;  %v310_v24 = vrot.slane %v5297_v13, 1  ;;  %v6103_v12 = vld [vmem:[%s6046_s7 + $0x80] sm:$0xff] }
  0x8c   : > { %1147 = vmatprep.subr.mxu1 %v1102_v25  ;;  %938 = vmatpush1.msra.mxu0 %v891_v26  ;;  %v1139_v25 = vld [vmem:[#allocation2 + $0x7f0] sm:$0xff]  ;;  %v5300_v26 = vld [vmem:[%s6046_s7 + $0x68] sm:$0xfe] }
  0x8d   : > { %1148 = vmatpush1.msra.mxu1 %v1101_v27  ;;  %939 = vmatprep.subr.mxu0 %v890_v28  ;;  %v5302_v27 = vld [vmem:[%s6046_s7 + $0x78] sm:$0x1]  ;;  %v6069_v28 = vld [vmem:[%s6046_s7 + $0x48] sm:$0xff] }
  0x8e   : > { %1149 = vmatprep.subr.mxu1 %v1100_v29  ;;  %940 = vmatpush1.msra.mxu0 %v889_v30  ;;  %v314_v29 = vsel %vm302_vm0, %v312_v16, %v313_v17  ;;  %v928_v30 = vld [vmem:[#allocation2 + $0x5e8] sm:$0xff]  ;;  %v919_v16 = vld [vmem:[#allocation2 + $0x5a0] sm:$0xff] }
  0x8f   : > { %1150 = vmatpush1.msra.mxu1 %v1099_v31  ;;  %941 = vmatprep.subr.mxu0 %v888_v32  ;;  %v1138_v31 = vld [vmem:[#allocation2 + $0x7e8] sm:$0xff]  ;;  %v5299_v32 = vld [vmem:[%s6046_s7 + $0x60] sm:$0xfe] }
  0x90   : > { %1151 = vmatprep.subr.mxu1 %v1098_v33  ;;  %942 = vmatpush1.msra.mxu0 %v887_v34  ;;  %v5301_v33 = vld [vmem:[%s6046_s7 + $0x70] sm:$0x1]  ;;  %v6075_v34 = vld [vmem:[%s6046_s7 + $0x40] sm:$0xff] }
  0x91   : > { %1152 = vmatpush1.msra.mxu1 %v1097_v35  ;;  %943 = vmatprep.subr.mxu0 %v886_v36  ;;  %v311_v35 = vsel %vm302_vm0, %v309_v23, %v310_v24  ;;  %v318_v36 = vrot.slane %v5300_v26, 1  ;;  %v1129_v17 = vld [vmem:[#allocation2 + $0x7a0] sm:$0xff]  ;;  %v1127_v23 = vld [vmem:[#allocation2 + $0x790] sm:$0xff]  ;;  %v5312_v24 = vld [vmem:[%s6046_s7 + $0xc8] sm:$0xfe] }
  0x92   : > { %1153 = vmatprep.subr.mxu1 %v1096_v37  ;;  %944 = vmatpush1.msra.mxu0 %v885_v38  ;;  %v319_v37 = vrot.slane %v5302_v27, 1  ;;  %v927_v38 = vld [vmem:[#allocation2 + $0x5e0] sm:$0xff]  ;;  %v6111_v26 = vld [vmem:[%s6046_s7 + $0xa8] sm:$0xff] }
  0x93   : > { %1154 = vmatpush1.msra.mxu1 %v1095_v39  ;;  %945 = vmatprep.subr.mxu0 %v884_v40  ;;  %v1137_v39 = vld [vmem:[#allocation2 + $0x7e0] sm:$0xff]  ;;  %v926_v40 = vld [vmem:[#allocation2 + $0x5d8] sm:$0xff] }
  0x94   : > { %1155 = vmatprep.subr.mxu1 %v1094_v41  ;;  %946 = vmatpush1.msra.mxu0 %v883_v42  ;;  %v1136_v41 = vld [vmem:[#allocation2 + $0x7d8] sm:$0xff]  ;;  %v925_v42 = vld [vmem:[#allocation2 + $0x5d0] sm:$0xff] }
  0x95   : > { %1156 = vmatpush1.msra.mxu1 %v1093_v43  ;;  %947 = vmatprep.subr.mxu0 %v882_v44  ;;  %v315_v43 = vrot.slane %v5299_v32, 1  ;;  %v316_v44 = vrot.slane %v5301_v33, 1  ;;  %v5313_v32 = vld [vmem:[%s6046_s7 + $0xd0] sm:$0x1]  ;;  %v6117_v33 = vld [vmem:[%s6046_s7 + $0xa0] sm:$0xff] }
  0x96   : > { %1157 = vmatprep.subr.mxu1 %v1092_v45  ;;  %948 = vmatpush1.msra.mxu0 %v881_v46  ;;  %v1135_v45 = vld [vmem:[#allocation2 + $0x7d0] sm:$0xff]  ;;  %v5304_v46 = vld [vmem:[%s6046_s7 + $0x88] sm:$0xfe] }
  0x97   : > { %1158 = vmatpush1.msra.mxu1 %v1091_v47  ;;  %949 = vmatprep.subr.mxu0 %v880_v48  ;;  %v5306_v47 = vld [vmem:[%s6046_s7 + $0x98] sm:$0x1]  ;;  %v6083_v48 = vld [vmem:[%s6046_s7 + $0x68] sm:$0xff] }
  0x98   : > { %1159 = vmatprep.subr.mxu1 %v1090_v49  ;;  %950 = vmatpush1.msra.mxu0 %v879_v50  ;;  %v320_v49 = vsel %vm302_vm0, %v318_v36, %v319_v37  ;;  %v924_v50 = vld [vmem:[#allocation2 + $0x5c8] sm:$0xff]  ;;  %v336_v36 = vrot.slane %v5312_v24, 1 }
  0x99   : > { %1160 = vmatpush1.msra.mxu1 %v1089_v51  ;;  %951 = vmatprep.subr.mxu0 %v878_v52  ;;  %v1134_v51 = vld [vmem:[#allocation2 + $0x7c8] sm:$0xff]  ;;  %v5303_v52 = vld [vmem:[%s6046_s7 + $0x80] sm:$0xfe] }
  0x9a   : > { %1161 = vmatprep.subr.mxu1 %v1088_v53  ;;  %952 = vmatpush1.msra.mxu0 %v877_v54  ;;  %v5305_v53 = vld [vmem:[%s6046_s7 + $0x90] sm:$0x1]  ;;  %v6089_v54 = vld [vmem:[%s6046_s7 + $0x60] sm:$0xff] }
  0x9b   : > { %1162 = vmatpush1.msra.mxu1 %v1087_v55  ;;  %953 = vmatprep.subr.mxu0 %v876_v56  ;;  %v317_v55 = vsel %vm302_vm0, %v315_v43, %v316_v44  ;;  %v324_v56 = vrot.slane %v5304_v46, 1  ;;  %v334_v44 = vrot.slane %v5313_v32, 1  ;;  %v5316_v46 = vld [vmem:[%s6046_s7 + $0xe8] sm:$0xfe] }
  0x9c   : > { %1163 = vmatprep.subr.mxu1 %v1086_v57  ;;  %954 = vmatpush1.msra.mxu0 %v875_v58  ;;  %v325_v57 = vrot.slane %v5306_v47, 1  ;;  %v923_v58 = vld [vmem:[#allocation2 + $0x5c0] sm:$0xff]  ;;  %v5318_v47 = vld [vmem:[%s6046_s7 + $0xf8] sm:$0x1]  ;;  %v904_v32 = vld [vmem:[#allocation2 + $0x528] sm:$0xff] }
  0x9d   : > { %1164 = vmatpush1.msra.mxu1 %v1085_v59  ;;  %955 = vmatprep.subr.mxu0 %v874_v60  ;;  %v1133_v59 = vld [vmem:[#allocation2 + $0x7c0] sm:$0xff]  ;;  %v922_v60 = vld [vmem:[#allocation2 + $0x5b8] sm:$0xff] }
  0x9e   : > { %1165 = vmatprep.subr.mxu1 %v1084_v61  ;;  %956 = vmatpush1.msra.mxu0 %v873_v62  ;;  %v1132_v61 = vld [vmem:[#allocation2 + $0x7b8] sm:$0xff]  ;;  %v921_v62 = vld [vmem:[#allocation2 + $0x5b0] sm:$0xff]  ;;  %v326_v5 = vsel %vm302_vm0, %v324_v56, %v325_v57  ;;  %v6131_v56 = vld [vmem:[%s6046_s7 + $0xc0] sm:$0xff] }
  0x9f   : > { %1166 = vmatpush1.msra.mxu1 %v1083_v63  ;;  %957 = vmatprep.subr.mxu0 %v872_v0  ;;  %v321_v63 = vrot.slane %v5303_v52, 1  ;;  %v322_v0 = vrot.slane %v5305_v53, 1  ;;  %v1122_v52 = vld [vmem:[#allocation2 + $0x768] sm:$0xff]  ;;  %v5315_v53 = vld [vmem:[%s6046_s7 + $0xe0] sm:$0xfe] }
  0xa0   : > { %1167 = vmatprep.subr.mxu1 %v1082_v1  ;;  %958 = vmatpush1.msra.mxu0 %v871_v2  ;;  %v1131_v1 = vld [vmem:[#allocation2 + $0x7b0] sm:$0xff]  ;;  %v5308_v2 = vld [vmem:[%s6046_s7 + $0xa8] sm:$0xfe] }
  0xa1   : > { %1168 = vmatpush1.msra.mxu1 %v1081_v3  ;;  %959 = vmatprep.subr.mxu0 %v870_v6  ;;  %v5310_v3 = vld [vmem:[%s6046_s7 + $0xb8] sm:$0x1]  ;;  %v920_v6 = vld [vmem:[#allocation2 + $0x5a8] sm:$0xff]  ;;  %v323_v13 = vsel %vm302_vm0, %v321_v63, %v322_v0  ;;  %v909_v0 = vld [vmem:[#allocation2 + $0x550] sm:$0xff] }
  0xa2   : > { %1169 = vmatprep.subr.mxu1 %v1080_v8  ;;  %960 = vmatpush1.msra.mxu0 %v869_v9  ;;  %v1130_v8 = vld [vmem:[#allocation2 + $0x7a8] sm:$0xff]  ;;  %v5307_v9 = vld [vmem:[%s6046_s7 + $0xa0] sm:$0xfe]  ;;  %v1120_v63 = vld [vmem:[#allocation2 + $0x758] sm:$0xff] }
  0xa3   : > { %1170 = vmatpush1.msra.mxu1 %v1079_v11  ;;  %961 = vmatprep.subr.mxu0 %v868_v14  ;;  %v5309_v11 = vld [vmem:[%s6046_s7 + $0xb0] sm:$0x1]  ;;  %v330_v14 = vrot.slane %v5308_v2, 1 }
  0xa4   : > { %1171 = vmatprep.subr.mxu1 %v1078_v15  ;;  %962 = vmatpush1.msra.mxu0 %v867_v18  ;;  %v331_v15 = vrot.slane %v5310_v3, 1  ;;  %v918_v18 = vld [vmem:[#allocation2 + $0x598] sm:$0xff]  ;;  %v1119_v3 = vld [vmem:[#allocation2 + $0x750] sm:$0xff] }
  0xa5   : > { %1172 = vmatpush1.msra.mxu1 %v1077_v19  ;;  %963 = vmatprep.subr.mxu0 %v930_v20  ;;  %v1128_v19 = vld [vmem:[#allocation2 + $0x798] sm:$0xff]  ;;  %v917_v20 = vld [vmem:[#allocation2 + $0x590] sm:$0xff] }
  0xa6   : > { %1173 = vmatprep.subr.mxu1 %v1140_v21  ;;  %964 = vmatpush2.msra.mxu0 %v929_v22  ;;  %v327_v21 = vrot.slane %v5307_v9, 1  ;;  %v328_v22 = vrot.slane %v5309_v11, 1  ;;  %v332_v27 = vsel %vm302_vm0, %v330_v14, %v331_v15  ;;  %v908_v11 = vld [vmem:[#allocation2 + $0x548] sm:$0xff]  ;;  %v5319_v14 = vld [vmem:[%s6046_s7 + $0x100] sm:$0xfe] }
  0xa7   : > { %1174 = vmatpush2.msra.mxu1 %v1139_v25  ;;  %582 = vmatprep.mubr.f32.mxu0 %v6069_v28  ;;  %v5314_v25 = vld [vmem:[%s6046_s7 + $0xd8] sm:$0x1]  ;;  %v5321_v15 = vld [vmem:[%s6046_s7 + $0x110] sm:$0x1]  ;;  %v345_v24 = vrot.slane %v5319_v14, 1 }
  0xa8   : > { %695 = vmatprep.mubr.f32.mxu1 %v314_v29  ;;  %965 = vmatprep.subr.mxu0 %v928_v30  ;;  %v916_v29 = vld [vmem:[#allocation2 + $0x588] sm:$0xff]  ;;  %v337_v37 = vrot.slane %v5314_v25, 1  ;;  %v346_v25 = vrot.slane %v5321_v15, 1  ;;  %v1711_v15 = vld [vmem:[#allocation2 + $0xaf0] sm:$0xff] }
  0xa9   : > { %1175 = vmatprep.subr.mxu1 %v1138_v31  ;;  %583 = vmatmul.mubr.f32.gmra.mxu0 %v6075_v34  ;;  %v1126_v30 = vld [vmem:[#allocation2 + $0x788] sm:$0xff]  ;;  %v5311_v31 = vld [vmem:[%s6046_s7 + $0xc0] sm:$0xfe] }
  0xaa   : > { %696 = vmatmul.mubr.f32.gmra.mxu1 %v311_v35  ;;  %966 = vmatpush2.msra.mxu0 %v927_v38  ;;  %v329_v35 = vsel %vm302_vm0, %v327_v21, %v328_v22  ;;  %v915_v38 = vld [vmem:[#allocation2 + $0x580] sm:$0xff]  ;;  %v333_v43 = vrot.slane %v5311_v31, 1  ;;  %v906_v22 = vld [vmem:[#allocation2 + $0x538] sm:$0xff] }
  0xab   : > { %1176 = vmatpush2.msra.mxu1 %v1137_v39  ;;  %967 = vmatprep.subr.mxu0 %v926_v40  ;;  %v1125_v39 = vld [vmem:[#allocation2 + $0x780] sm:$0xff]  ;;  %v914_v40 = vld [vmem:[#allocation2 + $0x578] sm:$0xff] }
  0xac   : > { %1177 = vmatprep.subr.mxu1 %v1136_v41  ;;  %968 = vmatpush2.msra.mxu0 %v925_v42  ;;  %v1124_v41 = vld [vmem:[#allocation2 + $0x778] sm:$0xff]  ;;  %v913_v42 = vld [vmem:[#allocation2 + $0x570] sm:$0xff]  ;;  %v335_v57 = vsel %vm302_vm0, %v333_v43, %v334_v44  ;;  %v1117_v21 = vld [vmem:[#allocation2 + $0x740] sm:$0xff] }
  0xad   : > { %1178 = vmatpush2.msra.mxu1 %v1135_v45  ;;  %588 = vmatprep.mubr.f32.mxu0 %v6083_v48  ;;  %v1123_v45 = vld [vmem:[#allocation2 + $0x770] sm:$0xff]  ;;  %v1113_v43 = vld [vmem:[#allocation2 + $0x720] sm:$0xff] }
  0xae   : > { %701 = vmatprep.mubr.f32.mxu1 %v320_v49  ;;  %969 = vmatprep.subr.mxu0 %v924_v50  ;;  %v6125_v49 = vld [vmem:[%s6046_s7 + $0xc8] sm:$0xff]  ;;  %v338_v50 = vsel %vm302_vm0, %v336_v36, %v337_v37  ;;  %v741_v36 = vld [vmem:[%s6046_s7 + $0x18] sm:$0x1] }
  0xaf   : > { %1179 = vmatprep.subr.mxu1 %v1134_v51  ;;  %589 = vmatmul.mubr.f32.gmra.mxu0 %v6089_v54  ;;  %v912_v51 = vld [vmem:[#allocation2 + $0x568] sm:$0xff] }
  0xb0   : > { %702 = vmatmul.mubr.f32.gmra.mxu1 %v317_v55  ;;  %970 = vmatpush2.msra.mxu0 %v923_v58  ;;  %v5317_v55 = vld [vmem:[%s6046_s7 + $0xf0] sm:$0x1]  ;;  %v342_v58 = vrot.slane %v5316_v46, 1  ;;  %v1114_v37 = vld [vmem:[#allocation2 + $0x728] sm:$0xff]  ;;  %v902_v46 = vld [vmem:[#allocation2 + $0x518] sm:$0xff] }
  0xb1   : > { %1180 = vmatpush2.msra.mxu1 %v1133_v59  ;;  %971 = vmatprep.subr.mxu0 %v922_v60  ;;  %v343_v59 = vrot.slane %v5318_v47, 1  ;;  %v911_v60 = vld [vmem:[#allocation2 + $0x560] sm:$0xff]  ;;  %v340_v2 = vrot.slane %v5317_v55, 1  ;;  %v1112_v47 = vld [vmem:[#allocation2 + $0x718] sm:$0xff]  ;;  %v900_v55 = vld [vmem:[#allocation2 + $0x508] sm:$0xff] }
  0xb2   : > { %1181 = vmatprep.subr.mxu1 %v1132_v61  ;;  %972 = vmatpush2.msra.mxu0 %v921_v62  ;;  %v1121_v61 = vld [vmem:[#allocation2 + $0x760] sm:$0xff]  ;;  %v910_v62 = vld [vmem:[#allocation2 + $0x558] sm:$0xff] }
  0xb3   : > { %1182 = vmatpush2.msra.mxu1 %v1131_v1  ;;  %594 = vmatprep.mubr.f32.mxu0 %v6097_v4  ;;  %v339_v1 = vrot.slane %v5315_v53, 1  ;;  %v344_v9 = vsel %vm302_vm0, %v342_v58, %v343_v59  ;;  %v1111_v53 = vld [vmem:[#allocation2 + $0x710] sm:$0xff]  ;;  %v743_v58 = vld [vmem:[%s6046_s7 + $0x28] sm:$0xfe]  ;;  %v745_v59 = vld [vmem:[%s6046_s7 + $0x38] sm:$0x1] }
  0xb4   : > { %707 = vmatprep.mubr.f32.mxu1 %v326_v5  ;;  %973 = vmatprep.subr.mxu0 %v920_v6  ;;  %v5320_v5 = vld [vmem:[%s6046_s7 + $0x108] sm:$0xfe]  ;;  %v5322_v6 = vld [vmem:[%s6046_s7 + $0x118] sm:$0x1] }
  0xb5   : > { %1183 = vmatprep.subr.mxu1 %v1130_v8  ;;  %595 = vmatmul.mubr.f32.gmra.mxu0 %v6103_v12  ;;  %v6139_v8 = vld [vmem:[%s6046_s7 + $0xe8] sm:$0xff] }
  0xb6   : > { %708 = vmatmul.mubr.f32.gmra.mxu1 %v323_v13  ;;  %974 = vmatpush2.msra.mxu0 %v919_v16  ;;  %v1118_v13 = vld [vmem:[#allocation2 + $0x748] sm:$0xff]  ;;  %v6145_v16 = vld [vmem:[%s6046_s7 + $0xe0] sm:$0xff] }
  0xb7   : > { %1184 = vmatpush2.msra.mxu1 %v1129_v17  ;;  %975 = vmatprep.subr.mxu0 %v918_v18  ;;  %v341_v17 = vsel %vm302_vm0, %v339_v1, %v340_v2  ;;  %v348_v18 = vrot.slane %v5320_v5, 1  ;;  %v1061_v2 = vld [vmem:[%s6046_s7 + $0x8] sm:$0xff]  ;;  %v811_v5 = vrot.slane %v743_v58, 1 }
  0xb8   : > { %1185 = vmatprep.subr.mxu1 %v1128_v19  ;;  %976 = vmatpush2.msra.mxu0 %v917_v20  ;;  %v349_v19 = vrot.slane %v5322_v6, 1  ;;  %v907_v20 = vld [vmem:[#allocation2 + $0x540] sm:$0xff]  ;;  %v812_v6 = vrot.slane %v745_v59, 1 }
  0xb9   : > { %1186 = vmatpush2.msra.mxu1 %v1127_v23  ;;  %600 = vmatprep.mubr.f32.mxu0 %v6111_v26  ;;  %v1116_v23 = vld [vmem:[#allocation2 + $0x738] sm:$0xff] }
  0xba   : > { %713 = vmatprep.mubr.f32.mxu1 %v332_v27  ;;  %977 = vmatprep.subr.mxu0 %v916_v29  ;;  %v905_v27 = vld [vmem:[#allocation2 + $0x530] sm:$0xff]  ;;  %v350_v31 = vsel %vm302_vm0, %v348_v18, %v349_v19  ;;  %v1710_v18 = vld [vmem:[#allocation2 + $0xae8] sm:$0xff] }
  0xbb   : > { %1187 = vmatprep.subr.mxu1 %v1126_v30  ;;  %601 = vmatmul.mubr.f32.gmra.mxu0 %v6117_v33  ;;  %v1115_v29 = vld [vmem:[#allocation2 + $0x730] sm:$0xff]  ;;  %v5338_v30 = vld [vmem:[%s6046_s7 + $0x108] sm:$0xff] }
  0xbc   : > { %714 = vmatmul.mubr.f32.gmra.mxu1 %v329_v35  ;;  %978 = vmatpush2.msra.mxu0 %v915_v38  ;;  %v739_v35 = vld [vmem:[%s6046_s7 + $0x8] sm:$0xfe]  ;;  %v738_v38 = vld [vmem:[%s6046_s7] sm:$0xfe] }
  0xbd   : > { %1188 = vmatpush2.msra.mxu1 %v1125_v39  ;;  %979 = vmatprep.subr.mxu0 %v914_v40  ;;  %v740_v39 = vld [vmem:[%s6046_s7 + $0x10] sm:$0x1]  ;;  %v5337_v40 = vld [vmem:[%s6046_s7 + $0x100] sm:$0xff]  ;;  %v805_v44 = vrot.slane %v739_v35, 1  ;;  %v1516_v19 = vld [vmem:[#allocation2 + $0x8e8] sm:$0xff] }
  0xbe   : > { %1189 = vmatprep.subr.mxu1 %v1124_v41  ;;  %980 = vmatpush2.msra.mxu0 %v913_v42  ;;  %v347_v41 = vsel %vm302_vm0, %v345_v24, %v346_v25  ;;  %v903_v42 = vld [vmem:[#allocation2 + $0x520] sm:$0xff]  ;;  %v748_v25 = vld [vmem:[%s6046_s7 + $0x50] sm:$0x1] }
  0xbf   : > { %1190 = vmatpush2.msra.mxu1 %v1123_v45  ;;  %606 = vmatprep.mubr.f32.mxu0 %v6125_v49  ;;  %v806_v45 = vrot.slane %v741_v36, 1  ;;  %v746_v24 = vld [vmem:[%s6046_s7 + $0x40] sm:$0xfe]  ;;  %v1707_v36 = vld [vmem:[#allocation2 + $0xad0] sm:$0xff] }
  0xc0   : > { %719 = vmatprep.mubr.f32.mxu1 %v338_v50  ;;  %981 = vmatprep.subr.mxu0 %v912_v51  ;;  %v802_v50 = vrot.slane %v738_v38, 1  ;;  %v803_v51 = vrot.slane %v740_v39, 1  ;;  %v815_v38 = vrot.slane %v748_v25, 1  ;;  %v1513_v39 = vld [vmem:[#allocation2 + $0x8d0] sm:$0xff] }
  0xc1   : > { %1191 = vmatprep.subr.mxu1 %v1122_v52  ;;  %607 = vmatmul.mubr.f32.gmra.mxu0 %v6131_v56  ;;  %v901_v52 = vld [vmem:[#allocation2 + $0x510] sm:$0xff] }
  0xc2   : > { %720 = vmatmul.mubr.f32.gmra.mxu1 %v335_v57  ;;  %982 = vmatpush2.msra.mxu0 %v911_v60  ;;  %v1110_v57 = vld [vmem:[#allocation2 + $0x708] sm:$0xff]  ;;  %v899_v60 = vld [vmem:[#allocation2 + $0x500] sm:$0xff]  ;;  %v804_v1 = vsel %vm302_vm0, %v802_v50, %v803_v51  ;;  %v760_v25 = vld [vmem:[%s6046_s7 + $0xb0] sm:$0x1] }
  0xc3   : > { %1192 = vmatpush2.msra.mxu1 %v1121_v61  ;;  %983 = vmatprep.subr.mxu0 %v910_v62  ;;  %v807_v61 = vsel %vm302_vm0, %v805_v44, %v806_v45  ;;  %v742_v62 = vld [vmem:[%s6046_s7 + $0x20] sm:$0xfe] }
  0xc4   : > { %1193 = vmatprep.subr.mxu1 %v1120_v63  ;;  %984 = vmatpush2.msra.mxu0 %v909_v0  ;;  %v744_v63 = vld [vmem:[%s6046_s7 + $0x30] sm:$0x1]  ;;  %v1109_v0 = vld [vmem:[#allocation2 + $0x700] sm:$0xff] }
  0xc5   : > { %1194 = vmatpush2.msra.mxu1 %v1119_v3  ;;  %612 = vmatprep.mubr.f32.mxu0 %v6139_v8  ;;  %v1712_v3 = vld [vmem:[#allocation2 + $0xaf8] sm:$0xff]  ;;  %v809_v14 = vrot.slane %v744_v63, 1  ;;  %v1705_v45 = vld [vmem:[#allocation2 + $0xac0] sm:$0xff] }
  0xc6   : > { %725 = vmatprep.mubr.f32.mxu1 %v344_v9  ;;  %985 = vmatprep.subr.mxu0 %v908_v11  ;;  %v1518_v9 = vld [vmem:[#allocation2 + $0x8f8] sm:$0xff]  ;;  %v1060_v11 = vld [vmem:[%s6046_s7] sm:$0xff] }
  0xc7   : > { %1195 = vmatprep.subr.mxu1 %v1118_v13  ;;  %613 = vmatmul.mubr.f32.gmra.mxu0 %v6145_v16  ;;  %v808_v13 = vrot.slane %v742_v62, 1  ;;  %v1511_v50 = vld [vmem:[#allocation2 + $0x8c0] sm:$0xff]  ;;  %v755_v62 = vld [vmem:[%s6046_s7 + $0x88] sm:$0xfe]  ;;  %v757_v63 = vld [vmem:[%s6046_s7 + $0x98] sm:$0x1] }
  0xc8   : > { %726 = vmatmul.mubr.f32.gmra.mxu1 %v341_v17  ;;  %986 = vmatpush2.msra.mxu0 %v907_v20  ;;  %v1517_v17 = vld [vmem:[#allocation2 + $0x8f0] sm:$0xff]  ;;  %v747_v20 = vld [vmem:[%s6046_s7 + $0x48] sm:$0xfe] }
  0xc9   : > { %1196 = vmatpush2.msra.mxu1 %v1117_v21  ;;  %987 = vmatprep.subr.mxu0 %v906_v22  ;;  %v749_v21 = vld [vmem:[%s6046_s7 + $0x58] sm:$0x1]  ;;  %v813_v22 = vsel %vm302_vm0, %v811_v5, %v812_v6  ;;  %v1507_v5 = vld [vmem:[#allocation2 + $0x8a0] sm:$0xff] }
  0xca   : > { %1197 = vmatprep.subr.mxu1 %v1116_v23  ;;  %988 = vmatpush2.msra.mxu0 %v905_v27  ;;  %v1709_v23 = vld [vmem:[#allocation2 + $0xae0] sm:$0xff]  ;;  %v818_v35 = vrot.slane %v749_v21, 1  ;;  %v761_v21 = vld [vmem:[%s6046_s7 + $0xb8] sm:$0x1] }
  0xcb   : > { %1198 = vmatpush2.msra.mxu1 %v1115_v29  ;;  %618 = vmatprep.mubr.f32.mxu0 %v5338_v30  ;;  %v1515_v27 = vld [vmem:[#allocation2 + $0x8e0] sm:$0xff]  ;;  %v810_v29 = vsel %vm302_vm0, %v808_v13, %v809_v14  ;;  %v1708_v30 = vld [vmem:[#allocation2 + $0xad8] sm:$0xff]  ;;  %v829_v13 = vrot.slane %v755_v62, 1  ;;  %v1699_v14 = vld [vmem:[#allocation2 + $0xa90] sm:$0xff] }
  0xcc   : > { %731 = vmatprep.mubr.f32.mxu1 %v350_v31  ;;  %989 = vmatprep.subr.mxu0 %v904_v32  ;;  %v1514_v31 = vld [vmem:[#allocation2 + $0x8d8] sm:$0xff]  ;;  %v817_v32 = vrot.slane %v747_v20, 1  ;;  %v759_v20 = vld [vmem:[%s6046_s7 + $0xa8] sm:$0xfe]  ;;  %v766_v62 = vld [vmem:[%s6046_s7 + $0xe0] sm:$0xfe] }
  0xcd   : > { %1199 = vmatprep.subr.mxu1 %v1114_v37  ;;  %619 = vmatmul.mubr.f32.gmra.mxu0 %v5337_v40  ;;  %v814_v37 = vrot.slane %v746_v24, 1  ;;  %v1706_v40 = vld [vmem:[#allocation2 + $0xac8] sm:$0xff]  ;;  %v758_v24 = vld [vmem:[%s6046_s7 + $0xa0] sm:$0xfe] }
  0xce   : > { %732 = vmatmul.mubr.f32.gmra.mxu1 %v347_v41  ;;  %990 = vmatpush2.msra.mxu0 %v903_v42  ;;  %v1512_v41 = vld [vmem:[#allocation2 + $0x8c8] sm:$0xff]  ;;  %v819_v44 = vsel %vm302_vm0, %v817_v32, %v818_v35  ;;  %v835_v32 = vrot.slane %v759_v20, 1  ;;  %v1695_v35 = vld [vmem:[#allocation2 + $0xa70] sm:$0xff] }
  0xcf   : > { %1200 = vmatpush2.msra.mxu1 %v1113_v43  ;;  %991 = vmatprep.subr.mxu0 %v902_v46  ;;  %v751_v42 = vld [vmem:[%s6046_s7 + $0x68] sm:$0xfe]  ;;  %v753_v43 = vld [vmem:[%s6046_s7 + $0x78] sm:$0x1]  ;;  %v750_v46 = vld [vmem:[%s6046_s7 + $0x60] sm:$0xfe]  ;;  %v816_v51 = vsel %vm302_vm0, %v814_v37, %v815_v38 }
  0xd0   : > { %1201 = vmatprep.subr.mxu1 %v1112_v47  ;;  %992 = vmatpush2.msra.mxu0 %v901_v52  ;;  %v752_v47 = vld [vmem:[%s6046_s7 + $0x70] sm:$0x1]  ;;  %v1704_v52 = vld [vmem:[#allocation2 + $0xab8] sm:$0xff]  ;;  %v820_v58 = vrot.slane %v750_v46, 1  ;;  %v833_v37 = vrot.slane %v760_v25, 1  ;;  %v1499_v46 = vld [vmem:[#allocation2 + $0x860] sm:$0xff] }
  0xd1   : > { %1202 = vmatpush2.msra.mxu1 %v1111_v53  ;;  %993 = vmatprep.subr.mxu0 %v900_v55  ;;  %v1510_v53 = vld [vmem:[#allocation2 + $0x8b8] sm:$0xff]  ;;  %v823_v55 = vrot.slane %v751_v42, 1  ;;  %v821_v59 = vrot.slane %v752_v47, 1  ;;  %v1501_v38 = vld [vmem:[#allocation2 + $0x870] sm:$0xff] }
  0xd2   : > { %1203 = vmatprep.subr.mxu1 %v1110_v57  ;;  %994 = vmatpush2.msra.mxu0 %v899_v60  ;;  %v1703_v57 = vld [vmem:[#allocation2 + $0xab0] sm:$0xff]  ;;  %v1550_v25 = vld [vmem:[#allocation2 + $0x9f8] sm:$0xff] }
  0xd3   : > { %995 = vmatprep.mubr.f32.mxu0 %v807_v61  ;;  %1204 = vmatpush2.msra.mxu1 %v1109_v0  ;;  %v1509_v60 = vld [vmem:[#allocation2 + $0x8b0] sm:$0xff]  ;;  %v1702_v61 = vld [vmem:[#allocation2 + $0xaa8] sm:$0xff]  ;;  %v822_v6 = vsel %vm302_vm0, %v820_v58, %v821_v59 }
  0xd4   : > { %996 = vmatmul.mubr.f32.vlgmr.msra.gmra.mxu0 %v804_v1  ;;  %1205 = vmatprep.mubr.f32.mxu1 %v1061_v2  ;;  %v1701_v1 = vld [vmem:[#allocation2 + $0xaa0] sm:$0xff]  ;;  %v1690_v58 = vld [vmem:[#allocation2 + $0xa48] sm:$0xff]  ;;  %v1683_v20 = vld [vmem:[#allocation2 + $0xa10] sm:$0xff] }
  0xd5   : > { %1745 = vmatprep.subr.mxu0 %v1712_v3  ;;  %1858 = vmatprep.subr.mxu1 %v1518_v9  ;;  %v754_v2 = vld [vmem:[%s6046_s7 + $0x80] sm:$0xfe]  ;;  %v756_v3 = vld [vmem:[%s6046_s7 + $0x90] sm:$0x1]  ;;  %v1700_v9 = vld [vmem:[#allocation2 + $0xa98] sm:$0xff] }
  0xd6   : > { %1206 = vmatmul.mubr.f32.vlgmr.msra.gmra.mxu1 %v1060_v11  ;;  %1746 = vmatpush1.msra.mxu0 %v1711_v15  ;;  %v1506_v11 = vld [vmem:[#allocation2 + $0x898] sm:$0xff]  ;;  %v826_v15 = vrot.slane %v754_v2, 1  ;;  %v767_v59 = vld [vmem:[%s6046_s7 + $0xe8] sm:$0xfe] }
  0xd7   : > { %1859 = vmatpush1.msra.mxu1 %v1517_v17  ;;  %1747 = vmatprep.subr.mxu0 %v1710_v18  ;;  %v827_v17 = vrot.slane %v756_v3, 1  ;;  %v1505_v18 = vld [vmem:[#allocation2 + $0x890] sm:$0xff]  ;;  %v1688_v2 = vld [vmem:[#allocation2 + $0xa38] sm:$0xff] }
  0xd8   : > { %1860 = vmatprep.subr.mxu1 %v1516_v19  ;;  %1001 = vmatprep.mubr.f32.mxu0 %v813_v22  ;;  %v1698_v19 = vld [vmem:[#allocation2 + $0xa88] sm:$0xff]  ;;  %v1494_v3 = vld [vmem:[#allocation2 + $0x838] sm:$0xff] }
  0xd9   : > { %1748 = vmatpush1.msra.mxu0 %v1709_v23  ;;  %1861 = vmatpush1.msra.mxu1 %v1515_v27  ;;  %v1697_v23 = vld [vmem:[#allocation2 + $0xa80] sm:$0xff] }
  0xda   : > { %1002 = vmatmul.mubr.f32.gmra.mxu0 %v810_v29  ;;  %1749 = vmatprep.subr.mxu0 %v1708_v30  ;;  %v1503_v27 = vld [vmem:[#allocation2 + $0x880] sm:$0xff]  ;;  %v828_v29 = vsel %vm302_vm0, %v826_v15, %v827_v17  ;;  %v1696_v30 = vld [vmem:[#allocation2 + $0xa78] sm:$0xff] }
  0xdb   : > { %1862 = vmatprep.subr.mxu1 %v1514_v31  ;;  %1211 = vmatprep.mubr.f32.mxu1 %v6053_v7  ;;  %v824_v7 = vrot.slane %v753_v43, 1  ;;  %v1502_v31 = vld [vmem:[#allocation2 + $0x878] sm:$0xff]  ;;  %v1693_v43 = vld [vmem:[#allocation2 + $0xa60] sm:$0xff] }
  0xdc   : > { %1750 = vmatpush1.msra.mxu0 %v1707_v36  ;;  %1863 = vmatpush1.msra.mxu1 %v1513_v39  ;;  %v832_v36 = vrot.slane %v758_v24, 1  ;;  %v1694_v39 = vld [vmem:[#allocation2 + $0xa68] sm:$0xff]  ;;  %v1685_v15 = vld [vmem:[#allocation2 + $0xa20] sm:$0xff] }
  0xdd   : > { %1751 = vmatprep.subr.mxu0 %v1706_v40  ;;  %1212 = vmatmul.mubr.f32.gmra.mxu1 %v6057_v10  ;;  %v1508_v10 = vld [vmem:[#allocation2 + $0x8a8] sm:$0xff]  ;;  %v825_v0 = vsel %vm302_vm0, %v823_v55, %v824_v7  ;;  %v1491_v17 = vld [vmem:[#allocation2 + $0x820] sm:$0xff] }
  0xde   : > { %1864 = vmatprep.subr.mxu1 %v1512_v41  ;;  %1007 = vmatprep.mubr.f32.mxu0 %v819_v44  ;;  %v763_v40 = vld [vmem:[%s6046_s7 + $0xc8] sm:$0xfe]  ;;  %v765_v41 = vld [vmem:[%s6046_s7 + $0xd8] sm:$0x1]  ;;  %v762_v44 = vld [vmem:[%s6046_s7 + $0xc0] sm:$0xfe]  ;;  %v834_v47 = vsel %vm302_vm0, %v832_v36, %v833_v37 }
  0xdf   : > { %1752 = vmatpush1.msra.mxu0 %v1705_v45  ;;  %1865 = vmatpush1.msra.mxu1 %v1511_v50  ;;  %v764_v45 = vld [vmem:[%s6046_s7 + $0xd0] sm:$0x1]  ;;  %v1692_v50 = vld [vmem:[#allocation2 + $0xa58] sm:$0xff]  ;;  %v838_v55 = vrot.slane %v762_v44, 1  ;;  %v1487_v24 = vld [vmem:[#allocation2 + $0x800] sm:$0xff] }
  0xe0   : > { %1008 = vmatmul.mubr.f32.gmra.mxu0 %v816_v51  ;;  %1753 = vmatprep.subr.mxu0 %v1704_v52  ;;  %v1498_v51 = vld [vmem:[#allocation2 + $0x858] sm:$0xff]  ;;  %v841_v52 = vrot.slane %v763_v40, 1  ;;  %v839_v7 = vrot.slane %v764_v45, 1  ;;  %v1739_v36 = vld [vmem:[#allocation2 + $0xbd0] sm:$0xff]  ;;  %v1734_v44 = vld [vmem:[#allocation2 + $0xba8] sm:$0xff] }
  0xe1   : > { %1866 = vmatprep.subr.mxu1 %v1510_v53  ;;  %1217 = vmatprep.mubr.f32.mxu1 %v6069_v28  ;;  %v830_v28 = vrot.slane %v757_v63, 1  ;;  %v1691_v53 = vld [vmem:[#allocation2 + $0xa50] sm:$0xff]  ;;  %v1736_v40 = vld [vmem:[#allocation2 + $0xbb8] sm:$0xff]  ;;  %v1540_v45 = vld [vmem:[#allocation2 + $0x9a8] sm:$0xff] }
  0xe2   : > { %1754 = vmatpush1.msra.mxu0 %v1703_v57  ;;  %1867 = vmatpush1.msra.mxu1 %v1509_v60  ;;  %v1497_v57 = vld [vmem:[#allocation2 + $0x850] sm:$0xff]  ;;  %v769_v60 = vld [vmem:[%s6046_s7 + $0xf8] sm:$0x1] }
  0xe3   : > { %1755 = vmatprep.subr.mxu0 %v1702_v61  ;;  %1218 = vmatmul.mubr.f32.gmra.mxu1 %v6075_v34  ;;  %v1504_v34 = vld [vmem:[#allocation2 + $0x888] sm:$0xff]  ;;  %v831_v22 = vsel %vm302_vm0, %v829_v13, %v830_v28  ;;  %v768_v63 = vld [vmem:[%s6046_s7 + $0xf0] sm:$0x1] }
  0xe4   : > { %1868 = vmatprep.subr.mxu1 %v1508_v10  ;;  %1013 = vmatprep.mubr.f32.mxu0 %v825_v0  ;;  %v1689_v10 = vld [vmem:[#allocation2 + $0xa40] sm:$0xff]  ;;  %v1493_v13 = vld [vmem:[#allocation2 + $0x830] sm:$0xff]  ;;  %v1686_v28 = vld [vmem:[#allocation2 + $0xa28] sm:$0xff] }
  0xe5   : > { %1756 = vmatpush1.msra.mxu0 %v1701_v1  ;;  %1869 = vmatpush1.msra.mxu1 %v1507_v5  ;;  %v1495_v0 = vld [vmem:[#allocation2 + $0x840] sm:$0xff]  ;;  %v840_v1 = vsel %vm302_vm0, %v838_v55, %v839_v7  ;;  %v847_v5 = vrot.slane %v767_v59, 1  ;;  %v1545_v37 = vld [vmem:[#allocation2 + $0x9d0] sm:$0xff]  ;;  %v1536_v55 = vld [vmem:[#allocation2 + $0x988] sm:$0xff] }
  0xe6   : > { %1014 = vmatmul.mubr.f32.gmra.mxu0 %v822_v6  ;;  %1757 = vmatprep.subr.mxu0 %v1700_v9  ;;  %v848_v6 = vrot.slane %v769_v60, 1  ;;  %v844_v9 = vrot.slane %v766_v62, 1  ;;  %v1729_v7 = vld [vmem:[#allocation2 + $0xb80] sm:$0xff]  ;;  %v1727_v59 = vld [vmem:[#allocation2 + $0xb70] sm:$0xff] }
  0xe7   : > { %1870 = vmatprep.subr.mxu1 %v1506_v11  ;;  %1223 = vmatprep.mubr.f32.mxu1 %v6083_v48  ;;  %v836_v48 = vrot.slane %v761_v21, 1  ;;  %v845_v11 = vrot.slane %v768_v63, 1  ;;  %v1682_v21 = vld [vmem:[#allocation2 + $0xa08] sm:$0xff]  ;;  %v1533_v60 = vld [vmem:[#allocation2 + $0x970] sm:$0xff]  ;;  %v1725_v62 = vld [vmem:[#allocation2 + $0xb60] sm:$0xff] }
  0xe8   : > { %1758 = vmatpush1.msra.mxu0 %v1699_v14  ;;  %1871 = vmatpush1.msra.mxu1 %v1505_v18  ;;  %v1492_v14 = vld [vmem:[#allocation2 + $0x828] sm:$0xff]  ;;  %v1531_v63 = vld [vmem:[#allocation2 + $0x960] sm:$0xff] }
  0xe9   : > { %1759 = vmatprep.subr.mxu0 %v1698_v19  ;;  %1224 = vmatmul.mubr.f32.gmra.mxu1 %v6089_v54  ;;  %v1500_v54 = vld [vmem:[#allocation2 + $0x868] sm:$0xff]  ;;  %v837_v42 = vsel %vm302_vm0, %v835_v32, %v836_v48  ;;  %v846_v18 = vsel %vm302_vm0, %v844_v9, %v845_v11  ;;  %v1684_v19 = vld [vmem:[#allocation2 + $0xa18] sm:$0xff]  ;;  %v1741_v32 = vld [vmem:[#allocation2 + $0xbe0] sm:$0xff] }
  0xea   : > { %1872 = vmatprep.subr.mxu1 %v1504_v34  ;;  %1019 = vmatprep.mubr.f32.mxu0 %v831_v22  ;;  %v1490_v34 = vld [vmem:[#allocation2 + $0x818] sm:$0xff]  ;;  %v1488_v22 = vld [vmem:[#allocation2 + $0x808] sm:$0xff]  ;;  %v1527_v9 = vld [vmem:[#allocation2 + $0x940] sm:$0xff] }
  0xeb   : > { %1760 = vmatpush1.msra.mxu0 %v1697_v23  ;;  %1873 = vmatpush1.msra.mxu1 %v1503_v27  ;;  %v1681_v23 = vld [vmem:[#allocation2 + $0xa00] sm:$0xff]  ;;  %v1743_v27 = vld [vmem:[#allocation2 + $0xbf0] sm:$0xff]  ;;  %v1740_v48 = vld [vmem:[#allocation2 + $0xbd8] sm:$0xff] }
  0xec   : > { %1020 = vmatmul.mubr.f32.gmra.mxu0 %v828_v29  ;;  %1761 = vmatprep.subr.mxu0 %v1696_v30  ;;  %v1549_v29 = vld [vmem:[#allocation2 + $0x9f0] sm:$0xff]  ;;  %v1742_v30 = vld [vmem:[#allocation2 + $0xbe8] sm:$0xff]  ;;  %v1720_v11 = vld [vmem:[#allocation2 + $0xb38] sm:$0xff] }
  0xed   : > { %1874 = vmatprep.subr.mxu1 %v1502_v31  ;;  %1229 = vmatprep.mubr.f32.mxu1 %v6097_v4  ;;  %v842_v4 = vrot.slane %v765_v41, 1  ;;  %v1548_v31 = vld [vmem:[#allocation2 + $0x9e8] sm:$0xff]  ;;  %v1542_v41 = vld [vmem:[#allocation2 + $0x9b8] sm:$0xff] }
  0xee   : > { %1762 = vmatpush1.msra.mxu0 %v1695_v35  ;;  %1875 = vmatpush1.msra.mxu1 %v1501_v38  ;;  %v1546_v35 = vld [vmem:[#allocation2 + $0x9d8] sm:$0xff]  ;;  %v1544_v38 = vld [vmem:[#allocation2 + $0x9c8] sm:$0xff] }
  0xef   : > { %1763 = vmatprep.subr.mxu0 %v1694_v39  ;;  %1230 = vmatmul.mubr.f32.gmra.mxu1 %v6103_v12  ;;  %v1496_v12 = vld [vmem:[#allocation2 + $0x848] sm:$0xff]  ;;  %v843_v61 = vsel %vm302_vm0, %v841_v52, %v842_v4  ;;  %v1737_v39 = vld [vmem:[#allocation2 + $0xbc0] sm:$0xff]  ;;  %v1731_v52 = vld [vmem:[#allocation2 + $0xb90] sm:$0xff] }
  0xf0   : > { %1876 = vmatprep.subr.mxu1 %v1500_v54  ;;  %1025 = vmatprep.mubr.f32.mxu0 %v837_v42  ;;  %v1543_v54 = vld [vmem:[#allocation2 + $0x9c0] sm:$0xff]  ;;  %v1735_v42 = vld [vmem:[#allocation2 + $0xbb0] sm:$0xff] }
  0xf1   : > { %1764 = vmatpush1.msra.mxu0 %v1693_v43  ;;  %1877 = vmatpush1.msra.mxu1 %v1499_v46  ;;  %v1541_v43 = vld [vmem:[#allocation2 + $0x9b0] sm:$0xff]  ;;  %v1733_v46 = vld [vmem:[#allocation2 + $0xba0] sm:$0xff] }
  0xf2   : > { %1026 = vmatmul.mubr.f32.gmra.mxu0 %v834_v47  ;;  %1765 = vmatprep.subr.mxu0 %v1692_v50  ;;  %v1539_v47 = vld [vmem:[#allocation2 + $0x9a0] sm:$0xff]  ;;  %v1732_v50 = vld [vmem:[#allocation2 + $0xb98] sm:$0xff]  ;;  %v1537_v4 = vld [vmem:[#allocation2 + $0x990] sm:$0xff] }
  0xf3   : > { %1878 = vmatprep.subr.mxu1 %v1498_v51  ;;  %1235 = vmatprep.mubr.f32.mxu1 %v6111_v26  ;;  %v1687_v26 = vld [vmem:[#allocation2 + $0xa30] sm:$0xff]  ;;  %v1538_v51 = vld [vmem:[#allocation2 + $0x998] sm:$0xff] }
  0xf4   : > { %1766 = vmatpush1.msra.mxu0 %v1691_v53  ;;  %1879 = vmatpush1.msra.mxu1 %v1497_v57  ;;  %v1730_v53 = vld [vmem:[#allocation2 + $0xb88] sm:$0xff]  ;;  %v1535_v57 = vld [vmem:[#allocation2 + $0x980] sm:$0xff] }
  0xf5   : > { %1767 = vmatprep.subr.mxu0 %v1690_v58  ;;  %1236 = vmatmul.mubr.f32.gmra.mxu1 %v6117_v33  ;;  %v849_v33 = vsel %vm302_vm0, %v847_v5, %v848_v6  ;;  %v1728_v58 = vld [vmem:[#allocation2 + $0xb78] sm:$0xff]  ;;  %v1722_v5 = vld [vmem:[#allocation2 + $0xb48] sm:$0xff] }
  0xf6   : > { %1880 = vmatprep.subr.mxu1 %v1496_v12  ;;  %1031 = vmatprep.mubr.f32.mxu0 %v843_v61  ;;  %v1534_v12 = vld [vmem:[#allocation2 + $0x978] sm:$0xff]  ;;  %v1726_v61 = vld [vmem:[#allocation2 + $0xb68] sm:$0xff] }
  0xf7   : > { %1768 = vmatpush1.msra.mxu0 %v1689_v10  ;;  %1881 = vmatpush1.msra.mxu1 %v1495_v0  ;;  %v1532_v10 = vld [vmem:[#allocation2 + $0x968] sm:$0xff]  ;;  %v1724_v0 = vld [vmem:[#allocation2 + $0xb58] sm:$0xff] }
  0xf8   : > { %1032 = vmatmul.mubr.f32.gmra.mxu0 %v840_v1  ;;  %1769 = vmatprep.subr.mxu0 %v1688_v2  ;;  %v1530_v1 = vld [vmem:[#allocation2 + $0x958] sm:$0xff]  ;;  %v1723_v2 = vld [vmem:[#allocation2 + $0xb50] sm:$0xff]  ;;  %v1528_v6 = vld [vmem:[#allocation2 + $0x948] sm:$0xff] }
  0xf9   : > { %1882 = vmatprep.subr.mxu1 %v1494_v3  ;;  %1241 = vmatprep.mubr.f32.mxu1 %v6125_v49  ;;  %v1489_v49 = vld [vmem:[#allocation2 + $0x810] sm:$0xff] }
  0xfa   : > { %1770 = vmatpush1.msra.mxu0 %v1687_v26  ;;  %1883 = vmatpush1.msra.mxu1 %v1493_v13  ;;  %v1529_v3 = vld [vmem:[#allocation2 + $0x950] sm:$0xff]  ;;  %v1721_v26 = vld [vmem:[#allocation2 + $0xb40] sm:$0xff]  ;;  %v1526_v13 = vld [vmem:[#allocation2 + $0x938] sm:$0xff] }
  0xfb   : > { %1771 = vmatprep.subr.mxu0 %v1686_v28  ;;  %1242 = vmatmul.mubr.f32.gmra.mxu1 %v6131_v56  ;;  %v1744_v56 = vld [vmem:[#allocation2 + $0xbf8] sm:$0xff]  ;;  %v1719_v28 = vld [vmem:[#allocation2 + $0xb30] sm:$0xff] }
  0xfc   : > { %1884 = vmatprep.subr.mxu1 %v1492_v14  ;;  %1037 = vmatprep.mubr.f32.mxu0 %v849_v33  ;;  %v1525_v14 = vld [vmem:[#allocation2 + $0x930] sm:$0xff]  ;;  %v1718_v33 = vld [vmem:[#allocation2 + $0xb28] sm:$0xff] }
  0xfd   : > { %1772 = vmatpush1.msra.mxu0 %v1685_v15  ;;  %1885 = vmatpush1.msra.mxu1 %v1491_v17  ;;  %v1524_v15 = vld [vmem:[#allocation2 + $0x928] sm:$0xff] }
  0xfe   : > { %1038 = vmatmul.mubr.f32.gmra.mxu0 %v846_v18  ;;  %1773 = vmatprep.subr.mxu0 %v1684_v19  ;;  %v5372_v17 = vld [vmem:[%s6046_s7 + $0x28] sm:$0xfc]  ;;  %v5374_v18 = vld [vmem:[%s6046_s7 + $0x38] sm:$0x3] }
  0xff   : > { %1886 = vmatprep.subr.mxu1 %v1490_v34  ;;  %1247 = vmatprep.mubr.f32.mxu1 %v6139_v8  ;;  %v1547_v8 = vld [vmem:[#allocation2 + $0x9e0] sm:$0xff]  ;;  %v5340_v19 = vld [vmem:[%s6046_s7 + $0x28] sm:$0xfe]  ;;  %v5342_v34 = vld [vmem:[%s6046_s7 + $0x38] sm:$0x1] }
 0x100   : > { %1774 = vmatpush1.msra.mxu0 %v1683_v20  ;;  %1887 = vmatpush1.msra.mxu1 %v1489_v49  ;;  %v5371_v20 = vld [vmem:[%s6046_s7 + $0x20] sm:$0xfc]  ;;  %v5373_v49 = vld [vmem:[%s6046_s7 + $0x30] sm:$0x3] }
 0x101   : > { %1775 = vmatprep.subr.mxu0 %v1682_v21  ;;  %1248 = vmatmul.mubr.f32.gmra.mxu1 %v6145_v16  ;;  %v1738_v16 = vld [vmem:[#allocation2 + $0xbc8] sm:$0xff]  ;;  %v5339_v21 = vld [vmem:[%s6046_s7 + $0x20] sm:$0xfe] }
 0x102   : > { %1888 = vmatprep.subr.mxu1 %v1488_v22  ;;  %1776 = vmatpush1.msra.mxu0 %v1681_v23  ;;  %v5341_v22 = vld [vmem:[%s6046_s7 + $0x30] sm:$0x1]  ;;  %v1717_v23 = vld [vmem:[#allocation2 + $0xb20] sm:$0xff] }
 0x103   : > { %1889 = vmatpush1.msra.mxu1 %v1487_v24  ;;  %1777 = vmatprep.subr.mxu0 %v1744_v56  ;;  %v1523_v24 = vld [vmem:[#allocation2 + $0x920] sm:$0xff]  ;;  %v1619_v56 = vrot.slane %v5372_v17, 2  ;;  %v2114_v17 = vld [vmem:[#allocation2 + $0xc70] sm:$0xff] }
 0x104   : > { %1890 = vmatprep.subr.mxu1 %v1550_v25  ;;  %1778 = vmatpush2.msra.mxu0 %v1743_v27  ;;  %v1620_v25 = vrot.slane %v5374_v18, 2  ;;  %v1716_v27 = vld [vmem:[#allocation2 + $0xb18] sm:$0xff]  ;;  %v2436_v18 = vld [vmem:[#allocation2 + $0xe70] sm:$0xff] }
 0x105   : > { %1891 = vmatpush2.msra.mxu1 %v1549_v29  ;;  %1779 = vmatprep.subr.mxu0 %v1742_v30  ;;  %v1522_v29 = vld [vmem:[#allocation2 + $0x918] sm:$0xff]  ;;  %v1425_v30 = vrot.slane %v5340_v19, 1  ;;  %v2113_v19 = vld [vmem:[#allocation2 + $0xc68] sm:$0xff] }
 0x106   : > { %1892 = vmatprep.subr.mxu1 %v1548_v31  ;;  %1780 = vmatpush2.msra.mxu0 %v1741_v32  ;;  %v1426_v31 = vrot.slane %v5342_v34, 1  ;;  %v1715_v32 = vld [vmem:[#allocation2 + $0xb10] sm:$0xff]  ;;  %v2435_v34 = vld [vmem:[#allocation2 + $0xe68] sm:$0xff] }
 0x107   : > { %1893 = vmatpush2.msra.mxu1 %v1547_v8  ;;  %1781 = vmatprep.subr.mxu0 %v1740_v48  ;;  %v1521_v8 = vld [vmem:[#allocation2 + $0x910] sm:$0xff]  ;;  %v1616_v48 = vrot.slane %v5371_v20, 2  ;;  %v2112_v20 = vld [vmem:[#allocation2 + $0xc60] sm:$0xff] }
 0x108   : > { %1894 = vmatprep.subr.mxu1 %v1546_v35  ;;  %1782 = vmatpush2.msra.mxu0 %v1739_v36  ;;  %v1617_v35 = vrot.slane %v5373_v49, 2  ;;  %v1422_v36 = vrot.slane %v5339_v21, 1  ;;  %v2434_v49 = vld [vmem:[#allocation2 + $0xe60] sm:$0xff]  ;;  %v2111_v21 = vld [vmem:[#allocation2 + $0xc58] sm:$0xff] }
 0x109   : > { %1895 = vmatpush2.msra.mxu1 %v1545_v37  ;;  %1783 = vmatprep.subr.mxu0 %v1738_v16  ;;  %v1423_v37 = vrot.slane %v5341_v22, 1  ;;  %v1714_v16 = vld [vmem:[#allocation2 + $0xb08] sm:$0xff]  ;;  %v2433_v22 = vld [vmem:[#allocation2 + $0xe58] sm:$0xff] }
 0x10a   : > { %1896 = vmatprep.subr.mxu1 %v1544_v38  ;;  %1784 = vmatpush2.msra.mxu0 %v1737_v39  ;;  %v1520_v38 = vld [vmem:[#allocation2 + $0x908] sm:$0xff]  ;;  %v1713_v39 = vld [vmem:[#allocation2 + $0xb00] sm:$0xff] }
 0x10b   : > { %1897 = vmatpush2.msra.mxu1 %v1543_v54  ;;  %1785 = vmatprep.subr.mxu0 %v1736_v40  ;;  %v1621_v54 = vsel %vm1615_vm1, %v1619_v56, %v1620_v25  ;;  %v1519_v40 = vld [vmem:[#allocation2 + $0x900] sm:$0xff]  ;;  %v2109_v56 = vld [vmem:[#allocation2 + $0xc48] sm:$0xff] }
 0x10c   : > { %1898 = vmatprep.subr.mxu1 %v1542_v41  ;;  %1786 = vmatpush2.msra.mxu0 %v1735_v42  ;;  %v1427_v41 = vsel %vm302_vm0, %v1425_v30, %v1426_v31  ;;  %v1618_v42 = vsel %vm1615_vm1, %v1616_v48, %v1617_v35  ;;  %v2431_v25 = vld [vmem:[#allocation2 + $0xe48] sm:$0xff]  ;;  %v2107_v30 = vld [vmem:[#allocation2 + $0xc38] sm:$0xff] }
 0x10d   : > { %1899 = vmatpush2.msra.mxu1 %v1541_v43  ;;  %1787 = vmatprep.subr.mxu0 %v1734_v44  ;;  %v1424_v43 = vsel %vm302_vm0, %v1422_v36, %v1423_v37  ;;  %v2131_v44 = vld [vmem:[#allocation2 + $0xcf8] sm:$0xff]  ;;  %v2105_v48 = vld [vmem:[#allocation2 + $0xc28] sm:$0xff]  ;;  %v2104_v36 = vld [vmem:[#allocation2 + $0xc20] sm:$0xff] }
 0x10e   : > { %1900 = vmatprep.subr.mxu1 %v1540_v45  ;;  %1788 = vmatpush2.msra.mxu0 %v1733_v46  ;;  %v2453_v45 = vld [vmem:[#allocation2 + $0xef8] sm:$0xff]  ;;  %v2130_v46 = vld [vmem:[#allocation2 + $0xcf0] sm:$0xff]  ;;  %v2427_v35 = vld [vmem:[#allocation2 + $0xe28] sm:$0xff] }
 0x10f   : > { %1901 = vmatpush2.msra.mxu1 %v1539_v47  ;;  %1789 = vmatprep.subr.mxu0 %v1732_v50  ;;  %v2452_v47 = vld [vmem:[#allocation2 + $0xef0] sm:$0xff]  ;;  %v2129_v50 = vld [vmem:[#allocation2 + $0xce8] sm:$0xff]  ;;  %v2429_v31 = vld [vmem:[#allocation2 + $0xe38] sm:$0xff] }
 0x110   : > { %1902 = vmatprep.subr.mxu1 %v1538_v51  ;;  %1790 = vmatpush2.msra.mxu0 %v1731_v52  ;;  %v2451_v51 = vld [vmem:[#allocation2 + $0xee8] sm:$0xff]  ;;  %v2128_v52 = vld [vmem:[#allocation2 + $0xce0] sm:$0xff] }
 0x111   : > { %1903 = vmatpush2.msra.mxu1 %v1537_v4  ;;  %1791 = vmatprep.subr.mxu0 %v1730_v53  ;;  %v2450_v4 = vld [vmem:[#allocation2 + $0xee0] sm:$0xff]  ;;  %v2127_v53 = vld [vmem:[#allocation2 + $0xcd8] sm:$0xff] }
 0x112   : > { %1904 = vmatprep.subr.mxu1 %v1536_v55  ;;  %1792 = vmatpush2.msra.mxu0 %v1729_v7  ;;  %v2449_v55 = vld [vmem:[#allocation2 + $0xed8] sm:$0xff]  ;;  %v2126_v7 = vld [vmem:[#allocation2 + $0xcd0] sm:$0xff]  ;;  %v2426_v37 = vld [vmem:[#allocation2 + $0xe20] sm:$0xff] }
 0x113   : > { %1905 = vmatpush2.msra.mxu1 %v1535_v57  ;;  %1793 = vmatprep.subr.mxu0 %v1728_v58  ;;  %v2448_v57 = vld [vmem:[#allocation2 + $0xed0] sm:$0xff]  ;;  %v2125_v58 = vld [vmem:[#allocation2 + $0xcc8] sm:$0xff] }
 0x114   : > { %1906 = vmatprep.subr.mxu1 %v1534_v12  ;;  %1794 = vmatpush2.msra.mxu0 %v1727_v59  ;;  %v2447_v12 = vld [vmem:[#allocation2 + $0xec8] sm:$0xff]  ;;  %v2124_v59 = vld [vmem:[#allocation2 + $0xcc0] sm:$0xff] }
 0x115   : > { %1907 = vmatpush2.msra.mxu1 %v1533_v60  ;;  %1795 = vmatprep.subr.mxu0 %v1726_v61  ;;  %v2446_v60 = vld [vmem:[#allocation2 + $0xec0] sm:$0xff]  ;;  %v2123_v61 = vld [vmem:[#allocation2 + $0xcb8] sm:$0xff] }
 0x116   : > { %1908 = vmatprep.subr.mxu1 %v1532_v10  ;;  %1796 = vmatpush2.msra.mxu0 %v1725_v62  ;;  %v2445_v10 = vld [vmem:[#allocation2 + $0xeb8] sm:$0xff]  ;;  %v2122_v62 = vld [vmem:[#allocation2 + $0xcb0] sm:$0xff] }
 0x117   : > { %1909 = vmatpush2.msra.mxu1 %v1531_v63  ;;  %1797 = vmatprep.subr.mxu0 %v1724_v0  ;;  %v2444_v63 = vld [vmem:[#allocation2 + $0xeb0] sm:$0xff]  ;;  %v2121_v0 = vld [vmem:[#allocation2 + $0xca8] sm:$0xff] }
 0x118   : > { %1910 = vmatprep.subr.mxu1 %v1530_v1  ;;  %1798 = vmatpush2.msra.mxu0 %v1723_v2  ;;  %v2443_v1 = vld [vmem:[#allocation2 + $0xea8] sm:$0xff]  ;;  %v2120_v2 = vld [vmem:[#allocation2 + $0xca0] sm:$0xff] }
 0x119   : > { %1911 = vmatpush2.msra.mxu1 %v1529_v3  ;;  %1799 = vmatprep.subr.mxu0 %v1722_v5  ;;  %v2442_v3 = vld [vmem:[#allocation2 + $0xea0] sm:$0xff]  ;;  %v2119_v5 = vld [vmem:[#allocation2 + $0xc98] sm:$0xff] }
 0x11a   : > { %1912 = vmatprep.subr.mxu1 %v1528_v6  ;;  %1800 = vmatpush2.msra.mxu0 %v1721_v26  ;;  %v2441_v6 = vld [vmem:[#allocation2 + $0xe98] sm:$0xff]  ;;  %v2118_v26 = vld [vmem:[#allocation2 + $0xc90] sm:$0xff] }
 0x11b   : > { %1913 = vmatpush2.msra.mxu1 %v1527_v9  ;;  %1801 = vmatprep.subr.mxu0 %v1720_v11  ;;  %v2440_v9 = vld [vmem:[#allocation2 + $0xe90] sm:$0xff]  ;;  %v2117_v11 = vld [vmem:[#allocation2 + $0xc88] sm:$0xff] }
 0x11c   : > { %1914 = vmatprep.subr.mxu1 %v1526_v13  ;;  %1802 = vmatpush2.msra.mxu0 %v1719_v28  ;;  %v2439_v13 = vld [vmem:[#allocation2 + $0xe88] sm:$0xff]  ;;  %v2116_v28 = vld [vmem:[#allocation2 + $0xc80] sm:$0xff] }
 0x11d   : > { %1915 = vmatpush2.msra.mxu1 %v1525_v14  ;;  %1803 = vmatprep.subr.mxu0 %v1718_v33  ;;  %v2438_v14 = vld [vmem:[#allocation2 + $0xe80] sm:$0xff]  ;;  %v2115_v33 = vld [vmem:[#allocation2 + $0xc78] sm:$0xff] }
 0x11e   : > { %1916 = vmatprep.subr.mxu1 %v1524_v15  ;;  %1804 = vmatpush2.msra.mxu0 %v1717_v23  ;;  %v2437_v15 = vld [vmem:[#allocation2 + $0xe78] sm:$0xff]  ;;  %v2110_v23 = vld [vmem:[#allocation2 + $0xc50] sm:$0xff] }
 0x11f   : > { %1917 = vmatpush2.msra.mxu1 %v1523_v24  ;;  %1805 = vmatprep.subr.mxu0 %v1716_v27  ;;  %v2432_v24 = vld [vmem:[#allocation2 + $0xe50] sm:$0xff]  ;;  %v2108_v27 = vld [vmem:[#allocation2 + $0xc40] sm:$0xff] }
 0x120   : > { %1918 = vmatprep.subr.mxu1 %v1522_v29  ;;  %1806 = vmatpush2.msra.mxu0 %v1715_v32  ;;  %v2430_v29 = vld [vmem:[#allocation2 + $0xe40] sm:$0xff]  ;;  %v2106_v32 = vld [vmem:[#allocation2 + $0xc30] sm:$0xff] }
 0x121   : > { %1919 = vmatpush2.msra.mxu1 %v1521_v8  ;;  %1807 = vmatprep.subr.mxu0 %v1714_v16  ;;  %v2428_v8 = vld [vmem:[#allocation2 + $0xe30] sm:$0xff]  ;;  %v2103_v16 = vld [vmem:[#allocation2 + $0xc18] sm:$0xff] }
 0x122   : > { %1920 = vmatprep.subr.mxu1 %v1520_v38  ;;  %1808 = vmatpush2.msra.mxu0 %v1713_v39  ;;  %v2425_v38 = vld [vmem:[#allocation2 + $0xe18] sm:$0xff]  ;;  %v5376_v39 = vld [vmem:[%s6046_s7 + $0x48] sm:$0xfc] }
 0x123   : > { %1809 = vmatprep.mubr.f32.mxu0 %v1621_v54  ;;  %1921 = vmatpush2.msra.mxu1 %v1519_v40  ;;  %v5378_v54 = vld [vmem:[%s6046_s7 + $0x58] sm:$0x3]  ;;  %v2102_v40 = vld [vmem:[#allocation2 + $0xc10] sm:$0xff] }
 0x124   : > { %1922 = vmatprep.mubr.f32.mxu1 %v1427_v41  ;;  %1810 = vmatmul.mubr.f32.vlgmr.msra.gmra.mxu0 %v1618_v42  ;;  %v2424_v41 = vld [vmem:[#allocation2 + $0xe10] sm:$0xff]  ;;  %v5344_v42 = vld [vmem:[%s6046_s7 + $0x48] sm:$0xfe] }
 0x125   : > { %1923 = vmatmul.mubr.f32.vlgmr.msra.gmra.mxu1 %v1424_v43  ;;  %2164 = vmatprep.subr.mxu0 %v2131_v44  ;;  %v5346_v43 = vld [vmem:[%s6046_s7 + $0x58] sm:$0x1]  ;;  %v5375_v44 = vld [vmem:[%s6046_s7 + $0x40] sm:$0xfc] }
 0x126   : > { %2486 = vmatprep.subr.mxu1 %v2453_v45  ;;  %2165 = vmatpush1.msra.mxu0 %v2130_v46  ;;  %v5377_v45 = vld [vmem:[%s6046_s7 + $0x50] sm:$0x3]  ;;  %v5343_v46 = vld [vmem:[%s6046_s7 + $0x40] sm:$0xfe] }
 0x127   : > { %2487 = vmatpush1.msra.mxu1 %v2452_v47  ;;  %2166 = vmatprep.subr.mxu0 %v2129_v50  ;;  %v5345_v47 = vld [vmem:[%s6046_s7 + $0x50] sm:$0x1]  ;;  %v2101_v50 = vld [vmem:[#allocation2 + $0xc08] sm:$0xff] }
 0x128   : > { %2488 = vmatprep.subr.mxu1 %v2451_v51  ;;  %2167 = vmatpush1.msra.mxu0 %v2128_v52  ;;  %v2423_v51 = vld [vmem:[#allocation2 + $0xe08] sm:$0xff]  ;;  %v2100_v52 = vld [vmem:[#allocation2 + $0xc00] sm:$0xff] }
 0x129   : > { %2489 = vmatpush1.msra.mxu1 %v2450_v4  ;;  %2168 = vmatprep.subr.mxu0 %v2127_v53  ;;  %v2422_v4 = vld [vmem:[#allocation2 + $0xe00] sm:$0xff]  ;;  %v2163_v53 = vld [vmem:[#allocation2 + $0xdf8] sm:$0xff] }
 0x12a   : > { %2490 = vmatprep.subr.mxu1 %v2449_v55  ;;  %2169 = vmatpush1.msra.mxu0 %v2126_v7  ;;  %v1625_v55 = vrot.slane %v5376_v39, 2  ;;  %v1626_v7 = vrot.slane %v5378_v54, 2  ;;  %v2157_v39 = vld [vmem:[#allocation2 + $0xdc8] sm:$0xff] }
 0x12b   : > { %2491 = vmatpush1.msra.mxu1 %v2448_v57  ;;  %2170 = vmatprep.subr.mxu0 %v2125_v58  ;;  %v1431_v57 = vrot.slane %v5344_v42, 1  ;;  %v1432_v58 = vrot.slane %v5346_v43, 1  ;;  %v2479_v54 = vld [vmem:[#allocation2 + $0xfc8] sm:$0xff]  ;;  %v2156_v42 = vld [vmem:[#allocation2 + $0xdc0] sm:$0xff] }
 0x12c   : > { %2492 = vmatprep.subr.mxu1 %v2447_v12  ;;  %2171 = vmatpush1.msra.mxu0 %v2124_v59  ;;  %v2485_v12 = vld [vmem:[#allocation2 + $0xff8] sm:$0xff]  ;;  %v2162_v59 = vld [vmem:[#allocation2 + $0xdf0] sm:$0xff]  ;;  %v2478_v43 = vld [vmem:[#allocation2 + $0xfc0] sm:$0xff] }
 0x12d   : > { %2493 = vmatpush1.msra.mxu1 %v2446_v60  ;;  %2172 = vmatprep.subr.mxu0 %v2123_v61  ;;  %v1622_v60 = vrot.slane %v5375_v44, 2  ;;  %v1623_v61 = vrot.slane %v5377_v45, 2  ;;  %v2155_v44 = vld [vmem:[#allocation2 + $0xdb8] sm:$0xff] }
 0x12e   : > { %2494 = vmatprep.subr.mxu1 %v2445_v10  ;;  %2173 = vmatpush1.msra.mxu0 %v2122_v62  ;;  %v1428_v10 = vrot.slane %v5343_v46, 1  ;;  %v1429_v62 = vrot.slane %v5345_v47, 1 }
 0x12f   : > { %2495 = vmatpush1.msra.mxu1 %v2444_v63  ;;  %2174 = vmatprep.subr.mxu0 %v2121_v0  ;;  %v2484_v63 = vld [vmem:[#allocation2 + $0xff0] sm:$0xff]  ;;  %v5380_v0 = vld [vmem:[%s6046_s7 + $0x68] sm:$0xfc] }
 0x130   : > { %2496 = vmatprep.subr.mxu1 %v2443_v1  ;;  %2175 = vmatpush1.msra.mxu0 %v2120_v2  ;;  %v5382_v1 = vld [vmem:[%s6046_s7 + $0x78] sm:$0x3]  ;;  %v5348_v2 = vld [vmem:[%s6046_s7 + $0x68] sm:$0xfe] }
 0x131   : > { %2497 = vmatpush1.msra.mxu1 %v2442_v3  ;;  %2176 = vmatprep.subr.mxu0 %v2119_v5  ;;  %v5350_v3 = vld [vmem:[%s6046_s7 + $0x78] sm:$0x1]  ;;  %v5379_v5 = vld [vmem:[%s6046_s7 + $0x60] sm:$0xfc] }
 0x132   : > { %2498 = vmatprep.subr.mxu1 %v2441_v6  ;;  %2177 = vmatpush1.msra.mxu0 %v2118_v26  ;;  %v1627_v6 = vsel %vm1615_vm1, %v1625_v55, %v1626_v7  ;;  %v1433_v26 = vsel %vm302_vm0, %v1431_v57, %v1432_v58  ;;  %v2476_v57 = vld [vmem:[#allocation2 + $0xfb0] sm:$0xff]  ;;  %v5388_v58 = vld [vmem:[%s6046_s7 + $0xa8] sm:$0xfc] }
 0x133   : > { %2499 = vmatpush1.msra.mxu1 %v2440_v9  ;;  %2178 = vmatprep.subr.mxu0 %v2117_v11  ;;  %v5381_v9 = vld [vmem:[%s6046_s7 + $0x70] sm:$0x3]  ;;  %v5347_v11 = vld [vmem:[%s6046_s7 + $0x60] sm:$0xfe] }
 0x134   : > { %2500 = vmatprep.subr.mxu1 %v2439_v13  ;;  %2179 = vmatpush1.msra.mxu0 %v2116_v28  ;;  %v5349_v13 = vld [vmem:[%s6046_s7 + $0x70] sm:$0x1]  ;;  %v2161_v28 = vld [vmem:[#allocation2 + $0xde8] sm:$0xff] }
 0x135   : > { %2501 = vmatpush1.msra.mxu1 %v2438_v14  ;;  %2180 = vmatprep.subr.mxu0 %v2115_v33  ;;  %v2483_v14 = vld [vmem:[#allocation2 + $0xfe8] sm:$0xff]  ;;  %v1624_v33 = vsel %vm1615_vm1, %v1622_v60, %v1623_v61  ;;  %v5358_v60 = vld [vmem:[%s6046_s7 + $0xb8] sm:$0x1]  ;;  %v5387_v61 = vld [vmem:[%s6046_s7 + $0xa0] sm:$0xfc] }
 0x136   : > { %2502 = vmatprep.subr.mxu1 %v2437_v15  ;;  %2181 = vmatpush1.msra.mxu0 %v2114_v17  ;;  %v1430_v15 = vsel %vm302_vm0, %v1428_v10, %v1429_v62  ;;  %v2160_v17 = vld [vmem:[#allocation2 + $0xde0] sm:$0xff] }
 0x137   : > { %2503 = vmatpush1.msra.mxu1 %v2436_v18  ;;  %2182 = vmatprep.subr.mxu0 %v2113_v19  ;;  %v2482_v18 = vld [vmem:[#allocation2 + $0xfe0] sm:$0xff]  ;;  %v2159_v19 = vld [vmem:[#allocation2 + $0xdd8] sm:$0xff] }
 0x138   : > { %2504 = vmatprep.subr.mxu1 %v2435_v34  ;;  %2183 = vmatpush1.msra.mxu0 %v2112_v20  ;;  %v1631_v34 = vrot.slane %v5380_v0, 2  ;;  %v1632_v20 = vrot.slane %v5382_v1, 2  ;;  %v5355_v0 = vld [vmem:[%s6046_s7 + $0xa0] sm:$0xfe]  ;;  %v5357_v1 = vld [vmem:[%s6046_s7 + $0xb0] sm:$0x1] }
 0x139   : > { %2505 = vmatpush1.msra.mxu1 %v2434_v49  ;;  %2184 = vmatprep.subr.mxu0 %v2111_v21  ;;  %v1437_v49 = vrot.slane %v5348_v2, 1  ;;  %v1438_v21 = vrot.slane %v5350_v3, 1  ;;  %v2153_v2 = vld [vmem:[#allocation2 + $0xda8] sm:$0xff] }
 0x13a   : > { %2506 = vmatprep.subr.mxu1 %v2433_v22  ;;  %2185 = vmatpush1.msra.mxu0 %v2110_v23  ;;  %v2481_v22 = vld [vmem:[#allocation2 + $0xfd8] sm:$0xff]  ;;  %v2158_v23 = vld [vmem:[#allocation2 + $0xdd0] sm:$0xff]  ;;  %v2475_v3 = vld [vmem:[#allocation2 + $0xfa8] sm:$0xff] }
 0x13b   : > { %2507 = vmatpush1.msra.mxu1 %v2432_v24  ;;  %2186 = vmatprep.subr.mxu0 %v2109_v56  ;;  %v1628_v24 = vrot.slane %v5379_v5, 2  ;;  %v1629_v56 = vrot.slane %v5381_v9, 2  ;;  %v2474_v9 = vld [vmem:[#allocation2 + $0xfa0] sm:$0xff] }
 0x13c   : > { %2508 = vmatprep.subr.mxu1 %v2431_v25  ;;  %2187 = vmatpush1.msra.mxu0 %v2108_v27  ;;  %v1434_v25 = vrot.slane %v5347_v11, 1  ;;  %v1435_v27 = vrot.slane %v5349_v13, 1  ;;  %v2151_v11 = vld [vmem:[#allocation2 + $0xd98] sm:$0xff]  ;;  %v1643_v13 = vrot.slane %v5388_v58, 2  ;;  %v5363_v58 = vld [vmem:[%s6046_s7 + $0xe0] sm:$0xfe] }
 0x13d   : > { %2509 = vmatpush1.msra.mxu1 %v2430_v29  ;;  %2188 = vmatprep.subr.mxu0 %v2107_v30  ;;  %v2480_v29 = vld [vmem:[#allocation2 + $0xfd0] sm:$0xff]  ;;  %v5384_v30 = vld [vmem:[%s6046_s7 + $0x88] sm:$0xfc] }
 0x13e   : > { %2510 = vmatprep.subr.mxu1 %v2429_v31  ;;  %2189 = vmatpush1.msra.mxu0 %v2106_v32  ;;  %v5386_v31 = vld [vmem:[%s6046_s7 + $0x98] sm:$0x3]  ;;  %v5352_v32 = vld [vmem:[%s6046_s7 + $0x88] sm:$0xfe]  ;;  %v1637_v45 = vrot.slane %v5384_v30, 2 }
 0x13f   : > { %2511 = vmatpush1.msra.mxu1 %v2428_v8  ;;  %2190 = vmatprep.subr.mxu0 %v2105_v48  ;;  %v5354_v8 = vld [vmem:[%s6046_s7 + $0x98] sm:$0x1]  ;;  %v5383_v48 = vld [vmem:[%s6046_s7 + $0x80] sm:$0xfc]  ;;  %v1638_v46 = vrot.slane %v5386_v31, 2  ;;  %v1443_v47 = vrot.slane %v5352_v32, 1 }
 0x140   : > { %2512 = vmatprep.subr.mxu1 %v2427_v35  ;;  %2191 = vmatpush1.msra.mxu0 %v2104_v36  ;;  %v1633_v35 = vsel %vm1615_vm1, %v1631_v34, %v1632_v20  ;;  %v1439_v36 = vsel %vm302_vm0, %v1437_v49, %v1438_v21  ;;  %v1446_v34 = vrot.slane %v5355_v0, 1  ;;  %v1447_v20 = vrot.slane %v5357_v1, 1  ;;  %v2472_v49 = vld [vmem:[#allocation2 + $0xf90] sm:$0xff]  ;;  %v5392_v21 = vld [vmem:[%s6046_s7 + $0xc8] sm:$0xfc] }
 0x141   : > { %2513 = vmatpush1.msra.mxu1 %v2426_v37  ;;  %2192 = vmatprep.subr.mxu0 %v2103_v16  ;;  %v5385_v37 = vld [vmem:[%s6046_s7 + $0x90] sm:$0x3]  ;;  %v5351_v16 = vld [vmem:[%s6046_s7 + $0x80] sm:$0xfe]  ;;  %v1639_v10 = vsel %vm1615_vm1, %v1637_v45, %v1638_v46  ;;  %v2149_v32 = vld [vmem:[#allocation2 + $0xd88] sm:$0xff] }
 0x142   : > { %2514 = vmatprep.subr.mxu1 %v2425_v38  ;;  %2193 = vmatpush1.msra.mxu0 %v2102_v40  ;;  %v5353_v38 = vld [vmem:[%s6046_s7 + $0x90] sm:$0x1]  ;;  %v1630_v40 = vsel %vm1615_vm1, %v1628_v24, %v1629_v56  ;;  %v1440_v55 = vrot.slane %v5351_v16, 1  ;;  %v5362_v24 = vld [vmem:[%s6046_s7 + $0xd8] sm:$0x1] }
 0x143   : > { %2515 = vmatpush1.msra.mxu1 %v2424_v41  ;;  %2194 = vmatprep.subr.mxu0 %v2101_v50  ;;  %v1436_v41 = vsel %vm302_vm0, %v1434_v25, %v1435_v27  ;;  %v1444_v50 = vrot.slane %v5354_v8, 1  ;;  %v1441_v7 = vrot.slane %v5353_v38, 1  ;;  %v5391_v56 = vld [vmem:[%s6046_s7 + $0xc0] sm:$0xfc]  ;;  %v5361_v31 = vld [vmem:[%s6046_s7 + $0xd0] sm:$0x1] }
 0x144   : > { %2516 = vmatprep.subr.mxu1 %v2423_v51  ;;  %2195 = vmatpush1.msra.mxu0 %v2100_v52  ;;  %v2477_v51 = vld [vmem:[#allocation2 + $0xfb8] sm:$0xff]  ;;  %v2154_v52 = vld [vmem:[#allocation2 + $0xdb0] sm:$0xff]  ;;  %v5359_v30 = vld [vmem:[%s6046_s7 + $0xc0] sm:$0xfe]  ;;  %v1649_v38 = vrot.slane %v5392_v21, 2  ;;  %v1453_v46 = vrot.slane %v5361_v31, 1 }
 0x145   : > { %2517 = vmatpush1.msra.mxu1 %v2422_v4  ;;  %2196 = vmatprep.subr.mxu0 %v2163_v53  ;;  %v1634_v4 = vrot.slane %v5383_v48, 2  ;;  %v1635_v53 = vrot.slane %v5385_v37, 2  ;;  %v1445_v62 = vsel %vm302_vm0, %v1443_v47, %v1444_v50  ;;  %v2471_v8 = vld [vmem:[#allocation2 + $0xf88] sm:$0xff]  ;;  %v2470_v37 = vld [vmem:[#allocation2 + $0xf80] sm:$0xff]  ;;  %v2147_v16 = vld [vmem:[#allocation2 + $0xd78] sm:$0xff]  ;;  %v1452_v45 = vrot.slane %v5359_v30, 1 }
 0x146   : > { %2518 = vmatprep.subr.mxu1 %v2485_v12  ;;  %2197 = vmatpush2.msra.mxu0 %v2162_v59  ;;  %v5390_v12 = vld [vmem:[%s6046_s7 + $0xb8] sm:$0x3]  ;;  %v5356_v59 = vld [vmem:[%s6046_s7 + $0xa8] sm:$0xfe]  ;;  %v2468_v47 = vld [vmem:[#allocation2 + $0xf70] sm:$0xff] }
 0x147   : > { %2519 = vmatpush2.msra.mxu1 %v2484_v63  ;;  %1815 = vmatprep.mubr.f32.mxu0 %v1627_v6  ;;  %v5389_v63 = vld [vmem:[%s6046_s7 + $0xb0] sm:$0x3]  ;;  %v1636_v5 = vsel %vm1615_vm1, %v1634_v4, %v1635_v53  ;;  %v1442_v6 = vsel %vm302_vm0, %v1440_v55, %v1441_v7  ;;  %v5396_v50 = vld [vmem:[%s6046_s7 + $0xe8] sm:$0xfc]  ;;  %v5366_v4 = vld [vmem:[%s6046_s7 + $0xf8] sm:$0x1] }
 0x148   : > { %1928 = vmatprep.mubr.f32.mxu1 %v1433_v26  ;;  %2198 = vmatprep.subr.mxu0 %v2161_v28  ;;  %v2152_v26 = vld [vmem:[#allocation2 + $0xda0] sm:$0xff]  ;;  %v1644_v28 = vrot.slane %v5390_v12, 2  ;;  %v5365_v12 = vld [vmem:[%s6046_s7 + $0xf0] sm:$0x1]  ;;  %v1655_v0 = vrot.slane %v5396_v50, 2 }
 0x149   : > { %2520 = vmatprep.subr.mxu1 %v2483_v14  ;;  %1816 = vmatmul.mubr.f32.gmra.mxu0 %v1624_v33  ;;  %v1449_v14 = vrot.slane %v5356_v59, 1  ;;  %v1450_v33 = vrot.slane %v5358_v60, 1  ;;  %v5395_v53 = vld [vmem:[%s6046_s7 + $0xe0] sm:$0xfc]  ;;  %v2145_v59 = vld [vmem:[#allocation2 + $0xd68] sm:$0xff] }
 0x14a   : > { %1929 = vmatmul.mubr.f32.gmra.mxu1 %v1430_v15  ;;  %2199 = vmatpush2.msra.mxu0 %v2160_v17  ;;  %v2473_v15 = vld [vmem:[#allocation2 + $0xf98] sm:$0xff]  ;;  %v2150_v17 = vld [vmem:[#allocation2 + $0xd90] sm:$0xff]  ;;  %v1645_v25 = vsel %vm1615_vm1, %v1643_v13, %v1644_v28  ;;  %v2467_v60 = vld [vmem:[#allocation2 + $0xf68] sm:$0xff]  ;;  %v1459_v13 = vrot.slane %v5365_v12, 1 }
 0x14b   : > { %2521 = vmatpush2.msra.mxu1 %v2482_v18  ;;  %2200 = vmatprep.subr.mxu0 %v2159_v19  ;;  %v1640_v18 = vrot.slane %v5387_v61, 2  ;;  %v1641_v19 = vrot.slane %v5389_v63, 2  ;;  %v1451_v27 = vsel %vm302_vm0, %v1449_v14, %v1450_v33  ;;  %v2466_v63 = vld [vmem:[#allocation2 + $0xf60] sm:$0xff]  ;;  %v2142_v28 = vld [vmem:[#allocation2 + $0xd50] sm:$0xff]  ;;  %v5400_v33 = vld [vmem:[%s6046_s7 + $0x108] sm:$0xfc] }
 0x14c   : > { %2522 = vmatprep.subr.mxu1 %v2481_v22  ;;  %2201 = vmatpush2.msra.mxu0 %v2158_v23  ;;  %v5394_v22 = vld [vmem:[%s6046_s7 + $0xd8] sm:$0x3]  ;;  %v5360_v23 = vld [vmem:[%s6046_s7 + $0xc8] sm:$0xfe]  ;;  %v2464_v14 = vld [vmem:[#allocation2 + $0xf50] sm:$0xff]  ;;  %v1661_v30 = vrot.slane %v5400_v33, 2 }
 0x14d   : > { %2523 = vmatpush2.msra.mxu1 %v2480_v29  ;;  %1821 = vmatprep.mubr.f32.mxu0 %v1633_v35  ;;  %v5393_v29 = vld [vmem:[%s6046_s7 + $0xd0] sm:$0x3]  ;;  %v1642_v48 = vsel %vm1615_vm1, %v1640_v18, %v1641_v19  ;;  %v1448_v35 = vsel %vm302_vm0, %v1446_v34, %v1447_v20  ;;  %v5370_v18 = vld [vmem:[%s6046_s7 + $0x118] sm:$0x1]  ;;  %v2141_v20 = vld [vmem:[#allocation2 + $0xd48] sm:$0xff] }
 0x14e   : > { %1934 = vmatprep.mubr.f32.mxu1 %v1439_v36  ;;  %2202 = vmatprep.subr.mxu0 %v2157_v39  ;;  %v2148_v36 = vld [vmem:[#allocation2 + $0xd80] sm:$0xff]  ;;  %v1650_v39 = vrot.slane %v5394_v22, 2  ;;  %v1972_v50 = vld [vmem:[%s6046_s7 + $0x8] sm:$0xfe] }
 0x14f   : > { %2524 = vmatprep.subr.mxu1 %v2479_v54  ;;  %1822 = vmatmul.mubr.f32.gmra.mxu0 %v1630_v40  ;;  %v1455_v54 = vrot.slane %v5360_v23, 1  ;;  %v1456_v40 = vrot.slane %v5362_v24, 1  ;;  %v5399_v21 = vld [vmem:[%s6046_s7 + $0x100] sm:$0xfc]  ;;  %v5401_v24 = vld [vmem:[%s6046_s7 + $0x110] sm:$0x3] }
 0x150   : > { %1935 = vmatmul.mubr.f32.gmra.mxu1 %v1436_v41  ;;  %2203 = vmatpush2.msra.mxu0 %v2156_v42  ;;  %v2469_v41 = vld [vmem:[#allocation2 + $0xf78] sm:$0xff]  ;;  %v2146_v42 = vld [vmem:[#allocation2 + $0xd70] sm:$0xff]  ;;  %v1651_v55 = vsel %vm1615_vm1, %v1649_v38, %v1650_v39  ;;  %v1659_v38 = vrot.slane %v5401_v24, 2  ;;  %v2458_v12 = vld [vmem:[#allocation2 + $0xf20] sm:$0xff] }
 0x151   : > { %2525 = vmatpush2.msra.mxu1 %v2478_v43  ;;  %2204 = vmatprep.subr.mxu0 %v2155_v44  ;;  %v1646_v43 = vrot.slane %v5391_v56, 2  ;;  %v1647_v44 = vrot.slane %v5393_v29, 2  ;;  %v1457_v7 = vsel %vm302_vm0, %v1455_v54, %v1456_v40  ;;  %v5367_v56 = vld [vmem:[%s6046_s7 + $0x100] sm:$0xfe]  ;;  %v6312_v29 = vpop.f32.mrf.mxu1  ;;  %v2138_v40 = vld [vmem:[#allocation2 + $0xd30] sm:$0xff] }
 0x152   : > { %2526 = vmatprep.subr.mxu1 %v2477_v51  ;;  %2205 = vmatpush2.msra.mxu0 %v2154_v52  ;;  %v5398_v51 = vld [vmem:[%s6046_s7 + $0xf8] sm:$0x3]  ;;  %v5364_v52 = vld [vmem:[%s6046_s7 + $0xe8] sm:$0xfe]  ;;  %v1464_v39 = vrot.slane %v5367_v56, 1 }
 0x153   : > { %2527 = vmatpush2.msra.mxu1 %v2476_v57  ;;  %1827 = vmatprep.mubr.f32.mxu0 %v1639_v10  ;;  %v5397_v57 = vld [vmem:[%s6046_s7 + $0xf0] sm:$0x3]  ;;  %v1648_v61 = vsel %vm1615_vm1, %v1646_v43, %v1647_v44  ;;  %v1454_v10 = vsel %vm302_vm0, %v1452_v45, %v1453_v46  ;;  %v1656_v1 = vrot.slane %v5398_v51, 2  ;;  %v6316_v44 = vpop.f32.mrf.mxu1  ;;  %v1974_v51 = vld [vmem:[%s6046_s7 + $0x18] sm:$0x1] }
 0x154   : > { %1940 = vmatprep.mubr.f32.mxu1 %v1445_v62  ;;  %2206 = vmatprep.subr.mxu0 %v2153_v2  ;;  %v2144_v62 = vld [vmem:[#allocation2 + $0xd60] sm:$0xff]  ;;  %v1461_v2 = vrot.slane %v5364_v52, 1  ;;  %v2945_v56 = vld [vmem:[#allocation2 + $0x12f8] sm:$0xff] }
 0x155   : > { %2528 = vmatprep.subr.mxu1 %v2475_v3  ;;  %1828 = vmatmul.mubr.f32.gmra.mxu0 %v1636_v5  ;;  %v1462_v3 = vrot.slane %v5366_v4, 1  ;;  %v2143_v5 = vld [vmem:[#allocation2 + $0xd58] sm:$0xff]  ;;  %v1657_v19 = vsel %vm1615_vm1, %v1655_v0, %v1656_v1  ;;  %v2136_v52 = vld [vmem:[#allocation2 + $0xd20] sm:$0xff] }
 0x156   : > { %1941 = vmatmul.mubr.f32.gmra.mxu1 %v1442_v6  ;;  %2207 = vmatpush2.msra.mxu0 %v2152_v26  ;;  %v2465_v6 = vld [vmem:[#allocation2 + $0xf58] sm:$0xff]  ;;  %v1652_v26 = vrot.slane %v5395_v53, 2  ;;  %v1971_v4 = vld [vmem:[%s6046_s7] sm:$0xfe]  ;;  %v1973_v53 = vld [vmem:[%s6046_s7 + $0x10] sm:$0x1] }
 0x157   : > { %2529 = vmatpush2.msra.mxu1 %v2474_v9  ;;  %2208 = vmatprep.subr.mxu0 %v2151_v11  ;;  %v1653_v9 = vrot.slane %v5397_v57, 2  ;;  %v1458_v11 = vrot.slane %v5363_v58, 1  ;;  %v1463_v34 = vsel %vm302_vm0, %v1461_v2, %v1462_v3  ;;  %v2135_v2 = vld [vmem:[#allocation2 + $0xd18] sm:$0xff] }
 0x158   : > { %2530 = vmatprep.subr.mxu1 %v2473_v15  ;;  %2209 = vmatpush2.msra.mxu0 %v2150_v17  ;;  %v5402_v15 = vld [vmem:[%s6046_s7 + $0x118] sm:$0x3]  ;;  %v5368_v17 = vld [vmem:[%s6046_s7 + $0x108] sm:$0xfe] }
 0x159   : > { %2531 = vmatpush2.msra.mxu1 %v2472_v49  ;;  %1833 = vmatprep.mubr.f32.mxu0 %v1645_v25  ;;  %v2463_v49 = vld [vmem:[#allocation2 + $0xf48] sm:$0xff]  ;;  %v1654_v22 = vsel %vm1615_vm1, %v1652_v26, %v1653_v9  ;;  %v1460_v23 = vsel %vm302_vm0, %v1458_v11, %v1459_v13  ;;  %v5369_v25 = vld [vmem:[%s6046_s7 + $0x110] sm:$0x1]  ;;  %v1662_v31 = vrot.slane %v5402_v15, 2  ;;  %v2457_v3 = vld [vmem:[#allocation2 + $0xf18] sm:$0xff]  ;;  %v2036_v26 = vrot.slane %v1973_v53, 1 }
 0x15a   : > { %1946 = vmatprep.mubr.f32.mxu1 %v1451_v27  ;;  %2210 = vmatprep.subr.mxu0 %v2149_v32  ;;  %v6310_v27 = vpop.f32.mrf.mxu0  ;;  %v1467_v32 = vrot.slane %v5368_v17, 1  ;;  %v1465_v54 = vrot.slane %v5369_v25, 1  ;;  %v2456_v9 = vld [vmem:[#allocation2 + $0xf10] sm:$0xff]  ;;  %v2133_v11 = vld [vmem:[#allocation2 + $0xd08] sm:$0xff]  ;;  %v2864_v25 = vld [vmem:[#allocation2 + $0x10f8] sm:$0xff] }
 0x15b   : > { %2532 = vmatprep.subr.mxu1 %v2471_v8  ;;  %1834 = vmatmul.mubr.f32.gmra.mxu0 %v1642_v48  ;;  %v1468_v8 = vrot.slane %v5370_v18, 1  ;;  %v2140_v48 = vld [vmem:[#allocation2 + $0xd40] sm:$0xff]  ;;  %v1663_v45 = vsel %vm1615_vm1, %v1661_v30, %v1662_v31  ;;  %v2455_v13 = vld [vmem:[#allocation2 + $0xf08] sm:$0xff]  ;;  %v1978_v18 = vld [vmem:[%s6046_s7 + $0x38] sm:$0x1] }
 0x15c   : > { %1947 = vmatmul.mubr.f32.gmra.mxu1 %v1448_v35  ;;  %2211 = vmatpush2.msra.mxu0 %v2148_v36  ;;  %v2462_v35 = vld [vmem:[#allocation2 + $0xf40] sm:$0xff]  ;;  %v2139_v36 = vld [vmem:[#allocation2 + $0xd38] sm:$0xff]  ;;  %v6314_v43 = vpop.f32.mrf.mxu0  ;;  %v1466_v58 = vsel %vm302_vm0, %v1464_v39, %v1465_v54  ;;  %v1976_v17 = vld [vmem:[%s6046_s7 + $0x28] sm:$0xfe] }
 0x15d   : > { %2533 = vmatpush2.msra.mxu1 %v2470_v37  ;;  %2212 = vmatprep.subr.mxu0 %v2147_v16  ;;  %v2461_v37 = vld [vmem:[#allocation2 + $0xf38] sm:$0xff]  ;;  %v1658_v16 = vrot.slane %v5399_v21, 2  ;;  %v1469_v46 = vsel %vm302_vm0, %v1467_v32, %v1468_v8  ;;  %v2944_v31 = vld [vmem:[#allocation2 + $0x12f0] sm:$0xff]  ;;  %v2044_v32 = vrot.slane %v1976_v17, 1  ;;  %v2045_v8 = vrot.slane %v1978_v18, 1  ;;  %v2943_v39 = vld [vmem:[#allocation2 + $0x12e8] sm:$0xff] }
 0x15e   : > { %2534 = vmatprep.subr.mxu1 %v2469_v41  ;;  %2213 = vmatpush2.msra.mxu0 %v2146_v42  ;;  %v2460_v41 = vld [vmem:[#allocation2 + $0xf30] sm:$0xff]  ;;  %v2137_v42 = vld [vmem:[#allocation2 + $0xd28] sm:$0xff]  ;;  %v2861_v53 = vld [vmem:[#allocation2 + $0x10e0] sm:$0xff] }
 0x15f   : > { %2535 = vmatpush2.msra.mxu1 %v2468_v47  ;;  %1839 = vmatprep.mubr.f32.mxu0 %v1651_v55  ;;  %v2459_v47 = vld [vmem:[#allocation2 + $0xf28] sm:$0xff]  ;;  %v1660_v57 = vsel %vm1615_vm1, %v1658_v16, %v1659_v38  ;;  %v2863_v38 = vld [vmem:[#allocation2 + $0x10f0] sm:$0xff]  ;;  %v2938_v18 = vld [vmem:[#allocation2 + $0x12c0] sm:$0xff] }
 0x160   : > { %1952 = vmatprep.mubr.f32.mxu1 %v1457_v7  ;;  %2214 = vmatprep.subr.mxu0 %v2145_v59  ;;  %v2294_v59 = vld [vmem:[%s6046_s7 + $0x8] sm:$0xfc] }
 0x161   : > { %2536 = vmatprep.subr.mxu1 %v2467_v60  ;;  %1840 = vmatmul.mubr.f32.gmra.mxu0 %v1648_v61  ;;  %v2296_v60 = vld [vmem:[%s6046_s7 + $0x18] sm:$0x3]  ;;  %v2038_v61 = vrot.slane %v1972_v50, 1  ;;  %v2862_v54 = vld [vmem:[#allocation2 + $0x10e8] sm:$0xff] }
 0x162   : > { %1953 = vmatmul.mubr.f32.gmra.mxu1 %v1454_v10  ;;  %2215 = vmatpush2.msra.mxu0 %v2144_v62  ;;  %v2039_v10 = vrot.slane %v1974_v51, 1  ;;  %v2293_v62 = vld [vmem:[%s6046_s7] sm:$0xfc]  ;;  %v1980_v51 = vld [vmem:[%s6046_s7 + $0x48] sm:$0xfe] }
 0x163   : > { %2537 = vmatpush2.msra.mxu1 %v2466_v63  ;;  %2216 = vmatprep.subr.mxu0 %v2143_v5  ;;  %v2295_v63 = vld [vmem:[%s6046_s7 + $0x10] sm:$0x3]  ;;  %v2357_v33 = vrot.slane %v2293_v62, 2 }
 0x164   : > { %2538 = vmatprep.subr.mxu1 %v2465_v6  ;;  %2217 = vmatpush2.msra.mxu0 %v2142_v28  ;;  %v2134_v5 = vld [vmem:[#allocation2 + $0xd10] sm:$0xff]  ;;  %v2035_v6 = vrot.slane %v1971_v4, 1  ;;  %v2360_v28 = vrot.slane %v2294_v59, 2  ;;  %v2358_v15 = vrot.slane %v2295_v63, 2  ;;  %v2046_v4 = vsel %vm302_vm0, %v2044_v32, %v2045_v8 }
 0x165   : > { %2539 = vmatpush2.msra.mxu1 %v2464_v14  ;;  %1845 = vmatprep.mubr.f32.mxu0 %v1657_v19  ;;  %v2361_v14 = vrot.slane %v2296_v60, 2  ;;  %v2132_v19 = vld [vmem:[#allocation2 + $0xd00] sm:$0xff]  ;;  %v2940_v62 = vld [vmem:[#allocation2 + $0x12d0] sm:$0xff] }
 0x166   : > { %1958 = vmatprep.mubr.f32.mxu1 %v1463_v34  ;;  %2218 = vmatprep.subr.mxu0 %v2141_v20  ;;  %v2040_v34 = vsel %vm302_vm0, %v2038_v61, %v2039_v10  ;;  %v1975_v20 = vld [vmem:[%s6046_s7 + $0x20] sm:$0xfe]  ;;  %v2037_v24 = vsel %vm302_vm0, %v2035_v6, %v2036_v26  ;;  %v2359_v16 = vsel %vm1615_vm1, %v2357_v33, %v2358_v15  ;;  %v2941_v61 = vld [vmem:[#allocation2 + $0x12d8] sm:$0xff]  ;;  %v2302_v6 = vld [vmem:[%s6046_s7 + $0x48] sm:$0xfc] }
 0x167   : > { %2540 = vmatprep.subr.mxu1 %v2463_v49  ;;  %1846 = vmatmul.mubr.f32.gmra.mxu0 %v1654_v22  ;;  %v1977_v49 = vld [vmem:[%s6046_s7 + $0x30] sm:$0x1]  ;;  %v2362_v30 = vsel %vm1615_vm1, %v2360_v28, %v2361_v14  ;;  %v2860_v10 = vld [vmem:[#allocation2 + $0x10d8] sm:$0xff]  ;;  %v2939_v14 = vld [vmem:[#allocation2 + $0x12c8] sm:$0xff] }
 0x168   : > { %1959 = vmatmul.mubr.f32.gmra.mxu1 %v1460_v23  ;;  %2219 = vmatpush2.msra.mxu0 %v2140_v48  ;;  %v2454_v23 = vld [vmem:[#allocation2 + $0xf00] sm:$0xff]  ;;  %v2298_v48 = vld [vmem:[%s6046_s7 + $0x28] sm:$0xfc]  ;;  %v2304_v26 = vld [vmem:[%s6046_s7 + $0x58] sm:$0x3] }
 0x169   : > { %2541 = vmatpush2.msra.mxu1 %v2462_v35  ;;  %2220 = vmatprep.subr.mxu0 %v2139_v36  ;;  %v6324_v55 = vpop.f32.mrf.mxu0  ;;  %v2300_v35 = vld [vmem:[%s6046_s7 + $0x38] sm:$0x3]  ;;  %v2859_v28 = vld [vmem:[#allocation2 + $0x10d0] sm:$0xff]  ;;  %v2858_v33 = vld [vmem:[#allocation2 + $0x10c8] sm:$0xff] }
 0x16a   : > { %2542 = vmatprep.subr.mxu1 %v2461_v37  ;;  %v6326_v7 = vpop.f32.mrf.mxu1  ;;  %2221 = vmatpush2.msra.mxu0 %v2138_v40  ;;  %v2041_v40 = vrot.slane %v1975_v20, 1  ;;  %v2367_v50 = vrot.slane %v2300_v35, 2  ;;  %v1985_v32 = vld [vmem:[%s6046_s7 + $0x70] sm:$0x1] }
 0x16b   : > { %2543 = vmatpush2.msra.mxu1 %v2460_v41  ;;  %1851 = vmatprep.mubr.f32.mxu0 %v1663_v45  ;;  %v6334_v0 = vpop.f32.mrf.mxu0  ;;  %v2042_v41 = vrot.slane %v1977_v49, 1  ;;  %v2297_v45 = vld [vmem:[%s6046_s7 + $0x20] sm:$0xfc]  ;;  %v2372_v49 = vrot.slane %v2302_v6, 2  ;;  %v1990_v6 = vld [vmem:[%s6046_s7 + $0x98] sm:$0x1] }
 0x16c   : > { %1964 = vmatprep.mubr.f32.mxu1 %v1469_v46  ;;  %v6336_v1 = vpop.f32.mrf.mxu1  ;;  %2222 = vmatprep.subr.mxu0 %v2137_v42  ;;  %v2942_v42 = vld [vmem:[#allocation2 + $0x12e0] sm:$0xff]  ;;  %v2299_v46 = vld [vmem:[%s6046_s7 + $0x30] sm:$0x3]  ;;  %v2363_v63 = vrot.slane %v2297_v45, 2  ;;  %v2306_v45 = vld [vmem:[%s6046_s7 + $0x68] sm:$0xfc] }
 0x16d   : > { %2544 = vmatprep.subr.mxu1 %v2459_v47  ;;  %1852 = vmatmul.mubr.f32.gmra.mxu0 %v1660_v57  ;;  %v2366_v47 = vrot.slane %v2298_v48, 2  ;;  %v1979_v57 = vld [vmem:[%s6046_s7 + $0x40] sm:$0xfe]  ;;  %v2043_v60 = vsel %vm302_vm0, %v2041_v40, %v2042_v41 }
 0x16e   : > { %1965 = vmatmul.mubr.f32.gmra.mxu1 %v1466_v58  ;;  %2223 = vmatpush2.msra.mxu0 %v2136_v52  ;;  %v1982_v52 = vld [vmem:[%s6046_s7 + $0x58] sm:$0x1]  ;;  %v1981_v58 = vld [vmem:[%s6046_s7 + $0x50] sm:$0x1]  ;;  %v2047_v15 = vrot.slane %v1979_v57, 1 }
 0x16f   : > { %2545 = vmatpush2.msra.mxu1 %v2458_v12  ;;  %2224 = vmatprep.subr.mxu0 %v2135_v2  ;;  %v6343_v21 = vpop.f32.mrf.mxu0  ;;  %v2364_v2 = vrot.slane %v2299_v46, 2  ;;  %v2048_v17 = vrot.slane %v1981_v58, 1  ;;  %v2308_v46 = vld [vmem:[%s6046_s7 + $0x78] sm:$0x3]  ;;  %v2054_v58 = vrot.slane %v1985_v32, 1 }
 0x170   : > { %2546 = vmatprep.subr.mxu1 %v2457_v3  ;;  %v6345_v22 = vpop.f32.mrf.mxu1  ;;  %2225 = vmatpush2.msra.mxu0 %v2134_v5  ;;  %v2050_v3 = vrot.slane %v1980_v51, 1  ;;  %v2051_v5 = vrot.slane %v1982_v52, 1  ;;  %v2855_v52 = vld [vmem:[#allocation2 + $0x10b0] sm:$0xff] }
 0x171   : > { %2547 = vmatpush2.msra.mxu1 %v2456_v9  ;;  %2226 = vmatprep.subr.mxu0 %v2133_v11  ;;  %v6351_v36 = vpop.f32.mrf.mxu0  ;;  %v2365_v20 = vsel %vm1615_vm1, %v2363_v63, %v2364_v2  ;;  %v2049_v35 = vsel %vm302_vm0, %v2047_v15, %v2048_v17  ;;  %v2853_v63 = vld [vmem:[#allocation2 + $0x10a0] sm:$0xff]  ;;  %v2378_v2 = vrot.slane %v2306_v45, 2  ;;  %v1992_v45 = vld [vmem:[%s6046_s7 + $0xa8] sm:$0xfe] }
 0x172   : > { %2548 = vmatprep.subr.mxu1 %v2455_v13  ;;  %v6353_v37 = vpop.f32.mrf.mxu1  ;;  %2227 = vmatpush2.msra.mxu0 %v2132_v19  ;;  %v2368_v13 = vsel %vm1615_vm1, %v2366_v47, %v2367_v50  ;;  %v2301_v19 = vld [vmem:[%s6046_s7 + $0x40] sm:$0xfc] }
 0x173   : > { %2228 = vmatprep.mubr.f32.mxu0 %v2040_v34  ;;  %2549 = vmatpush2.msra.mxu1 %v2454_v23  ;;  %v2303_v34 = vld [vmem:[%s6046_s7 + $0x50] sm:$0x3]  ;;  %v2373_v23 = vrot.slane %v2304_v26, 2 }
 0x174   : > { %2229 = vmatmul.mubr.f32.vlgmr.msra.gmra.mxu0 %v2037_v24  ;;  %2550 = vmatprep.mubr.f32.mxu1 %v2362_v30  ;;  %v1984_v24 = vld [vmem:[%s6046_s7 + $0x68] sm:$0xfe]  ;;  %v2857_v30 = vld [vmem:[#allocation2 + $0x10c0] sm:$0xff]  ;;  %v2370_v40 = vrot.slane %v2303_v34, 2 }
 0x175   : > { %2978 = vmatprep.subr.mxu0 %v2945_v56  ;;  %3091 = vmatprep.subr.mxu1 %v2864_v25  ;;  %v6363_v12 = vpop.f32.mrf.mxu0  ;;  %v1986_v56 = vld [vmem:[%s6046_s7 + $0x78] sm:$0x1]  ;;  %v2052_v25 = vsel %vm302_vm0, %v2050_v3, %v2051_v5  ;;  %v2056_v41 = vrot.slane %v1984_v24, 1  ;;  %v2374_v51 = vsel %vm1615_vm1, %v2372_v49, %v2373_v23  ;;  %v2379_v3 = vrot.slane %v2308_v46, 2  ;;  %v1988_v5 = vld [vmem:[%s6046_s7 + $0x88] sm:$0xfe] }
 0x176   : > { %2551 = vmatmul.mubr.f32.vlgmr.msra.gmra.mxu1 %v2359_v16  ;;  %v6365_v59 = vpop.f32.mrf.mxu1  ;;  %2979 = vmatpush1.msra.mxu0 %v2944_v31  ;;  %v1983_v31 = vld [vmem:[%s6046_s7 + $0x60] sm:$0xfe]  ;;  %v2937_v16 = vld [vmem:[#allocation2 + $0x12b8] sm:$0xff]  ;;  %v2310_v34 = vld [vmem:[%s6046_s7 + $0x88] sm:$0xfc] }
 0x177   : > { %3092 = vmatpush1.msra.mxu1 %v2863_v38  ;;  %2980 = vmatprep.subr.mxu0 %v2943_v39  ;;  %v6370_v9 = vpop.f32.mrf.mxu0  ;;  %v2856_v38 = vld [vmem:[#allocation2 + $0x10b8] sm:$0xff]  ;;  %v2936_v39 = vld [vmem:[#allocation2 + $0x12b0] sm:$0xff]  ;;  %v2053_v57 = vrot.slane %v1983_v31, 1  ;;  %v2380_v32 = vsel %vm1615_vm1, %v2378_v2, %v2379_v3 }
 0x178   : > { %3093 = vmatprep.subr.mxu1 %v2862_v54  ;;  %v6372_v11 = vpop.f32.mrf.mxu1  ;;  %2234 = vmatprep.mubr.f32.mxu0 %v2046_v4  ;;  %v2369_v54 = vrot.slane %v2301_v19, 2  ;;  %v2935_v4 = vld [vmem:[#allocation2 + $0x12a8] sm:$0xff]  ;;  %v2852_v49 = vld [vmem:[#allocation2 + $0x1098] sm:$0xff]  ;;  %v2932_v23 = vld [vmem:[#allocation2 + $0x1290] sm:$0xff] }
 0x179   : > { %2981 = vmatpush1.msra.mxu0 %v2942_v42  ;;  %3094 = vmatpush1.msra.mxu1 %v2861_v53  ;;  %v2057_v42 = vrot.slane %v1986_v56, 1  ;;  %v2854_v53 = vld [vmem:[#allocation2 + $0x10a8] sm:$0xff]  ;;  %v2055_v17 = vsel %vm302_vm0, %v2053_v57, %v2054_v58  ;;  %v2851_v24 = vld [vmem:[#allocation2 + $0x1090] sm:$0xff]  ;;  %v2062_v56 = vrot.slane %v1988_v5, 1  ;;  %v2930_v57 = vld [vmem:[#allocation2 + $0x1280] sm:$0xff] }
 0x17a   : > { %2235 = vmatmul.mubr.f32.gmra.mxu0 %v2043_v60  ;;  %2982 = vmatprep.subr.mxu0 %v2941_v61  ;;  %v2934_v60 = vld [vmem:[#allocation2 + $0x12a0] sm:$0xff]  ;;  %v2848_v2 = vld [vmem:[#allocation2 + $0x1078] sm:$0xff]  ;;  %v2928_v3 = vld [vmem:[#allocation2 + $0x1270] sm:$0xff] }
 0x17b   : > { %3095 = vmatprep.subr.mxu1 %v2860_v10  ;;  %2556 = vmatprep.mubr.f32.mxu1 %v2368_v13  ;;  %v6383_v8 = vpop.f32.mrf.mxu0  ;;  %v2305_v61 = vld [vmem:[%s6046_s7 + $0x60] sm:$0xfc]  ;;  %v2307_v10 = vld [vmem:[%s6046_s7 + $0x70] sm:$0x3]  ;;  %v2058_v26 = vsel %vm302_vm0, %v2056_v41, %v2057_v42  ;;  %v2933_v13 = vld [vmem:[#allocation2 + $0x1298] sm:$0xff] }
 0x17c   : > { %2983 = vmatpush1.msra.mxu0 %v2940_v62  ;;  %v6385_v48 = vpop.f32.mrf.mxu1  ;;  %3096 = vmatpush1.msra.mxu1 %v2859_v28  ;;  %v2371_v62 = vsel %vm1615_vm1, %v2369_v54, %v2370_v40  ;;  %v1987_v28 = vld [vmem:[%s6046_s7 + $0x80] sm:$0xfe]  ;;  %v2376_v19 = vrot.slane %v2307_v10, 2  ;;  %v2384_v40 = vrot.slane %v2310_v34, 2  ;;  %v2311_v42 = vld [vmem:[%s6046_s7 + $0x90] sm:$0x3] }
 0x17d   : > { %2984 = vmatprep.subr.mxu0 %v2939_v14  ;;  %2557 = vmatmul.mubr.f32.gmra.mxu1 %v2365_v20  ;;  %v6390_v47 = vpop.f32.mrf.mxu0  ;;  %v1989_v14 = vld [vmem:[%s6046_s7 + $0x90] sm:$0x1]  ;;  %v2312_v20 = vld [vmem:[%s6046_s7 + $0x98] sm:$0x3]  ;;  %v2309_v54 = vld [vmem:[%s6046_s7 + $0x80] sm:$0xfc] }
 0x17e   : > { %3097 = vmatprep.subr.mxu1 %v2858_v33  ;;  %v6392_v50 = vpop.f32.mrf.mxu1  ;;  %2240 = vmatprep.mubr.f32.mxu0 %v2052_v25  ;;  %v2063_v25 = vrot.slane %v1990_v6, 1  ;;  %v2385_v41 = vrot.slane %v2312_v20, 2  ;;  %v2849_v58 = vld [vmem:[#allocation2 + $0x1080] sm:$0xff]  ;;  %v2381_v5 = vrot.slane %v2309_v54, 2  ;;  %v2382_v6 = vrot.slane %v2311_v42, 2 }
 0x17f   : > { %2985 = vmatpush1.msra.mxu0 %v2938_v18  ;;  %3098 = vmatpush1.msra.mxu1 %v2857_v30  ;;  %v2375_v18 = vrot.slane %v2305_v61, 2  ;;  %v2316_v34 = vld [vmem:[%s6046_s7 + $0xb8] sm:$0x3] }
 0x180   : > { %2241 = vmatmul.mubr.f32.gmra.mxu0 %v2049_v35  ;;  %2986 = vmatprep.subr.mxu0 %v2937_v16  ;;  %v2931_v35 = vld [vmem:[#allocation2 + $0x1288] sm:$0xff]  ;;  %v2391_v54 = vrot.slane %v2316_v34, 2  ;;  %v2317_v34 = vld [vmem:[%s6046_s7 + $0xc0] sm:$0xfc] }
 0x181   : > { %3099 = vmatprep.subr.mxu1 %v2856_v38  ;;  %2562 = vmatprep.mubr.f32.mxu1 %v2374_v51  ;;  %v6403_v33 = vpop.f32.mrf.mxu0  ;;  %v2850_v16 = vld [vmem:[#allocation2 + $0x1088] sm:$0xff]  ;;  %v2059_v38 = vrot.slane %v1987_v28, 1  ;;  %v2377_v46 = vsel %vm1615_vm1, %v2375_v18, %v2376_v19  ;;  %v1994_v51 = vld [vmem:[%s6046_s7 + $0xb8] sm:$0x1] }
 0x182   : > { %2987 = vmatpush1.msra.mxu0 %v2936_v39  ;;  %v6405_v15 = vpop.f32.mrf.mxu1  ;;  %3100 = vmatpush1.msra.mxu1 %v2855_v52  ;;  %v2060_v39 = vrot.slane %v1989_v14, 1  ;;  %v1991_v52 = vld [vmem:[%s6046_s7 + $0xa0] sm:$0xfe]  ;;  %v2927_v28 = vld [vmem:[#allocation2 + $0x1268] sm:$0xff]  ;;  %v2068_v14 = vrot.slane %v1992_v45, 1 }
 0x183   : > { %2988 = vmatprep.subr.mxu0 %v2935_v4  ;;  %2563 = vmatmul.mubr.f32.gmra.mxu1 %v2371_v62  ;;  %v6410_v30 = vpop.f32.mrf.mxu0  ;;  %v1993_v4 = vld [vmem:[%s6046_s7 + $0xb0] sm:$0x1]  ;;  %v2065_v18 = vrot.slane %v1991_v52, 1 }
 0x184   : > { %3101 = vmatprep.subr.mxu1 %v2854_v53  ;;  %v6412_v31 = vpop.f32.mrf.mxu1  ;;  %2246 = vmatprep.mubr.f32.mxu0 %v2058_v26  ;;  %v2064_v53 = vsel %vm302_vm0, %v2062_v56, %v2063_v25  ;;  %v2061_v62 = vsel %vm302_vm0, %v2059_v38, %v2060_v39  ;;  %v1272_v26 = vlaneseq  ;;  %v2066_v19 = vrot.slane %v1993_v4, 1  ;;  %v2313_v56 = vld [vmem:[%s6046_s7 + $0xa0] sm:$0xfc]  ;;  %v2315_v25 = vld [vmem:[%s6046_s7 + $0xb0] sm:$0x3] }
 0x185   : > { %2989 = vmatpush1.msra.mxu0 %v2934_v60  ;;  %3102 = vmatpush1.msra.mxu1 %v2853_v63  ;;  %v6424_v60 = vld [vmem:[%s6046_s7 + $0xa8] sm:$0xfc]  ;;  %v2929_v63 = vld [vmem:[#allocation2 + $0x1278] sm:$0xff]  ;;  %v2383_v39 = vsel %vm1615_vm1, %v2381_v5, %v2382_v6  ;;  %v2843_v5 = vld [vmem:[#allocation2 + $0x1050] sm:$0xff] }
 0x186   : > { %2247 = vmatmul.mubr.f32.gmra.mxu0 %v2055_v17  ;;  %2990 = vmatprep.subr.mxu0 %v2933_v13  ;;  %v2847_v13 = vld [vmem:[#allocation2 + $0x1070] sm:$0xff]  ;;  %v2069_v17 = vrot.slane %v1994_v51, 1  ;;  %v1273_v42 = vshrl.u32 %v1272_v26, 7  ;;  %v2845_v51 = vld [vmem:[#allocation2 + $0x1060] sm:$0xff]  ;;  %v2067_v52 = vsel %vm302_vm0, %v2065_v18, %v2066_v19  ;;  %v2320_v4 = vld [vmem:[%s6046_s7 + $0xd8] sm:$0x3] }
 0x187   : > { %3103 = vmatprep.subr.mxu1 %v2852_v49  ;;  %2568 = vmatprep.mubr.f32.mxu1 %v2380_v32  ;;  %v6426_v61 = vpop.f32.mrf.mxu0  ;;  %v2386_v49 = vsel %vm1615_vm1, %v2384_v40, %v2385_v41  ;;  %v1996_v32 = vld [vmem:[%s6046_s7 + $0xc8] sm:$0xfe]  ;;  %v1997_v40 = vld [vmem:[%s6046_s7 + $0xd0] sm:$0x1]  ;;  %v2397_v19 = vrot.slane %v2320_v4, 2 }
 0x188   : > { %2991 = vmatpush1.msra.mxu0 %v2932_v23  ;;  %v6428_v10 = vpop.f32.mrf.mxu1  ;;  %3104 = vmatpush1.msra.mxu1 %v2851_v24  ;;  %v2846_v23 = vld [vmem:[#allocation2 + $0x1068] sm:$0xff]  ;;  %v2390_v24 = vrot.slane %v6424_v60, 2  ;;  %v2070_v45 = vsel %vm302_vm0, %v2068_v14, %v2069_v17  ;;  %v2387_v60 = vrot.slane %v2313_v56, 2  ;;  %v2072_v14 = vrot.slane %v1997_v40, 1  ;;  %v1999_v40 = vld [vmem:[%s6046_s7 + $0xe0] sm:$0xfe] }
 0x189   : > { %2992 = vmatprep.subr.mxu0 %v2931_v35  ;;  %2569 = vmatmul.mubr.f32.gmra.mxu1 %v2377_v46  ;;  %v6432_v20 = vpop.f32.mrf.mxu0  ;;  %v1998_v35 = vld [vmem:[%s6046_s7 + $0xd8] sm:$0x1]  ;;  %v6448_v41 = vld [vmem:[%s6046_s7 + $0xc8] sm:$0xfc]  ;;  %v2926_v46 = vld [vmem:[#allocation2 + $0x1260] sm:$0xff] }
 0x18a   : > { %3105 = vmatprep.subr.mxu1 %v2850_v16  ;;  %2252 = vmatprep.mubr.f32.mxu0 %v2064_v53  ;;  %v6441_v16 = vld [vmem:[%s6046_s7 + $0xc0] sm:$0xfe]  ;;  %v6443_v38 = vpop.f32.mrf.mxu1  ;;  %v2923_v6 = vld [vmem:[#allocation2 + $0x1248] sm:$0xff]  ;;  %v2392_v18 = vsel %vm1615_vm1, %v2390_v24, %v2391_v54  ;;  %v2002_v54 = vld [vmem:[%s6046_s7 + $0xf8] sm:$0x1] }
 0x18b   : > { %2993 = vmatpush1.msra.mxu0 %v2930_v57  ;;  %3106 = vmatpush1.msra.mxu1 %v2849_v58  ;;  %v2925_v57 = vld [vmem:[#allocation2 + $0x1258] sm:$0xff]  ;;  %v2071_v26 = vrot.slane %v6441_v16, 1  ;;  %v2842_v56 = vld [vmem:[#allocation2 + $0x1048] sm:$0xff]  ;;  %v692_v16 = vadd.f32 %v6312_v29, %v6310_v27  ;;  %v2393_v27 = vrot.slane %v2317_v34, 2  ;;  %v2321_v34 = vld [vmem:[%s6046_s7 + $0xe0] sm:$0xfc] }
 0x18c   : > { %2253 = vmatmul.mubr.f32.gmra.mxu0 %v2061_v62  ;;  %2994 = vmatprep.subr.mxu0 %v2929_v63  ;;  %v2844_v58 = vld [vmem:[#allocation2 + $0x1058] sm:$0xff]  ;;  %v2388_v62 = vrot.slane %v2315_v25, 2  ;;  %v2074_v63 = vrot.slane %v1996_v32, 1  ;;  %v6467_v25 = vld [vmem:[%s6046_s7 + $0xe8] sm:$0xfe] }
 0x18d   : > { %3107 = vmatprep.subr.mxu1 %v2848_v2  ;;  %2574 = vmatprep.mubr.f32.mxu1 %v2386_v49  ;;  %v6453_v53 = vpop.f32.mrf.mxu0  ;;  %v2075_v2 = vrot.slane %v1998_v35, 1  ;;  %v2319_v49 = vld [vmem:[%s6046_s7 + $0xd0] sm:$0x3]  ;;  %v1270_v32 = vld [vmem:[#allocation5] sm:$0x3]  ;;  %v6469_v35 = vsub.s32 1, %v1273_v42 }
 0x18e   : > { %2995 = vmatpush1.msra.mxu0 %v2928_v3  ;;  %3108 = vmatpush1.msra.mxu1 %v2847_v13  ;;  %v2924_v3 = vld [vmem:[#allocation2 + $0x1250] sm:$0xff]  ;;  %v2396_v13 = vrot.slane %v6448_v41, 2  ;;  %v2389_v24 = vsel %vm1615_vm1, %v2387_v60, %v2388_v62  ;;  %v2394_v29 = vrot.slane %v2319_v49, 2  ;;  %v2840_v60 = vld [vmem:[#allocation2 + $0x1038] sm:$0xff]  ;;  %v2322_v62 = vld [vmem:[%s6046_s7 + $0xe8] sm:$0xfc] }
 0x18f   : > { %2996 = vmatprep.subr.mxu0 %v2927_v28  ;;  %2575 = vmatmul.mubr.f32.gmra.mxu1 %v2383_v39  ;;  %v6457_v28 = vpop.f32.mrf.mxu1  ;;  %v6459_v17 = vpop.f32.mrf.mxu0  ;;  %v2076_v39 = vsel %vm302_vm0, %v2074_v63, %v2075_v2  ;;  %v2001_v41 = vld [vmem:[%s6046_s7 + $0xf0] sm:$0x1] }
 0x190   : > { %3109 = vmatprep.subr.mxu1 %v2846_v23  ;;  %2258 = vmatprep.mubr.f32.mxu0 %v2070_v45  ;;  %v6464_v23 = vsub.s32 0, %v1273_v42  ;;  %v694_v45 = vadd.f32 %v6316_v44, %v6314_v43  ;;  %v2922_v42 = vld [vmem:[#allocation2 + $0x1240] sm:$0xff]  ;;  %v2398_v43 = vsel %vm1615_vm1, %v2396_v13, %v2397_v19  ;;  %v2080_v44 = vrot.slane %v6467_v25, 1  ;;  %v2920_v19 = vld [vmem:[#allocation2 + $0x1230] sm:$0xff] }
 0x191   : > { %2997 = vmatpush1.msra.mxu0 %v2926_v46  ;;  %3110 = vmatpush1.msra.mxu1 %v2845_v51  ;;  %v2841_v46 = vld [vmem:[#allocation2 + $0x1040] sm:$0xff]  ;;  %v2073_v51 = vsel %vm302_vm0, %v2071_v26, %v2072_v14  ;;  %v2077_v26 = vrot.slane %v1999_v40, 1  ;;  %v2078_v14 = vrot.slane %v2001_v41, 1  ;;  %v6492_v13 = vrot.slane %v1270_v32, %v6469_v35  ;;  %v2323_v41 = vld [vmem:[%s6046_s7 + $0xf0] sm:$0x3] }
 0x192   : > { %2259 = vmatmul.mubr.f32.gmra.mxu0 %v2067_v52  ;;  %2998 = vmatprep.subr.mxu0 %v2925_v57  ;;  %v6481_v52 = vpop.f32.mrf.mxu1  ;;  %v1298_v57 = vld [vmem:[#allocation7] sm:$0x3]  ;;  %v6487_v2 = vrot.slane %v1270_v32, %v6464_v23  ;;  %v2402_v40 = vrot.slane %v2322_v62, 2 }
 0x193   : > { %3111 = vmatprep.subr.mxu1 %v2844_v58  ;;  %2580 = vmatprep.mubr.f32.mxu1 %v2392_v18  ;;  %v2921_v58 = vld [vmem:[#allocation2 + $0x1238] sm:$0xff]  ;;  %v6496_v25 = vrot.slane %v1298_v57, %v6464_v23 }
 0x194   : > { %2999 = vmatpush1.msra.mxu0 %v2924_v3  ;;  %v997_v4 = vpop.f32.mrf.mxu0  ;;  %3112 = vmatpush1.msra.mxu1 %v2843_v5  ;;  %v2081_v3 = vrot.slane %v2002_v54, 1  ;;  %v2324_v18 = vld [vmem:[%s6046_s7 + $0xf8] sm:$0x3]  ;;  %v2919_v54 = vld [vmem:[#allocation2 + $0x1228] sm:$0xff] }
 0x195   : > { %3000 = vmatprep.subr.mxu0 %v2923_v6  ;;  %v1044_v63 = vadd.f32 %v997_v4, %v692_v16  ;;  %2581 = vmatmul.mubr.f32.gmra.mxu1 %v2389_v24  ;;  %v2839_v16 = vld [vmem:[#allocation2 + $0x1030] sm:$0xff]  ;;  %v2395_v24 = vsel %vm1615_vm1, %v2393_v27, %v2394_v29  ;;  %v2403_v4 = vrot.slane %v2324_v18, 2  ;;  %v2918_v27 = vld [vmem:[#allocation2 + $0x1220] sm:$0xff]  ;;  %v2079_v29 = vsel %vm302_vm0, %v2077_v26, %v2078_v14 }
 0x196   : > { %3113 = vmatprep.subr.mxu1 %v2842_v56  ;;  %v1207_v5 = vpop.f32.mrf.mxu1  ;;  %v999_v6 = vpop.f32.mrf.mxu0  ;;  %2264 = vmatprep.mubr.f32.mxu0 %v2076_v39  ;;  %v6501_v39 = vrot.slane %v1298_v57, %v6469_v35  ;;  %v2399_v57 = vrot.slane %v2321_v34, 2  ;;  %v2915_v34 = vld [vmem:[#allocation2 + $0x1208] sm:$0xff] }
 0x197   : > { %3001 = vmatpush1.msra.mxu0 %v2922_v42  ;;  %v1254_v49 = vadd.f32 %v1207_v5, %v1044_v63  ;;  %v1045_v56 = vadd.f32 %v999_v6, %v694_v45  ;;  %3114 = vmatpush1.msra.mxu1 %v2841_v46  ;;  %v2838_v42 = vld [vmem:[#allocation2 + $0x1028] sm:$0xff]  ;;  %v698_v63 = vadd.f32 %v6326_v7, %v6324_v55  ;;  %v2837_v55 = vld [vmem:[#allocation2 + $0x1020] sm:$0xff]  ;;  %v2400_v7 = vrot.slane %v2323_v41, 2 }
 0x198   : > { %2265 = vmatmul.mubr.f32.gmra.mxu0 %v2073_v51  ;;  %v1209_v32 = vpop.f32.mrf.mxu1  ;;  %3002 = vmatprep.subr.mxu0 %v2921_v58  ;;  %v2082_v51 = vsel %vm302_vm0, %v2080_v44, %v2081_v3  ;;  %v700_v58 = vadd.f32 %v6336_v1, %v6334_v0  ;;  %v2917_v44 = vld [vmem:[#allocation2 + $0x1218] sm:$0xff]  ;;  %v2404_v0 = vsel %vm1615_vm1, %v2402_v40, %v2403_v4  ;;  %v2916_v1 = vld [vmem:[#allocation2 + $0x1210] sm:$0xff]  ;;  %v2914_v41 = vld [vmem:[#allocation2 + $0x1200] sm:$0xff] }
 0x199   : > { %3115 = vmatprep.subr.mxu1 %v2840_v60  ;;  %v1282_v45 = vmul.f32 %v6487_v2, %v1254_v49  ;;  %v1255_v46 = vadd.f32 %v1209_v32, %v1045_v56  ;;  %2586 = vmatprep.mubr.f32.mxu1 %v2398_v43  ;;  %v2836_v3 = vld [vmem:[#allocation2 + $0x1018] sm:$0xff]  ;;  %v2401_v56 = vsel %vm1615_vm1, %v2399_v57, %v2400_v7  ;;  %v2833_v32 = vld [vmem:[#allocation2 + $0x1000] sm:$0xff] }
 0x19a   : > { %3003 = vmatpush1.msra.mxu0 %v2920_v19  ;;  %v1003_v60 = vpop.f32.mrf.mxu0  ;;  %3116 = vmatpush1.msra.mxu1 %v2839_v16  ;;  %v2835_v19 = vld [vmem:[#allocation2 + $0x1010] sm:$0xff]  ;;  %v2834_v16 = vld [vmem:[#allocation2 + $0x1008] sm:$0xff]  ;;  %v2974_v7 = vld [vmem:[#allocation2 + $0x13e0] sm:$0xff] }
 0x19b   : > { %3004 = vmatprep.subr.mxu0 %v2919_v54  ;;  %v1310_v62 = vadd.f32 %v6496_v25, %v1282_v45  ;;  %v1283_v18 = vmul.f32 %v6492_v13, %v1255_v46  ;;  %v1046_v43 = vadd.f32 %v1003_v60, %v698_v63  ;;  %2587 = vmatmul.mubr.f32.gmra.mxu1 %v2395_v24  ;;  %v2977_v45 = vld [vmem:[#allocation2 + $0x13f8] sm:$0xff] }
 0x19c   : > { %3117 = vmatprep.subr.mxu1 %v2838_v42  ;;  %v1005_v5 = vpop.f32.mrf.mxu0  ;;  %2270 = vmatprep.mubr.f32.mxu0 %v2082_v51  ;;  %v704_v24 = vadd.f32 %v6345_v22, %v6343_v21  ;;  %v706_v42 = vadd.f32 %v6353_v37, %v6351_v36  ;;  %v2896_v21 = vld [vmem:[#allocation2 + $0x11f8] sm:$0xff]  ;;  %v2894_v36 = vld [vmem:[#allocation2 + $0x11e8] sm:$0xff] }
 0x19d   : > { %3005 = vmatpush1.msra.mxu0 %v2918_v27  ;;  %v1326_v26 = vmax.f32 %v1310_v62, 0.0  ;;  %v1311_v14 = vadd.f32 %v6501_v39, %v1283_v18  ;;  %v1047_v6 = vadd.f32 %v1005_v5, %v700_v58  ;;  %3118 = vmatpush1.msra.mxu1 %v2837_v55  ;;  %v1213_v49 = vpop.f32.mrf.mxu1  ;;  %v2976_v27 = vld [vmem:[#allocation2 + $0x13f0] sm:$0xff]  ;;  %v2975_v58 = vld [vmem:[#allocation2 + $0x13e8] sm:$0xff]  ;;  %v2893_v62 = vld [vmem:[#allocation2 + $0x11e0] sm:$0xff] }
 0x19e   : > { %2271 = vmatmul.mubr.f32.gmra.mxu0 %v2079_v29  ;;  %3006 = vmatprep.subr.mxu0 %v2917_v44  ;;  %v1256_v40 = vadd.f32 %v1213_v49, %v1046_v43  ;;  %v2895_v29 = vld [vmem:[#allocation2 + $0x11f0] sm:$0xff]  ;;  %v2973_v43 = vld [vmem:[#allocation2 + $0x13d8] sm:$0xff]  ;;  %v2971_v49 = vld [vmem:[#allocation2 + $0x13c8] sm:$0xff] }
 0x19f   : > { %3119 = vmatprep.subr.mxu1 %v2836_v3  ;;  %1342 = vst [vmem:[%s6522_s10] sm:$0xff] %v1326_v26  ;;  %v1327_v54 = vmax.f32 %v1311_v14, 0.0  ;;  %2592 = vmatprep.mubr.f32.mxu1 %v2404_v0  ;;  %v1215_v63 = vpop.f32.mrf.mxu1  ;;  %v2892_v44 = vld [vmem:[#allocation2 + $0x11d8] sm:$0xff]  ;;  %v710_v3 = vadd.f32 %v6365_v59, %v6363_v12  ;;  %v2972_v26 = vld [vmem:[#allocation2 + $0x13d0] sm:$0xff] }
 0x1a0   : > { %3007 = vmatpush1.msra.mxu0 %v2916_v1  ;;  %v1009_v4 = vpop.f32.mrf.mxu0  ;;  %3120 = vmatpush1.msra.mxu1 %v2835_v19  ;;  %v1284_v22 = vmul.f32 %v6487_v2, %v1256_v40  ;;  %v1257_v51 = vadd.f32 %v1215_v63, %v1047_v6  ;;  %v2891_v14 = vld [vmem:[#allocation2 + $0x11d0] sm:$0xff]  ;;  %v712_v6 = vadd.f32 %v6372_v11, %v6370_v9  ;;  %v2889_v40 = vld [vmem:[#allocation2 + $0x11c0] sm:$0xff]  ;;  %v2969_v9 = vld [vmem:[#allocation2 + $0x13b8] sm:$0xff] }
 0x1a1   : > { %3008 = vmatprep.subr.mxu0 %v2915_v34  ;;  %1343 = vst [vmem:[%s6522_s10 + $0x8] sm:$0xff] %v1327_v54  ;;  %v1048_v46 = vadd.f32 %v1009_v4, %v704_v24  ;;  %2593 = vmatmul.mubr.f32.gmra.mxu1 %v2401_v56  ;;  %v2890_v56 = vld [vmem:[#allocation2 + $0x11c8] sm:$0xff]  ;;  %v2970_v54 = vld [vmem:[#allocation2 + $0x13c0] sm:$0xff]  ;;  %v2888_v11 = vld [vmem:[#allocation2 + $0x11b8] sm:$0xff] }
 0x1a2   : > { %3121 = vmatprep.subr.mxu1 %v2834_v16  ;;  %v1011_v57 = vpop.f32.mrf.mxu0  ;;  %3009 = vmatpush1.msra.mxu0 %v2914_v41  ;;  %v1312_v37 = vadd.f32 %v6496_v25, %v1284_v22  ;;  %v1285_v60 = vmul.f32 %v6492_v13, %v1257_v51  ;;  %v2968_v63 = vld [vmem:[#allocation2 + $0x13b0] sm:$0xff]  ;;  %v2967_v22 = vld [vmem:[#allocation2 + $0x13a8] sm:$0xff]  ;;  %v716_v51 = vadd.f32 %v6385_v48, %v6383_v8 }
 0x1a3   : > { %3122 = vmatpush1.msra.mxu1 %v2833_v32  ;;  %v1049_v55 = vadd.f32 %v1011_v57, %v706_v42  ;;  %3010 = vmatprep.subr.mxu0 %v2977_v45  ;;  %v1219_v18 = vpop.f32.mrf.mxu1  ;;  %v2887_v45 = vld [vmem:[#allocation2 + $0x11b0] sm:$0xff] }
 0x1a4   : > { %3123 = vmatprep.subr.mxu1 %v2896_v21  ;;  %3011 = vmatpush2.msra.mxu0 %v2976_v27  ;;  %v1328_v5 = vmax.f32 %v1312_v37, 0.0  ;;  %v1313_v0 = vadd.f32 %v6501_v39, %v1285_v60  ;;  %v1258_v1 = vadd.f32 %v1219_v18, %v1048_v46  ;;  %v2886_v46 = vld [vmem:[#allocation2 + $0x11a8] sm:$0xff]  ;;  %v718_v37 = vadd.f32 %v6392_v50, %v6390_v47 }
 0x1a5   : > { %3124 = vmatpush2.msra.mxu1 %v2895_v29  ;;  %3012 = vmatprep.subr.mxu0 %v2975_v58  ;;  %v1221_v34 = vpop.f32.mrf.mxu1  ;;  %v2966_v58 = vld [vmem:[#allocation2 + $0x13a0] sm:$0xff]  ;;  %v2963_v47 = vld [vmem:[#allocation2 + $0x1388] sm:$0xff] }
 0x1a6   : > { %3125 = vmatprep.subr.mxu1 %v2894_v36  ;;  %v1015_v19 = vpop.f32.mrf.mxu0  ;;  %3013 = vmatpush2.msra.mxu0 %v2974_v7  ;;  %1344 = vst [vmem:[%s6522_s10 + $0x10] sm:$0xff] %v1328_v5  ;;  %v1329_v12 = vmax.f32 %v1313_v0, 0.0  ;;  %v1286_v59 = vmul.f32 %v6487_v2, %v1258_v1  ;;  %v1259_v24 = vadd.f32 %v1221_v34, %v1049_v55  ;;  %v2885_v36 = vld [vmem:[#allocation2 + $0x11a0] sm:$0xff]  ;;  %v2965_v7 = vld [vmem:[#allocation2 + $0x1398] sm:$0xff]  ;;  %v2882_v50 = vld [vmem:[#allocation2 + $0x1188] sm:$0xff] }
 0x1a7   : > { %3126 = vmatpush2.msra.mxu1 %v2893_v62  ;;  %v1050_v16 = vadd.f32 %v1015_v19, %v710_v3  ;;  %3014 = vmatprep.subr.mxu0 %v2973_v43  ;;  %v2884_v62 = vld [vmem:[#allocation2 + $0x1198] sm:$0xff]  ;;  %v2883_v3 = vld [vmem:[#allocation2 + $0x1190] sm:$0xff] }
 0x1a8   : > { %3127 = vmatprep.subr.mxu1 %v2892_v44  ;;  %v1017_v41 = vpop.f32.mrf.mxu0  ;;  %3015 = vmatpush2.msra.mxu0 %v2972_v26  ;;  %1345 = vst [vmem:[%s6522_s10 + $0x18] sm:$0xff] %v1329_v12  ;;  %v1314_v32 = vadd.f32 %v6496_v25, %v1286_v59  ;;  %v1287_v42 = vmul.f32 %v6492_v13, %v1259_v24  ;;  %v2964_v44 = vld [vmem:[#allocation2 + $0x1390] sm:$0xff]  ;;  %v2961_v34 = vld [vmem:[#allocation2 + $0x1378] sm:$0xff] }
 0x1a9   : > { %3128 = vmatpush2.msra.mxu1 %v2891_v14  ;;  %v1051_v4 = vadd.f32 %v1017_v41, %v712_v6  ;;  %3016 = vmatprep.subr.mxu0 %v2971_v49  ;;  %v1225_v21 = vpop.f32.mrf.mxu1  ;;  %v2962_v14 = vld [vmem:[#allocation2 + $0x1380] sm:$0xff]  ;;  %v2880_v49 = vld [vmem:[#allocation2 + $0x1178] sm:$0xff]  ;;  %v2960_v24 = vld [vmem:[#allocation2 + $0x1370] sm:$0xff] }
 0x1aa   : > { %3129 = vmatprep.subr.mxu1 %v2890_v56  ;;  %3017 = vmatpush2.msra.mxu0 %v2970_v54  ;;  %v1330_v27 = vmax.f32 %v1314_v32, 0.0  ;;  %v1315_v29 = vadd.f32 %v6501_v39, %v1287_v42  ;;  %v1260_v57 = vadd.f32 %v1225_v21, %v1050_v16  ;;  %v2881_v6 = vld [vmem:[#allocation2 + $0x1180] sm:$0xff]  ;;  %v722_v56 = vadd.f32 %v6405_v15, %v6403_v33  ;;  %v2879_v54 = vld [vmem:[#allocation2 + $0x1170] sm:$0xff]  ;;  %v2878_v32 = vld [vmem:[#allocation2 + $0x1168] sm:$0xff] }
 0x1ab   : > { %3130 = vmatpush2.msra.mxu1 %v2889_v40  ;;  %3018 = vmatprep.subr.mxu0 %v2969_v9  ;;  %v1227_v55 = vpop.f32.mrf.mxu1  ;;  %v724_v40 = vadd.f32 %v6412_v31, %v6410_v30  ;;  %v2957_v30 = vld [vmem:[#allocation2 + $0x1358] sm:$0xff] }
 0x1ac   : > { %3131 = vmatprep.subr.mxu1 %v2888_v11  ;;  %v1021_v60 = vpop.f32.mrf.mxu0  ;;  %3019 = vmatpush2.msra.mxu0 %v2968_v63  ;;  %1346 = vst [vmem:[%s6522_s10 + $0x20] sm:$0xff] %v1330_v27  ;;  %v1331_v8 = vmax.f32 %v1315_v29, 0.0  ;;  %v1288_v48 = vmul.f32 %v6487_v2, %v1260_v57  ;;  %v1261_v43 = vadd.f32 %v1227_v55, %v1051_v4  ;;  %v2959_v11 = vld [vmem:[#allocation2 + $0x1368] sm:$0xff]  ;;  %v2958_v63 = vld [vmem:[#allocation2 + $0x1360] sm:$0xff]  ;;  %v2876_v31 = vld [vmem:[#allocation2 + $0x1158] sm:$0xff] }
 0x1ad   : > { %3132 = vmatpush2.msra.mxu1 %v2887_v45  ;;  %v1052_v18 = vadd.f32 %v1021_v60, %v716_v51  ;;  %3020 = vmatprep.subr.mxu0 %v2967_v22  ;;  %v2877_v45 = vld [vmem:[#allocation2 + $0x1160] sm:$0xff]  ;;  %v2956_v27 = vld [vmem:[#allocation2 + $0x1350] sm:$0xff] }
 0x1ae   : > { %3133 = vmatprep.subr.mxu1 %v2886_v46  ;;  %v1023_v5 = vpop.f32.mrf.mxu0  ;;  %3021 = vmatpush2.msra.mxu0 %v2966_v58  ;;  %1347 = vst [vmem:[%s6522_s10 + $0x28] sm:$0xff] %v1331_v8  ;;  %v1316_v0 = vadd.f32 %v6496_v25, %v1288_v48  ;;  %v1289_v1 = vmul.f32 %v6492_v13, %v1261_v43  ;;  %v2875_v29 = vld [vmem:[#allocation2 + $0x1150] sm:$0xff]  ;;  %v2955_v58 = vld [vmem:[#allocation2 + $0x1348] sm:$0xff]  ;;  %v2873_v8 = vld [vmem:[#allocation2 + $0x1140] sm:$0xff] }
 0x1af   : > { %3134 = vmatpush2.msra.mxu1 %v2885_v36  ;;  %v1053_v26 = vadd.f32 %v1023_v5, %v718_v37  ;;  %3022 = vmatprep.subr.mxu0 %v2965_v7  ;;  %v1231_v19 = vpop.f32.mrf.mxu1  ;;  %v2874_v36 = vld [vmem:[#allocation2 + $0x1148] sm:$0xff]  ;;  %v728_v37 = vadd.f32 %v6428_v10, %v6426_v61  ;;  %v2953_v48 = vld [vmem:[#allocation2 + $0x1338] sm:$0xff] }
 0x1b0   : > { %3135 = vmatprep.subr.mxu1 %v2884_v62  ;;  %3023 = vmatpush2.msra.mxu0 %v2964_v44  ;;  %v1332_v12 = vmax.f32 %v1316_v0, 0.0  ;;  %v1317_v59 = vadd.f32 %v6501_v39, %v1289_v1  ;;  %v1262_v16 = vadd.f32 %v1231_v19, %v1052_v18  ;;  %v2954_v62 = vld [vmem:[#allocation2 + $0x1340] sm:$0xff]  ;;  %v730_v18 = vadd.f32 %v6443_v38, %v6432_v20  ;;  %v5420_v61 = vld [vmem:[%s6046_s7 + $0x28] sm:$0xfe]  ;;  %v5422_v10 = vld [vmem:[%s6046_s7 + $0x38] sm:$0x1] }
 0x1b1   : > { %3136 = vmatpush2.msra.mxu1 %v2883_v3  ;;  %3024 = vmatprep.subr.mxu0 %v2963_v47  ;;  %v1233_v9 = vpop.f32.mrf.mxu1  ;;  %v2872_v3 = vld [vmem:[#allocation2 + $0x1138] sm:$0xff]  ;;  %v2952_v1 = vld [vmem:[#allocation2 + $0x1330] sm:$0xff]  ;;  %v2951_v38 = vld [vmem:[#allocation2 + $0x1328] sm:$0xff] }
 0x1b2   : > { %3137 = vmatprep.subr.mxu1 %v2882_v50  ;;  %v1027_v41 = vpop.f32.mrf.mxu0  ;;  %3025 = vmatpush2.msra.mxu0 %v2962_v14  ;;  %1348 = vst [vmem:[%s6522_s10 + $0x30] sm:$0xff] %v1332_v12  ;;  %v1333_v33 = vmax.f32 %v1317_v59, 0.0  ;;  %v1290_v15 = vmul.f32 %v6487_v2, %v1262_v16  ;;  %v1263_v4 = vadd.f32 %v1233_v9, %v1053_v26  ;;  %v2871_v20 = vld [vmem:[#allocation2 + $0x1130] sm:$0xff]  ;;  %v2870_v14 = vld [vmem:[#allocation2 + $0x1128] sm:$0xff]  ;;  %v2950_v12 = vld [vmem:[#allocation2 + $0x1320] sm:$0xff]  ;;  %v2771_v16 = vrot.slane %v5420_v61, 1 }
 0x1b3   : > { %3138 = vmatpush2.msra.mxu1 %v2881_v6  ;;  %v1054_v42 = vadd.f32 %v1027_v41, %v722_v56  ;;  %3026 = vmatprep.subr.mxu0 %v2961_v34  ;;  %v5419_v6 = vld [vmem:[%s6046_s7 + $0x20] sm:$0xfe]  ;;  %v5421_v19 = vld [vmem:[%s6046_s7 + $0x30] sm:$0x1]  ;;  %v2949_v41 = vld [vmem:[#allocation2 + $0x1318] sm:$0xff] }
 0x1b4   : > { %3139 = vmatprep.subr.mxu1 %v2880_v49  ;;  %v1029_v21 = vpop.f32.mrf.mxu0  ;;  %3027 = vmatpush2.msra.mxu0 %v2960_v24  ;;  %1349 = vst [vmem:[%s6522_s10 + $0x38] sm:$0xff] %v1333_v33  ;;  %v1318_v22 = vadd.f32 %v6496_v25, %v1290_v15  ;;  %v1291_v46 = vmul.f32 %v6492_v13, %v1263_v4  ;;  %v2869_v59 = vld [vmem:[#allocation2 + $0x1120] sm:$0xff]  ;;  %v2772_v24 = vrot.slane %v5422_v10, 1  ;;  %v2868_v9 = vld [vmem:[#allocation2 + $0x1118] sm:$0xff]  ;;  %v2867_v4 = vld [vmem:[#allocation2 + $0x1110] sm:$0xff] }
 0x1b5   : > { %3140 = vmatpush2.msra.mxu1 %v2879_v54  ;;  %v1055_v51 = vadd.f32 %v1029_v21, %v724_v40  ;;  %3028 = vmatprep.subr.mxu0 %v2959_v11  ;;  %v1237_v57 = vpop.f32.mrf.mxu1  ;;  %v734_v40 = vadd.f32 %v6457_v28, %v6453_v53  ;;  %v736_v15 = vadd.f32 %v6481_v52, %v6459_v17  ;;  %v2947_v53 = vld [vmem:[#allocation2 + $0x1308] sm:$0xff]  ;;  %v2946_v17 = vld [vmem:[#allocation2 + $0x1300] sm:$0xff] }
 0x1b6   : > { %3141 = vmatprep.subr.mxu1 %v2878_v32  ;;  %3029 = vmatpush2.msra.mxu0 %v2958_v63  ;;  %v1334_v60 = vmax.f32 %v1318_v22, 0.0  ;;  %v1319_v55 = vadd.f32 %v6501_v39, %v1291_v46  ;;  %v1264_v7 = vadd.f32 %v1237_v57, %v1054_v42  ;;  %v2948_v42 = vld [vmem:[#allocation2 + $0x1310] sm:$0xff]  ;;  %v2768_v63 = vrot.slane %v5419_v6, 1  ;;  %v2866_v28 = vld [vmem:[#allocation2 + $0x1108] sm:$0xff]  ;;  %v2865_v57 = vld [vmem:[#allocation2 + $0x1100] sm:$0xff] }
 0x1b7   : > { %3142 = vmatpush2.msra.mxu1 %v2877_v45  ;;  %3030 = vmatprep.subr.mxu0 %v2957_v30  ;;  %v1239_v44 = vpop.f32.mrf.mxu1  ;;  %v2769_v45 = vrot.slane %v5421_v19, 1  ;;  %v5452_v52 = vld [vmem:[%s6046_s7 + $0x28] sm:$0xff]  ;;  %v3360_v19 = vld [vmem:[#allocation2 + $0x14d0] sm:$0xff] }
 0x1b8   : > { %3143 = vmatprep.subr.mxu1 %v2876_v31  ;;  %v1033_v43 = vpop.f32.mrf.mxu0  ;;  %3031 = vmatpush2.msra.mxu0 %v2956_v27  ;;  %1350 = vst [vmem:[%s6522_s10 + $0x40] sm:$0xff] %v1334_v60  ;;  %v1335_v5 = vmax.f32 %v1319_v55, 0.0  ;;  %v1292_v47 = vmul.f32 %v6487_v2, %v1264_v7  ;;  %v1265_v0 = vadd.f32 %v1239_v44, %v1055_v51  ;;  %v5451_v60 = vld [vmem:[%s6046_s7 + $0x20] sm:$0xff]  ;;  %v3364_v44 = vld [vmem:[#allocation2 + $0x14f0] sm:$0xff]  ;;  %v3363_v10 = vld [vmem:[#allocation2 + $0x14e8] sm:$0xff] }
 0x1b9   : > { %3144 = vmatpush2.msra.mxu1 %v2875_v29  ;;  %v1056_v50 = vadd.f32 %v1033_v43, %v728_v37  ;;  %3032 = vmatprep.subr.mxu0 %v2955_v58  ;;  %v2773_v27 = vsel %vm302_vm0, %v2771_v16, %v2772_v24  ;;  %v2770_v55 = vsel %vm302_vm0, %v2768_v63, %v2769_v45  ;;  %v3568_v16 = vld [vmem:[#allocation2 + $0x16c0] sm:$0xff]  ;;  %v3561_v63 = vld [vmem:[#allocation2 + $0x1688] sm:$0xff] }
 0x1ba   : > { %3145 = vmatprep.subr.mxu1 %v2874_v36  ;;  %v1035_v26 = vpop.f32.mrf.mxu0  ;;  %3033 = vmatpush2.msra.mxu0 %v2954_v62  ;;  %1351 = vst [vmem:[%s6522_s10 + $0x48] sm:$0xff] %v1335_v5  ;;  %v1320_v34 = vadd.f32 %v6496_v25, %v1292_v47  ;;  %v1293_v49 = vmul.f32 %v6492_v13, %v1265_v0  ;;  %v3365_v62 = vld [vmem:[#allocation2 + $0x14f8] sm:$0xff]  ;;  %v3573_v5 = vld [vmem:[#allocation2 + $0x16e8] sm:$0xff]  ;;  %v3350_v45 = vld [vmem:[#allocation2 + $0x1480] sm:$0xff] }
 0x1bb   : > { %3146 = vmatpush2.msra.mxu1 %v2873_v8  ;;  %v1057_v56 = vadd.f32 %v1035_v26, %v730_v18  ;;  %3034 = vmatprep.subr.mxu0 %v2953_v48  ;;  %v1243_v54 = vpop.f32.mrf.mxu1  ;;  %v3575_v8 = vld [vmem:[#allocation2 + $0x16f8] sm:$0xff] }
 0x1bc   : > { %3147 = vmatprep.subr.mxu1 %v2872_v3  ;;  %3035 = vmatpush2.msra.mxu0 %v2952_v1  ;;  %v1336_v11 = vmax.f32 %v1320_v34, 0.0  ;;  %v1321_v32 = vadd.f32 %v6501_v39, %v1293_v49  ;;  %v1266_v33 = vadd.f32 %v1243_v54, %v1056_v50  ;;  %v3574_v3 = vld [vmem:[#allocation2 + $0x16f0] sm:$0xff]  ;;  %v3362_v1 = vld [vmem:[#allocation2 + $0x14e0] sm:$0xff]  ;;  %v3571_v26 = vld [vmem:[#allocation2 + $0x16d8] sm:$0xff] }
 0x1bd   : > { %3148 = vmatpush2.msra.mxu1 %v2871_v20  ;;  %3036 = vmatprep.subr.mxu0 %v2951_v38  ;;  %v1245_v30 = vpop.f32.mrf.mxu1  ;;  %v3572_v20 = vld [vmem:[#allocation2 + $0x16e0] sm:$0xff]  ;;  %v3361_v38 = vld [vmem:[#allocation2 + $0x14d8] sm:$0xff]  ;;  %v3570_v34 = vld [vmem:[#allocation2 + $0x16d0] sm:$0xff] }
 0x1be   : > { %3149 = vmatprep.subr.mxu1 %v2870_v14  ;;  %v1039_v21 = vpop.f32.mrf.mxu0  ;;  %3037 = vmatpush2.msra.mxu0 %v2950_v12  ;;  %1352 = vst [vmem:[%s6522_s10 + $0x50] sm:$0xff] %v1336_v11  ;;  %v1337_v31 = vmax.f32 %v1321_v32, 0.0  ;;  %v1294_v22 = vmul.f32 %v6487_v2, %v1266_v33  ;;  %v1267_v51 = vadd.f32 %v1245_v30, %v1057_v56  ;;  %v3569_v49 = vld [vmem:[#allocation2 + $0x16c8] sm:$0xff]  ;;  %v3356_v54 = vld [vmem:[#allocation2 + $0x14b0] sm:$0xff]  ;;  %v3564_v11 = vld [vmem:[#allocation2 + $0x16a0] sm:$0xff] }
 0x1bf   : > { %3150 = vmatpush2.msra.mxu1 %v2869_v59  ;;  %v1058_v46 = vadd.f32 %v1039_v21, %v734_v40  ;;  %3038 = vmatprep.subr.mxu0 %v2949_v41  ;;  %v3358_v59 = vld [vmem:[#allocation2 + $0x14c0] sm:$0xff]  ;;  %v3566_v40 = vld [vmem:[#allocation2 + $0x16b0] sm:$0xff]  ;;  %v3355_v41 = vld [vmem:[#allocation2 + $0x14a8] sm:$0xff] }
 0x1c0   : > { %3151 = vmatprep.subr.mxu1 %v2868_v9  ;;  %v1041_v29 = vpop.f32.mrf.mxu0  ;;  %3039 = vmatpush2.msra.mxu0 %v2948_v42  ;;  %1353 = vst [vmem:[%s6522_s10 + $0x58] sm:$0xff] %v1337_v31  ;;  %v1322_v58 = vadd.f32 %v6496_v25, %v1294_v22  ;;  %v1295_v36 = vmul.f32 %v6492_v13, %v1267_v51  ;;  %v3565_v9 = vld [vmem:[#allocation2 + $0x16a8] sm:$0xff]  ;;  %v3353_v32 = vld [vmem:[#allocation2 + $0x1498] sm:$0xff]  ;;  %v3562_v42 = vld [vmem:[#allocation2 + $0x1690] sm:$0xff] }
 0x1c1   : > { %3152 = vmatpush2.msra.mxu1 %v2867_v4  ;;  %v1059_v37 = vadd.f32 %v1041_v29, %v736_v15  ;;  %3040 = vmatprep.subr.mxu0 %v2947_v53  ;;  %v1249_v7 = vpop.f32.mrf.mxu1  ;;  %v3563_v33 = vld [vmem:[#allocation2 + $0x1698] sm:$0xff]  ;;  %v3352_v15 = vld [vmem:[#allocation2 + $0x1490] sm:$0xff]  ;;  %v3351_v4 = vld [vmem:[#allocation2 + $0x1488] sm:$0xff] }
 0x1c2   : > { %3153 = vmatprep.subr.mxu1 %v2866_v28  ;;  %3041 = vmatpush2.msra.mxu0 %v2946_v17  ;;  %v1338_v48 = vmax.f32 %v1322_v58, 0.0  ;;  %v1323_v18 = vadd.f32 %v6501_v39, %v1295_v36  ;;  %v1268_v43 = vadd.f32 %v1249_v7, %v1058_v46  ;;  %v3560_v21 = vld [vmem:[#allocation2 + $0x1680] sm:$0xff]  ;;  %v3349_v30 = vld [vmem:[#allocation2 + $0x1478] sm:$0xff]  ;;  %v3348_v28 = vld [vmem:[#allocation2 + $0x1470] sm:$0xff] }
 0x1c3   : > { %3042 = vmatprep.mubr.f32.mxu0 %v5452_v52  ;;  %3154 = vmatpush2.msra.mxu1 %v2865_v57  ;;  %v1251_v61 = vpop.f32.mrf.mxu1  ;;  %v3559_v53 = vld [vmem:[#allocation2 + $0x1678] sm:$0xff]  ;;  %v3558_v31 = vld [vmem:[#allocation2 + $0x1670] sm:$0xff]  ;;  %v3347_v22 = vld [vmem:[#allocation2 + $0x1468] sm:$0xff] }
 0x1c4   : > { %3155 = vmatprep.mubr.f32.mxu1 %v2773_v27  ;;  %3043 = vmatmul.mubr.f32.vlgmr.msra.gmra.mxu0 %v5451_v60  ;;  %1354 = vst [vmem:[%s6522_s10 + $0x60] sm:$0xff] %v1338_v48  ;;  %v1339_v47 = vmax.f32 %v1323_v18, 0.0  ;;  %v1296_v50 = vmul.f32 %v6487_v2, %v1268_v43  ;;  %v1269_v0 = vadd.f32 %v1251_v61, %v1059_v37  ;;  %v3359_v2 = vld [vmem:[#allocation2 + $0x14c8] sm:$0xff]  ;;  %v3346_v51 = vld [vmem:[#allocation2 + $0x1460] sm:$0xff]  ;;  %v3345_v52 = vld [vmem:[#allocation2 + $0x1458] sm:$0xff] }
 0x1c5   : > { %3156 = vmatmul.mubr.f32.vlgmr.msra.gmra.mxu1 %v2770_v55  ;;  %3398 = vmatprep.subr.mxu0 %v3365_v62  ;;  %v3557_v46 = vld [vmem:[#allocation2 + $0x1668] sm:$0xff]  ;;  %v3556_v17 = vld [vmem:[#allocation2 + $0x1660] sm:$0xff]  ;;  %v3555_v27 = vld [vmem:[#allocation2 + $0x1658] sm:$0xff] }
 0x1c6   : > { %3608 = vmatprep.subr.mxu1 %v3575_v8  ;;  %3399 = vmatpush1.msra.mxu0 %v3364_v44  ;;  %1355 = vst [vmem:[%s6522_s10 + $0x68] sm:$0xff] %v1339_v47  ;;  %v1324_v14 = vadd.f32 %v6496_v25, %v1296_v50  ;;  %v1297_v6 = vmul.f32 %v6492_v13, %v1269_v0  ;;  %v3357_v13 = vld [vmem:[#allocation2 + $0x14b8] sm:$0xff]  ;;  %v3344_v29 = vld [vmem:[#allocation2 + $0x1450] sm:$0xff]  ;;  %v3343_v58 = vld [vmem:[#allocation2 + $0x1448] sm:$0xff] }
 0x1c7   : > { %3609 = vmatpush1.msra.mxu1 %v3574_v3  ;;  %3400 = vmatprep.subr.mxu0 %v3363_v10  ;;  %v3567_v25 = vld [vmem:[#allocation2 + $0x16b8] sm:$0xff]  ;;  %v3554_v57 = vld [vmem:[#allocation2 + $0x1650] sm:$0xff]  ;;  %v3553_v36 = vld [vmem:[#allocation2 + $0x1648] sm:$0xff] }
 0x1c8   : > { %3610 = vmatprep.subr.mxu1 %v3573_v5  ;;  %3401 = vmatpush1.msra.mxu0 %v3362_v1  ;;  %v1340_v56 = vmax.f32 %v1324_v14, 0.0  ;;  %v1325_v12 = vadd.f32 %v6501_v39, %v1297_v6  ;;  %v3354_v39 = vld [vmem:[#allocation2 + $0x14a0] sm:$0xff]  ;;  %v3341_v55 = vld [vmem:[#allocation2 + $0x1438] sm:$0xff]  ;;  %v3340_v62 = vld [vmem:[#allocation2 + $0x1430] sm:$0xff] }
 0x1c9   : > { %3611 = vmatpush1.msra.mxu1 %v3572_v20  ;;  %3402 = vmatprep.subr.mxu0 %v3361_v38  ;;  %v3342_v37 = vld [vmem:[#allocation2 + $0x1440] sm:$0xff]  ;;  %v3551_v7 = vld [vmem:[#allocation2 + $0x1638] sm:$0xff]  ;;  %v3550_v8 = vld [vmem:[#allocation2 + $0x1630] sm:$0xff] }
 0x1ca   : > { %3612 = vmatprep.subr.mxu1 %v3571_v26  ;;  %3403 = vmatpush1.msra.mxu0 %v3360_v19  ;;  %1356 = vst [vmem:[%s6522_s10 + $0x70] sm:$0xff] %v1340_v56  ;;  %v1341_v24 = vmax.f32 %v1325_v12, 0.0  ;;  %v3552_v60 = vld [vmem:[#allocation2 + $0x1640] sm:$0xff]  ;;  %v3339_v48 = vld [vmem:[#allocation2 + $0x1428] sm:$0xff]  ;;  %v5426_v61 = vld [vmem:[%s6046_s7 + $0x58] sm:$0x1] }
 0x1cb   : > { %3613 = vmatpush1.msra.mxu1 %v3570_v34  ;;  %3404 = vmatprep.subr.mxu0 %v3359_v2  ;;  %v3549_v18 = vld [vmem:[#allocation2 + $0x1628] sm:$0xff]  ;;  %v3338_v43 = vld [vmem:[#allocation2 + $0x1420] sm:$0xff]  ;;  %v3337_v10 = vld [vmem:[#allocation2 + $0x1418] sm:$0xff]  ;;  %v2778_v14 = vrot.slane %v5426_v61, 1 }
 0x1cc   : > { %3614 = vmatprep.subr.mxu1 %v3569_v49  ;;  %3405 = vmatpush1.msra.mxu0 %v3358_v59  ;;  %1357 = vst [vmem:[%s6522_s10 + $0x78] sm:$0xff] %v1341_v24  ;;  %v3548_v44 = vld [vmem:[#allocation2 + $0x1620] sm:$0xff]  ;;  %v5424_v3 = vld [vmem:[%s6046_s7 + $0x48] sm:$0xfe]  ;;  %v3547_v5 = vld [vmem:[#allocation2 + $0x1618] sm:$0xff] }
 0x1cd   : > { %3615 = vmatpush1.msra.mxu1 %v3568_v16  ;;  %3406 = vmatprep.subr.mxu0 %v3357_v13  ;;  %v3336_v47 = vld [vmem:[#allocation2 + $0x1410] sm:$0xff]  ;;  %v5423_v0 = vld [vmem:[%s6046_s7 + $0x40] sm:$0xfe]  ;;  %v3335_v20 = vld [vmem:[#allocation2 + $0x1408] sm:$0xff]  ;;  %v2777_v26 = vrot.slane %v5424_v3, 1 }
 0x1ce   : > { %3616 = vmatprep.subr.mxu1 %v3567_v25  ;;  %3407 = vmatpush1.msra.mxu0 %v3356_v54  ;;  %v3546_v50 = vld [vmem:[#allocation2 + $0x1610] sm:$0xff]  ;;  %v3545_v38 = vld [vmem:[#allocation2 + $0x1608] sm:$0xff]  ;;  %v3334_v6 = vld [vmem:[#allocation2 + $0x1400] sm:$0xff]  ;;  %v2774_v56 = vrot.slane %v5423_v0, 1 }
 0x1cf   : > { %3617 = vmatpush1.msra.mxu1 %v3566_v40  ;;  %3408 = vmatprep.subr.mxu0 %v3355_v41  ;;  %v5425_v1 = vld [vmem:[%s6046_s7 + $0x50] sm:$0x1]  ;;  %v3544_v19 = vld [vmem:[#allocation2 + $0x1600] sm:$0xff]  ;;  %v3397_v34 = vld [vmem:[#allocation2 + $0x15f8] sm:$0xff]  ;;  %v2779_v24 = vsel %vm302_vm0, %v2777_v26, %v2778_v14 }
 0x1d0   : > { %3618 = vmatprep.subr.mxu1 %v3565_v9  ;;  %3409 = vmatpush1.msra.mxu0 %v3354_v39  ;;  %v3607_v2 = vld [vmem:[#allocation2 + $0x17f8] sm:$0xff]  ;;  %v3396_v49 = vld [vmem:[#allocation2 + $0x15f0] sm:$0xff]  ;;  %v2775_v12 = vrot.slane %v5425_v1, 1  ;;  %v5428_v16 = vld [vmem:[%s6046_s7 + $0x68] sm:$0xfe] }
 0x1d1   : > { %3619 = vmatpush1.msra.mxu1 %v3564_v11  ;;  %3410 = vmatprep.subr.mxu0 %v3353_v32  ;;  %v3606_v59 = vld [vmem:[#allocation2 + $0x17f0] sm:$0xff]  ;;  %v5430_v13 = vld [vmem:[%s6046_s7 + $0x78] sm:$0x1]  ;;  %v6605_v25 = vld [vmem:[%s6046_s7 + $0x48] sm:$0xff]  ;;  %v2783_v32 = vrot.slane %v5428_v16, 1 }
 0x1d2   : > { %3620 = vmatprep.subr.mxu1 %v3563_v33  ;;  %3411 = vmatpush1.msra.mxu0 %v3352_v15  ;;  %v3395_v54 = vld [vmem:[#allocation2 + $0x15e8] sm:$0xff]  ;;  %v5427_v41 = vld [vmem:[%s6046_s7 + $0x60] sm:$0xfe]  ;;  %v5429_v9 = vld [vmem:[%s6046_s7 + $0x70] sm:$0x1]  ;;  %v2776_v11 = vsel %vm302_vm0, %v2774_v56, %v2775_v12  ;;  %v2784_v33 = vrot.slane %v5430_v13, 1 }
 0x1d3   : > { %3621 = vmatpush1.msra.mxu1 %v3562_v42  ;;  %3412 = vmatprep.subr.mxu0 %v3351_v4  ;;  %v3605_v40 = vld [vmem:[#allocation2 + $0x17e8] sm:$0xff]  ;;  %v6611_v39 = vld [vmem:[%s6046_s7 + $0x40] sm:$0xff]  ;;  %v3393_v4 = vld [vmem:[#allocation2 + $0x15d8] sm:$0xff] }
 0x1d4   : > { %3622 = vmatprep.subr.mxu1 %v3561_v63  ;;  %3413 = vmatpush1.msra.mxu0 %v3350_v45  ;;  %v3394_v15 = vld [vmem:[#allocation2 + $0x15e0] sm:$0xff]  ;;  %v3603_v63 = vld [vmem:[#allocation2 + $0x17d8] sm:$0xff]  ;;  %v3392_v45 = vld [vmem:[#allocation2 + $0x15d0] sm:$0xff] }
 0x1d5   : > { %3623 = vmatpush1.msra.mxu1 %v3560_v21  ;;  %3414 = vmatprep.subr.mxu0 %v3349_v30  ;;  %v3604_v42 = vld [vmem:[#allocation2 + $0x17e0] sm:$0xff]  ;;  %v2780_v21 = vrot.slane %v5427_v41, 1  ;;  %v2781_v30 = vrot.slane %v5429_v9, 1  ;;  %v6633_v3 = vld [vmem:[%s6046_s7 + $0x88] sm:$0xff]  ;;  %v3594_v56 = vld [vmem:[#allocation2 + $0x1790] sm:$0xff] }
 0x1d6   : > { %3624 = vmatprep.subr.mxu1 %v3559_v53  ;;  %3415 = vmatpush1.msra.mxu0 %v3348_v28  ;;  %v3602_v53 = vld [vmem:[#allocation2 + $0x17d0] sm:$0xff]  ;;  %v5432_v28 = vld [vmem:[%s6046_s7 + $0x88] sm:$0xfe]  ;;  %v6639_v0 = vld [vmem:[%s6046_s7 + $0x80] sm:$0xff] }
 0x1d7   : > { %3625 = vmatpush1.msra.mxu1 %v3558_v31  ;;  %3416 = vmatprep.subr.mxu0 %v3347_v22  ;;  %v5434_v31 = vld [vmem:[%s6046_s7 + $0x98] sm:$0x1]  ;;  %v6619_v22 = vld [vmem:[%s6046_s7 + $0x68] sm:$0xff]  ;;  %v3386_v26 = vld [vmem:[#allocation2 + $0x15a0] sm:$0xff] }
 0x1d8   : > { %3626 = vmatprep.subr.mxu1 %v3557_v46  ;;  %3417 = vmatpush1.msra.mxu0 %v3346_v51  ;;  %v2785_v46 = vsel %vm302_vm0, %v2783_v32, %v2784_v33  ;;  %v3391_v51 = vld [vmem:[#allocation2 + $0x15c8] sm:$0xff]  ;;  %v3596_v14 = vld [vmem:[#allocation2 + $0x17a0] sm:$0xff]  ;;  %v5441_v41 = vld [vmem:[%s6046_s7 + $0xd0] sm:$0x1] }
 0x1d9   : > { %3627 = vmatpush1.msra.mxu1 %v3556_v17  ;;  %3418 = vmatprep.subr.mxu0 %v3345_v52  ;;  %v3601_v17 = vld [vmem:[#allocation2 + $0x17c8] sm:$0xff]  ;;  %v5431_v52 = vld [vmem:[%s6046_s7 + $0x80] sm:$0xfe] }
 0x1da   : > { %3628 = vmatprep.subr.mxu1 %v3555_v27  ;;  %3419 = vmatpush1.msra.mxu0 %v3344_v29  ;;  %v5433_v27 = vld [vmem:[%s6046_s7 + $0x90] sm:$0x1]  ;;  %v6625_v29 = vld [vmem:[%s6046_s7 + $0x60] sm:$0xff]  ;;  %v5440_v12 = vld [vmem:[%s6046_s7 + $0xc8] sm:$0xfe] }
 0x1db   : > { %3629 = vmatpush1.msra.mxu1 %v3554_v57  ;;  %3420 = vmatprep.subr.mxu0 %v3343_v58  ;;  %v2782_v57 = vsel %vm302_vm0, %v2780_v21, %v2781_v30  ;;  %v2789_v58 = vrot.slane %v5432_v28, 1  ;;  %v6647_v16 = vld [vmem:[%s6046_s7 + $0xa8] sm:$0xff]  ;;  %v6653_v9 = vld [vmem:[%s6046_s7 + $0xa0] sm:$0xff]  ;;  %v2801_v32 = vrot.slane %v5440_v12, 1  ;;  %v2799_v30 = vrot.slane %v5441_v41, 1  ;;  %v3373_v12 = vld [vmem:[#allocation2 + $0x1538] sm:$0xff] }
 0x1dc   : > { %3630 = vmatprep.subr.mxu1 %v3553_v36  ;;  %3421 = vmatpush1.msra.mxu0 %v3342_v37  ;;  %v2790_v36 = vrot.slane %v5434_v31, 1  ;;  %v3390_v37 = vld [vmem:[#allocation2 + $0x15c0] sm:$0xff]  ;;  %v5444_v28 = vld [vmem:[%s6046_s7 + $0xe8] sm:$0xfe]  ;;  %v5446_v31 = vld [vmem:[%s6046_s7 + $0xf8] sm:$0x1] }
 0x1dd   : > { %3631 = vmatpush1.msra.mxu1 %v3552_v60  ;;  %3422 = vmatprep.subr.mxu0 %v3341_v55  ;;  %v3600_v60 = vld [vmem:[#allocation2 + $0x17c0] sm:$0xff]  ;;  %v3389_v55 = vld [vmem:[#allocation2 + $0x15b8] sm:$0xff]  ;;  %v6691_v41 = vld [vmem:[%s6046_s7 + $0x108] sm:$0xff] }
 0x1de   : > { %3632 = vmatprep.subr.mxu1 %v3551_v7  ;;  %3423 = vmatpush1.msra.mxu0 %v3340_v62  ;;  %v3599_v7 = vld [vmem:[#allocation2 + $0x17b8] sm:$0xff]  ;;  %v3388_v62 = vld [vmem:[#allocation2 + $0x15b0] sm:$0xff]  ;;  %v2791_v61 = vsel %vm302_vm0, %v2789_v58, %v2790_v36  ;;  %v6667_v58 = vld [vmem:[%s6046_s7 + $0xc0] sm:$0xff] }
 0x1df   : > { %3633 = vmatpush1.msra.mxu1 %v3550_v8  ;;  %3424 = vmatprep.subr.mxu0 %v3339_v48  ;;  %v2786_v8 = vrot.slane %v5431_v52, 1  ;;  %v2787_v48 = vrot.slane %v5433_v27, 1  ;;  %v3589_v52 = vld [vmem:[#allocation2 + $0x1768] sm:$0xff]  ;;  %v5443_v27 = vld [vmem:[%s6046_s7 + $0xe0] sm:$0xfe] }
 0x1e0   : > { %3634 = vmatprep.subr.mxu1 %v3549_v18  ;;  %3425 = vmatpush1.msra.mxu0 %v3338_v43  ;;  %v3598_v18 = vld [vmem:[#allocation2 + $0x17b0] sm:$0xff]  ;;  %v5436_v43 = vld [vmem:[%s6046_s7 + $0xa8] sm:$0xfe] }
 0x1e1   : > { %3635 = vmatpush1.msra.mxu1 %v3548_v44  ;;  %3426 = vmatprep.subr.mxu0 %v3337_v10  ;;  %v5438_v44 = vld [vmem:[%s6046_s7 + $0xb8] sm:$0x1]  ;;  %v3387_v10 = vld [vmem:[#allocation2 + $0x15a8] sm:$0xff]  ;;  %v2788_v1 = vsel %vm302_vm0, %v2786_v8, %v2787_v48  ;;  %v3376_v48 = vld [vmem:[#allocation2 + $0x1550] sm:$0xff] }
 0x1e2   : > { %3636 = vmatprep.subr.mxu1 %v3547_v5  ;;  %3427 = vmatpush1.msra.mxu0 %v3336_v47  ;;  %v3597_v5 = vld [vmem:[#allocation2 + $0x17a8] sm:$0xff]  ;;  %v5435_v47 = vld [vmem:[%s6046_s7 + $0xa0] sm:$0xfe]  ;;  %v3587_v8 = vld [vmem:[#allocation2 + $0x1758] sm:$0xff] }
 0x1e3   : > { %3637 = vmatpush1.msra.mxu1 %v3546_v50  ;;  %3428 = vmatprep.subr.mxu0 %v3335_v20  ;;  %v5437_v50 = vld [vmem:[%s6046_s7 + $0xb0] sm:$0x1]  ;;  %v2795_v20 = vrot.slane %v5436_v43, 1 }
 0x1e4   : > { %3638 = vmatprep.subr.mxu1 %v3545_v38  ;;  %3429 = vmatpush1.msra.mxu0 %v3334_v6  ;;  %v2796_v38 = vrot.slane %v5438_v44, 1  ;;  %v3385_v6 = vld [vmem:[#allocation2 + $0x1598] sm:$0xff]  ;;  %v3586_v44 = vld [vmem:[#allocation2 + $0x1750] sm:$0xff] }
 0x1e5   : > { %3639 = vmatpush1.msra.mxu1 %v3544_v19  ;;  %3430 = vmatprep.subr.mxu0 %v3397_v34  ;;  %v3595_v19 = vld [vmem:[#allocation2 + $0x1798] sm:$0xff]  ;;  %v3384_v34 = vld [vmem:[#allocation2 + $0x1590] sm:$0xff] }
 0x1e6   : > { %3640 = vmatprep.subr.mxu1 %v3607_v2  ;;  %3431 = vmatpush2.msra.mxu0 %v3396_v49  ;;  %v2792_v2 = vrot.slane %v5435_v47, 1  ;;  %v2793_v49 = vrot.slane %v5437_v50, 1  ;;  %v2797_v13 = vsel %vm302_vm0, %v2795_v20, %v2796_v38  ;;  %v3375_v50 = vld [vmem:[#allocation2 + $0x1548] sm:$0xff]  ;;  %v5447_v20 = vld [vmem:[%s6046_s7 + $0x100] sm:$0xfe] }
 0x1e7   : > { %3641 = vmatpush2.msra.mxu1 %v3606_v59  ;;  %3048 = vmatprep.mubr.f32.mxu0 %v6605_v25  ;;  %v5442_v59 = vld [vmem:[%s6046_s7 + $0xd8] sm:$0x1]  ;;  %v5449_v38 = vld [vmem:[%s6046_s7 + $0x110] sm:$0x1] }
 0x1e8   : > { %3161 = vmatprep.mubr.f32.mxu1 %v2779_v24  ;;  %3432 = vmatprep.subr.mxu0 %v3395_v54  ;;  %v3383_v24 = vld [vmem:[#allocation2 + $0x1588] sm:$0xff]  ;;  %v2802_v33 = vrot.slane %v5442_v59, 1  ;;  %v3583_v59 = vld [vmem:[#allocation2 + $0x1738] sm:$0xff] }
 0x1e9   : > { %3642 = vmatprep.subr.mxu1 %v3605_v40  ;;  %3049 = vmatmul.mubr.f32.gmra.mxu0 %v6611_v39  ;;  %v3593_v54 = vld [vmem:[#allocation2 + $0x1788] sm:$0xff]  ;;  %v5439_v40 = vld [vmem:[%s6046_s7 + $0xc0] sm:$0xfe] }
 0x1ea   : > { %3162 = vmatmul.mubr.f32.gmra.mxu1 %v2776_v11  ;;  %3433 = vmatpush2.msra.mxu0 %v3394_v15  ;;  %v2794_v11 = vsel %vm302_vm0, %v2792_v2, %v2793_v49  ;;  %v3382_v15 = vld [vmem:[#allocation2 + $0x1580] sm:$0xff]  ;;  %v2798_v21 = vrot.slane %v5439_v40, 1  ;;  %v3582_v40 = vld [vmem:[#allocation2 + $0x1730] sm:$0xff] }
 0x1eb   : > { %3643 = vmatpush2.msra.mxu1 %v3604_v42  ;;  %3434 = vmatprep.subr.mxu0 %v3393_v4  ;;  %v3592_v42 = vld [vmem:[#allocation2 + $0x1780] sm:$0xff]  ;;  %v3381_v4 = vld [vmem:[#allocation2 + $0x1578] sm:$0xff] }
 0x1ec   : > { %3644 = vmatprep.subr.mxu1 %v3603_v63  ;;  %3435 = vmatpush2.msra.mxu0 %v3392_v45  ;;  %v3591_v63 = vld [vmem:[#allocation2 + $0x1778] sm:$0xff]  ;;  %v3380_v45 = vld [vmem:[#allocation2 + $0x1570] sm:$0xff]  ;;  %v2800_v36 = vsel %vm302_vm0, %v2798_v21, %v2799_v30  ;;  %v3374_v49 = vld [vmem:[#allocation2 + $0x1540] sm:$0xff] }
 0x1ed   : > { %3645 = vmatpush2.msra.mxu1 %v3602_v53  ;;  %3054 = vmatprep.mubr.f32.mxu0 %v6619_v22  ;;  %v3590_v53 = vld [vmem:[#allocation2 + $0x1770] sm:$0xff] }
 0x1ee   : > { %3167 = vmatprep.mubr.f32.mxu1 %v2785_v46  ;;  %3436 = vmatprep.subr.mxu0 %v3391_v51  ;;  %v6661_v46 = vld [vmem:[%s6046_s7 + $0xc8] sm:$0xff]  ;;  %v2803_v51 = vsel %vm302_vm0, %v2801_v32, %v2802_v33  ;;  %v5469_v21 = vld [vmem:[%s6046_s7 + $0x50] sm:$0x1] }
 0x1ef   : > { %3646 = vmatprep.subr.mxu1 %v3601_v17  ;;  %3055 = vmatmul.mubr.f32.gmra.mxu0 %v6625_v29  ;;  %v3379_v17 = vld [vmem:[#allocation2 + $0x1568] sm:$0xff] }
 0x1f0   : > { %3168 = vmatmul.mubr.f32.gmra.mxu1 %v2782_v57  ;;  %3437 = vmatpush2.msra.mxu0 %v3390_v37  ;;  %v5445_v57 = vld [vmem:[%s6046_s7 + $0xf0] sm:$0x1]  ;;  %v2807_v37 = vrot.slane %v5444_v28, 1  ;;  %v6707_v28 = vld [vmem:[%s6046_s7 + $0x100] sm:$0xff] }
 0x1f1   : > { %3647 = vmatpush2.msra.mxu1 %v3600_v60  ;;  %3438 = vmatprep.subr.mxu0 %v3389_v55  ;;  %v2808_v60 = vrot.slane %v5446_v31, 1  ;;  %v3378_v55 = vld [vmem:[#allocation2 + $0x1560] sm:$0xff]  ;;  %v2805_v43 = vrot.slane %v5445_v57, 1 }
 0x1f2   : > { %3648 = vmatprep.subr.mxu1 %v3599_v7  ;;  %3439 = vmatpush2.msra.mxu0 %v3388_v62  ;;  %v3588_v7 = vld [vmem:[#allocation2 + $0x1760] sm:$0xff]  ;;  %v3377_v62 = vld [vmem:[#allocation2 + $0x1558] sm:$0xff] }
 0x1f3   : > { %3649 = vmatpush2.msra.mxu1 %v3598_v18  ;;  %3060 = vmatprep.mubr.f32.mxu0 %v6633_v3  ;;  %v2804_v18 = vrot.slane %v5443_v27, 1  ;;  %v2809_v47 = vsel %vm302_vm0, %v2807_v37, %v2808_v60  ;;  %v3369_v37 = vld [vmem:[#allocation2 + $0x1518] sm:$0xff] }
 0x1f4   : > { %3173 = vmatprep.mubr.f32.mxu1 %v2791_v61  ;;  %3440 = vmatprep.subr.mxu0 %v3387_v10  ;;  %v5448_v61 = vld [vmem:[%s6046_s7 + $0x108] sm:$0xfe]  ;;  %v5450_v10 = vld [vmem:[%s6046_s7 + $0x118] sm:$0x1] }
 0x1f5   : > { %3650 = vmatprep.subr.mxu1 %v3597_v5  ;;  %3061 = vmatmul.mubr.f32.gmra.mxu0 %v6639_v0  ;;  %v6675_v5 = vld [vmem:[%s6046_s7 + $0xe8] sm:$0xff]  ;;  %v2814_v2 = vrot.slane %v5450_v10, 1  ;;  %v3579_v60 = vld [vmem:[#allocation2 + $0x1718] sm:$0xff] }
 0x1f6   : > { %3174 = vmatmul.mubr.f32.gmra.mxu1 %v2788_v1  ;;  %3441 = vmatpush2.msra.mxu0 %v3386_v26  ;;  %v3585_v1 = vld [vmem:[#allocation2 + $0x1748] sm:$0xff]  ;;  %v6680_v26 = vpop.f32.mrf.mxu0 }
 0x1f7   : > { %3651 = vmatpush2.msra.mxu1 %v3596_v14  ;;  %3442 = vmatprep.subr.mxu0 %v3385_v6  ;;  %v6682_v14 = vpop.f32.mrf.mxu1  ;;  %v6685_v6 = vld [vmem:[%s6046_s7 + $0xe0] sm:$0xff] }
 0x1f8   : > { %3652 = vmatprep.subr.mxu1 %v3595_v19  ;;  %3443 = vmatpush2.msra.mxu0 %v3384_v34  ;;  %v2806_v19 = vsel %vm302_vm0, %v2804_v18, %v2805_v43  ;;  %v2813_v34 = vrot.slane %v5448_v61, 1  ;;  %v3577_v18 = vld [vmem:[#allocation2 + $0x1708] sm:$0xff]  ;;  %v3366_v61 = vld [vmem:[#allocation2 + $0x1500] sm:$0xff] }
 0x1f9   : > { %3653 = vmatpush2.msra.mxu1 %v3594_v56  ;;  %3066 = vmatprep.mubr.f32.mxu0 %v6647_v16  ;;  %v3584_v56 = vld [vmem:[#allocation2 + $0x1740] sm:$0xff]  ;;  %v6695_v32 = vpop.f32.mrf.mxu1  ;;  %v5472_v43 = vld [vmem:[%s6046_s7 + $0x68] sm:$0xfe] }
 0x1fa   : > { %3179 = vmatprep.mubr.f32.mxu1 %v2797_v13  ;;  %3444 = vmatprep.subr.mxu0 %v3383_v24  ;;  %v2810_v13 = vrot.slane %v5447_v20, 1  ;;  %v2811_v24 = vrot.slane %v5449_v38, 1  ;;  %v2815_v33 = vsel %vm302_vm0, %v2813_v34, %v2814_v2  ;;  %v3576_v38 = vld [vmem:[#allocation2 + $0x1700] sm:$0xff]  ;;  %v4179_v34 = vld [vmem:[#allocation2 + $0x1af8] sm:$0xff]  ;;  %v3278_v2 = vrot.slane %v5472_v43, 1  ;;  %v4173_v43 = vld [vmem:[#allocation2 + $0x1ac8] sm:$0xff] }
 0x1fb   : > { %3654 = vmatprep.subr.mxu1 %v3593_v54  ;;  %3067 = vmatmul.mubr.f32.gmra.mxu0 %v6653_v9  ;;  %v3372_v54 = vld [vmem:[#allocation2 + $0x1530] sm:$0xff] }
 0x1fc   : > { %3180 = vmatmul.mubr.f32.gmra.mxu1 %v2794_v11  ;;  %3445 = vmatpush2.msra.mxu0 %v3382_v15  ;;  %v6693_v11 = vpop.f32.mrf.mxu0  ;;  %v3371_v15 = vld [vmem:[#allocation2 + $0x1528] sm:$0xff]  ;;  %v2812_v31 = vsel %vm302_vm0, %v2810_v13, %v2811_v24 }
 0x1fd   : > { %3655 = vmatpush2.msra.mxu1 %v3592_v42  ;;  %3446 = vmatprep.subr.mxu0 %v3381_v4  ;;  %v5468_v42 = vld [vmem:[%s6046_s7 + $0x48] sm:$0xfe]  ;;  %v5470_v4 = vld [vmem:[%s6046_s7 + $0x58] sm:$0x1] }
 0x1fe   : > { %3656 = vmatprep.subr.mxu1 %v3591_v63  ;;  %3447 = vmatpush2.msra.mxu0 %v3380_v45  ;;  %v3581_v63 = vld [vmem:[#allocation2 + $0x1728] sm:$0xff]  ;;  %v5467_v45 = vld [vmem:[%s6046_s7 + $0x40] sm:$0xfe]  ;;  %v3273_v27 = vrot.slane %v5470_v4, 1  ;;  %v5478_v4 = vld [vmem:[%s6046_s7 + $0x98] sm:$0x1] }
 0x1ff   : > { %3657 = vmatpush2.msra.mxu1 %v3590_v53  ;;  %3072 = vmatprep.mubr.f32.mxu0 %v6661_v46 }
 0x200   : > { %3185 = vmatprep.mubr.f32.mxu1 %v2803_v51  ;;  %3448 = vmatprep.subr.mxu0 %v3379_v17  ;;  %v3370_v51 = vld [vmem:[#allocation2 + $0x1520] sm:$0xff] }
 0x201   : > { %3658 = vmatprep.subr.mxu1 %v3589_v52  ;;  %3073 = vmatmul.mubr.f32.gmra.mxu0 %v6667_v58  ;;  %v3580_v17 = vld [vmem:[#allocation2 + $0x1720] sm:$0xff]  ;;  %v3272_v52 = vrot.slane %v5468_v42, 1  ;;  %v5476_v42 = vld [vmem:[%s6046_s7 + $0x88] sm:$0xfe] }
 0x202   : > { %3186 = vmatmul.mubr.f32.gmra.mxu1 %v2800_v36  ;;  %3449 = vmatpush2.msra.mxu0 %v3378_v55  ;;  %v3269_v55 = vrot.slane %v5467_v45, 1  ;;  %v4176_v45 = vld [vmem:[#allocation2 + $0x1ae0] sm:$0xff] }
 0x203   : > { %3659 = vmatpush2.msra.mxu1 %v3588_v7  ;;  %3450 = vmatprep.subr.mxu0 %v3377_v62  ;;  %v3270_v7 = vrot.slane %v5469_v21, 1  ;;  %v3368_v62 = vld [vmem:[#allocation2 + $0x1510] sm:$0xff]  ;;  %v3274_v10 = vsel %vm302_vm0, %v3272_v52, %v3273_v27  ;;  %v5475_v21 = vld [vmem:[%s6046_s7 + $0x80] sm:$0xfe]  ;;  %v4175_v27 = vld [vmem:[#allocation2 + $0x1ad8] sm:$0xff] }
 0x204   : > { %3660 = vmatprep.subr.mxu1 %v3587_v8  ;;  %3451 = vmatpush2.msra.mxu0 %v3376_v48  ;;  %v3578_v8 = vld [vmem:[#allocation2 + $0x1710] sm:$0xff]  ;;  %v3367_v48 = vld [vmem:[#allocation2 + $0x1508] sm:$0xff]  ;;  %v3983_v52 = vld [vmem:[#allocation2 + $0x18e0] sm:$0xff] }
 0x205   : > { %3661 = vmatpush2.msra.mxu1 %v3586_v44  ;;  %3078 = vmatprep.mubr.f32.mxu0 %v6675_v5  ;;  %v5474_v44 = vld [vmem:[%s6046_s7 + $0x78] sm:$0x1] }
 0x206   : > { %3191 = vmatprep.mubr.f32.mxu1 %v2809_v47  ;;  %3452 = vmatprep.subr.mxu0 %v3375_v50  ;;  %v5471_v47 = vld [vmem:[%s6046_s7 + $0x60] sm:$0xfe]  ;;  %v5473_v50 = vld [vmem:[%s6046_s7 + $0x70] sm:$0x1] }
 0x207   : > { %3662 = vmatprep.subr.mxu1 %v3585_v1  ;;  %3079 = vmatmul.mubr.f32.gmra.mxu0 %v6685_v6  ;;  %v3275_v13 = vrot.slane %v5471_v47, 1  ;;  %v3276_v24 = vrot.slane %v5473_v50, 1  ;;  %v4172_v50 = vld [vmem:[#allocation2 + $0x1ac0] sm:$0xff] }
 0x208   : > { %3192 = vmatmul.mubr.f32.gmra.mxu1 %v2806_v19  ;;  %3453 = vmatpush2.msra.mxu0 %v3374_v49  ;;  %v3271_v19 = vsel %vm302_vm0, %v3269_v55, %v3270_v7  ;;  %v3279_v49 = vrot.slane %v5474_v44, 1  ;;  %v3980_v44 = vld [vmem:[#allocation2 + $0x18c8] sm:$0xff] }
 0x209   : > { %3663 = vmatpush2.msra.mxu1 %v3584_v56  ;;  %3454 = vmatprep.subr.mxu0 %v3373_v12  ;;  %v6702_v30 = vpop.f32.mrf.mxu0 }
 0x20a   : > { %3664 = vmatprep.subr.mxu1 %v3583_v59  ;;  %v6704_v53 = vpop.f32.mrf.mxu1  ;;  %3455 = vmatpush2.msra.mxu0 %v3372_v54  ;;  %v3986_v59 = vld [vmem:[#allocation2 + $0x18f8] sm:$0xff]  ;;  %v4178_v54 = vld [vmem:[#allocation2 + $0x1af0] sm:$0xff] }
 0x20b   : > { %3665 = vmatpush2.msra.mxu1 %v3582_v40  ;;  %3084 = vmatprep.mubr.f32.mxu0 %v6691_v41  ;;  %v6711_v57 = vpop.f32.mrf.mxu0  ;;  %v3985_v40 = vld [vmem:[#allocation2 + $0x18f0] sm:$0xff] }
 0x20c   : > { %3197 = vmatprep.mubr.f32.mxu1 %v2815_v33  ;;  %v6713_v36 = vpop.f32.mrf.mxu1  ;;  %3456 = vmatprep.subr.mxu0 %v3371_v15  ;;  %v4177_v33 = vld [vmem:[#allocation2 + $0x1ae8] sm:$0xff] }
 0x20d   : > { %3666 = vmatprep.subr.mxu1 %v3581_v63  ;;  %3085 = vmatmul.mubr.f32.gmra.mxu0 %v6707_v28  ;;  %v3984_v15 = vld [vmem:[#allocation2 + $0x18e8] sm:$0xff]  ;;  %v3280_v63 = vsel %vm302_vm0, %v3278_v2, %v3279_v49  ;;  %v3979_v49 = vld [vmem:[#allocation2 + $0x18c0] sm:$0xff] }
 0x20e   : > { %3198 = vmatmul.mubr.f32.gmra.mxu1 %v2812_v31  ;;  %3457 = vmatpush2.msra.mxu0 %v3370_v51  ;;  %v5477_v31 = vld [vmem:[%s6046_s7 + $0x90] sm:$0x1] }
 0x20f   : > { %3667 = vmatpush2.msra.mxu1 %v3580_v17  ;;  %3458 = vmatprep.subr.mxu0 %v3369_v37  ;;  %v6721_v1 = vpop.f32.mrf.mxu0  ;;  %v3982_v37 = vld [vmem:[#allocation2 + $0x18d8] sm:$0xff] }
 0x210   : > { %3668 = vmatprep.subr.mxu1 %v3579_v60  ;;  %v6723_v20 = vpop.f32.mrf.mxu1  ;;  %3459 = vmatpush2.msra.mxu0 %v3368_v62  ;;  %v3284_v60 = vrot.slane %v5476_v42, 1  ;;  %v4174_v62 = vld [vmem:[#allocation2 + $0x1ad0] sm:$0xff] }
 0x211   : > { %3669 = vmatpush2.msra.mxu1 %v3578_v8  ;;  %3460 = vmatprep.subr.mxu0 %v3367_v48  ;;  %v6726_v56 = vpop.f32.mrf.mxu0  ;;  %v3281_v8 = vrot.slane %v5475_v21, 1  ;;  %v3282_v48 = vrot.slane %v5477_v31, 1  ;;  %v5484_v21 = vld [vmem:[%s6046_s7 + $0xc8] sm:$0xfe]  ;;  %v5486_v31 = vld [vmem:[%s6046_s7 + $0xd8] sm:$0x1] }
 0x212   : > { %3670 = vmatprep.subr.mxu1 %v3577_v18  ;;  %v6728_v12 = vpop.f32.mrf.mxu1  ;;  %3461 = vmatpush2.msra.mxu0 %v3366_v61  ;;  %v3981_v18 = vld [vmem:[#allocation2 + $0x18d0] sm:$0xff]  ;;  %v5480_v61 = vld [vmem:[%s6046_s7 + $0xa8] sm:$0xfe] }
 0x213   : > { %3462 = vmatprep.mubr.f32.mxu0 %v3274_v10  ;;  %3671 = vmatpush2.msra.mxu1 %v3576_v38  ;;  %v5482_v10 = vld [vmem:[%s6046_s7 + $0xb8] sm:$0x1]  ;;  %v5479_v38 = vld [vmem:[%s6046_s7 + $0xa0] sm:$0xfe] }
 0x214   : > { %3463 = vmatmul.mubr.f32.vlgmr.msra.gmra.mxu0 %v3271_v19  ;;  %3672 = vmatprep.mubr.f32.mxu1 %v6605_v25  ;;  %v3277_v25 = vsel %vm302_vm0, %v3275_v13, %v3276_v24  ;;  %v5481_v19 = vld [vmem:[%s6046_s7 + $0xb0] sm:$0x1]  ;;  %v4171_v13 = vld [vmem:[#allocation2 + $0x1ab8] sm:$0xff]  ;;  %v3290_v24 = vrot.slane %v5480_v61, 1  ;;  %v3287_v42 = vrot.slane %v5479_v38, 1  ;;  %v4165_v38 = vld [vmem:[#allocation2 + $0x1a88] sm:$0xff] }
 0x215   : > { %4212 = vmatprep.subr.mxu0 %v4179_v34  ;;  %4325 = vmatprep.subr.mxu1 %v3986_v59  ;;  %v6737_v51 = vpop.f32.mrf.mxu0  ;;  %v3283_v59 = vsel %vm302_vm0, %v3281_v8, %v3282_v48  ;;  %v4167_v48 = vld [vmem:[#allocation2 + $0x1a98] sm:$0xff] }
 0x216   : > { %3673 = vmatmul.mubr.f32.vlgmr.msra.gmra.mxu1 %v6611_v39  ;;  %v6739_v17 = vpop.f32.mrf.mxu1  ;;  %4213 = vmatpush1.msra.mxu0 %v4178_v54  ;;  %v3285_v39 = vrot.slane %v5478_v4, 1  ;;  %v3291_v54 = vrot.slane %v5482_v10, 1  ;;  %v3288_v4 = vrot.slane %v5481_v19, 1  ;;  %v4166_v10 = vld [vmem:[#allocation2 + $0x1a90] sm:$0xff]  ;;  %v3972_v19 = vld [vmem:[#allocation2 + $0x1888] sm:$0xff] }
 0x217   : > { %4326 = vmatpush1.msra.mxu1 %v3985_v40  ;;  %4214 = vmatprep.subr.mxu0 %v4177_v33  ;;  %v6742_v55 = vpop.f32.mrf.mxu0 }
 0x218   : > { %4327 = vmatprep.subr.mxu1 %v3984_v15  ;;  %v6744_v7 = vpop.f32.mrf.mxu1  ;;  %3468 = vmatprep.mubr.f32.mxu0 %v3280_v63  ;;  %v3286_v47 = vsel %vm302_vm0, %v3284_v60, %v3285_v39  ;;  %v4170_v15 = vld [vmem:[#allocation2 + $0x1ab0] sm:$0xff]  ;;  %v4169_v63 = vld [vmem:[#allocation2 + $0x1aa8] sm:$0xff]  ;;  %v3289_v8 = vsel %vm302_vm0, %v3287_v42, %v3288_v4  ;;  %v3971_v4 = vld [vmem:[#allocation2 + $0x1880] sm:$0xff] }
 0x219   : > { %4215 = vmatpush1.msra.mxu0 %v4176_v45  ;;  %4328 = vmatpush1.msra.mxu1 %v3983_v52  ;;  %v3976_v45 = vld [vmem:[#allocation2 + $0x18a8] sm:$0xff]  ;;  %v3292_v52 = vsel %vm302_vm0, %v3290_v24, %v3291_v54  ;;  %v5487_v24 = vld [vmem:[%s6046_s7 + $0xe0] sm:$0xfe]  ;;  %v5489_v54 = vld [vmem:[%s6046_s7 + $0xf0] sm:$0x1] }
 0x21a   : > { %3469 = vmatmul.mubr.f32.gmra.mxu0 %v3277_v25  ;;  %4216 = vmatprep.subr.mxu0 %v4175_v27  ;;  %v4168_v25 = vld [vmem:[#allocation2 + $0x1aa0] sm:$0xff] }
 0x21b   : > { %4329 = vmatprep.subr.mxu1 %v3982_v37  ;;  %3678 = vmatprep.mubr.f32.mxu1 %v6619_v22  ;;  %v6752_v34 = vpop.f32.mrf.mxu0  ;;  %v3978_v22 = vld [vmem:[#allocation2 + $0x18b8] sm:$0xff]  ;;  %v5483_v27 = vld [vmem:[%s6046_s7 + $0xc0] sm:$0xfe]  ;;  %v5485_v37 = vld [vmem:[%s6046_s7 + $0xd0] sm:$0x1] }
 0x21c   : > { %4217 = vmatpush1.msra.mxu0 %v4174_v62  ;;  %v6754_v2 = vpop.f32.mrf.mxu1  ;;  %4330 = vmatpush1.msra.mxu1 %v3981_v18  ;;  %v3975_v62 = vld [vmem:[#allocation2 + $0x18a0] sm:$0xff]  ;;  %v3296_v18 = vrot.slane %v5484_v21, 1 }
 0x21d   : > { %4218 = vmatprep.subr.mxu0 %v4173_v43  ;;  %3679 = vmatmul.mubr.f32.gmra.mxu1 %v6625_v29  ;;  %v6758_v40 = vpop.f32.mrf.mxu0  ;;  %v3977_v29 = vld [vmem:[#allocation2 + $0x18b0] sm:$0xff]  ;;  %v3297_v43 = vrot.slane %v5486_v31, 1 }
 0x21e   : > { %4331 = vmatprep.subr.mxu1 %v3980_v44  ;;  %v6760_v33 = vpop.f32.mrf.mxu1  ;;  %3474 = vmatprep.mubr.f32.mxu0 %v3286_v47  ;;  %v3293_v47 = vrot.slane %v5483_v27, 1  ;;  %v3299_v27 = vrot.slane %v5487_v24, 1 }
 0x21f   : > { %4219 = vmatpush1.msra.mxu0 %v4172_v50  ;;  %4332 = vmatpush1.msra.mxu1 %v3979_v49  ;;  %v3294_v50 = vrot.slane %v5485_v37, 1  ;;  %v5488_v49 = vld [vmem:[%s6046_s7 + $0xe8] sm:$0xfe]  ;;  %v3300_v37 = vrot.slane %v5489_v54, 1 }
 0x220   : > { %3475 = vmatmul.mubr.f32.gmra.mxu0 %v3283_v59  ;;  %4220 = vmatprep.subr.mxu0 %v4171_v13  ;;  %v5490_v59 = vld [vmem:[%s6046_s7 + $0xf8] sm:$0x1]  ;;  %v3298_v13 = vsel %vm302_vm0, %v3296_v18, %v3297_v43  ;;  %v5491_v18 = vld [vmem:[%s6046_s7 + $0x100] sm:$0xfe]  ;;  %v5493_v43 = vld [vmem:[%s6046_s7 + $0x110] sm:$0x1] }
 0x221   : > { %4333 = vmatprep.subr.mxu1 %v3978_v22  ;;  %3684 = vmatprep.mubr.f32.mxu1 %v6633_v3  ;;  %v6768_v60 = vpop.f32.mrf.mxu0  ;;  %v3974_v3 = vld [vmem:[#allocation2 + $0x1898] sm:$0xff]  ;;  %v4164_v22 = vld [vmem:[#allocation2 + $0x1a80] sm:$0xff]  ;;  %v3303_v21 = vrot.slane %v5490_v59, 1  ;;  %v4158_v59 = vld [vmem:[#allocation2 + $0x1a50] sm:$0xff]  ;;  %v3306_v24 = vrot.slane %v5493_v43, 1  ;;  %v1927_v43 = vadd.f32 %v6695_v32, %v6693_v11 }
 0x222   : > { %4221 = vmatpush1.msra.mxu0 %v4170_v15  ;;  %v6770_v39 = vpop.f32.mrf.mxu1  ;;  %4334 = vmatpush1.msra.mxu1 %v3977_v29  ;;  %v3295_v29 = vsel %vm302_vm0, %v3293_v47, %v3294_v50  ;;  %v4160_v47 = vld [vmem:[#allocation2 + $0x1a60] sm:$0xff]  ;;  %v4154_v32 = vld [vmem:[#allocation2 + $0x1a30] sm:$0xff] }
 0x223   : > { %4222 = vmatprep.subr.mxu0 %v4169_v63  ;;  %3685 = vmatmul.mubr.f32.gmra.mxu1 %v6639_v0  ;;  %v6774_v44 = vpop.f32.mrf.mxu0  ;;  %v3973_v0 = vld [vmem:[#allocation2 + $0x1890] sm:$0xff]  ;;  %v3970_v63 = vld [vmem:[#allocation2 + $0x1878] sm:$0xff] }
 0x224   : > { %4335 = vmatprep.subr.mxu1 %v3976_v45  ;;  %v6776_v61 = vpop.f32.mrf.mxu1  ;;  %3480 = vmatprep.mubr.f32.mxu0 %v3292_v52  ;;  %v3302_v45 = vrot.slane %v5488_v49, 1  ;;  %v4162_v52 = vld [vmem:[#allocation2 + $0x1a70] sm:$0xff]  ;;  %v3966_v49 = vld [vmem:[#allocation2 + $0x1858] sm:$0xff] }
 0x225   : > { %4223 = vmatpush1.msra.mxu0 %v4168_v25  ;;  %4336 = vmatpush1.msra.mxu1 %v3975_v62  ;;  %v3969_v25 = vld [vmem:[#allocation2 + $0x1870] sm:$0xff]  ;;  %v3968_v62 = vld [vmem:[#allocation2 + $0x1868] sm:$0xff] }
 0x226   : > { %3481 = vmatmul.mubr.f32.gmra.mxu0 %v3289_v8  ;;  %4224 = vmatprep.subr.mxu0 %v4167_v48  ;;  %v5492_v8 = vld [vmem:[%s6046_s7 + $0x108] sm:$0xfe] }
 0x227   : > { %4337 = vmatprep.subr.mxu1 %v3974_v3  ;;  %3690 = vmatprep.mubr.f32.mxu1 %v6647_v16  ;;  %v6784_v15 = vpop.f32.mrf.mxu0  ;;  %v4163_v16 = vld [vmem:[#allocation2 + $0x1a78] sm:$0xff] }
 0x228   : > { %4225 = vmatpush1.msra.mxu0 %v4166_v10  ;;  %v6786_v42 = vpop.f32.mrf.mxu1  ;;  %4338 = vmatpush1.msra.mxu1 %v3973_v0  ;;  %v5494_v3 = vld [vmem:[%s6046_s7 + $0x118] sm:$0x1]  ;;  %v3304_v10 = vsel %vm302_vm0, %v3302_v45, %v3303_v21  ;;  %v3967_v0 = vld [vmem:[#allocation2 + $0x1860] sm:$0xff] }
 0x229   : > { %4226 = vmatprep.subr.mxu0 %v4165_v38  ;;  %3691 = vmatmul.mubr.f32.gmra.mxu1 %v6653_v9  ;;  %v6790_v31 = vpop.f32.mrf.mxu0  ;;  %v4161_v9 = vld [vmem:[#allocation2 + $0x1a68] sm:$0xff]  ;;  %v3301_v38 = vsel %vm302_vm0, %v3299_v27, %v3300_v37  ;;  %v5498_v45 = vld [vmem:[%s6046_s7 + $0x138] sm:$0x1]  ;;  %v2615_v21 = vld [vmem:[#allocation5] sm:$0x3] }
 0x22a   : > { %4339 = vmatprep.subr.mxu1 %v3972_v19  ;;  %3486 = vmatprep.mubr.f32.mxu0 %v3298_v13  ;;  %v6793_v48 = vpop.f32.mrf.mxu1  ;;  %v4159_v19 = vld [vmem:[#allocation2 + $0x1a58] sm:$0xff]  ;;  %v3309_v13 = vrot.slane %v5494_v3, 1  ;;  %v5497_v27 = vld [vmem:[%s6046_s7 + $0x130] sm:$0x1]  ;;  %v2643_v37 = vld [vmem:[#allocation7] sm:$0x3] }
 0x22b   : > { %4227 = vmatpush1.msra.mxu0 %v4164_v22  ;;  %4340 = vmatpush1.msra.mxu1 %v3971_v4  ;;  %v3305_v22 = vrot.slane %v5491_v18, 1 }
 0x22c   : > { %3487 = vmatmul.mubr.f32.gmra.mxu0 %v3295_v29  ;;  %4228 = vmatprep.subr.mxu0 %v4163_v16  ;;  %v3965_v29 = vld [vmem:[#allocation2 + $0x1850] sm:$0xff]  ;;  %v4157_v16 = vld [vmem:[#allocation2 + $0x1a48] sm:$0xff] }
 0x22d   : > { %4341 = vmatprep.subr.mxu1 %v3970_v63  ;;  %3696 = vmatprep.mubr.f32.mxu1 %v6661_v46  ;;  %v6800_v50 = vpop.f32.mrf.mxu0  ;;  %v3308_v46 = vrot.slane %v5492_v8, 1  ;;  %v5496_v63 = vld [vmem:[%s6046_s7 + $0x128] sm:$0xfe]  ;;  %v3307_v8 = vsel %vm302_vm0, %v3305_v22, %v3306_v24  ;;  %v6829_v24 = vrot.slane %v2615_v21, %v6469_v35 }
 0x22e   : > { %4229 = vmatpush1.msra.mxu0 %v4162_v52  ;;  %4342 = vmatpush1.msra.mxu1 %v3969_v25  ;;  %v6804_v54 = vpop.f32.mrf.mxu1  ;;  %v1925_v52 = vadd.f32 %v6682_v14, %v6680_v26  ;;  %v5495_v25 = vld [vmem:[%s6046_s7 + $0x120] sm:$0xfe]  ;;  %v3314_v14 = vrot.slane %v5496_v63, 1  ;;  %v3960_v63 = vld [vmem:[#allocation2 + $0x1828] sm:$0xff] }
 0x22f   : > { %4230 = vmatprep.subr.mxu0 %v4161_v9  ;;  %3697 = vmatmul.mubr.f32.gmra.mxu1 %v6667_v58  ;;  %v6806_v4 = vpop.f32.mrf.mxu0  ;;  %v3964_v58 = vld [vmem:[#allocation2 + $0x1848] sm:$0xff]  ;;  %v3310_v9 = vsel %vm302_vm0, %v3308_v46, %v3309_v13  ;;  %v3963_v26 = vld [vmem:[#allocation2 + $0x1840] sm:$0xff]  ;;  %v6826_v46 = vrot.slane %v2643_v37, %v6464_v23 }
 0x230   : > { %4343 = vmatprep.subr.mxu1 %v3968_v62  ;;  %3492 = vmatprep.mubr.f32.mxu0 %v3304_v10  ;;  %v4156_v62 = vld [vmem:[#allocation2 + $0x1a40] sm:$0xff]  ;;  %v6817_v3 = vpop.f32.mrf.mxu1 }
 0x231   : > { %4231 = vmatpush1.msra.mxu0 %v4160_v47  ;;  %4344 = vmatpush1.msra.mxu1 %v3967_v0  ;;  %v6822_v47 = vrot.slane %v2615_v21, %v6464_v23  ;;  %v3962_v0 = vld [vmem:[#allocation2 + $0x1838] sm:$0xff] }
 0x232   : > { %3493 = vmatmul.mubr.f32.gmra.mxu0 %v3301_v38  ;;  %4232 = vmatprep.subr.mxu0 %v4159_v19  ;;  %v3315_v38 = vrot.slane %v5498_v45, 1  ;;  %v3311_v19 = vrot.slane %v5495_v25, 1  ;;  %v1931_v45 = vadd.f32 %v6704_v53, %v6702_v30 }
 0x233   : > { %4345 = vmatprep.subr.mxu1 %v3966_v49  ;;  %3702 = vmatprep.mubr.f32.mxu1 %v6675_v5  ;;  %v4155_v5 = vld [vmem:[#allocation2 + $0x1a38] sm:$0xff]  ;;  %v3312_v49 = vrot.slane %v5497_v27, 1  ;;  %v4152_v27 = vld [vmem:[#allocation2 + $0x1a20] sm:$0xff] }
 0x234   : > { %4233 = vmatpush1.msra.mxu0 %v4158_v59  ;;  %v2230_v18 = vpop.f32.mrf.mxu0  ;;  %4346 = vmatpush1.msra.mxu1 %v3965_v29  ;;  %v4153_v29 = vld [vmem:[#allocation2 + $0x1a28] sm:$0xff]  ;;  %v3316_v21 = vsel %vm302_vm0, %v3314_v14, %v3315_v38 }
 0x235   : > { %4234 = vmatprep.subr.mxu0 %v4157_v16  ;;  %v2277_v10 = vadd.f32 %v2230_v18, %v1925_v52  ;;  %3703 = vmatmul.mubr.f32.gmra.mxu1 %v6685_v6  ;;  %v3961_v6 = vld [vmem:[#allocation2 + $0x1830] sm:$0xff]  ;;  %v4149_v38 = vld [vmem:[#allocation2 + $0x1a08] sm:$0xff] }
 0x236   : > { %4347 = vmatprep.subr.mxu1 %v3964_v58  ;;  %v2552_v59 = vpop.f32.mrf.mxu1  ;;  %v2232_v11 = vpop.f32.mrf.mxu0  ;;  %3498 = vmatprep.mubr.f32.mxu0 %v3310_v9  ;;  %v6832_v58 = vrot.slane %v2643_v37, %v6469_v35  ;;  %v3313_v9 = vsel %vm302_vm0, %v3311_v19, %v3312_v49  ;;  %v1933_v37 = vadd.f32 %v6713_v36, %v6711_v57  ;;  %v5514_v57 = vld [vmem:[%s6046_s7 + $0x128] sm:$0xff]  ;;  %v4150_v36 = vld [vmem:[#allocation2 + $0x1a10] sm:$0xff] }
 0x237   : > { %4235 = vmatpush1.msra.mxu0 %v4156_v62  ;;  %v2599_v13 = vadd.f32 %v2552_v59, %v2277_v10  ;;  %v2278_v22 = vadd.f32 %v2232_v11, %v1927_v43  ;;  %4348 = vmatpush1.msra.mxu1 %v3963_v26  ;;  %v3958_v43 = vld [vmem:[#allocation2 + $0x1818] sm:$0xff]  ;;  %v3956_v49 = vld [vmem:[#allocation2 + $0x1808] sm:$0xff]  ;;  %v1937_v59 = vadd.f32 %v6723_v20, %v6721_v1 }
 0x238   : > { %3499 = vmatmul.mubr.f32.gmra.mxu0 %v3307_v8  ;;  %v2554_v16 = vpop.f32.mrf.mxu1  ;;  %4236 = vmatprep.subr.mxu0 %v4155_v5  ;;  %v3959_v8 = vld [vmem:[#allocation2 + $0x1820] sm:$0xff] }
 0x239   : > { %4349 = vmatprep.subr.mxu1 %v3962_v0  ;;  %v2627_v52 = vmul.f32 %v6822_v47, %v2599_v13  ;;  %v2600_v25 = vadd.f32 %v2554_v16, %v2278_v22  ;;  %3708 = vmatprep.mubr.f32.mxu1 %v6691_v41  ;;  %v4151_v41 = vld [vmem:[#allocation2 + $0x1a18] sm:$0xff]  ;;  %v3957_v0 = vld [vmem:[#allocation2 + $0x1810] sm:$0xff]  ;;  %v4148_v13 = vld [vmem:[#allocation2 + $0x1a00] sm:$0xff] }
 0x23a   : > { %4237 = vmatpush1.msra.mxu0 %v4154_v32  ;;  %v2236_v62 = vpop.f32.mrf.mxu0  ;;  %4350 = vmatpush1.msra.mxu1 %v3961_v6  ;;  %v3955_v22 = vld [vmem:[#allocation2 + $0x1800] sm:$0xff]  ;;  %v1939_v6 = vadd.f32 %v6728_v12, %v6726_v56  ;;  %v4016_v56 = vld [vmem:[#allocation2 + $0x19e8] sm:$0xff] }
 0x23b   : > { %4238 = vmatprep.subr.mxu0 %v4153_v29  ;;  %v2655_v30 = vadd.f32 %v6826_v46, %v2627_v52  ;;  %v2628_v53 = vmul.f32 %v6829_v24, %v2600_v25  ;;  %v2279_v18 = vadd.f32 %v2236_v62, %v1931_v45  ;;  %3709 = vmatmul.mubr.f32.gmra.mxu1 %v6707_v28  ;;  %v5513_v28 = vld [vmem:[%s6046_s7 + $0x120] sm:$0xff]  ;;  %v4018_v45 = vld [vmem:[#allocation2 + $0x19f8] sm:$0xff]  ;;  %v4210_v25 = vld [vmem:[#allocation2 + $0x1bf0] sm:$0xff] }
 0x23c   : > { %4351 = vmatprep.subr.mxu1 %v3960_v63  ;;  %v2238_v26 = vpop.f32.mrf.mxu0  ;;  %3504 = vmatprep.mubr.f32.mxu0 %v3316_v21  ;;  %v4211_v63 = vld [vmem:[#allocation2 + $0x1bf8] sm:$0xff]  ;;  %v4017_v21 = vld [vmem:[#allocation2 + $0x19f0] sm:$0xff] }
 0x23d   : > { %4239 = vmatpush1.msra.mxu0 %v4152_v27  ;;  %v2671_v14 = vmax.f32 %v2655_v30, 0.0  ;;  %v2656_v10 = vadd.f32 %v6832_v58, %v2628_v53  ;;  %v2280_v5 = vadd.f32 %v2238_v26, %v1933_v37  ;;  %4352 = vmatpush1.msra.mxu1 %v3959_v8  ;;  %v2558_v19 = vpop.f32.mrf.mxu1  ;;  %v4208_v8 = vld [vmem:[#allocation2 + $0x1be0] sm:$0xff] }
 0x23e   : > { %3505 = vmatmul.mubr.f32.gmra.mxu0 %v3313_v9  ;;  %4240 = vmatprep.subr.mxu0 %v4151_v41  ;;  %v2601_v32 = vadd.f32 %v2558_v19, %v2279_v18  ;;  %v4209_v9 = vld [vmem:[#allocation2 + $0x1be8] sm:$0xff]  ;;  %v4015_v30 = vld [vmem:[#allocation2 + $0x19e0] sm:$0xff]  ;;  %v4207_v18 = vld [vmem:[#allocation2 + $0x1bd8] sm:$0xff] }
 0x23f   : > { %4353 = vmatprep.subr.mxu1 %v3958_v43  ;;  %5403 = vst [vmem:[%s6522_s10 + $0x80] sm:$0xff] %v2671_v14  ;;  %v2672_v11 = vmax.f32 %v2656_v10, 0.0  ;;  %3714 = vmatprep.mubr.f32.mxu1 %v5514_v57  ;;  %v2560_v16 = vpop.f32.mrf.mxu1  ;;  %v4014_v41 = vld [vmem:[#allocation2 + $0x19d8] sm:$0xff]  ;;  %v1943_v43 = vadd.f32 %v6739_v17, %v6737_v51  ;;  %v4206_v14 = vld [vmem:[#allocation2 + $0x1bd0] sm:$0xff]  ;;  %v4205_v19 = vld [vmem:[#allocation2 + $0x1bc8] sm:$0xff] }
 0x240   : > { %4241 = vmatpush1.msra.mxu0 %v4150_v36  ;;  %v2242_v29 = vpop.f32.mrf.mxu0  ;;  %4354 = vmatpush1.msra.mxu1 %v3957_v0  ;;  %v2629_v52 = vmul.f32 %v6822_v47, %v2601_v32  ;;  %v2602_v20 = vadd.f32 %v2560_v16, %v2280_v5  ;;  %v4013_v10 = vld [vmem:[#allocation2 + $0x19d0] sm:$0xff]  ;;  %v1945_v5 = vadd.f32 %v6744_v7, %v6742_v55  ;;  %v4011_v32 = vld [vmem:[#allocation2 + $0x19c0] sm:$0xff]  ;;  %v4203_v55 = vld [vmem:[#allocation2 + $0x1bb8] sm:$0xff] }
 0x241   : > { %4242 = vmatprep.subr.mxu0 %v4149_v38  ;;  %5404 = vst [vmem:[%s6522_s10 + $0x88] sm:$0xff] %v2672_v11  ;;  %v2281_v1 = vadd.f32 %v2242_v29, %v1937_v59  ;;  %3715 = vmatmul.mubr.f32.gmra.mxu1 %v5513_v28  ;;  %v4012_v28 = vld [vmem:[#allocation2 + $0x19c8] sm:$0xff]  ;;  %v4204_v11 = vld [vmem:[#allocation2 + $0x1bc0] sm:$0xff]  ;;  %v4010_v7 = vld [vmem:[#allocation2 + $0x19b8] sm:$0xff] }
 0x242   : > { %4355 = vmatprep.subr.mxu1 %v3956_v49  ;;  %v2244_v27 = vpop.f32.mrf.mxu0  ;;  %4243 = vmatpush1.msra.mxu0 %v4148_v13  ;;  %v2657_v12 = vadd.f32 %v6826_v46, %v2629_v52  ;;  %v2630_v37 = vmul.f32 %v6829_v24, %v2602_v20  ;;  %v4202_v16 = vld [vmem:[#allocation2 + $0x1bb0] sm:$0xff]  ;;  %v4201_v52 = vld [vmem:[#allocation2 + $0x1ba8] sm:$0xff]  ;;  %v1949_v20 = vadd.f32 %v6754_v2, %v6752_v34 }
 0x243   : > { %4356 = vmatpush1.msra.mxu1 %v3955_v22  ;;  %v2282_v62 = vadd.f32 %v2244_v27, %v1939_v6  ;;  %4244 = vmatprep.subr.mxu0 %v4211_v63  ;;  %v2564_v53 = vpop.f32.mrf.mxu1  ;;  %v4009_v63 = vld [vmem:[#allocation2 + $0x19b0] sm:$0xff] }
 0x244   : > { %4357 = vmatprep.subr.mxu1 %v4018_v45  ;;  %4245 = vmatpush2.msra.mxu0 %v4210_v25  ;;  %v2673_v26 = vmax.f32 %v2657_v12, 0.0  ;;  %v2658_v57 = vadd.f32 %v6832_v58, %v2630_v37  ;;  %v2603_v36 = vadd.f32 %v2564_v53, %v2281_v1  ;;  %v4008_v1 = vld [vmem:[#allocation2 + $0x19a8] sm:$0xff]  ;;  %v1951_v12 = vadd.f32 %v6760_v33, %v6758_v40 }
 0x245   : > { %4358 = vmatpush2.msra.mxu1 %v4017_v21  ;;  %4246 = vmatprep.subr.mxu0 %v4209_v9  ;;  %v2566_v38 = vpop.f32.mrf.mxu1  ;;  %v4200_v9 = vld [vmem:[#allocation2 + $0x1ba0] sm:$0xff]  ;;  %v4197_v40 = vld [vmem:[#allocation2 + $0x1b88] sm:$0xff] }
 0x246   : > { %4359 = vmatprep.subr.mxu1 %v4016_v56  ;;  %v2248_v0 = vpop.f32.mrf.mxu0  ;;  %4247 = vmatpush2.msra.mxu0 %v4208_v8  ;;  %5405 = vst [vmem:[%s6522_s10 + $0x90] sm:$0xff] %v2673_v26  ;;  %v2674_v51 = vmax.f32 %v2658_v57, 0.0  ;;  %v2631_v17 = vmul.f32 %v6822_v47, %v2603_v36  ;;  %v2604_v59 = vadd.f32 %v2566_v38, %v2282_v62  ;;  %v4007_v56 = vld [vmem:[#allocation2 + $0x19a0] sm:$0xff]  ;;  %v4199_v8 = vld [vmem:[#allocation2 + $0x1b98] sm:$0xff]  ;;  %v4004_v33 = vld [vmem:[#allocation2 + $0x1988] sm:$0xff] }
 0x247   : > { %4360 = vmatpush2.msra.mxu1 %v4015_v30  ;;  %v2283_v49 = vadd.f32 %v2248_v0, %v1943_v43  ;;  %4248 = vmatprep.subr.mxu0 %v4207_v18  ;;  %v4006_v30 = vld [vmem:[#allocation2 + $0x1998] sm:$0xff]  ;;  %v4005_v43 = vld [vmem:[#allocation2 + $0x1990] sm:$0xff] }
 0x248   : > { %4361 = vmatprep.subr.mxu1 %v4014_v41  ;;  %v2250_v13 = vpop.f32.mrf.mxu0  ;;  %4249 = vmatpush2.msra.mxu0 %v4206_v14  ;;  %5406 = vst [vmem:[%s6522_s10 + $0x98] sm:$0xff] %v2674_v51  ;;  %v2659_v22 = vadd.f32 %v6826_v46, %v2631_v17  ;;  %v2632_v6 = vmul.f32 %v6829_v24, %v2604_v59  ;;  %v4198_v41 = vld [vmem:[#allocation2 + $0x1b90] sm:$0xff]  ;;  %v4195_v38 = vld [vmem:[#allocation2 + $0x1b78] sm:$0xff] }
 0x249   : > { %4362 = vmatpush2.msra.mxu1 %v4013_v10  ;;  %v2284_v29 = vadd.f32 %v2250_v13, %v1945_v5  ;;  %4250 = vmatprep.subr.mxu0 %v4205_v19  ;;  %v2570_v45 = vpop.f32.mrf.mxu1  ;;  %v4196_v10 = vld [vmem:[#allocation2 + $0x1b80] sm:$0xff]  ;;  %v4002_v19 = vld [vmem:[#allocation2 + $0x1978] sm:$0xff]  ;;  %v4194_v59 = vld [vmem:[#allocation2 + $0x1b70] sm:$0xff] }
 0x24a   : > { %4363 = vmatprep.subr.mxu1 %v4012_v28  ;;  %4251 = vmatpush2.msra.mxu0 %v4204_v11  ;;  %v2675_v25 = vmax.f32 %v2659_v22, 0.0  ;;  %v2660_v21 = vadd.f32 %v6832_v58, %v2632_v6  ;;  %v2605_v27 = vadd.f32 %v2570_v45, %v2283_v49  ;;  %v4003_v5 = vld [vmem:[#allocation2 + $0x1980] sm:$0xff]  ;;  %v1955_v28 = vadd.f32 %v6770_v39, %v6768_v60  ;;  %v4001_v11 = vld [vmem:[#allocation2 + $0x1970] sm:$0xff]  ;;  %v4000_v22 = vld [vmem:[#allocation2 + $0x1968] sm:$0xff] }
 0x24b   : > { %4364 = vmatpush2.msra.mxu1 %v4011_v32  ;;  %4252 = vmatprep.subr.mxu0 %v4203_v55  ;;  %v2572_v62 = vpop.f32.mrf.mxu1  ;;  %v1957_v32 = vadd.f32 %v6776_v61, %v6774_v44  ;;  %v4191_v45 = vld [vmem:[#allocation2 + $0x1b58] sm:$0xff]  ;;  %v4190_v61 = vld [vmem:[#allocation2 + $0x1b50] sm:$0xff] }
 0x24c   : > { %4365 = vmatprep.subr.mxu1 %v4010_v7  ;;  %v2254_v37 = vpop.f32.mrf.mxu0  ;;  %4253 = vmatpush2.msra.mxu0 %v4202_v16  ;;  %5407 = vst [vmem:[%s6522_s10 + $0xa0] sm:$0xff] %v2675_v25  ;;  %v2676_v34 = vmax.f32 %v2660_v21, 0.0  ;;  %v2633_v2 = vmul.f32 %v6822_v47, %v2605_v27  ;;  %v2606_v18 = vadd.f32 %v2572_v62, %v2284_v29  ;;  %v4193_v7 = vld [vmem:[#allocation2 + $0x1b68] sm:$0xff]  ;;  %v4192_v16 = vld [vmem:[#allocation2 + $0x1b60] sm:$0xff]  ;;  %v3998_v44 = vld [vmem:[#allocation2 + $0x1958] sm:$0xff] }
 0x24d   : > { %4366 = vmatpush2.msra.mxu1 %v4009_v63  ;;  %v2285_v53 = vadd.f32 %v2254_v37, %v1949_v20  ;;  %4254 = vmatprep.subr.mxu0 %v4201_v52  ;;  %v3999_v63 = vld [vmem:[#allocation2 + $0x1960] sm:$0xff]  ;;  %v4189_v27 = vld [vmem:[#allocation2 + $0x1b48] sm:$0xff]  ;;  %v1961_v37 = vadd.f32 %v6786_v42, %v6784_v15 }
 0x24e   : > { %4367 = vmatprep.subr.mxu1 %v4008_v1  ;;  %v2256_v26 = vpop.f32.mrf.mxu0  ;;  %4255 = vmatpush2.msra.mxu0 %v4200_v9  ;;  %5408 = vst [vmem:[%s6522_s10 + $0xa8] sm:$0xff] %v2676_v34  ;;  %v2661_v57 = vadd.f32 %v6826_v46, %v2633_v2  ;;  %v2634_v36 = vmul.f32 %v6829_v24, %v2606_v18  ;;  %v3997_v1 = vld [vmem:[#allocation2 + $0x1950] sm:$0xff]  ;;  %v3996_v9 = vld [vmem:[#allocation2 + $0x1948] sm:$0xff]  ;;  %v3995_v62 = vld [vmem:[#allocation2 + $0x1940] sm:$0xff] }
 0x24f   : > { %4368 = vmatpush2.msra.mxu1 %v4007_v56  ;;  %v2286_v14 = vadd.f32 %v2256_v26, %v1951_v12  ;;  %4256 = vmatprep.subr.mxu0 %v4199_v8  ;;  %v2576_v0 = vpop.f32.mrf.mxu1  ;;  %v4188_v56 = vld [vmem:[#allocation2 + $0x1b40] sm:$0xff]  ;;  %v4187_v8 = vld [vmem:[#allocation2 + $0x1b38] sm:$0xff]  ;;  %v6899_v15 = vld [vmem:[%s6046_s7 + $0x28] sm:$0xfe] }
 0x250   : > { %4369 = vmatprep.subr.mxu1 %v4006_v30  ;;  %4257 = vmatpush2.msra.mxu0 %v4198_v41  ;;  %v2677_v51 = vmax.f32 %v2661_v57, 0.0  ;;  %v2662_v17 = vadd.f32 %v6832_v58, %v2634_v36  ;;  %v2607_v49 = vadd.f32 %v2576_v0, %v2285_v53  ;;  %v6890_v30 = vld [vmem:[%s6046_s7 + $0x28] sm:$0xfc]  ;;  %v3994_v18 = vld [vmem:[#allocation2 + $0x1938] sm:$0xff]  ;;  %v1963_v41 = vadd.f32 %v6793_v48, %v6790_v31  ;;  %v6905_v57 = vld [vmem:[%s6046_s7 + $0x20] sm:$0xfc] }
 0x251   : > { %4370 = vmatpush2.msra.mxu1 %v4005_v43  ;;  %4258 = vmatprep.subr.mxu0 %v4197_v40  ;;  %v2578_v55 = vpop.f32.mrf.mxu1  ;;  %v6896_v43 = vld [vmem:[%s6046_s7 + $0x38] sm:$0x3]  ;;  %v4186_v40 = vld [vmem:[#allocation2 + $0x1b30] sm:$0xff]  ;;  %v3992_v0 = vld [vmem:[#allocation2 + $0x1928] sm:$0xff] }
 0x252   : > { %4371 = vmatprep.subr.mxu1 %v4004_v33  ;;  %v2260_v13 = vpop.f32.mrf.mxu0  ;;  %4259 = vmatpush2.msra.mxu0 %v4196_v10  ;;  %5409 = vst [vmem:[%s6522_s10 + $0xb0] sm:$0xff] %v2677_v51  ;;  %v2678_v60 = vmax.f32 %v2662_v17, 0.0  ;;  %v2635_v39 = vmul.f32 %v6822_v47, %v2607_v49  ;;  %v2608_v29 = vadd.f32 %v2578_v55, %v2286_v14  ;;  %v6902_v33 = vld [vmem:[%s6046_s7 + $0x38] sm:$0x1]  ;;  %v3993_v10 = vld [vmem:[#allocation2 + $0x1930] sm:$0xff]  ;;  %v4087_v55 = vrot.slane %v6896_v43, 2 }
 0x253   : > { %4372 = vmatpush2.msra.mxu1 %v4003_v5  ;;  %v2287_v6 = vadd.f32 %v2260_v13, %v1955_v28  ;;  %4260 = vmatprep.subr.mxu0 %v4195_v38  ;;  %v4185_v5 = vld [vmem:[#allocation2 + $0x1b28] sm:$0xff]  ;;  %v4086_v38 = vrot.slane %v6890_v30, 2  ;;  %v5565_v28 = vld [vmem:[%s6046_s7 + $0x30] sm:$0x3]  ;;  %v5531_v51 = vld [vmem:[%s6046_s7 + $0x20] sm:$0xfe] }
 0x254   : > { %4373 = vmatprep.subr.mxu1 %v4002_v19  ;;  %v2262_v52 = vpop.f32.mrf.mxu0  ;;  %4261 = vmatpush2.msra.mxu0 %v4194_v59  ;;  %5410 = vst [vmem:[%s6522_s10 + $0xb8] sm:$0xff] %v2678_v60  ;;  %v2663_v20 = vadd.f32 %v6826_v46, %v2635_v39  ;;  %v2636_v25 = vmul.f32 %v6829_v24, %v2608_v29  ;;  %v5533_v17 = vld [vmem:[%s6046_s7 + $0x30] sm:$0x1]  ;;  %v3991_v13 = vld [vmem:[#allocation2 + $0x1920] sm:$0xff]  ;;  %v4083_v60 = vrot.slane %v6905_v57, 2  ;;  %v4183_v29 = vld [vmem:[#allocation2 + $0x1b18] sm:$0xff] }
 0x255   : > { %4374 = vmatpush2.msra.mxu1 %v4001_v11  ;;  %v2288_v21 = vadd.f32 %v2262_v52, %v1957_v32  ;;  %4262 = vmatprep.subr.mxu0 %v4193_v7  ;;  %v2582_v12 = vpop.f32.mrf.mxu1  ;;  %v4184_v32 = vld [vmem:[#allocation2 + $0x1b20] sm:$0xff]  ;;  %v3893_v7 = vrot.slane %v6899_v15, 1 }
 0x256   : > { %4375 = vmatprep.subr.mxu1 %v4000_v22  ;;  %4263 = vmatpush2.msra.mxu0 %v4192_v16  ;;  %v2679_v34 = vmax.f32 %v2663_v20, 0.0  ;;  %v2664_v2 = vadd.f32 %v6832_v58, %v2636_v25  ;;  %v2609_v53 = vadd.f32 %v2582_v12, %v2287_v6  ;;  %v3894_v22 = vrot.slane %v6902_v33, 1  ;;  %v3990_v16 = vld [vmem:[#allocation2 + $0x1918] sm:$0xff] }
 0x257   : > { %4376 = vmatpush2.msra.mxu1 %v3999_v63  ;;  %4264 = vmatprep.subr.mxu0 %v4191_v45  ;;  %v2584_v26 = vpop.f32.mrf.mxu1  ;;  %v1967_v6 = vadd.f32 %v6804_v54, %v6800_v50  ;;  %v4084_v20 = vrot.slane %v5565_v28, 2  ;;  %v3890_v25 = vrot.slane %v5531_v51, 1  ;;  %v4181_v50 = vld [vmem:[#allocation2 + $0x1b08] sm:$0xff]  ;;  %v4917_v28 = vld [vmem:[#allocation2 + $0x1ee0] sm:$0xff]  ;;  %v4594_v51 = vld [vmem:[#allocation2 + $0x1cd8] sm:$0xff] }
 0x258   : > { %4377 = vmatprep.subr.mxu1 %v3998_v44  ;;  %v2266_v42 = vpop.f32.mrf.mxu0  ;;  %4265 = vmatpush2.msra.mxu0 %v4190_v61  ;;  %5411 = vst [vmem:[%s6522_s10 + $0xc0] sm:$0xff] %v2679_v34  ;;  %v2680_v36 = vmax.f32 %v2664_v2, 0.0  ;;  %v2637_v31 = vmul.f32 %v6822_v47, %v2609_v53  ;;  %v2610_v14 = vadd.f32 %v2584_v26, %v2288_v21  ;;  %v4182_v61 = vld [vmem:[#allocation2 + $0x1b10] sm:$0xff]  ;;  %v3891_v21 = vrot.slane %v5533_v17, 1  ;;  %v3988_v54 = vld [vmem:[#allocation2 + $0x1908] sm:$0xff]  ;;  %v3987_v34 = vld [vmem:[#allocation2 + $0x1900] sm:$0xff] }
 0x259   : > { %4378 = vmatpush2.msra.mxu1 %v3997_v1  ;;  %v2289_v48 = vadd.f32 %v2266_v42, %v1961_v37  ;;  %4266 = vmatprep.subr.mxu0 %v4189_v27  ;;  %v1969_v44 = vadd.f32 %v6817_v3, %v6806_v4  ;;  %v3989_v1 = vld [vmem:[#allocation2 + $0x1910] sm:$0xff]  ;;  %v4180_v4 = vld [vmem:[#allocation2 + $0x1b00] sm:$0xff]  ;;  %v4088_v3 = vsel %vm1615_vm1, %v4086_v38, %v4087_v55  ;;  %v4598_v42 = vld [vmem:[#allocation2 + $0x1cf8] sm:$0xff] }
 0x25a   : > { %4379 = vmatprep.subr.mxu1 %v3996_v9  ;;  %v2268_v19 = vpop.f32.mrf.mxu0  ;;  %4267 = vmatpush2.msra.mxu0 %v4188_v56  ;;  %5412 = vst [vmem:[%s6522_s10 + $0xc8] sm:$0xff] %v2680_v36  ;;  %v2665_v49 = vadd.f32 %v6826_v46, %v2637_v31  ;;  %v2638_v59 = vmul.f32 %v6829_v24, %v2610_v14  ;;  %v4920_v26 = vld [vmem:[#allocation2 + $0x1ef8] sm:$0xff]  ;;  %v4597_v36 = vld [vmem:[#allocation2 + $0x1cf0] sm:$0xff]  ;;  %v4596_v14 = vld [vmem:[#allocation2 + $0x1ce8] sm:$0xff] }
 0x25b   : > { %4380 = vmatpush2.msra.mxu1 %v3995_v62  ;;  %v2290_v11 = vadd.f32 %v2268_v19, %v1963_v41  ;;  %4268 = vmatprep.subr.mxu0 %v4187_v8  ;;  %v2588_v39 = vpop.f32.mrf.mxu1  ;;  %v3895_v8 = vsel %vm302_vm0, %v3893_v7, %v3894_v22  ;;  %v4085_v41 = vsel %vm1615_vm1, %v4083_v60, %v4084_v20  ;;  %v4919_v31 = vld [vmem:[#allocation2 + $0x1ef0] sm:$0xff]  ;;  %v4595_v19 = vld [vmem:[#allocation2 + $0x1ce0] sm:$0xff]  ;;  %v4916_v17 = vld [vmem:[#allocation2 + $0x1ed8] sm:$0xff] }
 0x25c   : > { %4381 = vmatprep.subr.mxu1 %v3994_v18  ;;  %4269 = vmatpush2.msra.mxu0 %v4186_v40  ;;  %v2681_v63 = vmax.f32 %v2665_v49, 0.0  ;;  %v2666_v45 = vadd.f32 %v6832_v58, %v2638_v59  ;;  %v2611_v52 = vadd.f32 %v2588_v39, %v2289_v48  ;;  %v3892_v43 = vsel %vm302_vm0, %v3890_v25, %v3891_v21  ;;  %v4591_v22 = vld [vmem:[#allocation2 + $0x1cc0] sm:$0xff]  ;;  %v4584_v20 = vld [vmem:[#allocation2 + $0x1c88] sm:$0xff] }
 0x25d   : > { %4382 = vmatpush2.msra.mxu1 %v3993_v10  ;;  %4270 = vmatprep.subr.mxu0 %v4185_v5  ;;  %v2590_v9 = vpop.f32.mrf.mxu1  ;;  %v4918_v10 = vld [vmem:[#allocation2 + $0x1ee8] sm:$0xff]  ;;  %v4913_v60 = vld [vmem:[#allocation2 + $0x1ec0] sm:$0xff] }
 0x25e   : > { %4383 = vmatprep.subr.mxu1 %v3992_v0  ;;  %v2272_v27 = vpop.f32.mrf.mxu0  ;;  %4271 = vmatpush2.msra.mxu0 %v4184_v32  ;;  %5413 = vst [vmem:[%s6522_s10 + $0xd0] sm:$0xff] %v2681_v63  ;;  %v2682_v56 = vmax.f32 %v2666_v45, 0.0  ;;  %v2639_v12 = vmul.f32 %v6822_v47, %v2611_v52  ;;  %v2612_v62 = vadd.f32 %v2590_v9, %v2290_v11  ;;  %v4593_v11 = vld [vmem:[#allocation2 + $0x1cd0] sm:$0xff]  ;;  %v4910_v63 = vld [vmem:[#allocation2 + $0x1ea8] sm:$0xff]  ;;  %v4909_v45 = vld [vmem:[#allocation2 + $0x1ea0] sm:$0xff] }
 0x25f   : > { %4384 = vmatpush2.msra.mxu1 %v3991_v13  ;;  %v2291_v37 = vadd.f32 %v2272_v27, %v1967_v6  ;;  %4272 = vmatprep.subr.mxu0 %v4183_v29  ;;  %v4915_v32 = vld [vmem:[#allocation2 + $0x1ed0] sm:$0xff]  ;;  %v4914_v13 = vld [vmem:[#allocation2 + $0x1ec8] sm:$0xff]  ;;  %v4586_v52 = vld [vmem:[#allocation2 + $0x1c98] sm:$0xff] }
 0x260   : > { %4385 = vmatprep.subr.mxu1 %v3990_v16  ;;  %v2274_v30 = vpop.f32.mrf.mxu0  ;;  %4273 = vmatpush2.msra.mxu0 %v4182_v61  ;;  %5414 = vst [vmem:[%s6522_s10 + $0xd8] sm:$0xff] %v2682_v56  ;;  %v2667_v2 = vadd.f32 %v6826_v46, %v2639_v12  ;;  %v2640_v53 = vmul.f32 %v6829_v24, %v2612_v62  ;;  %v4589_v6 = vld [vmem:[#allocation2 + $0x1cb0] sm:$0xff]  ;;  %v4588_v16 = vld [vmem:[#allocation2 + $0x1ca8] sm:$0xff]  ;;  %v4583_v21 = vld [vmem:[#allocation2 + $0x1c80] sm:$0xff] }
 0x261   : > { %4386 = vmatpush2.msra.mxu1 %v3989_v1  ;;  %v2292_v18 = vadd.f32 %v2274_v30, %v1969_v44  ;;  %4274 = vmatprep.subr.mxu0 %v4181_v50  ;;  %v2594_v15 = vpop.f32.mrf.mxu1  ;;  %v4911_v29 = vld [vmem:[#allocation2 + $0x1eb0] sm:$0xff]  ;;  %v4908_v44 = vld [vmem:[#allocation2 + $0x1e98] sm:$0xff]  ;;  %v4906_v25 = vld [vmem:[#allocation2 + $0x1e88] sm:$0xff] }
 0x262   : > { %4387 = vmatprep.subr.mxu1 %v3988_v54  ;;  %4275 = vmatpush2.msra.mxu0 %v4180_v4  ;;  %v2683_v40 = vmax.f32 %v2667_v2, 0.0  ;;  %v2668_v33 = vadd.f32 %v6832_v58, %v2640_v53  ;;  %v2613_v57 = vadd.f32 %v2594_v15, %v2291_v37  ;;  %v4585_v61 = vld [vmem:[#allocation2 + $0x1c90] sm:$0xff]  ;;  %v4905_v27 = vld [vmem:[#allocation2 + $0x1e80] sm:$0xff]  ;;  %v4582_v9 = vld [vmem:[#allocation2 + $0x1c78] sm:$0xff] }
 0x263   : > { %4276 = vmatprep.mubr.f32.mxu0 %v4088_v3  ;;  %4388 = vmatpush2.msra.mxu1 %v3987_v34  ;;  %v2596_v48 = vpop.f32.mrf.mxu1  ;;  %v4907_v1 = vld [vmem:[#allocation2 + $0x1e90] sm:$0xff]  ;;  %v4904_v50 = vld [vmem:[#allocation2 + $0x1e78] sm:$0xff]  ;;  %v4580_v12 = vld [vmem:[#allocation2 + $0x1c68] sm:$0xff] }
 0x264   : > { %4389 = vmatprep.mubr.f32.mxu1 %v3895_v8  ;;  %4277 = vmatmul.mubr.f32.vlgmr.msra.gmra.mxu0 %v4085_v41  ;;  %5415 = vst [vmem:[%s6522_s10 + $0xe0] sm:$0xff] %v2683_v40  ;;  %v2684_v5 = vmax.f32 %v2668_v33, 0.0  ;;  %v2641_v0 = vmul.f32 %v6822_v47, %v2613_v57  ;;  %v2614_v38 = vadd.f32 %v2596_v48, %v2292_v18  ;;  %v4592_v47 = vld [vmem:[#allocation2 + $0x1cc8] sm:$0xff]  ;;  %v4581_v54 = vld [vmem:[#allocation2 + $0x1c70] sm:$0xff]  ;;  %v4579_v62 = vld [vmem:[#allocation2 + $0x1c60] sm:$0xff] }
 0x265   : > { %4390 = vmatmul.mubr.f32.vlgmr.msra.gmra.mxu1 %v3892_v43  ;;  %4631 = vmatprep.subr.mxu0 %v4598_v42  ;;  %v4903_v56 = vld [vmem:[#allocation2 + $0x1e70] sm:$0xff]  ;;  %v4902_v37 = vld [vmem:[#allocation2 + $0x1e68] sm:$0xff]  ;;  %v4901_v4 = vld [vmem:[#allocation2 + $0x1e60] sm:$0xff] }
 0x266   : > { %4953 = vmatprep.subr.mxu1 %v4920_v26  ;;  %4632 = vmatpush1.msra.mxu0 %v4597_v36  ;;  %5416 = vst [vmem:[%s6522_s10 + $0xe8] sm:$0xff] %v2684_v5  ;;  %v2669_v49 = vadd.f32 %v6826_v46, %v2641_v0  ;;  %v2642_v59 = vmul.f32 %v6829_v24, %v2614_v38  ;;  %v4590_v46 = vld [vmem:[#allocation2 + $0x1cb8] sm:$0xff]  ;;  %v4577_v30 = vld [vmem:[#allocation2 + $0x1c50] sm:$0xff]  ;;  %v4576_v2 = vld [vmem:[#allocation2 + $0x1c48] sm:$0xff] }
 0x267   : > { %4954 = vmatpush1.msra.mxu1 %v4919_v31  ;;  %4633 = vmatprep.subr.mxu0 %v4596_v14  ;;  %v4912_v24 = vld [vmem:[#allocation2 + $0x1eb8] sm:$0xff]  ;;  %v4899_v34 = vld [vmem:[#allocation2 + $0x1e50] sm:$0xff]  ;;  %v4898_v53 = vld [vmem:[#allocation2 + $0x1e48] sm:$0xff] }
 0x268   : > { %4955 = vmatprep.subr.mxu1 %v4918_v10  ;;  %4634 = vmatpush1.msra.mxu0 %v4595_v19  ;;  %v2685_v55 = vmax.f32 %v2669_v49, 0.0  ;;  %v2670_v7 = vadd.f32 %v6832_v58, %v2642_v59  ;;  %v4587_v58 = vld [vmem:[#allocation2 + $0x1ca0] sm:$0xff]  ;;  %v4578_v3 = vld [vmem:[#allocation2 + $0x1c58] sm:$0xff]  ;;  %v4573_v42 = vld [vmem:[#allocation2 + $0x1c30] sm:$0xff] }
 0x269   : > { %4956 = vmatpush1.msra.mxu1 %v4917_v28  ;;  %4635 = vmatprep.subr.mxu0 %v4594_v51  ;;  %v4900_v8 = vld [vmem:[#allocation2 + $0x1e58] sm:$0xff]  ;;  %v4575_v18 = vld [vmem:[#allocation2 + $0x1c40] sm:$0xff]  ;;  %v4895_v26 = vld [vmem:[#allocation2 + $0x1e30] sm:$0xff] }
 0x26a   : > { %4957 = vmatprep.subr.mxu1 %v4916_v17  ;;  %4636 = vmatpush1.msra.mxu0 %v4593_v11  ;;  %5417 = vst [vmem:[%s6522_s10 + $0xf0] sm:$0xff] %v2685_v55  ;;  %v2686_v39 = vmax.f32 %v2670_v7, 0.0  ;;  %v4897_v41 = vld [vmem:[#allocation2 + $0x1e40] sm:$0xff]  ;;  %v4574_v43 = vld [vmem:[#allocation2 + $0x1c38] sm:$0xff]  ;;  %v5568_v40 = vld [vmem:[%s6046_s7 + $0x48] sm:$0xfc] }
 0x26b   : > { %4958 = vmatpush1.msra.mxu1 %v4915_v32  ;;  %4637 = vmatprep.subr.mxu0 %v4592_v47  ;;  %v4896_v15 = vld [vmem:[#allocation2 + $0x1e38] sm:$0xff]  ;;  %v5536_v57 = vld [vmem:[%s6046_s7 + $0x48] sm:$0xfe]  ;;  %v4571_v14 = vld [vmem:[#allocation2 + $0x1c20] sm:$0xff]  ;;  %v4092_v28 = vrot.slane %v5568_v40, 2 }
 0x26c   : > { %4959 = vmatprep.subr.mxu1 %v4914_v13  ;;  %4638 = vmatpush1.msra.mxu0 %v4591_v22  ;;  %5418 = vst [vmem:[%s6522_s10 + $0xf8] sm:$0xff] %v2686_v39  ;;  %v5570_v33 = vld [vmem:[%s6046_s7 + $0x58] sm:$0x3]  ;;  %v4572_v31 = vld [vmem:[#allocation2 + $0x1c28] sm:$0xff]  ;;  %v4893_v10 = vld [vmem:[#allocation2 + $0x1e20] sm:$0xff]  ;;  %v3899_v17 = vrot.slane %v5536_v57, 1 }
 0x26d   : > { %4960 = vmatpush1.msra.mxu1 %v4913_v60  ;;  %4639 = vmatprep.subr.mxu0 %v4590_v46  ;;  %v5538_v36 = vld [vmem:[%s6046_s7 + $0x58] sm:$0x1]  ;;  %v4894_v48 = vld [vmem:[#allocation2 + $0x1e28] sm:$0xff]  ;;  %v4569_v38 = vld [vmem:[#allocation2 + $0x1c10] sm:$0xff]  ;;  %v4093_v51 = vrot.slane %v5570_v33, 2 }
 0x26e   : > { %4961 = vmatprep.subr.mxu1 %v4912_v24  ;;  %4640 = vmatpush1.msra.mxu0 %v4589_v6  ;;  %v4570_v5 = vld [vmem:[#allocation2 + $0x1c18] sm:$0xff]  ;;  %v4891_v19 = vld [vmem:[#allocation2 + $0x1e10] sm:$0xff]  ;;  %v3900_v49 = vrot.slane %v5538_v36, 1  ;;  %v5567_v59 = vld [vmem:[%s6046_s7 + $0x40] sm:$0xfc] }
 0x26f   : > { %4962 = vmatpush1.msra.mxu1 %v4911_v29  ;;  %4641 = vmatprep.subr.mxu0 %v4588_v16  ;;  %v4892_v0 = vld [vmem:[#allocation2 + $0x1e18] sm:$0xff]  ;;  %v4568_v11 = vld [vmem:[#allocation2 + $0x1c08] sm:$0xff]  ;;  %v5569_v32 = vld [vmem:[%s6046_s7 + $0x50] sm:$0x3]  ;;  %v4089_v29 = vrot.slane %v5567_v59, 2 }
 0x270   : > { %4963 = vmatprep.subr.mxu1 %v4910_v63  ;;  %4642 = vmatpush1.msra.mxu0 %v4587_v58  ;;  %v5535_v47 = vld [vmem:[%s6046_s7 + $0x40] sm:$0xfe]  ;;  %v5537_v13 = vld [vmem:[%s6046_s7 + $0x50] sm:$0x1]  ;;  %v4890_v55 = vld [vmem:[#allocation2 + $0x1e08] sm:$0xff]  ;;  %v4090_v16 = vrot.slane %v5569_v32, 2 }
 0x271   : > { %4964 = vmatpush1.msra.mxu1 %v4909_v45  ;;  %4643 = vmatprep.subr.mxu0 %v4586_v52  ;;  %v4567_v7 = vld [vmem:[#allocation2 + $0x1c00] sm:$0xff]  ;;  %v5572_v22 = vld [vmem:[%s6046_s7 + $0x68] sm:$0xfc]  ;;  %v5574_v60 = vld [vmem:[%s6046_s7 + $0x78] sm:$0x3]  ;;  %v3896_v63 = vrot.slane %v5535_v47, 1  ;;  %v4094_v52 = vsel %vm1615_vm1, %v4092_v28, %v4093_v51 }
 0x272   : > { %4965 = vmatprep.subr.mxu1 %v4908_v44  ;;  %4644 = vmatpush1.msra.mxu0 %v4585_v61  ;;  %v5540_v46 = vld [vmem:[%s6046_s7 + $0x68] sm:$0xfe]  ;;  %v5542_v24 = vld [vmem:[%s6046_s7 + $0x78] sm:$0x1]  ;;  %v4889_v39 = vld [vmem:[#allocation2 + $0x1e00] sm:$0xff]  ;;  %v3897_v58 = vrot.slane %v5537_v13, 1  ;;  %v3901_v44 = vsel %vm302_vm0, %v3899_v17, %v3900_v49 }
 0x273   : > { %4966 = vmatpush1.msra.mxu1 %v4907_v1  ;;  %4645 = vmatprep.subr.mxu0 %v4584_v20  ;;  %v4630_v6 = vld [vmem:[#allocation2 + $0x1df8] sm:$0xff]  ;;  %v4629_v61 = vld [vmem:[#allocation2 + $0x1df0] sm:$0xff]  ;;  %v4098_v20 = vrot.slane %v5572_v22, 2  ;;  %v4946_v49 = vld [vmem:[#allocation2 + $0x1fc8] sm:$0xff] }
 0x274   : > { %4967 = vmatprep.subr.mxu1 %v4906_v25  ;;  %4646 = vmatpush1.msra.mxu0 %v4583_v21  ;;  %v4952_v45 = vld [vmem:[#allocation2 + $0x1ff8] sm:$0xff]  ;;  %v4951_v1 = vld [vmem:[#allocation2 + $0x1ff0] sm:$0xff]  ;;  %v4099_v25 = vrot.slane %v5574_v60, 2  ;;  %v3905_v21 = vrot.slane %v5540_v46, 1  ;;  %v4623_v59 = vld [vmem:[#allocation2 + $0x1dc0] sm:$0xff] }
 0x275   : > { %4968 = vmatpush1.msra.mxu1 %v4905_v27  ;;  %4647 = vmatprep.subr.mxu0 %v4582_v9  ;;  %v3906_v27 = vrot.slane %v5542_v24, 1  ;;  %v5571_v9 = vld [vmem:[%s6046_s7 + $0x60] sm:$0xfc]  ;;  %v4625_v57 = vld [vmem:[#allocation2 + $0x1dd0] sm:$0xff]  ;;  %v5582_v32 = vld [vmem:[%s6046_s7 + $0xb8] sm:$0x3] }
 0x276   : > { %4969 = vmatprep.subr.mxu1 %v4904_v50  ;;  %4648 = vmatpush1.msra.mxu0 %v4581_v54  ;;  %v4628_v50 = vld [vmem:[#allocation2 + $0x1de8] sm:$0xff]  ;;  %v5573_v54 = vld [vmem:[%s6046_s7 + $0x70] sm:$0x3]  ;;  %v4100_v40 = vsel %vm1615_vm1, %v4098_v20, %v4099_v25  ;;  %v5550_v13 = vld [vmem:[%s6046_s7 + $0xb8] sm:$0x1] }
 0x277   : > { %4970 = vmatpush1.msra.mxu1 %v4903_v56  ;;  %4649 = vmatprep.subr.mxu0 %v4580_v12  ;;  %v5539_v56 = vld [vmem:[%s6046_s7 + $0x60] sm:$0xfe]  ;;  %v5541_v12 = vld [vmem:[%s6046_s7 + $0x70] sm:$0x1]  ;;  %v3907_v33 = vsel %vm302_vm0, %v3905_v21, %v3906_v27  ;;  %v5548_v47 = vld [vmem:[%s6046_s7 + $0xa8] sm:$0xfe] }
 0x278   : > { %4971 = vmatprep.subr.mxu1 %v4902_v37  ;;  %4650 = vmatpush1.msra.mxu0 %v4579_v62  ;;  %v4091_v37 = vsel %vm1615_vm1, %v4089_v29, %v4090_v16  ;;  %v3898_v62 = vsel %vm302_vm0, %v3896_v63, %v3897_v58  ;;  %v4947_v36 = vld [vmem:[#allocation2 + $0x1fd0] sm:$0xff]  ;;  %v5547_v25 = vld [vmem:[%s6046_s7 + $0xa0] sm:$0xfe] }
 0x279   : > { %4972 = vmatpush1.msra.mxu1 %v4901_v4  ;;  %4651 = vmatprep.subr.mxu0 %v4578_v3  ;;  %v4950_v4 = vld [vmem:[#allocation2 + $0x1fe8] sm:$0xff]  ;;  %v4627_v3 = vld [vmem:[#allocation2 + $0x1de0] sm:$0xff]  ;;  %v5545_v28 = vld [vmem:[%s6046_s7 + $0x90] sm:$0x1] }
 0x27a   : > { %4973 = vmatprep.subr.mxu1 %v4900_v8  ;;  %4652 = vmatpush1.msra.mxu0 %v4577_v30  ;;  %v5576_v8 = vld [vmem:[%s6046_s7 + $0x88] sm:$0xfc]  ;;  %v5578_v30 = vld [vmem:[%s6046_s7 + $0x98] sm:$0x3]  ;;  %v3909_v24 = vrot.slane %v5545_v28, 1  ;;  %v4621_v16 = vld [vmem:[#allocation2 + $0x1db0] sm:$0xff] }
 0x27b   : > { %4974 = vmatpush1.msra.mxu1 %v4899_v34  ;;  %4653 = vmatprep.subr.mxu0 %v4576_v2  ;;  %v5544_v34 = vld [vmem:[%s6046_s7 + $0x88] sm:$0xfe]  ;;  %v5546_v2 = vld [vmem:[%s6046_s7 + $0x98] sm:$0x1]  ;;  %v4943_v63 = vld [vmem:[#allocation2 + $0x1fb0] sm:$0xff] }
 0x27c   : > { %4975 = vmatprep.subr.mxu1 %v4898_v53  ;;  %4654 = vmatpush1.msra.mxu0 %v4575_v18  ;;  %v4949_v53 = vld [vmem:[#allocation2 + $0x1fe0] sm:$0xff]  ;;  %v4626_v18 = vld [vmem:[#allocation2 + $0x1dd8] sm:$0xff]  ;;  %v5581_v20 = vld [vmem:[%s6046_s7 + $0xb0] sm:$0x3] }
 0x27d   : > { %4976 = vmatpush1.msra.mxu1 %v4897_v41  ;;  %4655 = vmatprep.subr.mxu0 %v4574_v43  ;;  %v4095_v41 = vrot.slane %v5571_v9, 2  ;;  %v4096_v43 = vrot.slane %v5573_v54, 2  ;;  %v5549_v21 = vld [vmem:[%s6046_s7 + $0xb0] sm:$0x1]  ;;  %v4619_v54 = vld [vmem:[#allocation2 + $0x1da0] sm:$0xff] }
 0x27e   : > { %4977 = vmatprep.subr.mxu1 %v4896_v15  ;;  %4656 = vmatpush1.msra.mxu0 %v4573_v42  ;;  %v3902_v15 = vrot.slane %v5539_v56, 1  ;;  %v3903_v42 = vrot.slane %v5541_v12, 1  ;;  %v5584_v56 = vld [vmem:[%s6046_s7 + $0xc8] sm:$0xfc]  ;;  %v5586_v12 = vld [vmem:[%s6046_s7 + $0xd8] sm:$0x3] }
 0x27f   : > { %4978 = vmatpush1.msra.mxu1 %v4895_v26  ;;  %4657 = vmatprep.subr.mxu0 %v4572_v31  ;;  %v4948_v26 = vld [vmem:[#allocation2 + $0x1fd8] sm:$0xff]  ;;  %v4104_v31 = vrot.slane %v5576_v8, 2  ;;  %v4097_v51 = vsel %vm1615_vm1, %v4095_v41, %v4096_v43  ;;  %v4617_v43 = vld [vmem:[#allocation2 + $0x1d90] sm:$0xff] }
 0x280   : > { %4979 = vmatprep.subr.mxu1 %v4894_v48  ;;  %4658 = vmatpush1.msra.mxu0 %v4571_v14  ;;  %v4105_v48 = vrot.slane %v5578_v30, 2  ;;  %v3911_v14 = vrot.slane %v5544_v34, 1  ;;  %v3904_v17 = vsel %vm302_vm0, %v3902_v15, %v3903_v42  ;;  %v4108_v30 = vrot.slane %v5581_v20, 2  ;;  %v4939_v15 = vld [vmem:[#allocation2 + $0x1f90] sm:$0xff]  ;;  %v5590_v28 = vld [vmem:[%s6046_s7 + $0xf8] sm:$0x3] }
 0x281   : > { %4980 = vmatpush1.msra.mxu1 %v4893_v10  ;;  %4659 = vmatprep.subr.mxu0 %v4570_v5  ;;  %v3912_v10 = vrot.slane %v5546_v2, 1  ;;  %v5575_v5 = vld [vmem:[%s6046_s7 + $0x80] sm:$0xfc]  ;;  %v3914_v34 = vrot.slane %v5547_v25, 1  ;;  %v3915_v2 = vrot.slane %v5549_v21, 1  ;;  %v4116_v42 = vrot.slane %v5584_v56, 2 }
 0x282   : > { %4981 = vmatprep.subr.mxu1 %v4892_v0  ;;  %4660 = vmatpush1.msra.mxu0 %v4569_v38  ;;  %v4624_v0 = vld [vmem:[#allocation2 + $0x1dc8] sm:$0xff]  ;;  %v5577_v38 = vld [vmem:[%s6046_s7 + $0x90] sm:$0x3]  ;;  %v4101_v22 = vrot.slane %v5575_v5, 2  ;;  %v4611_v20 = vld [vmem:[#allocation2 + $0x1d60] sm:$0xff] }
 0x283   : > { %4982 = vmatpush1.msra.mxu1 %v4891_v19  ;;  %4661 = vmatprep.subr.mxu0 %v4568_v11  ;;  %v5543_v19 = vld [vmem:[%s6046_s7 + $0x80] sm:$0xfe]  ;;  %v5580_v11 = vld [vmem:[%s6046_s7 + $0xa8] sm:$0xfc]  ;;  %v4102_v60 = vrot.slane %v5577_v38, 2  ;;  %v3913_v29 = vsel %vm302_vm0, %v3911_v14, %v3912_v10  ;;  %v3916_v5 = vsel %vm302_vm0, %v3914_v34, %v3915_v2  ;;  %v4931_v34 = vld [vmem:[#allocation2 + $0x1f50] sm:$0xff] }
 0x284   : > { %4983 = vmatprep.subr.mxu1 %v4890_v55  ;;  %4662 = vmatpush1.msra.mxu0 %v4567_v7  ;;  %v4945_v55 = vld [vmem:[#allocation2 + $0x1fc0] sm:$0xff]  ;;  %v4622_v7 = vld [vmem:[#allocation2 + $0x1db8] sm:$0xff]  ;;  %v3908_v46 = vrot.slane %v5543_v19, 1  ;;  %v4110_v58 = vrot.slane %v5580_v11, 2  ;;  %v5553_v14 = vld [vmem:[%s6046_s7 + $0xd0] sm:$0x1] }
 0x285   : > { %4984 = vmatpush1.msra.mxu1 %v4889_v39  ;;  %4663 = vmatprep.subr.mxu0 %v4630_v6  ;;  %v4944_v39 = vld [vmem:[#allocation2 + $0x1fb8] sm:$0xff]  ;;  %v4106_v6 = vsel %vm1615_vm1, %v4104_v31, %v4105_v48  ;;  %v4103_v27 = vsel %vm1615_vm1, %v4101_v22, %v4102_v60  ;;  %v5585_v31 = vld [vmem:[%s6046_s7 + $0xd0] sm:$0x3]  ;;  %v5551_v48 = vld [vmem:[%s6046_s7 + $0xc0] sm:$0xfe] }
 0x286   : > { %4985 = vmatprep.subr.mxu1 %v4952_v45  ;;  %4282 = vmatprep.mubr.f32.mxu0 %v4094_v52  ;;  %v4111_v45 = vrot.slane %v5582_v32, 2  ;;  %v3917_v52 = vrot.slane %v5548_v47, 1  ;;  %v3910_v9 = vsel %vm302_vm0, %v3908_v46, %v3909_v24  ;;  %v4615_v38 = vld [vmem:[#allocation2 + $0x1d80] sm:$0xff]  ;;  %v5588_v19 = vld [vmem:[%s6046_s7 + $0xe8] sm:$0xfc]  ;;  %v4114_v32 = vrot.slane %v5585_v31, 2 }
 0x287   : > { %4395 = vmatprep.mubr.f32.mxu1 %v3901_v44  ;;  %4664 = vmatpush2.msra.mxu0 %v4629_v61  ;;  %v3918_v44 = vrot.slane %v5550_v13, 1  ;;  %v5579_v61 = vld [vmem:[%s6046_s7 + $0xa0] sm:$0xfc]  ;;  %v3920_v47 = vrot.slane %v5551_v48, 1  ;;  %v3921_v13 = vrot.slane %v5553_v14, 1  ;;  %v4613_v60 = vld [vmem:[#allocation2 + $0x1d70] sm:$0xff] }
 0x288   : > { %4986 = vmatpush2.msra.mxu1 %v4951_v1  ;;  %4283 = vmatmul.mubr.f32.gmra.mxu0 %v4091_v37  ;;  %v4620_v1 = vld [vmem:[#allocation2 + $0x1da8] sm:$0xff]  ;;  %v4107_v8 = vrot.slane %v5579_v61, 2  ;;  %v4935_v46 = vld [vmem:[#allocation2 + $0x1f70] sm:$0xff]  ;;  %v4122_v24 = vrot.slane %v5588_v19, 2  ;;  %v7015_v21 = vld [vmem:[%s6046_s7 + $0x118] sm:$0x3] }
 0x289   : > { %4396 = vmatmul.mubr.f32.gmra.mxu1 %v3898_v62  ;;  %4665 = vmatprep.subr.mxu0 %v4628_v50  ;;  %v4942_v50 = vld [vmem:[#allocation2 + $0x1fa8] sm:$0xff]  ;;  %v5554_v62 = vld [vmem:[%s6046_s7 + $0xd8] sm:$0x1]  ;;  %v3919_v41 = vsel %vm302_vm0, %v3917_v52, %v3918_v44  ;;  %v5557_v52 = vld [vmem:[%s6046_s7 + $0xf0] sm:$0x1]  ;;  %v3922_v61 = vsel %vm302_vm0, %v3920_v47, %v3921_v13 }
 0x28a   : > { %4987 = vmatprep.subr.mxu1 %v4950_v4  ;;  %4666 = vmatpush2.msra.mxu0 %v4627_v3  ;;  %v5552_v37 = vld [vmem:[%s6046_s7 + $0xc8] sm:$0xfe]  ;;  %v4941_v4 = vld [vmem:[#allocation2 + $0x1fa0] sm:$0xff]  ;;  %v4618_v3 = vld [vmem:[#allocation2 + $0x1d98] sm:$0xff]  ;;  %v4109_v10 = vsel %vm1615_vm1, %v4107_v8, %v4108_v30 }
 0x28b   : > { %4988 = vmatpush2.msra.mxu1 %v4949_v53  ;;  %4667 = vmatprep.subr.mxu0 %v4626_v18  ;;  %v4940_v53 = vld [vmem:[#allocation2 + $0x1f98] sm:$0xff]  ;;  %v4112_v18 = vsel %vm1615_vm1, %v4110_v58, %v4111_v45  ;;  %v5589_v58 = vld [vmem:[%s6046_s7 + $0xf0] sm:$0x3]  ;;  %v5555_v45 = vld [vmem:[%s6046_s7 + $0xe0] sm:$0xfe] }
 0x28c   : > { %4989 = vmatprep.subr.mxu1 %v4948_v26  ;;  %4288 = vmatprep.mubr.f32.mxu0 %v4100_v40  ;;  %v4117_v26 = vrot.slane %v5586_v12, 2  ;;  %v3923_v40 = vrot.slane %v5552_v37, 1  ;;  %v7012_v25 = vld [vmem:[%s6046_s7 + $0x108] sm:$0xfc]  ;;  %v4120_v12 = vrot.slane %v5589_v58, 2  ;;  %v3926_v37 = vrot.slane %v5555_v45, 1 }
 0x28d   : > { %4401 = vmatprep.mubr.f32.mxu1 %v3907_v33  ;;  %4668 = vmatpush2.msra.mxu0 %v4625_v57  ;;  %v3924_v33 = vrot.slane %v5554_v62, 1  ;;  %v5583_v57 = vld [vmem:[%s6046_s7 + $0xc0] sm:$0xfc]  ;;  %v3927_v62 = vrot.slane %v5557_v52, 1  ;;  %v4609_v30 = vld [vmem:[#allocation2 + $0x1d50] sm:$0xff]  ;;  %v4128_v2 = vrot.slane %v7012_v25, 2 }
 0x28e   : > { %4990 = vmatpush2.msra.mxu1 %v4947_v36  ;;  %4289 = vmatmul.mubr.f32.gmra.mxu0 %v4097_v51  ;;  %v4616_v36 = vld [vmem:[#allocation2 + $0x1d88] sm:$0xff]  ;;  %v4113_v11 = vrot.slane %v5583_v57, 2  ;;  %v4607_v31 = vld [vmem:[#allocation2 + $0x1d40] sm:$0xff]  ;;  %v7039_v14 = vld [vmem:[%s6046_s7 + $0x58] sm:$0x1] }
 0x28f   : > { %4402 = vmatmul.mubr.f32.gmra.mxu1 %v3904_v17  ;;  %4669 = vmatprep.subr.mxu0 %v4624_v0  ;;  %v4938_v0 = vld [vmem:[#allocation2 + $0x1f88] sm:$0xff]  ;;  %v5558_v17 = vld [vmem:[%s6046_s7 + $0xf8] sm:$0x1]  ;;  %v3925_v22 = vsel %vm302_vm0, %v3923_v40, %v3924_v33  ;;  %v5559_v40 = vld [vmem:[%s6046_s7 + $0x100] sm:$0xfe] }
 0x290   : > { %4991 = vmatprep.subr.mxu1 %v4946_v49  ;;  %4670 = vmatpush2.msra.mxu0 %v4623_v59  ;;  %v5556_v51 = vld [vmem:[%s6046_s7 + $0xe8] sm:$0xfe]  ;;  %v4937_v49 = vld [vmem:[#allocation2 + $0x1f80] sm:$0xff]  ;;  %v4614_v59 = vld [vmem:[#allocation2 + $0x1d78] sm:$0xff]  ;;  %v4115_v44 = vsel %vm1615_vm1, %v4113_v11, %v4114_v32  ;;  %v3932_v11 = vrot.slane %v5559_v40, 1 }
 0x291   : > { %4992 = vmatpush2.msra.mxu1 %v4945_v55  ;;  %4671 = vmatprep.subr.mxu0 %v4622_v7  ;;  %v4936_v55 = vld [vmem:[#allocation2 + $0x1f78] sm:$0xff]  ;;  %v4118_v7 = vsel %vm1615_vm1, %v4116_v42, %v4117_v26  ;;  %v4930_v42 = vld [vmem:[#allocation2 + $0x1f48] sm:$0xff]  ;;  %v5593_v26 = vld [vmem:[%s6046_s7 + $0x110] sm:$0x3] }
 0x292   : > { %4993 = vmatprep.subr.mxu1 %v4944_v39  ;;  %4294 = vmatprep.mubr.f32.mxu0 %v4106_v6  ;;  %v4123_v39 = vrot.slane %v5590_v28, 2  ;;  %v3929_v6 = vrot.slane %v5556_v51, 1  ;;  %v5561_v33 = vld [vmem:[%s6046_s7 + $0x110] sm:$0x1]  ;;  %v7036_v48 = vld [vmem:[%s6046_s7 + $0x48] sm:$0xfe] }
 0x293   : > { %4407 = vmatprep.mubr.f32.mxu1 %v3913_v29  ;;  %4672 = vmatpush2.msra.mxu0 %v4621_v16  ;;  %v3930_v29 = vrot.slane %v5558_v17, 1  ;;  %v5587_v16 = vld [vmem:[%s6046_s7 + $0xe0] sm:$0xfc]  ;;  %v7049_v19 = vld [vmem:[%s6046_s7 + $0x58] sm:$0x3]  ;;  %v3933_v32 = vrot.slane %v5561_v33, 1 }
 0x294   : > { %4994 = vmatpush2.msra.mxu1 %v4943_v63  ;;  %4295 = vmatmul.mubr.f32.gmra.mxu0 %v4103_v27  ;;  %v4612_v63 = vld [vmem:[#allocation2 + $0x1d68] sm:$0xff]  ;;  %v4119_v56 = vrot.slane %v5587_v16, 2  ;;  %v7052_v28 = vld [vmem:[%s6046_s7 + $0x40] sm:$0xfe]  ;;  %v4606_v51 = vld [vmem:[#allocation2 + $0x1d38] sm:$0xff] }
 0x295   : > { %4408 = vmatmul.mubr.f32.gmra.mxu1 %v3910_v9  ;;  %4673 = vmatprep.subr.mxu0 %v4620_v1  ;;  %v4934_v1 = vld [vmem:[#allocation2 + $0x1f68] sm:$0xff]  ;;  %v7021_v9 = vld [vmem:[%s6046_s7 + $0x118] sm:$0x1]  ;;  %v3931_v8 = vsel %vm302_vm0, %v3929_v6, %v3930_v29  ;;  %v4605_v47 = vld [vmem:[#allocation2 + $0x1d30] sm:$0xff]  ;;  %v4502_v6 = vrot.slane %v7052_v28, 1  ;;  %v3934_v25 = vsel %vm302_vm0, %v3932_v11, %v3933_v32 }
 0x296   : > { %4995 = vmatprep.subr.mxu1 %v4942_v50  ;;  %4674 = vmatpush2.msra.mxu0 %v4619_v54  ;;  %v7018_v27 = vld [vmem:[%s6046_s7 + $0x108] sm:$0xfe]  ;;  %v4933_v50 = vld [vmem:[#allocation2 + $0x1f60] sm:$0xff]  ;;  %v4610_v54 = vld [vmem:[#allocation2 + $0x1d58] sm:$0xff]  ;;  %v4121_v57 = vsel %vm1615_vm1, %v4119_v56, %v4120_v12 }
 0x297   : > { %4996 = vmatpush2.msra.mxu1 %v4941_v4  ;;  %4675 = vmatprep.subr.mxu0 %v4618_v3  ;;  %v4932_v4 = vld [vmem:[#allocation2 + $0x1f58] sm:$0xff]  ;;  %v4124_v3 = vsel %vm1615_vm1, %v4122_v24, %v4123_v39  ;;  %v4927_v13 = vld [vmem:[#allocation2 + $0x1f30] sm:$0xff]  ;;  %v4828_v39 = vrot.slane %v7049_v19, 2  ;;  %v7065_v29 = vld [vmem:[%s6046_s7 + $0x40] sm:$0xfc] }
 0x298   : > { %4997 = vmatprep.subr.mxu1 %v4940_v53  ;;  %4300 = vmatprep.mubr.f32.mxu0 %v4112_v18  ;;  %v4129_v53 = vrot.slane %v7015_v21, 2  ;;  %v3935_v18 = vrot.slane %v7018_v27, 1  ;;  %v4928_v17 = vld [vmem:[#allocation2 + $0x1f38] sm:$0xff]  ;;  %v7068_v16 = vld [vmem:[%s6046_s7 + $0x50] sm:$0x3]  ;;  %v4604_v45 = vld [vmem:[#allocation2 + $0x1d28] sm:$0xff] }
 0x299   : > { %4413 = vmatprep.mubr.f32.mxu1 %v3919_v41  ;;  %4676 = vmatpush2.msra.mxu0 %v4617_v43  ;;  %v3936_v41 = vrot.slane %v7021_v9, 1  ;;  %v5591_v43 = vld [vmem:[%s6046_s7 + $0x100] sm:$0xfc]  ;;  %v4926_v52 = vld [vmem:[#allocation2 + $0x1f28] sm:$0xff]  ;;  %v7086_v9 = vld [vmem:[%s6046_s7 + $0x78] sm:$0x3] }
 0x29a   : > { %4998 = vmatpush2.msra.mxu1 %v4939_v15  ;;  %4301 = vmatmul.mubr.f32.gmra.mxu0 %v4109_v10  ;;  %v4608_v15 = vld [vmem:[#allocation2 + $0x1d48] sm:$0xff]  ;;  %v4603_v21 = vld [vmem:[#allocation2 + $0x1d20] sm:$0xff] }
 0x29b   : > { %4414 = vmatmul.mubr.f32.gmra.mxu1 %v3916_v5  ;;  %4677 = vmatprep.subr.mxu0 %v4616_v36  ;;  %v3928_v36 = vsel %vm302_vm0, %v3926_v37, %v3927_v62  ;;  %v7042_v10 = vld [vmem:[%s6046_s7 + $0x48] sm:$0xfc]  ;;  %v7044_v5 = vpop.f32.mrf.mxu0  ;;  %v3937_v24 = vsel %vm302_vm0, %v3935_v18, %v3936_v41  ;;  %v4925_v27 = vld [vmem:[#allocation2 + $0x1f20] sm:$0xff]  ;;  %v4602_v37 = vld [vmem:[#allocation2 + $0x1d18] sm:$0xff]  ;;  %v4825_v18 = vrot.slane %v7068_v16, 2 }
 0x29c   : > { %4999 = vmatprep.subr.mxu1 %v4938_v0  ;;  %4678 = vmatpush2.msra.mxu0 %v4615_v38  ;;  %v7046_v0 = vpop.f32.mrf.mxu1  ;;  %v4929_v38 = vld [vmem:[#allocation2 + $0x1f40] sm:$0xff]  ;;  %v4924_v62 = vld [vmem:[#allocation2 + $0x1f18] sm:$0xff]  ;;  %v5636_v32 = vld [vmem:[%s6046_s7 + $0x88] sm:$0xfc] }
 0x29d   : > { %5000 = vmatpush2.msra.mxu1 %v4937_v49  ;;  %4679 = vmatprep.subr.mxu0 %v4614_v59  ;;  %v4125_v49 = vrot.slane %v5591_v43, 2  ;;  %v4126_v59 = vrot.slane %v5593_v26, 2  ;;  %v4922_v26 = vld [vmem:[#allocation2 + $0x1f08] sm:$0xff]  ;;  %v4921_v11 = vld [vmem:[#allocation2 + $0x1f00] sm:$0xff] }
 0x29e   : > { %5001 = vmatprep.subr.mxu1 %v4936_v55  ;;  %4306 = vmatprep.mubr.f32.mxu0 %v4118_v7  ;;  %v4505_v55 = vrot.slane %v7036_v48, 1  ;;  %v4506_v7 = vrot.slane %v7039_v14, 1  ;;  %v7072_v58 = vpop.f32.mrf.mxu1 }
 0x29f   : > { %4419 = vmatprep.mubr.f32.mxu1 %v3925_v22  ;;  %4680 = vmatpush2.msra.mxu0 %v4613_v60  ;;  %v4827_v22 = vrot.slane %v7042_v10, 2  ;;  %v7058_v60 = vld [vmem:[%s6046_s7 + $0x50] sm:$0x1]  ;;  %v4839_v10 = vrot.slane %v5636_v32, 2 }
 0x2a0   : > { %5002 = vmatpush2.msra.mxu1 %v4935_v46  ;;  %4307 = vmatmul.mubr.f32.gmra.mxu0 %v4115_v44  ;;  %v4130_v46 = vsel %vm1615_vm1, %v4128_v2, %v4129_v53  ;;  %v7075_v44 = vld [vmem:[%s6046_s7 + $0x68] sm:$0xfe]  ;;  %v4503_v2 = vrot.slane %v7058_v60, 1  ;;  %v4824_v53 = vrot.slane %v7065_v29, 2  ;;  %v4507_v60 = vsel %vm302_vm0, %v4505_v55, %v4506_v7  ;;  %v5637_v29 = vld [vmem:[%s6046_s7 + $0x90] sm:$0x3] }
 0x2a1   : > { %4420 = vmatmul.mubr.f32.gmra.mxu1 %v3922_v61  ;;  %4681 = vmatprep.subr.mxu0 %v4612_v63  ;;  %v7070_v63 = vpop.f32.mrf.mxu0  ;;  %v7078_v61 = vld [vmem:[%s6046_s7 + $0x78] sm:$0x1]  ;;  %v4511_v41 = vrot.slane %v7075_v44, 1  ;;  %v4829_v14 = vsel %vm1615_vm1, %v4827_v22, %v4828_v39  ;;  %v5608_v7 = vld [vmem:[%s6046_s7 + $0xa8] sm:$0xfe] }
 0x2a2   : > { %5003 = vmatprep.subr.mxu1 %v4934_v1  ;;  %4682 = vmatpush2.msra.mxu0 %v4611_v20  ;;  %v7081_v1 = vld [vmem:[%s6046_s7 + $0x68] sm:$0xfc]  ;;  %v4127_v20 = vsel %vm1615_vm1, %v4125_v49, %v4126_v59  ;;  %v4512_v40 = vrot.slane %v7078_v61, 1  ;;  %v7123_v49 = vld [vmem:[%s6046_s7 + $0x98] sm:$0x1]  ;;  %v4504_v48 = vsel %vm302_vm0, %v4502_v6, %v4503_v2  ;;  %v4826_v55 = vsel %vm1615_vm1, %v4824_v53, %v4825_v18 }
 0x2a3   : > { %5004 = vmatpush2.msra.mxu1 %v4933_v50  ;;  %4683 = vmatprep.subr.mxu0 %v4610_v54  ;;  %v7089_v50 = vld [vmem:[%s6046_s7 + $0x60] sm:$0xfe]  ;;  %v7092_v54 = vld [vmem:[%s6046_s7 + $0x70] sm:$0x1]  ;;  %v4833_v33 = vrot.slane %v7081_v1, 2  ;;  %v4518_v19 = vrot.slane %v7123_v49, 1 }
 0x2a4   : > { %5005 = vmatprep.subr.mxu1 %v4932_v4  ;;  %4312 = vmatprep.mubr.f32.mxu0 %v4124_v3  ;;  %v7099_v4 = vld [vmem:[%s6046_s7 + $0x60] sm:$0xfc]  ;;  %v7102_v3 = vld [vmem:[%s6046_s7 + $0x70] sm:$0x3]  ;;  %v5640_v44 = vld [vmem:[%s6046_s7 + $0xa8] sm:$0xfc]  ;;  %v4513_v61 = vsel %vm302_vm0, %v4511_v41, %v4512_v40 }
 0x2a5   : > { %4425 = vmatprep.mubr.f32.mxu1 %v3931_v8  ;;  %4684 = vmatpush2.msra.mxu0 %v4609_v30  ;;  %v7105_v8 = vld [vmem:[%s6046_s7 + $0x88] sm:$0xfe]  ;;  %v4601_v30 = vld [vmem:[#allocation2 + $0x1d10] sm:$0xff]  ;;  %v7158_v22 = vld [vmem:[%s6046_s7 + $0xa0] sm:$0xfe] }
 0x2a6   : > { %5006 = vmatpush2.msra.mxu1 %v4931_v34  ;;  %4313 = vmatmul.mubr.f32.gmra.mxu0 %v4121_v57  ;;  %v4923_v34 = vld [vmem:[#allocation2 + $0x1f10] sm:$0xff]  ;;  %v4834_v57 = vrot.slane %v7086_v9, 2  ;;  %v4517_v59 = vrot.slane %v7105_v8, 1  ;;  %v4837_v9 = vrot.slane %v5637_v29, 2  ;;  %v5639_v8 = vld [vmem:[%s6046_s7 + $0xa0] sm:$0xfc] }
 0x2a7   : > { %4426 = vmatmul.mubr.f32.gmra.mxu1 %v3928_v36  ;;  %4685 = vmatprep.subr.mxu0 %v4608_v15  ;;  %v4508_v36 = vrot.slane %v7089_v50, 1  ;;  %v4523_v50 = vrot.slane %v5608_v7, 1  ;;  %v5641_v2 = vld [vmem:[%s6046_s7 + $0xb0] sm:$0x3]  ;;  %v5612_v53 = vld [vmem:[%s6046_s7 + $0xc8] sm:$0xfe] }
 0x2a8   : > { %5007 = vmatprep.subr.mxu1 %v4930_v42  ;;  %4686 = vmatpush2.msra.mxu0 %v4607_v31  ;;  %v4600_v42 = vld [vmem:[#allocation2 + $0x1d08] sm:$0xff]  ;;  %v4599_v31 = vld [vmem:[#allocation2 + $0x1d00] sm:$0xff]  ;;  %v4835_v1 = vsel %vm1615_vm1, %v4833_v33, %v4834_v57  ;;  %v5614_v18 = vld [vmem:[%s6046_s7 + $0xd8] sm:$0x1] }
 0x2a9   : > { %5008 = vmatpush2.msra.mxu1 %v4929_v38  ;;  %4687 = vmatprep.subr.mxu0 %v4606_v51  ;;  %v7094_v56 = vpop.f32.mrf.mxu0  ;;  %v4509_v38 = vrot.slane %v7092_v54, 1  ;;  %v4830_v51 = vrot.slane %v7099_v4, 2  ;;  %v5609_v4 = vld [vmem:[%s6046_s7 + $0xb0] sm:$0x1]  ;;  %v5644_v33 = vld [vmem:[%s6046_s7 + $0xc8] sm:$0xfc] }
 0x2aa   : > { %5009 = vmatprep.subr.mxu1 %v4928_v17  ;;  %v7096_v12 = vpop.f32.mrf.mxu1  ;;  %4318 = vmatprep.mubr.f32.mxu0 %v4130_v46  ;;  %v4831_v17 = vrot.slane %v7102_v3, 2  ;;  %v5605_v46 = vld [vmem:[%s6046_s7 + $0x90] sm:$0x1]  ;;  %v4520_v3 = vrot.slane %v7158_v22, 1  ;;  %v5646_v57 = vld [vmem:[%s6046_s7 + $0xd8] sm:$0x3] }
 0x2ab   : > { %4431 = vmatprep.mubr.f32.mxu1 %v3937_v24  ;;  %4688 = vmatpush2.msra.mxu0 %v4605_v47  ;;  %v7111_v43 = vpop.f32.mrf.mxu0  ;;  %v5638_v47 = vld [vmem:[%s6046_s7 + $0x98] sm:$0x3]  ;;  %v5635_v24 = vld [vmem:[%s6046_s7 + $0x80] sm:$0xfc]  ;;  %v4530_v29 = vrot.slane %v5614_v18, 1 }
 0x2ac   : > { %5010 = vmatpush2.msra.mxu1 %v4927_v13  ;;  %v7113_v15 = vpop.f32.mrf.mxu1  ;;  %4319 = vmatmul.mubr.f32.gmra.mxu0 %v4127_v20  ;;  %v5603_v13 = vld [vmem:[%s6046_s7 + $0x80] sm:$0xfe]  ;;  %v5642_v20 = vld [vmem:[%s6046_s7 + $0xb8] sm:$0x3]  ;;  %v4840_v6 = vrot.slane %v5638_v47, 2 }
 0x2ad   : > { %4432 = vmatmul.mubr.f32.gmra.mxu1 %v3934_v25  ;;  %4689 = vmatprep.subr.mxu0 %v4604_v45  ;;  %v4514_v25 = vrot.slane %v5603_v13, 1  ;;  %v5643_v49 = vld [vmem:[%s6046_s7 + $0xc0] sm:$0xfc]  ;;  %v4521_v13 = vrot.slane %v5609_v4, 1  ;;  %v5622_v4 = vld [vmem:[%s6046_s7 + $0x118] sm:$0x1] }
 0x2ae   : > { %5011 = vmatprep.subr.mxu1 %v4926_v52  ;;  %4690 = vmatpush2.msra.mxu0 %v4603_v21  ;;  %v5610_v52 = vld [vmem:[%s6046_s7 + $0xb8] sm:$0x1]  ;;  %v4515_v21 = vrot.slane %v5605_v46, 1  ;;  %v4841_v40 = vsel %vm1615_vm1, %v4839_v10, %v4840_v6  ;;  %v4843_v46 = vrot.slane %v5641_v2, 2 }
 0x2af   : > { %5012 = vmatpush2.msra.mxu1 %v4925_v27  ;;  %4691 = vmatprep.subr.mxu0 %v4602_v37  ;;  %v7137_v16 = vpop.f32.mrf.mxu0  ;;  %v4836_v27 = vrot.slane %v5635_v24, 2  ;;  %v4524_v54 = vrot.slane %v5610_v52, 1  ;;  %v4845_v37 = vrot.slane %v5640_v44, 2  ;;  %v4529_v24 = vrot.slane %v5612_v53, 1  ;;  %v5650_v10 = vld [vmem:[%s6046_s7 + $0xf8] sm:$0x3] }
 0x2b0   : > { %5013 = vmatprep.subr.mxu1 %v4924_v62  ;;  %v7139_v45 = vpop.f32.mrf.mxu1  ;;  %4692 = vmatpush2.msra.mxu0 %v4601_v30  ;;  %v4846_v62 = vrot.slane %v5642_v20, 2  ;;  %v4510_v30 = vsel %vm302_vm0, %v4508_v36, %v4509_v38  ;;  %v4516_v36 = vsel %vm302_vm0, %v4514_v25, %v4515_v21  ;;  %v4848_v52 = vrot.slane %v5643_v49, 2  ;;  %v5615_v25 = vld [vmem:[%s6046_s7 + $0xe0] sm:$0xfe]  ;;  %v5617_v21 = vld [vmem:[%s6046_s7 + $0xf0] sm:$0x1] }
 0x2b1   : > { %5014 = vmatpush2.msra.mxu1 %v4923_v34  ;;  %4693 = vmatprep.subr.mxu0 %v4600_v42  ;;  %v7160_v28 = vpop.f32.mrf.mxu0  ;;  %v4832_v34 = vsel %vm1615_vm1, %v4830_v51, %v4831_v17  ;;  %v4838_v38 = vsel %vm1615_vm1, %v4836_v27, %v4837_v9  ;;  %v4525_v51 = vsel %vm302_vm0, %v4523_v50, %v4524_v54  ;;  %v5613_v17 = vld [vmem:[%s6046_s7 + $0xd0] sm:$0x1]  ;;  %v5647_v27 = vld [vmem:[%s6046_s7 + $0xe0] sm:$0xfc]  ;;  %v4858_v53 = vrot.slane %v5650_v10, 2 }
 0x2b2   : > { %5015 = vmatprep.subr.mxu1 %v4922_v26  ;;  %v7162_v39 = vpop.f32.mrf.mxu1  ;;  %4694 = vmatpush2.msra.mxu0 %v4599_v31  ;;  %v4519_v26 = vsel %vm302_vm0, %v4517_v59, %v4518_v19  ;;  %v7181_v31 = vld [vmem:[%s6046_s7 + $0xc0] sm:$0xfe]  ;;  %v4847_v59 = vsel %vm1615_vm1, %v4845_v37, %v4846_v62  ;;  %v4527_v7 = vrot.slane %v5613_v17, 1  ;;  %v5648_v19 = vld [vmem:[%s6046_s7 + $0xe8] sm:$0xfc]  ;;  %v4522_v6 = vsel %vm302_vm0, %v4520_v3, %v4521_v13 }
 0x2b3   : > { %4695 = vmatprep.mubr.f32.mxu0 %v4507_v60  ;;  %5016 = vmatpush2.msra.mxu1 %v4921_v11  ;;  %v5645_v11 = vld [vmem:[%s6046_s7 + $0xd0] sm:$0x3]  ;;  %v4842_v60 = vrot.slane %v5639_v8, 2  ;;  %v4531_v50 = vsel %vm302_vm0, %v4529_v24, %v4530_v29  ;;  %v5620_v62 = vld [vmem:[%s6046_s7 + $0x108] sm:$0xfe]  ;;  %v4857_v2 = vrot.slane %v5648_v19, 2 }
 0x2b4   : > { %5017 = vmatprep.mubr.f32.mxu1 %v4829_v14  ;;  %4696 = vmatmul.mubr.f32.vlgmr.msra.gmra.mxu0 %v4504_v48  ;;  %v4851_v14 = vrot.slane %v5644_v33, 2  ;;  %v4852_v48 = vrot.slane %v5646_v57, 2  ;;  %v4849_v44 = vrot.slane %v5645_v11, 2  ;;  %v5649_v37 = vld [vmem:[%s6046_s7 + $0xf0] sm:$0x3]  ;;  %v4532_v18 = vrot.slane %v5615_v25, 1 }
 0x2b5   : > { %5018 = vmatmul.mubr.f32.vlgmr.msra.gmra.mxu1 %v4826_v55  ;;  %4701 = vmatprep.mubr.f32.mxu0 %v4513_v61  ;;  %v7172_v41 = vpop.f32.mrf.mxu0  ;;  %v4526_v55 = vrot.slane %v7181_v31, 1  ;;  %v5616_v61 = vld [vmem:[%s6046_s7 + $0xe8] sm:$0xfe]  ;;  %v4844_v9 = vsel %vm1615_vm1, %v4842_v60, %v4843_v46  ;;  %v5654_v33 = vld [vmem:[%s6046_s7 + $0x118] sm:$0x3]  ;;  %v4854_v57 = vrot.slane %v5647_v27, 2  ;;  %v4859_v29 = vsel %vm1615_vm1, %v4857_v2, %v4858_v53 }
 0x2b6   : > { %5023 = vmatprep.mubr.f32.mxu1 %v4835_v1  ;;  %v7174_v42 = vpop.f32.mrf.mxu1  ;;  %v5618_v1 = vld [vmem:[%s6046_s7 + $0xf8] sm:$0x1]  ;;  %v4853_v54 = vsel %vm1615_vm1, %v4851_v14, %v4852_v48  ;;  %v4855_v31 = vrot.slane %v5649_v37, 2  ;;  %v4850_v49 = vsel %vm1615_vm1, %v4848_v52, %v4849_v44  ;;  %v5621_v11 = vld [vmem:[%s6046_s7 + $0x110] sm:$0x1]  ;;  %v4864_v48 = vrot.slane %v5654_v33, 2 }
 0x2b7   : > { %v7189_v32 = vpop.f32.mrf.mxu0  ;;  %v4528_v17 = vsel %vm302_vm0, %v4526_v55, %v4527_v7  ;;  %v5653_v13 = vld [vmem:[%s6046_s7 + $0x110] sm:$0x3]  ;;  %v5656_v19 = vld [vmem:[%s6046_s7 + $0x128] sm:$0xfc]  ;;  %v5658_v55 = vld [vmem:[%s6046_s7 + $0x138] sm:$0x3] }
 0x2b8   : > { %v7191_v47 = vpop.f32.mrf.mxu1  ;;  %4702 = vmatmul.mubr.f32.gmra.mxu0 %v4510_v30  ;;  %v4535_v30 = vrot.slane %v5616_v61, 1  ;;  %v5624_v61 = vld [vmem:[%s6046_s7 + $0x128] sm:$0xfe]  ;;  %v4539_v10 = vrot.slane %v5621_v11, 1  ;;  %v4861_v25 = vrot.slane %v5653_v13, 2  ;;  %v4856_v27 = vsel %vm1615_vm1, %v4854_v57, %v4855_v31 }
 0x2b9   : > { %5024 = vmatmul.mubr.f32.gmra.mxu1 %v4832_v34  ;;  %4707 = vmatprep.mubr.f32.mxu0 %v4519_v26  ;;  %v4536_v34 = vrot.slane %v5618_v1, 1  ;;  %v4533_v26 = vrot.slane %v5617_v21, 1  ;;  %v5626_v1 = vld [vmem:[%s6046_s7 + $0x138] sm:$0x1]  ;;  %v5625_v37 = vld [vmem:[%s6046_s7 + $0x130] sm:$0x1] }
 0x2ba   : > { %5029 = vmatprep.mubr.f32.mxu1 %v4841_v40  ;;  %v5652_v40 = vld [vmem:[%s6046_s7 + $0x108] sm:$0xfc]  ;;  %v5655_v2 = vld [vmem:[%s6046_s7 + $0x120] sm:$0xfc]  ;;  %v5657_v53 = vld [vmem:[%s6046_s7 + $0x130] sm:$0x3] }
 0x2bb   : > { %v7199_v20 = vpop.f32.mrf.mxu0  ;;  %v4537_v24 = vsel %vm302_vm0, %v4535_v30, %v4536_v34  ;;  %v4863_v14 = vrot.slane %v5652_v40, 2  ;;  %v4534_v21 = vsel %vm302_vm0, %v4532_v18, %v4533_v26  ;;  %v4869_v30 = vrot.slane %v5656_v19, 2 }
 0x2bc   : > { %v7201_v22 = vpop.f32.mrf.mxu1  ;;  %4708 = vmatmul.mubr.f32.gmra.mxu0 %v4516_v36  ;;  %v4541_v36 = vrot.slane %v5620_v62, 1  ;;  %v4870_v34 = vrot.slane %v5658_v55, 2  ;;  %v4545_v31 = vrot.slane %v5625_v37, 1  ;;  %v3765_v55 = vld [vmem:[#allocation7] sm:$0x3] }
 0x2bd   : > { %5030 = vmatmul.mubr.f32.gmra.mxu1 %v4838_v38  ;;  %4713 = vmatprep.mubr.f32.mxu0 %v4525_v51  ;;  %v7213_v8 = vpop.f32.mrf.mxu0  ;;  %v4542_v38 = vrot.slane %v5622_v4, 1  ;;  %v5619_v51 = vld [vmem:[%s6046_s7 + $0x100] sm:$0xfe]  ;;  %v4865_v4 = vsel %vm1615_vm1, %v4863_v14, %v4864_v48  ;;  %v7286_v37 = vrot.slane %v3765_v55, %v6469_v35 }
 0x2be   : > { %5035 = vmatprep.mubr.f32.mxu1 %v4847_v59  ;;  %v7215_v3 = vpop.f32.mrf.mxu1  ;;  %v5651_v59 = vld [vmem:[%s6046_s7 + $0x100] sm:$0xfc]  ;;  %v4538_v44 = vrot.slane %v5619_v51, 1  ;;  %v3737_v48 = vld [vmem:[#allocation5] sm:$0x3] }
 0x2bf   : > { %v4543_v62 = vsel %vm302_vm0, %v4541_v36, %v4542_v38  ;;  %v4866_v36 = vrot.slane %v5655_v2, 2  ;;  %v4867_v38 = vrot.slane %v5657_v53, 2 }
 0x2c0   : > { %4714 = vmatmul.mubr.f32.gmra.mxu0 %v4522_v6  ;;  %v4860_v6 = vrot.slane %v5651_v59, 2  ;;  %v4540_v18 = vsel %vm302_vm0, %v4538_v44, %v4539_v10  ;;  %v3160_v44 = vadd.f32 %v7072_v58, %v7070_v63 }
 0x2c1   : > { %5036 = vmatmul.mubr.f32.gmra.mxu1 %v4844_v9  ;;  %4719 = vmatprep.mubr.f32.mxu0 %v4531_v50  ;;  %v7225_v60 = vpop.f32.mrf.mxu0  ;;  %v4547_v9 = vrot.slane %v5624_v61, 1  ;;  %v4548_v50 = vrot.slane %v5626_v1, 1  ;;  %v4868_v13 = vsel %vm1615_vm1, %v4866_v36, %v4867_v38  ;;  %v3158_v61 = vadd.f32 %v7046_v0, %v7044_v5 }
 0x2c2   : > { %5041 = vmatprep.mubr.f32.mxu1 %v4853_v54  ;;  %v7227_v46 = vpop.f32.mrf.mxu1  ;;  %v5623_v54 = vld [vmem:[%s6046_s7 + $0x120] sm:$0xfe]  ;;  %v4862_v26 = vsel %vm1615_vm1, %v4860_v6, %v4861_v25  ;;  %v7274_v6 = vrot.slane %v3737_v48, %v6464_v23  ;;  %v7280_v5 = vrot.slane %v3737_v48, %v6469_v35 }
 0x2c3   : > { %v7235_v7 = vpop.f32.mrf.mxu0  ;;  %v4544_v57 = vrot.slane %v5623_v54, 1  ;;  %v3164_v54 = vadd.f32 %v7096_v12, %v7094_v56 }
 0x2c4   : > { %v7237_v52 = vpop.f32.mrf.mxu1  ;;  %4720 = vmatmul.mubr.f32.gmra.mxu0 %v4528_v17  ;;  %v4549_v17 = vsel %vm302_vm0, %v4547_v9, %v4548_v50  ;;  %v7277_v9 = vrot.slane %v3765_v55, %v6464_v23 }
 0x2c5   : > { %5042 = vmatmul.mubr.f32.gmra.mxu1 %v4850_v49  ;;  %4725 = vmatprep.mubr.f32.mxu0 %v4537_v24  ;;  %v4871_v49 = vsel %vm1615_vm1, %v4869_v30, %v4870_v34  ;;  %v4546_v59 = vsel %vm302_vm0, %v4544_v57, %v4545_v31  ;;  %v3170_v57 = vadd.f32 %v7139_v45, %v7137_v16 }
 0x2c6   : > { %5047 = vmatprep.mubr.f32.mxu1 %v4859_v29 }
 0x2c7   : > { %v7247_v40 = vpop.f32.mrf.mxu0 }
 0x2c8   : > { %v7249_v33 = vpop.f32.mrf.mxu1  ;;  %4726 = vmatmul.mubr.f32.gmra.mxu0 %v4534_v21 }
 0x2c9   : > { %5048 = vmatmul.mubr.f32.gmra.mxu1 %v4856_v27  ;;  %4731 = vmatprep.mubr.f32.mxu0 %v4543_v62  ;;  %v7253_v51 = vpop.f32.mrf.mxu0 }
 0x2ca   : > { %5053 = vmatprep.mubr.f32.mxu1 %v4865_v4  ;;  %v7257_v11 = vpop.f32.mrf.mxu1  ;;  %v3166_v4 = vadd.f32 %v7113_v15, %v7111_v43  ;;  %v3172_v15 = vadd.f32 %v7162_v39, %v7160_v28 }
 0x2cc   : > { %4732 = vmatmul.mubr.f32.gmra.mxu0 %v4540_v18 }
 0x2cd   : > { %5054 = vmatmul.mubr.f32.gmra.mxu1 %v4862_v26  ;;  %4737 = vmatprep.mubr.f32.mxu0 %v4549_v17  ;;  %v7261_v24 = vpop.f32.mrf.mxu0 }
 0x2ce   : > { %5059 = vmatprep.mubr.f32.mxu1 %v4871_v49  ;;  %v7263_v29 = vpop.f32.mrf.mxu1 }
 0x2cf   : > { %v7265_v14 = vpop.f32.mrf.mxu0 }
 0x2d0   : > { %4738 = vmatmul.mubr.f32.gmra.mxu0 %v4546_v59  ;;  %v7269_v1 = vpop.f32.mrf.mxu1 }
 0x2d1   : > { %5060 = vmatmul.mubr.f32.gmra.mxu1 %v4868_v13 }
 0x2d4   : > { %v3464_v19 = vpop.f32.mrf.mxu0 }
 0x2d5   : > { %v3511_v10 = vadd.f32 %v3464_v19, %v3158_v61  ;;  %v3176_v19 = vadd.f32 %v7174_v42, %v7172_v41 }
 0x2d6   : > { %v3674_v25 = vpop.f32.mrf.mxu1  ;;  %v3466_v21 = vpop.f32.mrf.mxu0 }
 0x2d7   : > { %v3721_v27 = vadd.f32 %v3674_v25, %v3511_v10  ;;  %v3512_v50 = vadd.f32 %v3466_v21, %v3160_v44  ;;  %v3178_v44 = vadd.f32 %v7191_v47, %v7189_v32  ;;  %v3182_v32 = vadd.f32 %v7201_v22, %v7199_v20 }
 0x2d8   : > { %v3676_v0 = vpop.f32.mrf.mxu1 }
 0x2d9   : > { %v3749_v63 = vmul.f32 %v7274_v6, %v3721_v27  ;;  %v3722_v58 = vadd.f32 %v3676_v0, %v3512_v50 }
 0x2da   : > { %v3470_v62 = vpop.f32.mrf.mxu0 }
 0x2db   : > { %v3777_v30 = vadd.f32 %v7277_v9, %v3749_v63  ;;  %v3750_v34 = vmul.f32 %v7280_v5, %v3722_v58  ;;  %v3513_v2 = vadd.f32 %v3470_v62, %v3164_v54 }
 0x2dc   : > { %v3472_v53 = vpop.f32.mrf.mxu0 }
 0x2dd   : > { %v3793_v18 = vmax.f32 %v3777_v30, 0.0  ;;  %v3778_v56 = vadd.f32 %v7286_v37, %v3750_v34  ;;  %v3514_v12 = vadd.f32 %v3472_v53, %v3166_v4  ;;  %v3680_v26 = vpop.f32.mrf.mxu1  ;;  %v3184_v30 = vadd.f32 %v7215_v3, %v7213_v8 }
 0x2de   : > { %v3723_v36 = vadd.f32 %v3680_v26, %v3513_v2  ;;  %v3188_v8 = vadd.f32 %v7227_v46, %v7225_v60 }
 0x2df   : > { %5515 = vst [vmem:[%s6522_s10 + $0x100] sm:$0xff] %v3793_v18  ;;  %v3794_v31 = vmax.f32 %v3778_v56, 0.0  ;;  %v3682_v43 = vpop.f32.mrf.mxu1 }
 0x2e0   : > { %v3476_v38 = vpop.f32.mrf.mxu0  ;;  %v3751_v17 = vmul.f32 %v7274_v6, %v3723_v36  ;;  %v3724_v59 = vadd.f32 %v3682_v43, %v3514_v12  ;;  %v3190_v43 = vadd.f32 %v7237_v52, %v7235_v7  ;;  %v3194_v7 = vadd.f32 %v7249_v33, %v7247_v40 }
 0x2e1   : > { %5516 = vst [vmem:[%s6522_s10 + $0x108] sm:$0xff] %v3794_v31  ;;  %v3515_v49 = vadd.f32 %v3476_v38, %v3170_v57 }
 0x2e2   : > { %v3478_v13 = vpop.f32.mrf.mxu0  ;;  %v3779_v48 = vadd.f32 %v7277_v9, %v3751_v17  ;;  %v3752_v61 = vmul.f32 %v7280_v5, %v3724_v59 }
 0x2e3   : > { %v3516_v16 = vadd.f32 %v3478_v13, %v3172_v15  ;;  %v3686_v45 = vpop.f32.mrf.mxu1 }
 0x2e4   : > { %v3795_v55 = vmax.f32 %v3779_v48, 0.0  ;;  %v3780_v28 = vadd.f32 %v7286_v37, %v3752_v61  ;;  %v3725_v39 = vadd.f32 %v3686_v45, %v3515_v49 }
 0x2e5   : > { %v3688_v25 = vpop.f32.mrf.mxu1 }
 0x2e6   : > { %v3482_v10 = vpop.f32.mrf.mxu0  ;;  %5517 = vst [vmem:[%s6522_s10 + $0x110] sm:$0xff] %v3795_v55  ;;  %v3796_v21 = vmax.f32 %v3780_v28, 0.0  ;;  %v3753_v27 = vmul.f32 %v7274_v6, %v3725_v39  ;;  %v3726_v0 = vadd.f32 %v3688_v25, %v3516_v16  ;;  %v3196_v28 = vadd.f32 %v7257_v11, %v7253_v51 }
 0x2e7   : > { %v3517_v50 = vadd.f32 %v3482_v10, %v3176_v19  ;;  %v3200_v51 = vadd.f32 %v7263_v29, %v7261_v24 }
 0x2e8   : > { %v3484_v54 = vpop.f32.mrf.mxu0  ;;  %5518 = vst [vmem:[%s6522_s10 + $0x118] sm:$0xff] %v3796_v21  ;;  %v3781_v41 = vadd.f32 %v7277_v9, %v3753_v27  ;;  %v3754_v42 = vmul.f32 %v7280_v5, %v3726_v0 }
 0x2e9   : > { %v3518_v63 = vadd.f32 %v3484_v54, %v3178_v44  ;;  %v3692_v58 = vpop.f32.mrf.mxu1 }
 0x2ea   : > { %v3797_v47 = vmax.f32 %v3781_v41, 0.0  ;;  %v3782_v62 = vadd.f32 %v7286_v37, %v3754_v42  ;;  %v3727_v4 = vadd.f32 %v3692_v58, %v3517_v50 }
 0x2eb   : > { %v3694_v2 = vpop.f32.mrf.mxu1 }
 0x2ec   : > { %v3488_v34 = vpop.f32.mrf.mxu0  ;;  %5519 = vst [vmem:[%s6522_s10 + $0x120] sm:$0xff] %v3797_v47  ;;  %v3798_v53 = vmax.f32 %v3782_v62, 0.0  ;;  %v3755_v18 = vmul.f32 %v7274_v6, %v3727_v4  ;;  %v3728_v12 = vadd.f32 %v3694_v2, %v3518_v63  ;;  %v3202_v63 = vadd.f32 %v7269_v1, %v7265_v14 }
 0x2ed   : > { %v3519_v56 = vadd.f32 %v3488_v34, %v3182_v32 }
 0x2ee   : > { %v3490_v26 = vpop.f32.mrf.mxu0  ;;  %5520 = vst [vmem:[%s6522_s10 + $0x128] sm:$0xff] %v3798_v53  ;;  %v3783_v20 = vadd.f32 %v7277_v9, %v3755_v18  ;;  %v3756_v22 = vmul.f32 %v7280_v5, %v3728_v12 }
 0x2ef   : > { %v3520_v57 = vadd.f32 %v3490_v26, %v3184_v30  ;;  %v3698_v31 = vpop.f32.mrf.mxu1 }
 0x2f0   : > { %v3799_v3 = vmax.f32 %v3783_v20, 0.0  ;;  %v3784_v36 = vadd.f32 %v7286_v37, %v3756_v22  ;;  %v3729_v38 = vadd.f32 %v3698_v31, %v3519_v56 }
 0x2f1   : > { %v3700_v17 = vpop.f32.mrf.mxu1 }
 0x2f2   : > { %v3494_v15 = vpop.f32.mrf.mxu0  ;;  %5521 = vst [vmem:[%s6522_s10 + $0x130] sm:$0xff] %v3799_v3  ;;  %v3800_v49 = vmax.f32 %v3784_v36, 0.0  ;;  %v3757_v59 = vmul.f32 %v7274_v6, %v3729_v38  ;;  %v3730_v48 = vadd.f32 %v3700_v17, %v3520_v57 }
 0x2f3   : > { %v3521_v13 = vadd.f32 %v3494_v15, %v3188_v8 }
 0x2f4   : > { %v3496_v61 = vpop.f32.mrf.mxu0  ;;  %5522 = vst [vmem:[%s6522_s10 + $0x138] sm:$0xff] %v3800_v49  ;;  %v3785_v60 = vadd.f32 %v7277_v9, %v3757_v59  ;;  %v3758_v46 = vmul.f32 %v7280_v5, %v3730_v48 }
 0x2f5   : > { %v3522_v16 = vadd.f32 %v3496_v61, %v3190_v43  ;;  %v3704_v45 = vpop.f32.mrf.mxu1 }
 0x2f6   : > { %v3801_v52 = vmax.f32 %v3785_v60, 0.0  ;;  %v3786_v19 = vadd.f32 %v7286_v37, %v3758_v46  ;;  %v3731_v55 = vadd.f32 %v3704_v45, %v3521_v13 }
 0x2f7   : > { %v3706_v44 = vpop.f32.mrf.mxu1 }
 0x2f8   : > { %v3500_v39 = vpop.f32.mrf.mxu0  ;;  %5523 = vst [vmem:[%s6522_s10 + $0x140] sm:$0xff] %v3801_v52  ;;  %v3802_v10 = vmax.f32 %v3786_v19, 0.0  ;;  %v3759_v25 = vmul.f32 %v7274_v6, %v3731_v55  ;;  %v3732_v27 = vadd.f32 %v3706_v44, %v3522_v16 }
 0x2f9   : > { %v3523_v21 = vadd.f32 %v3500_v39, %v3194_v7 }
 0x2fa   : > { %v3502_v50 = vpop.f32.mrf.mxu0  ;;  %5524 = vst [vmem:[%s6522_s10 + $0x148] sm:$0xff] %v3802_v10  ;;  %v3787_v40 = vadd.f32 %v7277_v9, %v3759_v25  ;;  %v3760_v33 = vmul.f32 %v7280_v5, %v3732_v27 }
 0x2fb   : > { %v3524_v0 = vadd.f32 %v3502_v50, %v3196_v28  ;;  %v3710_v54 = vpop.f32.mrf.mxu1 }
 0x2fc   : > { %v3803_v11 = vmax.f32 %v3787_v40, 0.0  ;;  %v3788_v41 = vadd.f32 %v7286_v37, %v3760_v33  ;;  %v3733_v42 = vadd.f32 %v3710_v54, %v3523_v21 }
 0x2fd   : > { %v3712_v32 = vpop.f32.mrf.mxu1 }
 0x2fe   : > { %v3506_v58 = vpop.f32.mrf.mxu0  ;;  %5525 = vst [vmem:[%s6522_s10 + $0x150] sm:$0xff] %v3803_v11  ;;  %v3804_v47 = vmax.f32 %v3788_v41, 0.0  ;;  %v3761_v62 = vmul.f32 %v7274_v6, %v3733_v42  ;;  %v3734_v30 = vadd.f32 %v3712_v32, %v3524_v0  ;;  %v5082_v0 = vld [vmem:[#allocation5] sm:$0x3] }
 0x2ff   : > { %v3525_v4 = vadd.f32 %v3506_v58, %v3200_v51  ;;  %v5110_v51 = vld [vmem:[#allocation7] sm:$0x3]  ;;  %v7396_v58 = vrot.slane %v5082_v0, %v6464_v23 }
 0x300   : > { %v3508_v34 = vpop.f32.mrf.mxu0  ;;  %5526 = vst [vmem:[%s6522_s10 + $0x158] sm:$0xff] %v3804_v47  ;;  %v3789_v24 = vadd.f32 %v7277_v9, %v3761_v62  ;;  %v3762_v29 = vmul.f32 %v7280_v5, %v3734_v30  ;;  %v7399_v32 = vrot.slane %v5110_v51, %v6464_v23 }
 0x301   : > { %v3526_v2 = vadd.f32 %v3508_v34, %v3202_v63  ;;  %v3716_v53 = vpop.f32.mrf.mxu1 }
 0x302   : > { %v3805_v14 = vmax.f32 %v3789_v24, 0.0  ;;  %v3790_v1 = vadd.f32 %v7286_v37, %v3762_v29  ;;  %v3735_v18 = vadd.f32 %v3716_v53, %v3525_v4  ;;  %v7402_v24 = vrot.slane %v5082_v0, %v6469_v35 }
 0x303   : > { %v3718_v56 = vpop.f32.mrf.mxu1  ;;  %v7405_v29 = vrot.slane %v5110_v51, %v6469_v35 }
 0x304   : > { %5527 = vst [vmem:[%s6522_s10 + $0x160] sm:$0xff] %v3805_v14  ;;  %v3806_v12 = vmax.f32 %v3790_v1, 0.0  ;;  %v3763_v26 = vmul.f32 %v7274_v6, %v3735_v18  ;;  %v3736_v20 = vadd.f32 %v3718_v56, %v3526_v2 }
 0x306   : > { %5528 = vst [vmem:[%s6522_s10 + $0x168] sm:$0xff] %v3806_v12  ;;  %v3791_v22 = vadd.f32 %v7277_v9, %v3763_v26  ;;  %v3764_v57 = vmul.f32 %v7280_v5, %v3736_v20 }
 0x308   : > { %v3807_v31 = vmax.f32 %v3791_v22, 0.0  ;;  %v3792_v8 = vadd.f32 %v7286_v37, %v3764_v57 }
 0x30a   : > { %5529 = vst [vmem:[%s6522_s10 + $0x170] sm:$0xff] %v3807_v31  ;;  %v3808_v3 = vmax.f32 %v3792_v8, 0.0 }
 0x30c   : > { %5530 = vst [vmem:[%s6522_s10 + $0x178] sm:$0xff] %v3808_v3 }
 0x324   : > { %v4278_v36 = vpop.f32.mrf.mxu0 }
 0x325   : > { %v4391_v38 = vpop.f32.mrf.mxu1 }
 0x326   : > { %v4280_v43 = vpop.f32.mrf.mxu0  ;;  %v4392_v54 = vadd.f32 %v4391_v38, %v4278_v36 }
 0x327   : > { %v4393_v15 = vpop.f32.mrf.mxu1 }
 0x328   : > { %v4394_v42 = vadd.f32 %v4393_v15, %v4280_v43 }
 0x348   : > { %v4284_v17 = vpop.f32.mrf.mxu0 }
 0x349   : > { %v4397_v49 = vpop.f32.mrf.mxu1 }
 0x34a   : > { %v4286_v59 = vpop.f32.mrf.mxu0  ;;  %v4398_v4 = vadd.f32 %v4397_v49, %v4284_v17 }
 0x34b   : > { %v4399_v6 = vpop.f32.mrf.mxu1 }
 0x34c   : > { %v4400_v14 = vadd.f32 %v4399_v6, %v4286_v59 }
 0x34e   : > { %v4290_v13 = vpop.f32.mrf.mxu0 }
 0x34f   : > { %v4403_v48 = vpop.f32.mrf.mxu1 }
 0x350   : > { %v4292_v61 = vpop.f32.mrf.mxu0  ;;  %v4404_v31 = vadd.f32 %v4403_v48, %v4290_v13 }
 0x351   : > { %v4405_v9 = vpop.f32.mrf.mxu1 }
 0x352   : > { %v4406_v8 = vadd.f32 %v4405_v9, %v4292_v61 }
 0x354   : > { %v4296_v60 = vpop.f32.mrf.mxu0 }
 0x355   : > { %v4409_v5 = vpop.f32.mrf.mxu1 }
 0x356   : > { %v7361_v46 = vpop.f32.mrf.mxu0  ;;  %v4410_v17 = vadd.f32 %v4409_v5, %v4296_v60 }
 0x357   : > { %v4411_v37 = vpop.f32.mrf.mxu1 }
 0x358   : > { %v4412_v61 = vadd.f32 %v4411_v37, %v7361_v46 }
 0x35a   : > { %v7363_v16 = vpop.f32.mrf.mxu0 }
 0x35b   : > { %v7365_v45 = vpop.f32.mrf.mxu1 }
 0x35c   : > { %v7367_v7 = vpop.f32.mrf.mxu0 }
 0x35d   : > { %v7369_v52 = vpop.f32.mrf.mxu1 }
 0x360   : > { %v7371_v19 = vpop.f32.mrf.mxu0 }
 0x361   : > { %v7373_v55 = vpop.f32.mrf.mxu1 }
 0x362   : > { %v7375_v28 = vpop.f32.mrf.mxu0 }
 0x363   : > { %v7377_v39 = vpop.f32.mrf.mxu1 }
 0x366   : > { %v7379_v44 = vpop.f32.mrf.mxu0 }
 0x367   : > { %v7381_v10 = vpop.f32.mrf.mxu1 }
 0x368   : > { %v7383_v25 = vpop.f32.mrf.mxu0 }
 0x369   : > { %v7385_v21 = vpop.f32.mrf.mxu1 }
 0x36c   : > { %v7387_v27 = vpop.f32.mrf.mxu0 }
 0x36d   : > { %v7389_v50 = vpop.f32.mrf.mxu1 }
 0x36e   : > { %v7391_v40 = vpop.f32.mrf.mxu0 }
 0x36f   : > { %v7393_v33 = vpop.f32.mrf.mxu1 }
 0x374   : > { %v4697_v11 = vpop.f32.mrf.mxu0 }
 0x375   : > { %v5019_v41 = vpop.f32.mrf.mxu1  ;;  %v4744_v63 = vadd.f32 %v4697_v11, %v4392_v54 }
 0x376   : > { %v4699_v47 = vpop.f32.mrf.mxu0 }
 0x377   : > { %v5021_v62 = vpop.f32.mrf.mxu1  ;;  %v5066_v30 = vadd.f32 %v5019_v41, %v4744_v63  ;;  %v4745_v34 = vadd.f32 %v4699_v47, %v4394_v42  ;;  %v4416_v63 = vadd.f32 %v7365_v45, %v7363_v16 }
 0x378   : > { %v4703_v2 = vpop.f32.mrf.mxu0 }
 0x379   : > { %v5025_v53 = vpop.f32.mrf.mxu1  ;;  %v5094_v1 = vmul.f32 %v7396_v58, %v5066_v30  ;;  %v5067_v18 = vadd.f32 %v5021_v62, %v4745_v34  ;;  %v4746_v56 = vadd.f32 %v4703_v2, %v4398_v4 }
 0x37a   : > { %v4705_v23 = vpop.f32.mrf.mxu0 }
 0x37b   : > { %v5027_v12 = vpop.f32.mrf.mxu1  ;;  %v5122_v26 = vadd.f32 %v7399_v32, %v5094_v1  ;;  %v5095_v20 = vmul.f32 %v7402_v24, %v5067_v18  ;;  %v5068_v22 = vadd.f32 %v5025_v53, %v4746_v56  ;;  %v4747_v57 = vadd.f32 %v4705_v23, %v4400_v14 }
 0x37c   : > { %v4709_v35 = vpop.f32.mrf.mxu0  ;;  %v4418_v56 = vadd.f32 %v7369_v52, %v7367_v7  ;;  %v4422_v23 = vadd.f32 %v7373_v55, %v7371_v19 }
 0x37d   : > { %v5031_v3 = vpop.f32.mrf.mxu1  ;;  %v5138_v36 = vmax.f32 %v5122_v26, 0.0  ;;  %v5123_v38 = vadd.f32 %v7405_v29, %v5095_v20  ;;  %v5096_v43 = vmul.f32 %v7396_v58, %v5068_v22  ;;  %v5069_v15 = vadd.f32 %v5027_v12, %v4747_v57 }
 0x37e   : > { %v4748_v49 = vadd.f32 %v4709_v35, %v4404_v31  ;;  %v4711_v59 = vpop.f32.mrf.mxu0  ;;  %v4424_v35 = vadd.f32 %v7377_v39, %v7375_v28 }
 0x37f   : > { %v5033_v6 = vpop.f32.mrf.mxu1  ;;  %5659 = vst [vmem:[%s6522_s10 + $0x180] sm:$0xff] %v5138_v36  ;;  %v5139_v0 = vmax.f32 %v5123_v38, 0.0  ;;  %v5124_v54 = vadd.f32 %v7399_v32, %v5096_v43  ;;  %v5097_v13 = vmul.f32 %v7402_v24, %v5069_v15  ;;  %v4749_v48 = vadd.f32 %v4711_v59, %v4406_v8 }
 0x380   : > { %v5070_v9 = vadd.f32 %v5031_v3, %v4748_v49  ;;  %v4715_v51 = vpop.f32.mrf.mxu0  ;;  %v4428_v43 = vadd.f32 %v7381_v10, %v7379_v44 }
 0x381   : > { %v5037_v11 = vpop.f32.mrf.mxu1  ;;  %5660 = vst [vmem:[%s6522_s10 + $0x188] sm:$0xff] %v5139_v0  ;;  %v5140_v41 = vmax.f32 %v5124_v54, 0.0  ;;  %v5125_v60 = vadd.f32 %v7405_v29, %v5097_v13  ;;  %v5071_v5 = vadd.f32 %v5033_v6, %v4749_v48  ;;  %v4750_v42 = vadd.f32 %v4715_v51, %v4410_v17 }
 0x382   : > { %v5098_v47 = vmul.f32 %v7396_v58, %v5070_v9  ;;  %v4717_v62 = vpop.f32.mrf.mxu0  ;;  %v4430_v0 = vadd.f32 %v7385_v21, %v7383_v25 }
 0x383   : > { %v5039_v4 = vpop.f32.mrf.mxu1  ;;  %5661 = vst [vmem:[%s6522_s10 + $0x190] sm:$0xff] %v5140_v41  ;;  %v5141_v30 = vmax.f32 %v5125_v60, 0.0  ;;  %v5099_v46 = vmul.f32 %v7402_v24, %v5071_v5  ;;  %v5072_v37 = vadd.f32 %v5037_v11, %v4750_v42  ;;  %v4751_v34 = vadd.f32 %v4717_v62, %v4412_v61 }
 0x384   : > { %v5126_v2 = vadd.f32 %v7399_v32, %v5098_v47  ;;  %v4721_v53 = vpop.f32.mrf.mxu0  ;;  %v4434_v42 = vadd.f32 %v7389_v50, %v7387_v27 }
 0x385   : > { %v5043_v14 = vpop.f32.mrf.mxu1  ;;  %5662 = vst [vmem:[%s6522_s10 + $0x198] sm:$0xff] %v5141_v30  ;;  %v5127_v1 = vadd.f32 %v7405_v29, %v5099_v46  ;;  %v5100_v16 = vmul.f32 %v7396_v58, %v5072_v37  ;;  %v5073_v45 = vadd.f32 %v5039_v4, %v4751_v34  ;;  %v4752_v18 = vadd.f32 %v4721_v53, %v4416_v63 }
 0x386   : > { %v5142_v12 = vmax.f32 %v5126_v2, 0.0  ;;  %v4723_v26 = vpop.f32.mrf.mxu0  ;;  %v4436_v63 = vadd.f32 %v7393_v33, %v7391_v40 }
 0x387   : > { %v5045_v20 = vpop.f32.mrf.mxu1  ;;  %v5143_v22 = vmax.f32 %v5127_v1, 0.0  ;;  %v5128_v57 = vadd.f32 %v7399_v32, %v5100_v16  ;;  %v5101_v31 = vmul.f32 %v7402_v24, %v5073_v45  ;;  %v5074_v8 = vadd.f32 %v5043_v14, %v4752_v18 }
 0x388   : > { %5663 = vst [vmem:[%s6522_s10 + $0x1a0] sm:$0xff] %v5142_v12  ;;  %v4753_v3 = vadd.f32 %v4723_v26, %v4418_v56  ;;  %v4727_v36 = vpop.f32.mrf.mxu0 }
 0x389   : > { %v5049_v7 = vpop.f32.mrf.mxu1  ;;  %5664 = vst [vmem:[%s6522_s10 + $0x1a8] sm:$0xff] %v5143_v22  ;;  %v5144_v52 = vmax.f32 %v5128_v57, 0.0  ;;  %v5129_v19 = vadd.f32 %v7405_v29, %v5101_v31  ;;  %v5102_v55 = vmul.f32 %v7396_v58, %v5074_v8  ;;  %v4754_v38 = vadd.f32 %v4727_v36, %v4422_v23 }
 0x38a   : > { %v5075_v15 = vadd.f32 %v5045_v20, %v4753_v3  ;;  %v4729_v17 = vpop.f32.mrf.mxu0 }
 0x38b   : > { %v5051_v49 = vpop.f32.mrf.mxu1  ;;  %5665 = vst [vmem:[%s6522_s10 + $0x1b0] sm:$0xff] %v5144_v52  ;;  %v5145_v28 = vmax.f32 %v5129_v19, 0.0  ;;  %v5130_v39 = vadd.f32 %v7399_v32, %v5102_v55  ;;  %v5076_v59 = vadd.f32 %v5049_v7, %v4754_v38  ;;  %v4755_v6 = vadd.f32 %v4729_v17, %v4424_v35 }
 0x38c   : > { %v5103_v54 = vmul.f32 %v7402_v24, %v5075_v15  ;;  %v4733_v13 = vpop.f32.mrf.mxu0 }
 0x38d   : > { %v5055_v48 = vpop.f32.mrf.mxu1  ;;  %5666 = vst [vmem:[%s6522_s10 + $0x1b8] sm:$0xff] %v5145_v28  ;;  %v5146_v61 = vmax.f32 %v5130_v39, 0.0  ;;  %v5104_v44 = vmul.f32 %v7396_v58, %v5076_v59  ;;  %v5077_v10 = vadd.f32 %v5051_v49, %v4755_v6  ;;  %v4756_v9 = vadd.f32 %v4733_v13, %v4428_v43 }
 0x38e   : > { %v5131_v51 = vadd.f32 %v7405_v29, %v5103_v54  ;;  %v4735_v11 = vpop.f32.mrf.mxu0 }
 0x38f   : > { %v5057_v41 = vpop.f32.mrf.mxu1  ;;  %5667 = vst [vmem:[%s6522_s10 + $0x1c0] sm:$0xff] %v5146_v61  ;;  %v5132_v60 = vadd.f32 %v7399_v32, %v5104_v44  ;;  %v5105_v25 = vmul.f32 %v7402_v24, %v5077_v10  ;;  %v5078_v21 = vadd.f32 %v5055_v48, %v4756_v9  ;;  %v4757_v5 = vadd.f32 %v4735_v11, %v4430_v0 }
 0x390   : > { %v5147_v47 = vmax.f32 %v5131_v51, 0.0  ;;  %v4739_v62 = vpop.f32.mrf.mxu0 }
 0x391   : > { %v5061_v4 = vpop.f32.mrf.mxu1  ;;  %v5148_v30 = vmax.f32 %v5132_v60, 0.0  ;;  %v5133_v46 = vadd.f32 %v7405_v29, %v5105_v25  ;;  %v5106_v37 = vmul.f32 %v7396_v58, %v5078_v21  ;;  %v5079_v34 = vadd.f32 %v5057_v41, %v4757_v5 }
 0x392   : > { %5668 = vst [vmem:[%s6522_s10 + $0x1c8] sm:$0xff] %v5147_v47  ;;  %v4758_v2 = vadd.f32 %v4739_v62, %v4434_v42  ;;  %v4741_v53 = vpop.f32.mrf.mxu0 }
 0x393   : > { %5669 = vst [vmem:[%s6522_s10 + $0x1d0] sm:$0xff] %v5148_v30  ;;  %v5149_v27 = vmax.f32 %v5133_v46, 0.0  ;;  %v5134_v50 = vadd.f32 %v7399_v32, %v5106_v37  ;;  %v5107_v40 = vmul.f32 %v7402_v24, %v5079_v34  ;;  %v4759_v33 = vadd.f32 %v4741_v53, %v4436_v63  ;;  %v5063_v1 = vpop.f32.mrf.mxu1 }
 0x394   : > { %v5080_v14 = vadd.f32 %v5061_v4, %v4758_v2 }
 0x395   : > { %5670 = vst [vmem:[%s6522_s10 + $0x1d8] sm:$0xff] %v5149_v27  ;;  %v5150_v16 = vmax.f32 %v5134_v50, 0.0  ;;  %v5135_v45 = vadd.f32 %v7405_v29, %v5107_v40  ;;  %v5081_v18 = vadd.f32 %v5063_v1, %v4759_v33 }
 0x396   : > { %v5108_v56 = vmul.f32 %v7396_v58, %v5080_v14 }
 0x397   : > { %5671 = vst [vmem:[%s6522_s10 + $0x1e0] sm:$0xff] %v5150_v16  ;;  %v5151_v23 = vmax.f32 %v5135_v45, 0.0  ;;  %v5109_v12 = vmul.f32 %v7402_v24, %v5081_v18 }
 0x398   : > { %v5136_v26 = vadd.f32 %v7399_v32, %v5108_v56 }
 0x399   : > { %5672 = vst [vmem:[%s6522_s10 + $0x1e8] sm:$0xff] %v5151_v23  ;;  %v5137_v20 = vadd.f32 %v7405_v29, %v5109_v12 }
 0x39a   : > { %v5152_v22 = vmax.f32 %v5136_v26, 0.0 }
 0x39b   : > { %v5153_v58 = vmax.f32 %v5137_v20, 0.0 }
 0x39c   : > { %5673 = vst [vmem:[%s6522_s10 + $0x1f0] sm:$0xff] %v5152_v22 }
 0x39d   : > { %5674 = vst [vmem:[%s6522_s10 + $0x1f8] sm:$0xff] %v5153_v58 }
 0x39e   : > { %5849 = shalt.err (!%p5846_p6)
}
 0x39f   : > { %s5850_s27 = scalar_lea.hbm %s7475_s20, 8192  ;;  %s5854_s6 = scalar_lea.hbm %s7527_s4, 16384 }
 0x3a0   : > { %p5851_p10 = scmp.ne.s32.totalorder %s7475_s20, %s5850_s27  ;;  %p5855_p11 = scmp.lt.s32.totalorder %s7475_s20, %s7527_s4 }
 0x3a1   : > { %p5856_p0 = scmp.lt.s32.totalorder %s5854_s6, %s5850_s27 }
 0x3a2   : > { %p5852_p8 = pnand %p5851_p10, %p7540_p2 }
 0x3a3   : > { %p5857_p12 = por %p5856_p0, %p5855_p11 }
 0x3a4   : > { %p5853_p13 = pneg %p5852_p8 }
 0x3a6   : > { %p5858_p1 = pnand %p5857_p12, %p5853_p13 }
 0x3a8   : > { %5861 = shalt.err (!%p5858_p1)
}
 0x3a9   : > { %s5912_s9 = smov 256   ;;  %s5913_s10 = smov 16  }
 0x3aa   : > { %5696 = dma.vmem_to_hbm [thread:$0]  (%p7540_p2), %s7477_s12, 8192, %s7475_s20, %s7483_s19, %s5912_s9, %s5912_s9, %s5913_s10  }
 0x3ab PF: > { %p5718_p9 = scmp.ge.s32.totalorder %s5904_s18, 2  ;;  %s5201_s11 = sand.u32 1, %s5892_s15  }
 0x3ac   : > { %p7541_p3 = scmp.ne.s32.totalorder %s7532_s26, 0  ;;  %s5202_s13 = scalar_lea.sflag [#allocation4], %s5201_s11 }
 0x3ae   : > { %p5709_p4 = pnand %p5718_p9, %p7541_p3 }
 0x3b0   : > { %p5710_p7 = pneg %p5709_p4 }
 0x3b2   : > { %5887 = dma.done.wait (%p5710_p7), %s5202_s13, 8192  }
 0x3b3   : > { %5889 = vsyncadd (%p5710_p7), %s5202_s13, 4294959104  ;;  %p16_p5 = scmp.ge.s32.totalorder %s5964_s21, 4   ;;  %s7542_s15 = smov %s5896_s16 }
 0x3b4   : > { %s7543_s16 = smov %s5900_s17  ;;  %s7544_s17 = smov %s5975_s24 }
 0x3b5   : > { %s7545_s18 = smov %s5964_s21  ;;  %18 = sbr.rel (!%p16_p5) target bundleno = 5 (0x5), region = 104 }
 0x3ba   :  { %5207 = vsyncpa [#allocation3], 1 }
 0x3bb   :  { %5209 = vsyncpa [#allocation3 + $0x1], 1 }
 0x3bc   :  { %5210 = vsyncpa [#allocation6], 1 }
 0x3bd   :  { %5211 = vsyncpa [#allocation4], 1 }
 0x3be   :  { %5213 = vsyncpa [#allocation4 + $0x1], 1 }

</bundles_post_ra>
